<compile_context>
chip_gen: v7x
topology: tpu7x:2x2x1
jax: 0.10.0
libtpu: 0.0.40
codegen_flags: <defaults>
</compile_context>

<pallas_src>
import functools

import jax
import jax.numpy as jnp
from jax.experimental import pallas as pl
from jax.experimental.pallas import tpu as pltpu

BN_EPS = 1e-5
ACT_DTYPE = jnp.bfloat16

GROWTH_RATE = 32
BN_SIZE = 4
NUM_LAYERS_BLOCK1 = 6
INIT_FEATURES = 64


# ------------------------------------------------------------------ Pallas kernels

def _conv1x1_bn_kernel(x_ref, w_ref, si_ref, bi_ref, so_ref, bo_ref, o_ref):
    """relu(bn_out( relu(bn_in(x)) @ w )): 1x1 conv with BN+ReLU fused on both sides."""
    x = x_ref[...].astype(jnp.float32)
    xa = jnp.maximum(x * si_ref[...] + bi_ref[...], 0.0).astype(ACT_DTYPE)
    acc = jnp.dot(xa, w_ref[...], preferred_element_type=jnp.float32)
    y = jnp.maximum(acc * so_ref[...] + bo_ref[...], 0.0)
    o_ref[...] = y.astype(o_ref.dtype)


def _conv_tap_kernel(x_ref, w_ref, so_ref, bo_ref, o_ref, *, kh, kw, ho, wo, relu_out):
    """Stride-1 conv as a sum over kh*kw shifted-slice matmuls (no im2col in HBM).

    x_ref : (1, ho+kh-1, wo+kw-1, Cin)  padded NHWC block held in VMEM
    w_ref : (kh*kw, Cin, Cout)          per-tap weight matrices (bf16)
    so/bo : (1, Cout)                   folded BN affine on the output (identity = 1, 0)
    o_ref : (1, ho*wo, Cout)            flattened spatial output (reshaped outside)
    """
    cin = x_ref.shape[-1]
    cout = o_ref.shape[-1]
    acc = jnp.zeros((ho * wo, cout), jnp.float32)
    for dy in range(kh):
        for dx in range(kw):
            patch = x_ref[0, pl.ds(dy, ho), pl.ds(dx, wo), :].reshape(ho * wo, cin)
            acc = acc + jnp.dot(patch, w_ref[dy * kw + dx],
                                preferred_element_type=jnp.float32)
    y = acc * so_ref[...] + bo_ref[...]
    if relu_out:
        y = jnp.maximum(y, 0.0)
    o_ref[0] = y.astype(o_ref.dtype)


def _maxpool3x3s2_kernel(x_ref, o_ref, *, ho, wo):
    """3x3 / stride-2 / pad-1 max pool from a parity-split (space-to-depth) padded input.

    x_ref : (4, ho+1, wo+1, C) where row (py*2+px) holds x_pad[2i+py, 2j+px]
    o_ref : (1, ho, wo, C)
    """
    out = None
    for dy in range(3):
        py, a = dy % 2, dy // 2
        for dx in range(3):
            px, b = dx % 2, dx // 2
            v = x_ref[py * 2 + px, pl.ds(a, ho), pl.ds(b, wo), :]
            out = v if out is None else jnp.maximum(out, v)
    o_ref[0] = out.astype(o_ref.dtype)


def _transition_kernel(x_ref, w_ref, si_ref, bi_ref, p_ref, o_ref):
    """transition1 fused: relu(bn(x)) @ w, then avg-pool via a constant pooling matrix."""
    _, h, w, cin = x_ref.shape
    x = x_ref[0].reshape(h * w, cin).astype(jnp.float32)
    xa = jnp.maximum(x * si_ref[...] + bi_ref[...], 0.0).astype(ACT_DTYPE)
    y = jnp.dot(xa, w_ref[...], preferred_element_type=jnp.float32)        # (h*w, Cout)
    pooled = jnp.dot(p_ref[...], y, preferred_element_type=jnp.float32)    # (ho*wo, Cout)
    o_ref[0] = pooled.astype(o_ref.dtype)


# ------------------------------------------------------------------ pallas_call wrappers

def _row_tile(m):
    assert m % 8 == 0, m
    for t in (512, 256, 128, 64, 32, 16, 8):
        if m % t == 0 and m // t >= 2:   # >=2 grid steps (dual-TC on v7x)
            return t
    return m


def conv1x1_bn(x2d, w, si, bi, so, bo):
    m, k = x2d.shape
    cout = w.shape[1]
    tm = _row_tile(m)
    return pl.pallas_call(
        _conv1x1_bn_kernel,
        out_shape=jax.ShapeDtypeStruct((m, cout), ACT_DTYPE),
        grid_spec=pltpu.PrefetchScalarGridSpec(
            num_scalar_prefetch=0,
            grid=(m // tm,),
            in_specs=[
                pl.BlockSpec((tm, k), lambda i: (i, 0)),
                pl.BlockSpec((k, cout), lambda i: (0, 0)),
                pl.BlockSpec((1, k), lambda i: (0, 0)),
                pl.BlockSpec((1, k), lambda i: (0, 0)),
                pl.BlockSpec((1, cout), lambda i: (0, 0)),
                pl.BlockSpec((1, cout), lambda i: (0, 0)),
            ],
            out_specs=pl.BlockSpec((tm, cout), lambda i: (i, 0)),
        ),
        compiler_params=pltpu.CompilerParams(dimension_semantics=("parallel",)),
    )(x2d, w, si, bi, so, bo)


def conv_taps(x, w_taps, so, bo, *, kh, kw, relu_out):
    n, hp, wp, cin = x.shape
    ntaps, cin2, cout = w_taps.shape
    assert ntaps == kh * kw and cin2 == cin
    ho, wo = hp - kh + 1, wp - kw + 1
    kern = functools.partial(_conv_tap_kernel, kh=kh, kw=kw, ho=ho, wo=wo,
                             relu_out=relu_out)
    out = pl.pallas_call(
        kern,
        out_shape=jax.ShapeDtypeStruct((n, ho * wo, cout), ACT_DTYPE),
        grid_spec=pltpu.PrefetchScalarGridSpec(
            num_scalar_prefetch=0,
            grid=(n,),
            in_specs=[
                pl.BlockSpec((1, hp, wp, cin), lambda i: (i, 0, 0, 0)),
                pl.BlockSpec((ntaps, cin, cout), lambda i: (0, 0, 0)),
                pl.BlockSpec((1, cout), lambda i: (0, 0)),
                pl.BlockSpec((1, cout), lambda i: (0, 0)),
            ],
            out_specs=pl.BlockSpec((1, ho * wo, cout), lambda i: (i, 0, 0)),
        ),
        compiler_params=pltpu.CompilerParams(dimension_semantics=("parallel",)),
    )(x, w_taps, so, bo)
    return out.reshape(n, ho, wo, cout)


def maxpool_3x3_s2_p1(x):
    n, h, w, c = x.shape
    assert h % 2 == 0 and w % 2 == 0
    ho, wo = h // 2, w // 2
    hp, wp = ho + 1, wo + 1
    xpad = jnp.pad(x, ((0, 0), (1, 1), (1, 1), (0, 0)), constant_values=-jnp.inf)
    # parity split (space-to-depth, 1x traffic): [n, py, px, i, j, c] = xpad[n, 2i+py, 2j+px, c]
    xpar = xpad.reshape(n, hp, 2, wp, 2, c).transpose(0, 2, 4, 1, 3, 5)
    xpar = xpar.reshape(n * 4, hp, wp, c)
    kern = functools.partial(_maxpool3x3s2_kernel, ho=ho, wo=wo)
    return pl.pallas_call(
        kern,
        out_shape=jax.ShapeDtypeStruct((n, ho, wo, c), x.dtype),
        grid_spec=pltpu.PrefetchScalarGridSpec(
            num_scalar_prefetch=0,
            grid=(n,),
            in_specs=[pl.BlockSpec((4, hp, wp, c), lambda i: (i, 0, 0, 0))],
            out_specs=pl.BlockSpec((1, ho, wo, c), lambda i: (i, 0, 0, 0)),
        ),
        compiler_params=pltpu.CompilerParams(dimension_semantics=("parallel",)),
    )(xpar)


def _avgpool_matrix(h, w, k):
    """(ho*wo, h*w) averaging matrix for a non-overlapping k x k pool."""
    ho, wo = h // k, w // k
    ys = jnp.arange(h * w) // w
    xs = jnp.arange(h * w) % w
    owner = (ys // k) * wo + (xs // k)
    p = (owner[None, :] == jnp.arange(ho * wo)[:, None]).astype(jnp.float32)
    return p / float(k * k)


def transition_avgpool(feats, wmat, si, bi, pool_k):
    n, h, w, cin = feats.shape
    cout = wmat.shape[1]
    assert h % pool_k == 0 and w % pool_k == 0
    ho, wo = h // pool_k, w // pool_k
    pmat = _avgpool_matrix(h, w, pool_k)
    out = pl.pallas_call(
        _transition_kernel,
        out_shape=jax.ShapeDtypeStruct((n, ho * wo, cout), jnp.float32),
        grid_spec=pltpu.PrefetchScalarGridSpec(
            num_scalar_prefetch=0,
            grid=(n,),
            in_specs=[
                pl.BlockSpec((1, h, w, cin), lambda i: (i, 0, 0, 0)),
                pl.BlockSpec((cin, cout), lambda i: (0, 0)),
                pl.BlockSpec((1, cin), lambda i: (0, 0)),
                pl.BlockSpec((1, cin), lambda i: (0, 0)),
                pl.BlockSpec((ho * wo, h * w), lambda i: (0, 0)),
            ],
            out_specs=pl.BlockSpec((1, ho * wo, cout), lambda i: (i, 0, 0)),
        ),
        compiler_params=pltpu.CompilerParams(dimension_semantics=("parallel",)),
    )(feats, wmat, si, bi, pmat)
    return out.reshape(n, ho, wo, cout)


# ------------------------------------------------------------------ param folding / layout

def _fold_bn(bn, width=None):
    """Eval-mode BN -> per-channel (scale, bias) f32 rows; zero-padded to `width` channels."""
    gamma, beta, mean, var = bn
    scale = gamma / jnp.sqrt(var + BN_EPS)
    bias = beta - mean * scale
    c = scale.shape[0]
    if width is not None and width > c:
        scale = jnp.pad(scale, (0, width - c))
        bias = jnp.pad(bias, (0, width - c))
    return (scale.reshape(1, -1).astype(jnp.float32),
            bias.reshape(1, -1).astype(jnp.float32))


def _w_1x1(w_torch, k_pad=None):
    """(Cout, Cin, 1, 1) -> (K, Cout) matmul weight (rows zero-padded to k_pad), bf16."""
    cout, cin = w_torch.shape[0], w_torch.shape[1]
    wmat = w_torch.reshape(cout, cin).T
    if k_pad is not None and k_pad > cin:
        wmat = jnp.pad(wmat, ((0, k_pad - cin), (0, 0)))
    return wmat.astype(ACT_DTYPE)


def _w_taps(w_torch):
    """(Cout, Cin, kh, kw) -> (kh*kw, Cin, Cout) per-tap matrices, bf16."""
    cout, cin, kh, kw = w_torch.shape
    return jnp.transpose(w_torch, (2, 3, 1, 0)).reshape(kh * kw, cin, cout).astype(ACT_DTYPE)


def _w_conv0_s2d(w_torch):
    """7x7/stride-2 stem weights -> 4x4 stride-1 taps over the space-to-depth input.

    s2d channel layout: k = (py*2 + px)*Cin + c with x_s2d[y, x, k] = x_pad[2y+py, 2x+px, c].
    """
    cout, cin, kh, kw = w_torch.shape                       # (64, 3, 7, 7)
    wpad = jnp.pad(w_torch, ((0, 0), (0, 0), (0, 8 - kh), (0, 8 - kw)))
    wpad = wpad.reshape(cout, cin, 4, 2, 4, 2)              # [o, c, a, py, b, px]
    wpad = jnp.transpose(wpad, (2, 4, 3, 5, 1, 0))          # [a, b, py, px, c, o]
    return wpad.reshape(16, 4 * cin, cout).astype(ACT_DTYPE)  # (16, 12, Cout)


# ------------------------------------------------------------------ model

def init_params(key):
    keys = iter(jax.random.split(key, 128))

    def conv_w(cout, cin, kh, kw):
        return 0.05 * jax.random.normal(next(keys), (cout, cin, kh, kw), jnp.float32)

    def bn_p(c):
        gamma = 1.0 + 0.1 * jax.random.normal(next(keys), (c,), jnp.float32)
        beta = 0.1 * jax.random.normal(next(keys), (c,), jnp.float32)
        mean = 0.1 * jax.random.normal(next(keys), (c,), jnp.float32)
        var = jax.random.uniform(next(keys), (c,), jnp.float32, 0.5, 1.5)
        return (gamma, beta, mean, var)

    params = {
        "conv0_w": conv_w(INIT_FEATURES, 3, 7, 7),          # Conv2d(3, 64, 7, s2, p3)
        "norm0": bn_p(INIT_FEATURES),
        "dense": [],
    }
    c_in = INIT_FEATURES
    for _ in range(NUM_LAYERS_BLOCK1):
        layer = {
            "norm1": bn_p(c_in),
            "conv1_w": conv_w(BN_SIZE * GROWTH_RATE, c_in, 1, 1),         # 1x1 bottleneck
            "norm2": bn_p(BN_SIZE * GROWTH_RATE),
            "conv2_w": conv_w(GROWTH_RATE, BN_SIZE * GROWTH_RATE, 3, 3),  # 3x3, pad 1
        }
        params["dense"].append(layer)
        c_in += GROWTH_RATE
    assert c_in == 256
    params["trans_norm"] = bn_p(c_in)
    params["trans_conv_w"] = conv_w(64, c_in, 1, 1)          # modified: Conv2d(256, 64, 1)
    return params


def input_conv_forward(x_nchw, params):
    # NCHW in -> NHWC bf16 internal -> NCHW f32 out.
    x = jnp.transpose(x_nchw, (0, 2, 3, 1)).astype(ACT_DTYPE)
    n, h, w, _ = x.shape
    assert h % 2 == 0 and w % 2 == 0

    # ---- stem: Conv2d(3,64,7,s2,p3) + BN0 + ReLU as a space-to-depth 4x4 stride-1 conv
    xpad = jnp.pad(x, ((0, 0), (3, 3), (3, 3), (0, 0)))                   # (n, h+6, w+6, 3)
    hs, ws = (h + 6) // 2, (w + 6) // 2
    xs2d = xpad.reshape(n, hs, 2, ws, 2, 3).transpose(0, 1, 3, 2, 4, 5).reshape(n, hs, ws, 12)
    s0, b0 = _fold_bn(params["norm0"])
    w0 = _w_conv0_s2d(params["conv0_w"])
    y = conv_taps(xs2d, w0, s0, b0, kh=4, kw=4, relu_out=True)            # (n, h/2, w/2, 64)

    # ---- pool0: MaxPool2d(3, stride=2, padding=1)
    y = maxpool_3x3_s2_p1(y)                                              # (n, h/4, w/4, 64)

    # ---- denseblock1: 6 layers, growth 32, fixed lane-dense 256-channel feature buffer
    hb, wb = y.shape[1], y.shape[2]
    m = n * hb * wb
    c_total = INIT_FEATURES + GROWTH_RATE * NUM_LAYERS_BLOCK1             # 256
    feats = jnp.zeros((n, hb, wb, c_total), ACT_DTYPE)
    feats = feats.at[..., :INIT_FEATURES].set(y)
    ones_g = jnp.ones((1, GROWTH_RATE), jnp.float32)
    zeros_g = jnp.zeros((1, GROWTH_RATE), jnp.float32)

    c_in = INIT_FEATURES
    for layer in params["dense"]:
        si, bi = _fold_bn(layer["norm1"], width=c_total)   # zero scale/bias beyond c_in
        so, bo = _fold_bn(layer["norm2"])
        w1 = _w_1x1(layer["conv1_w"], k_pad=c_total)       # (256, 128), zero rows >= c_in
        w2 = _w_taps(layer["conv2_w"])                     # (9, 128, 32)

        # 1x1 bottleneck: relu(bn2( relu(bn1(feats)) @ w1 )) -- both BNs fused in-kernel
        b = conv1x1_bn(feats.reshape(m, c_total), w1, si, bi, so, bo)     # (m, 128)
        b = b.reshape(n, hb, wb, BN_SIZE * GROWTH_RATE)

        # 3x3 conv, zero pad 1 (input is already post-BN/ReLU, matching PyTorch order)
        bpad = jnp.pad(b, ((0, 0), (1, 1), (1, 1), (0, 0)))
        ynew = conv_taps(bpad, w2, ones_g, zeros_g, kh=3, kw=3, relu_out=False)

        # "concat" = in-place write of the 32 new channels into the fixed buffer
        feats = jax.lax.dynamic_update_slice(feats, ynew, (0, 0, 0, c_in))
        c_in += GROWTH_RATE

    # ---- transition1: BN -> ReLU -> Conv2d(256,64,1) -> AvgPool2d(4,4), fully fused
    st, bt = _fold_bn(params["trans_norm"])
    wt = _w_1x1(params["trans_conv_w"])                                   # (256, 64)
    out = transition_avgpool(feats, wt, st, bt, pool_k=4)                 # (n, hb/4, wb/4, 64)

    return jnp.transpose(out, (0, 3, 1, 2))                               # NCHW, f32


if __name__ == "__main__":
    key = jax.random.PRNGKey(0)
    k_x, k_p = jax.random.split(key)
    x = jax.random.normal(k_x, (2, 3, 32, 32), jnp.float32)   # NCHW, like PyTorch
    params = init_params(k_p)

    fwd = jax.jit(input_conv_forward)
    out = jax.block_until_ready(fwd(x, params))

    assert out.shape == (2, 64, 2, 2), out.shape
    assert bool(jnp.all(jnp.isfinite(out)))
    print("KERNEL_OK")
</pallas_src>

<mosaic_0001>
module attributes {stable_mosaic.version = 11 : i64} {
  func.func @_conv_tap_kernel(%arg0: i32, %arg1: memref<1x19x19x12xbf16, #tpu.memory_space<vmem>>, %arg2: memref<16x12x64xbf16, #tpu.memory_space<vmem>>, %arg3: memref<1x64xf32, #tpu.memory_space<vmem>>, %arg4: memref<1x64xf32, #tpu.memory_space<vmem>>, %arg5: memref<1x256x64xbf16, #tpu.memory_space<vmem>>) attributes {dimension_semantics = [#tpu.dimension_semantics<parallel>], iteration_bounds = array<i64: 2>, scalar_prefetch = 0 : i64, scratch_operands = 0 : i64, tpu.core_type = #tpu.core_type<tc>, window_params = [{transform_indices = @transform_0, window_bounds = array<i64: 1, 19, 19, 12>}, {pipeline_mode = #tpu.pipeline_mode<synchronous>, transform_indices = @transform_1, window_bounds = array<i64: 16, 12, 64>}, {pipeline_mode = #tpu.pipeline_mode<synchronous>, transform_indices = @transform_2, window_bounds = array<i64: 1, 64>}, {pipeline_mode = #tpu.pipeline_mode<synchronous>, transform_indices = @transform_3, window_bounds = array<i64: 1, 64>}, {transform_indices = @transform_4, window_bounds = array<i64: 1, 256, 64>}]} {
    %cst = arith.constant 0.000000e+00 : f32
    %0 = vector.broadcast %cst : f32 to vector<256x64xf32>
    %c0 = arith.constant 0 : index
    %c0_0 = arith.constant 0 : index
    %c0_1 = arith.constant 0 : index
    %c0_2 = arith.constant 0 : index
    %1 = vector.load %arg1[%c0, %c0_0, %c0_1, %c0_2] : memref<1x19x19x12xbf16, #tpu.memory_space<vmem>>, vector<1x16x16x12xbf16>
    %2 = vector.shape_cast %1 : vector<1x16x16x12xbf16> to vector<16x16x12xbf16>
    %3 = vector.shape_cast %2 : vector<16x16x12xbf16> to vector<256x12xbf16>
    %c0_3 = arith.constant 0 : index
    %c0_4 = arith.constant 0 : index
    %c0_5 = arith.constant 0 : index
    %4 = vector.load %arg2[%c0_3, %c0_4, %c0_5] : memref<16x12x64xbf16, #tpu.memory_space<vmem>>, vector<1x12x64xbf16>
    %5 = vector.shape_cast %4 : vector<1x12x64xbf16> to vector<12x64xbf16>
    %cst_6 = arith.constant dense<0.000000e+00> : vector<256x64xf32>
    %6 = tpu.matmul %3, %5, %cst_6 {dimension_numbers = #tpu.dot_dimension_numbers<[1], [0], [0], [1], [0, 0, 1, 1], [], []>} : vector<256x12xbf16>, vector<12x64xbf16>, vector<256x64xf32> -> vector<256x64xf32>
    %7 = arith.addf %0, %6 : vector<256x64xf32>
    %c0_7 = arith.constant 0 : index
    %c0_8 = arith.constant 0 : index
    %c1 = arith.constant 1 : index
    %c0_9 = arith.constant 0 : index
    %8 = vector.load %arg1[%c0_7, %c0_8, %c1, %c0_9] : memref<1x19x19x12xbf16, #tpu.memory_space<vmem>>, vector<1x16x16x12xbf16>
    %9 = vector.shape_cast %8 : vector<1x16x16x12xbf16> to vector<16x16x12xbf16>
    %10 = vector.shape_cast %9 : vector<16x16x12xbf16> to vector<256x12xbf16>
    %c1_10 = arith.constant 1 : index
    %c0_11 = arith.constant 0 : index
    %c0_12 = arith.constant 0 : index
    %11 = vector.load %arg2[%c1_10, %c0_11, %c0_12] : memref<16x12x64xbf16, #tpu.memory_space<vmem>>, vector<1x12x64xbf16>
    %12 = vector.shape_cast %11 : vector<1x12x64xbf16> to vector<12x64xbf16>
    %cst_13 = arith.constant dense<0.000000e+00> : vector<256x64xf32>
    %13 = tpu.matmul %10, %12, %cst_13 {dimension_numbers = #tpu.dot_dimension_numbers<[1], [0], [0], [1], [0, 0, 1, 1], [], []>} : vector<256x12xbf16>, vector<12x64xbf16>, vector<256x64xf32> -> vector<256x64xf32>
    %14 = arith.addf %7, %13 : vector<256x64xf32>
    %c0_14 = arith.constant 0 : index
    %c0_15 = arith.constant 0 : index
    %c2 = arith.constant 2 : index
    %c0_16 = arith.constant 0 : index
    %15 = vector.load %arg1[%c0_14, %c0_15, %c2, %c0_16] : memref<1x19x19x12xbf16, #tpu.memory_space<vmem>>, vector<1x16x16x12xbf16>
    %16 = vector.shape_cast %15 : vector<1x16x16x12xbf16> to vector<16x16x12xbf16>
    %17 = vector.shape_cast %16 : vector<16x16x12xbf16> to vector<256x12xbf16>
    %c2_17 = arith.constant 2 : index
    %c0_18 = arith.constant 0 : index
    %c0_19 = arith.constant 0 : index
    %18 = vector.load %arg2[%c2_17, %c0_18, %c0_19] : memref<16x12x64xbf16, #tpu.memory_space<vmem>>, vector<1x12x64xbf16>
    %19 = vector.shape_cast %18 : vector<1x12x64xbf16> to vector<12x64xbf16>
    %cst_20 = arith.constant dense<0.000000e+00> : vector<256x64xf32>
    %20 = tpu.matmul %17, %19, %cst_20 {dimension_numbers = #tpu.dot_dimension_numbers<[1], [0], [0], [1], [0, 0, 1, 1], [], []>} : vector<256x12xbf16>, vector<12x64xbf16>, vector<256x64xf32> -> vector<256x64xf32>
    %21 = arith.addf %14, %20 : vector<256x64xf32>
    %c0_21 = arith.constant 0 : index
    %c0_22 = arith.constant 0 : index
    %c3 = arith.constant 3 : index
    %c0_23 = arith.constant 0 : index
    %22 = vector.load %arg1[%c0_21, %c0_22, %c3, %c0_23] : memref<1x19x19x12xbf16, #tpu.memory_space<vmem>>, vector<1x16x16x12xbf16>
    %23 = vector.shape_cast %22 : vector<1x16x16x12xbf16> to vector<16x16x12xbf16>
    %24 = vector.shape_cast %23 : vector<16x16x12xbf16> to vector<256x12xbf16>
    %c3_24 = arith.constant 3 : index
    %c0_25 = arith.constant 0 : index
    %c0_26 = arith.constant 0 : index
    %25 = vector.load %arg2[%c3_24, %c0_25, %c0_26] : memref<16x12x64xbf16, #tpu.memory_space<vmem>>, vector<1x12x64xbf16>
    %26 = vector.shape_cast %25 : vector<1x12x64xbf16> to vector<12x64xbf16>
    %cst_27 = arith.constant dense<0.000000e+00> : vector<256x64xf32>
    %27 = tpu.matmul %24, %26, %cst_27 {dimension_numbers = #tpu.dot_dimension_numbers<[1], [0], [0], [1], [0, 0, 1, 1], [], []>} : vector<256x12xbf16>, vector<12x64xbf16>, vector<256x64xf32> -> vector<256x64xf32>
    %28 = arith.addf %21, %27 : vector<256x64xf32>
    %c0_28 = arith.constant 0 : index
    %c1_29 = arith.constant 1 : index
    %c0_30 = arith.constant 0 : index
    %c0_31 = arith.constant 0 : index
    %29 = vector.load %arg1[%c0_28, %c1_29, %c0_30, %c0_31] : memref<1x19x19x12xbf16, #tpu.memory_space<vmem>>, vector<1x16x16x12xbf16>
    %30 = vector.shape_cast %29 : vector<1x16x16x12xbf16> to vector<16x16x12xbf16>
    %31 = vector.shape_cast %30 : vector<16x16x12xbf16> to vector<256x12xbf16>
    %c4 = arith.constant 4 : index
    %c0_32 = arith.constant 0 : index
    %c0_33 = arith.constant 0 : index
    %32 = vector.load %arg2[%c4, %c0_32, %c0_33] : memref<16x12x64xbf16, #tpu.memory_space<vmem>>, vector<1x12x64xbf16>
    %33 = vector.shape_cast %32 : vector<1x12x64xbf16> to vector<12x64xbf16>
    %cst_34 = arith.constant dense<0.000000e+00> : vector<256x64xf32>
    %34 = tpu.matmul %31, %33, %cst_34 {dimension_numbers = #tpu.dot_dimension_numbers<[1], [0], [0], [1], [0, 0, 1, 1], [], []>} : vector<256x12xbf16>, vector<12x64xbf16>, vector<256x64xf32> -> vector<256x64xf32>
    %35 = arith.addf %28, %34 : vector<256x64xf32>
    %c0_35 = arith.constant 0 : index
    %c1_36 = arith.constant 1 : index
    %c1_37 = arith.constant 1 : index
    %c0_38 = arith.constant 0 : index
    %36 = vector.load %arg1[%c0_35, %c1_36, %c1_37, %c0_38] : memref<1x19x19x12xbf16, #tpu.memory_space<vmem>>, vector<1x16x16x12xbf16>
    %37 = vector.shape_cast %36 : vector<1x16x16x12xbf16> to vector<16x16x12xbf16>
    %38 = vector.shape_cast %37 : vector<16x16x12xbf16> to vector<256x12xbf16>
    %c5 = arith.constant 5 : index
    %c0_39 = arith.constant 0 : index
    %c0_40 = arith.constant 0 : index
    %39 = vector.load %arg2[%c5, %c0_39, %c0_40] : memref<16x12x64xbf16, #tpu.memory_space<vmem>>, vector<1x12x64xbf16>
    %40 = vector.shape_cast %39 : vector<1x12x64xbf16> to vector<12x64xbf16>
    %cst_41 = arith.constant dense<0.000000e+00> : vector<256x64xf32>
    %41 = tpu.matmul %38, %40, %cst_41 {dimension_numbers = #tpu.dot_dimension_numbers<[1], [0], [0], [1], [0, 0, 1, 1], [], []>} : vector<256x12xbf16>, vector<12x64xbf16>, vector<256x64xf32> -> vector<256x64xf32>
    %42 = arith.addf %35, %41 : vector<256x64xf32>
    %c0_42 = arith.constant 0 : index
    %c1_43 = arith.constant 1 : index
    %c2_44 = arith.constant 2 : index
    %c0_45 = arith.constant 0 : index
    %43 = vector.load %arg1[%c0_42, %c1_43, %c2_44, %c0_45] : memref<1x19x19x12xbf16, #tpu.memory_space<vmem>>, vector<1x16x16x12xbf16>
    %44 = vector.shape_cast %43 : vector<1x16x16x12xbf16> to vector<16x16x12xbf16>
    %45 = vector.shape_cast %44 : vector<16x16x12xbf16> to vector<256x12xbf16>
    %c6 = arith.constant 6 : index
    %c0_46 = arith.constant 0 : index
    %c0_47 = arith.constant 0 : index
    %46 = vector.load %arg2[%c6, %c0_46, %c0_47] : memref<16x12x64xbf16, #tpu.memory_space<vmem>>, vector<1x12x64xbf16>
    %47 = vector.shape_cast %46 : vector<1x12x64xbf16> to vector<12x64xbf16>
    %cst_48 = arith.constant dense<0.000000e+00> : vector<256x64xf32>
    %48 = tpu.matmul %45, %47, %cst_48 {dimension_numbers = #tpu.dot_dimension_numbers<[1], [0], [0], [1], [0, 0, 1, 1], [], []>} : vector<256x12xbf16>, vector<12x64xbf16>, vector<256x64xf32> -> vector<256x64xf32>
    %49 = arith.addf %42, %48 : vector<256x64xf32>
    %c0_49 = arith.constant 0 : index
    %c1_50 = arith.constant 1 : index
    %c3_51 = arith.constant 3 : index
    %c0_52 = arith.constant 0 : index
    %50 = vector.load %arg1[%c0_49, %c1_50, %c3_51, %c0_52] : memref<1x19x19x12xbf16, #tpu.memory_space<vmem>>, vector<1x16x16x12xbf16>
    %51 = vector.shape_cast %50 : vector<1x16x16x12xbf16> to vector<16x16x12xbf16>
    %52 = vector.shape_cast %51 : vector<16x16x12xbf16> to vector<256x12xbf16>
    %c7 = arith.constant 7 : index
    %c0_53 = arith.constant 0 : index
    %c0_54 = arith.constant 0 : index
    %53 = vector.load %arg2[%c7, %c0_53, %c0_54] : memref<16x12x64xbf16, #tpu.memory_space<vmem>>, vector<1x12x64xbf16>
    %54 = vector.shape_cast %53 : vector<1x12x64xbf16> to vector<12x64xbf16>
    %cst_55 = arith.constant dense<0.000000e+00> : vector<256x64xf32>
    %55 = tpu.matmul %52, %54, %cst_55 {dimension_numbers = #tpu.dot_dimension_numbers<[1], [0], [0], [1], [0, 0, 1, 1], [], []>} : vector<256x12xbf16>, vector<12x64xbf16>, vector<256x64xf32> -> vector<256x64xf32>
    %56 = arith.addf %49, %55 : vector<256x64xf32>
    %c0_56 = arith.constant 0 : index
    %c2_57 = arith.constant 2 : index
    %c0_58 = arith.constant 0 : index
    %c0_59 = arith.constant 0 : index
    %57 = vector.load %arg1[%c0_56, %c2_57, %c0_58, %c0_59] : memref<1x19x19x12xbf16, #tpu.memory_space<vmem>>, vector<1x16x16x12xbf16>
    %58 = vector.shape_cast %57 : vector<1x16x16x12xbf16> to vector<16x16x12xbf16>
    %59 = vector.shape_cast %58 : vector<16x16x12xbf16> to vector<256x12xbf16>
    %c8 = arith.constant 8 : index
    %c0_60 = arith.constant 0 : index
    %c0_61 = arith.constant 0 : index
    %60 = vector.load %arg2[%c8, %c0_60, %c0_61] : memref<16x12x64xbf16, #tpu.memory_space<vmem>>, vector<1x12x64xbf16>
    %61 = vector.shape_cast %60 : vector<1x12x64xbf16> to vector<12x64xbf16>
    %cst_62 = arith.constant dense<0.000000e+00> : vector<256x64xf32>
    %62 = tpu.matmul %59, %61, %cst_62 {dimension_numbers = #tpu.dot_dimension_numbers<[1], [0], [0], [1], [0, 0, 1, 1], [], []>} : vector<256x12xbf16>, vector<12x64xbf16>, vector<256x64xf32> -> vector<256x64xf32>
    %63 = arith.addf %56, %62 : vector<256x64xf32>
    %c0_63 = arith.constant 0 : index
    %c2_64 = arith.constant 2 : index
    %c1_65 = arith.constant 1 : index
    %c0_66 = arith.constant 0 : index
    %64 = vector.load %arg1[%c0_63, %c2_64, %c1_65, %c0_66] : memref<1x19x19x12xbf16, #tpu.memory_space<vmem>>, vector<1x16x16x12xbf16>
    %65 = vector.shape_cast %64 : vector<1x16x16x12xbf16> to vector<16x16x12xbf16>
    %66 = vector.shape_cast %65 : vector<16x16x12xbf16> to vector<256x12xbf16>
    %c9 = arith.constant 9 : index
    %c0_67 = arith.constant 0 : index
    %c0_68 = arith.constant 0 : index
    %67 = vector.load %arg2[%c9, %c0_67, %c0_68] : memref<16x12x64xbf16, #tpu.memory_space<vmem>>, vector<1x12x64xbf16>
    %68 = vector.shape_cast %67 : vector<1x12x64xbf16> to vector<12x64xbf16>
    %cst_69 = arith.constant dense<0.000000e+00> : vector<256x64xf32>
    %69 = tpu.matmul %66, %68, %cst_69 {dimension_numbers = #tpu.dot_dimension_numbers<[1], [0], [0], [1], [0, 0, 1, 1], [], []>} : vector<256x12xbf16>, vector<12x64xbf16>, vector<256x64xf32> -> vector<256x64xf32>
    %70 = arith.addf %63, %69 : vector<256x64xf32>
    %c0_70 = arith.constant 0 : index
    %c2_71 = arith.constant 2 : index
    %c2_72 = arith.constant 2 : index
    %c0_73 = arith.constant 0 : index
    %71 = vector.load %arg1[%c0_70, %c2_71, %c2_72, %c0_73] : memref<1x19x19x12xbf16, #tpu.memory_space<vmem>>, vector<1x16x16x12xbf16>
    %72 = vector.shape_cast %71 : vector<1x16x16x12xbf16> to vector<16x16x12xbf16>
    %73 = vector.shape_cast %72 : vector<16x16x12xbf16> to vector<256x12xbf16>
    %c10 = arith.constant 10 : index
    %c0_74 = arith.constant 0 : index
    %c0_75 = arith.constant 0 : index
    %74 = vector.load %arg2[%c10, %c0_74, %c0_75] : memref<16x12x64xbf16, #tpu.memory_space<vmem>>, vector<1x12x64xbf16>
    %75 = vector.shape_cast %74 : vector<1x12x64xbf16> to vector<12x64xbf16>
    %cst_76 = arith.constant dense<0.000000e+00> : vector<256x64xf32>
    %76 = tpu.matmul %73, %75, %cst_76 {dimension_numbers = #tpu.dot_dimension_numbers<[1], [0], [0], [1], [0, 0, 1, 1], [], []>} : vector<256x12xbf16>, vector<12x64xbf16>, vector<256x64xf32> -> vector<256x64xf32>
    %77 = arith.addf %70, %76 : vector<256x64xf32>
    %c0_77 = arith.constant 0 : index
    %c2_78 = arith.constant 2 : index
    %c3_79 = arith.constant 3 : index
    %c0_80 = arith.constant 0 : index
    %78 = vector.load %arg1[%c0_77, %c2_78, %c3_79, %c0_80] : memref<1x19x19x12xbf16, #tpu.memory_space<vmem>>, vector<1x16x16x12xbf16>
    %79 = vector.shape_cast %78 : vector<1x16x16x12xbf16> to vector<16x16x12xbf16>
    %80 = vector.shape_cast %79 : vector<16x16x12xbf16> to vector<256x12xbf16>
    %c11 = arith.constant 11 : index
    %c0_81 = arith.constant 0 : index
    %c0_82 = arith.constant 0 : index
    %81 = vector.load %arg2[%c11, %c0_81, %c0_82] : memref<16x12x64xbf16, #tpu.memory_space<vmem>>, vector<1x12x64xbf16>
    %82 = vector.shape_cast %81 : vector<1x12x64xbf16> to vector<12x64xbf16>
    %cst_83 = arith.constant dense<0.000000e+00> : vector<256x64xf32>
    %83 = tpu.matmul %80, %82, %cst_83 {dimension_numbers = #tpu.dot_dimension_numbers<[1], [0], [0], [1], [0, 0, 1, 1], [], []>} : vector<256x12xbf16>, vector<12x64xbf16>, vector<256x64xf32> -> vector<256x64xf32>
    %84 = arith.addf %77, %83 : vector<256x64xf32>
    %c0_84 = arith.constant 0 : index
    %c3_85 = arith.constant 3 : index
    %c0_86 = arith.constant 0 : index
    %c0_87 = arith.constant 0 : index
    %85 = vector.load %arg1[%c0_84, %c3_85, %c0_86, %c0_87] : memref<1x19x19x12xbf16, #tpu.memory_space<vmem>>, vector<1x16x16x12xbf16>
    %86 = vector.shape_cast %85 : vector<1x16x16x12xbf16> to vector<16x16x12xbf16>
    %87 = vector.shape_cast %86 : vector<16x16x12xbf16> to vector<256x12xbf16>
    %c12 = arith.constant 12 : index
    %c0_88 = arith.constant 0 : index
    %c0_89 = arith.constant 0 : index
    %88 = vector.load %arg2[%c12, %c0_88, %c0_89] : memref<16x12x64xbf16, #tpu.memory_space<vmem>>, vector<1x12x64xbf16>
    %89 = vector.shape_cast %88 : vector<1x12x64xbf16> to vector<12x64xbf16>
    %cst_90 = arith.constant dense<0.000000e+00> : vector<256x64xf32>
    %90 = tpu.matmul %87, %89, %cst_90 {dimension_numbers = #tpu.dot_dimension_numbers<[1], [0], [0], [1], [0, 0, 1, 1], [], []>} : vector<256x12xbf16>, vector<12x64xbf16>, vector<256x64xf32> -> vector<256x64xf32>
    %91 = arith.addf %84, %90 : vector<256x64xf32>
    %c0_91 = arith.constant 0 : index
    %c3_92 = arith.constant 3 : index
    %c1_93 = arith.constant 1 : index
    %c0_94 = arith.constant 0 : index
    %92 = vector.load %arg1[%c0_91, %c3_92, %c1_93, %c0_94] : memref<1x19x19x12xbf16, #tpu.memory_space<vmem>>, vector<1x16x16x12xbf16>
    %93 = vector.shape_cast %92 : vector<1x16x16x12xbf16> to vector<16x16x12xbf16>
    %94 = vector.shape_cast %93 : vector<16x16x12xbf16> to vector<256x12xbf16>
    %c13 = arith.constant 13 : index
    %c0_95 = arith.constant 0 : index
    %c0_96 = arith.constant 0 : index
    %95 = vector.load %arg2[%c13, %c0_95, %c0_96] : memref<16x12x64xbf16, #tpu.memory_space<vmem>>, vector<1x12x64xbf16>
    %96 = vector.shape_cast %95 : vector<1x12x64xbf16> to vector<12x64xbf16>
    %cst_97 = arith.constant dense<0.000000e+00> : vector<256x64xf32>
    %97 = tpu.matmul %94, %96, %cst_97 {dimension_numbers = #tpu.dot_dimension_numbers<[1], [0], [0], [1], [0, 0, 1, 1], [], []>} : vector<256x12xbf16>, vector<12x64xbf16>, vector<256x64xf32> -> vector<256x64xf32>
    %98 = arith.addf %91, %97 : vector<256x64xf32>
    %c0_98 = arith.constant 0 : index
    %c3_99 = arith.constant 3 : index
    %c2_100 = arith.constant 2 : index
    %c0_101 = arith.constant 0 : index
    %99 = vector.load %arg1[%c0_98, %c3_99, %c2_100, %c0_101] : memref<1x19x19x12xbf16, #tpu.memory_space<vmem>>, vector<1x16x16x12xbf16>
    %100 = vector.shape_cast %99 : vector<1x16x16x12xbf16> to vector<16x16x12xbf16>
    %101 = vector.shape_cast %100 : vector<16x16x12xbf16> to vector<256x12xbf16>
    %c14 = arith.constant 14 : index
    %c0_102 = arith.constant 0 : index
    %c0_103 = arith.constant 0 : index
    %102 = vector.load %arg2[%c14, %c0_102, %c0_103] : memref<16x12x64xbf16, #tpu.memory_space<vmem>>, vector<1x12x64xbf16>
    %103 = vector.shape_cast %102 : vector<1x12x64xbf16> to vector<12x64xbf16>
    %cst_104 = arith.constant dense<0.000000e+00> : vector<256x64xf32>
    %104 = tpu.matmul %101, %103, %cst_104 {dimension_numbers = #tpu.dot_dimension_numbers<[1], [0], [0], [1], [0, 0, 1, 1], [], []>} : vector<256x12xbf16>, vector<12x64xbf16>, vector<256x64xf32> -> vector<256x64xf32>
    %105 = arith.addf %98, %104 : vector<256x64xf32>
    %c0_105 = arith.constant 0 : index
    %c3_106 = arith.constant 3 : index
    %c3_107 = arith.constant 3 : index
    %c0_108 = arith.constant 0 : index
    %106 = vector.load %arg1[%c0_105, %c3_106, %c3_107, %c0_108] : memref<1x19x19x12xbf16, #tpu.memory_space<vmem>>, vector<1x16x16x12xbf16>
    %107 = vector.shape_cast %106 : vector<1x16x16x12xbf16> to vector<16x16x12xbf16>
    %108 = vector.shape_cast %107 : vector<16x16x12xbf16> to vector<256x12xbf16>
    %c15 = arith.constant 15 : index
    %c0_109 = arith.constant 0 : index
    %c0_110 = arith.constant 0 : index
    %109 = vector.load %arg2[%c15, %c0_109, %c0_110] : memref<16x12x64xbf16, #tpu.memory_space<vmem>>, vector<1x12x64xbf16>
    %110 = vector.shape_cast %109 : vector<1x12x64xbf16> to vector<12x64xbf16>
    %cst_111 = arith.constant dense<0.000000e+00> : vector<256x64xf32>
    %111 = tpu.matmul %108, %110, %cst_111 {dimension_numbers = #tpu.dot_dimension_numbers<[1], [0], [0], [1], [0, 0, 1, 1], [], []>} : vector<256x12xbf16>, vector<12x64xbf16>, vector<256x64xf32> -> vector<256x64xf32>
    %112 = arith.addf %105, %111 : vector<256x64xf32>
    %c0_112 = arith.constant 0 : index
    %c0_113 = arith.constant 0 : index
    %113 = vector.load %arg3[%c0_112, %c0_113] : memref<1x64xf32, #tpu.memory_space<vmem>>, vector<1x64xf32>
    %114 = vector.broadcast %113 : vector<1x64xf32> to vector<256x64xf32>
    %115 = arith.mulf %112, %114 : vector<256x64xf32>
    %c0_114 = arith.constant 0 : index
    %c0_115 = arith.constant 0 : index
    %116 = vector.load %arg4[%c0_114, %c0_115] : memref<1x64xf32, #tpu.memory_space<vmem>>, vector<1x64xf32>
    %117 = vector.broadcast %116 : vector<1x64xf32> to vector<256x64xf32>
    %118 = arith.addf %115, %117 : vector<256x64xf32>
    %cst_116 = arith.constant 0.000000e+00 : f32
    %119 = vector.broadcast %cst_116 : f32 to vector<256x64xf32>
    %120 = arith.maximumf %118, %119 : vector<256x64xf32>
    %121 = arith.truncf %120 : vector<256x64xf32> to vector<256x64xbf16>
    %c0_117 = arith.constant 0 : index
    %c0_118 = arith.constant 0 : index
    %c0_119 = arith.constant 0 : index
    %122 = vector.load %arg5[%c0_117, %c0_118, %c0_119] : memref<1x256x64xbf16, #tpu.memory_space<vmem>>, vector<1x256x64xbf16>
    %123 = vector.shape_cast %122 : vector<1x256x64xbf16> to vector<256x64xbf16>
    %124 = vector.shape_cast %121 : vector<256x64xbf16> to vector<1x256x64xbf16>
    tpu.vector_store %arg5[%c0_117, %c0_118, %c0_119], %124 {strides = array<i32>} : memref<1x256x64xbf16, #tpu.memory_space<vmem>>, vector<1x256x64xbf16>,
    return
  }
  func.func @transform_0(%arg0: i32) -> (i32, i32, i32, i32) {
    %c0_i32 = arith.constant 0 : i32
    %c0_i32_0 = arith.constant 0 : i32
    %c0_i32_1 = arith.constant 0 : i32
    %c0_i32_2 = arith.constant 0 : i32
    return %arg0, %c0_i32, %c0_i32_0, %c0_i32_1 : i32, i32, i32, i32
  }
  func.func @transform_1(%arg0: i32) -> (i32, i32, i32) {
    %c0_i32 = arith.constant 0 : i32
    %c0_i32_0 = arith.constant 0 : i32
    %c0_i32_1 = arith.constant 0 : i32
    %c0_i32_2 = arith.constant 0 : i32
    return %c0_i32, %c0_i32_0, %c0_i32_1 : i32, i32, i32
  }
  func.func @transform_2(%arg0: i32) -> (i32, i32) {
    %c0_i32 = arith.constant 0 : i32
    %c0_i32_0 = arith.constant 0 : i32
    %c0_i32_1 = arith.constant 0 : i32
    return %c0_i32, %c0_i32_0 : i32, i32
  }
  func.func @transform_3(%arg0: i32) -> (i32, i32) {
    %c0_i32 = arith.constant 0 : i32
    %c0_i32_0 = arith.constant 0 : i32
    %c0_i32_1 = arith.constant 0 : i32
    return %c0_i32, %c0_i32_0 : i32, i32
  }
  func.func @transform_4(%arg0: i32) -> (i32, i32, i32) {
    %c0_i32 = arith.constant 0 : i32
    %c0_i32_0 = arith.constant 0 : i32
    %c0_i32_1 = arith.constant 0 : i32
    return %arg0, %c0_i32, %c0_i32_0 : i32, i32, i32
  }
}

module attributes {stable_mosaic.version = 11 : i64} {
  func.func @_maxpool3x3s2_kernel(%arg0: i32, %arg1: memref<4x9x9x64xbf16, #tpu.memory_space<vmem>>, %arg2: memref<1x8x8x64xbf16, #tpu.memory_space<vmem>>) attributes {dimension_semantics = [#tpu.dimension_semantics<parallel>], iteration_bounds = array<i64: 2>, scalar_prefetch = 0 : i64, scratch_operands = 0 : i64, tpu.core_type = #tpu.core_type<tc>, window_params = [{transform_indices = @transform_0, window_bounds = array<i64: 4, 9, 9, 64>}, {transform_indices = @transform_1, window_bounds = array<i64: 1, 8, 8, 64>}]} {
    %c0 = arith.constant 0 : index
    %c0_0 = arith.constant 0 : index
    %c0_1 = arith.constant 0 : index
    %c0_2 = arith.constant 0 : index
    %0 = vector.load %arg1[%c0, %c0_0, %c0_1, %c0_2] : memref<4x9x9x64xbf16, #tpu.memory_space<vmem>>, vector<1x8x8x64xbf16>
    %1 = vector.shape_cast %0 : vector<1x8x8x64xbf16> to vector<8x8x64xbf16>
    %c1 = arith.constant 1 : index
    %c0_3 = arith.constant 0 : index
    %c0_4 = arith.constant 0 : index
    %c0_5 = arith.constant 0 : index
    %2 = vector.load %arg1[%c1, %c0_3, %c0_4, %c0_5] : memref<4x9x9x64xbf16, #tpu.memory_space<vmem>>, vector<1x8x8x64xbf16>
    %3 = vector.shape_cast %2 : vector<1x8x8x64xbf16> to vector<8x8x64xbf16>
    %4 = arith.maximumf %1, %3 : vector<8x8x64xbf16>
    %c0_6 = arith.constant 0 : index
    %c0_7 = arith.constant 0 : index
    %c1_8 = arith.constant 1 : index
    %c0_9 = arith.constant 0 : index
    %5 = vector.load %arg1[%c0_6, %c0_7, %c1_8, %c0_9] : memref<4x9x9x64xbf16, #tpu.memory_space<vmem>>, vector<1x8x8x64xbf16>
    %6 = vector.shape_cast %5 : vector<1x8x8x64xbf16> to vector<8x8x64xbf16>
    %7 = arith.maximumf %4, %6 : vector<8x8x64xbf16>
    %c2 = arith.constant 2 : index
    %c0_10 = arith.constant 0 : index
    %c0_11 = arith.constant 0 : index
    %c0_12 = arith.constant 0 : index
    %8 = vector.load %arg1[%c2, %c0_10, %c0_11, %c0_12] : memref<4x9x9x64xbf16, #tpu.memory_space<vmem>>, vector<1x8x8x64xbf16>
    %9 = vector.shape_cast %8 : vector<1x8x8x64xbf16> to vector<8x8x64xbf16>
    %10 = arith.maximumf %7, %9 : vector<8x8x64xbf16>
    %c3 = arith.constant 3 : index
    %c0_13 = arith.constant 0 : index
    %c0_14 = arith.constant 0 : index
    %c0_15 = arith.constant 0 : index
    %11 = vector.load %arg1[%c3, %c0_13, %c0_14, %c0_15] : memref<4x9x9x64xbf16, #tpu.memory_space<vmem>>, vector<1x8x8x64xbf16>
    %12 = vector.shape_cast %11 : vector<1x8x8x64xbf16> to vector<8x8x64xbf16>
    %13 = arith.maximumf %10, %12 : vector<8x8x64xbf16>
    %c2_16 = arith.constant 2 : index
    %c0_17 = arith.constant 0 : index
    %c1_18 = arith.constant 1 : index
    %c0_19 = arith.constant 0 : index
    %14 = vector.load %arg1[%c2_16, %c0_17, %c1_18, %c0_19] : memref<4x9x9x64xbf16, #tpu.memory_space<vmem>>, vector<1x8x8x64xbf16>
    %15 = vector.shape_cast %14 : vector<1x8x8x64xbf16> to vector<8x8x64xbf16>
    %16 = arith.maximumf %13, %15 : vector<8x8x64xbf16>
    %c0_20 = arith.constant 0 : index
    %c1_21 = arith.constant 1 : index
    %c0_22 = arith.constant 0 : index
    %c0_23 = arith.constant 0 : index
    %17 = vector.load %arg1[%c0_20, %c1_21, %c0_22, %c0_23] : memref<4x9x9x64xbf16, #tpu.memory_space<vmem>>, vector<1x8x8x64xbf16>
    %18 = vector.shape_cast %17 : vector<1x8x8x64xbf16> to vector<8x8x64xbf16>
    %19 = arith.maximumf %16, %18 : vector<8x8x64xbf16>
    %c1_24 = arith.constant 1 : index
    %c1_25 = arith.constant 1 : index
    %c0_26 = arith.constant 0 : index
    %c0_27 = arith.constant 0 : index
    %20 = vector.load %arg1[%c1_24, %c1_25, %c0_26, %c0_27] : memref<4x9x9x64xbf16, #tpu.memory_space<vmem>>, vector<1x8x8x64xbf16>
    %21 = vector.shape_cast %20 : vector<1x8x8x64xbf16> to vector<8x8x64xbf16>
    %22 = arith.maximumf %19, %21 : vector<8x8x64xbf16>
    %c0_28 = arith.constant 0 : index
    %c1_29 = arith.constant 1 : index
    %c1_30 = arith.constant 1 : index
    %c0_31 = arith.constant 0 : index
    %23 = vector.load %arg1[%c0_28, %c1_29, %c1_30, %c0_31] : memref<4x9x9x64xbf16, #tpu.memory_space<vmem>>, vector<1x8x8x64xbf16>
    %24 = vector.shape_cast %23 : vector<1x8x8x64xbf16> to vector<8x8x64xbf16>
    %25 = arith.maximumf %22, %24 : vector<8x8x64xbf16>
    %c0_32 = arith.constant 0 : index
    %c0_33 = arith.constant 0 : index
    %c0_34 = arith.constant 0 : index
    %c0_35 = arith.constant 0 : index
    %26 = vector.load %arg2[%c0_32, %c0_33, %c0_34, %c0_35] : memref<1x8x8x64xbf16, #tpu.memory_space<vmem>>, vector<1x8x8x64xbf16>
    %27 = vector.shape_cast %26 : vector<1x8x8x64xbf16> to vector<8x8x64xbf16>
    %28 = vector.shape_cast %25 : vector<8x8x64xbf16> to vector<1x8x8x64xbf16>
    tpu.vector_store %arg2[%c0_32, %c0_33, %c0_34, %c0_35], %28 {strides = array<i32>} : memref<1x8x8x64xbf16, #tpu.memory_space<vmem>>, vector<1x8x8x64xbf16>,
    return
  }
  func.func @transform_0(%arg0: i32) -> (i32, i32, i32, i32) {
    %c0_i32 = arith.constant 0 : i32
    %c0_i32_0 = arith.constant 0 : i32
    %c0_i32_1 = arith.constant 0 : i32
    %c0_i32_2 = arith.constant 0 : i32
    return %arg0, %c0_i32, %c0_i32_0, %c0_i32_1 : i32, i32, i32, i32
  }
  func.func @transform_1(%arg0: i32) -> (i32, i32, i32, i32) {
    %c0_i32 = arith.constant 0 : i32
    %c0_i32_0 = arith.constant 0 : i32
    %c0_i32_1 = arith.constant 0 : i32
    %c0_i32_2 = arith.constant 0 : i32
    return %arg0, %c0_i32, %c0_i32_0, %c0_i32_1 : i32, i32, i32, i32
  }
}

module attributes {stable_mosaic.version = 11 : i64} {
  func.func @_conv1x1_bn_kernel(%arg0: i32, %arg1: memref<64x256xbf16, #tpu.memory_space<vmem>>, %arg2: memref<256x128xbf16, #tpu.memory_space<vmem>>, %arg3: memref<1x256xf32, #tpu.memory_space<vmem>>, %arg4: memref<1x256xf32, #tpu.memory_space<vmem>>, %arg5: memref<1x128xf32, #tpu.memory_space<vmem>>, %arg6: memref<1x128xf32, #tpu.memory_space<vmem>>, %arg7: memref<64x128xbf16, #tpu.memory_space<vmem>>) attributes {dimension_semantics = [#tpu.dimension_semantics<parallel>], iteration_bounds = array<i64: 2>, scalar_prefetch = 0 : i64, scratch_operands = 0 : i64, tpu.core_type = #tpu.core_type<tc>, window_params = [{transform_indices = @transform_0, window_bounds = array<i64: 64, 256>}, {pipeline_mode = #tpu.pipeline_mode<synchronous>, transform_indices = @transform_1, window_bounds = array<i64: 256, 128>}, {pipeline_mode = #tpu.pipeline_mode<synchronous>, transform_indices = @transform_2, window_bounds = array<i64: 1, 256>}, {pipeline_mode = #tpu.pipeline_mode<synchronous>, transform_indices = @transform_3, window_bounds = array<i64: 1, 256>}, {pipeline_mode = #tpu.pipeline_mode<synchronous>, transform_indices = @transform_4, window_bounds = array<i64: 1, 128>}, {pipeline_mode = #tpu.pipeline_mode<synchronous>, transform_indices = @transform_5, window_bounds = array<i64: 1, 128>}, {transform_indices = @transform_6, window_bounds = array<i64: 64, 128>}]} {
    %c0 = arith.constant 0 : index
    %c0_0 = arith.constant 0 : index
    %0 = vector.load %arg1[%c0, %c0_0] : memref<64x256xbf16, #tpu.memory_space<vmem>>, vector<64x256xbf16>
    %1 = arith.extf %0 : vector<64x256xbf16> to vector<64x256xf32>
    %c0_1 = arith.constant 0 : index
    %c0_2 = arith.constant 0 : index
    %2 = vector.load %arg3[%c0_1, %c0_2] : memref<1x256xf32, #tpu.memory_space<vmem>>, vector<1x256xf32>
    %3 = vector.broadcast %2 : vector<1x256xf32> to vector<64x256xf32>
    %4 = arith.mulf %1, %3 : vector<64x256xf32>
    %c0_3 = arith.constant 0 : index
    %c0_4 = arith.constant 0 : index
    %5 = vector.load %arg4[%c0_3, %c0_4] : memref<1x256xf32, #tpu.memory_space<vmem>>, vector<1x256xf32>
    %6 = vector.broadcast %5 : vector<1x256xf32> to vector<64x256xf32>
    %7 = arith.addf %4, %6 : vector<64x256xf32>
    %cst = arith.constant 0.000000e+00 : f32
    %8 = vector.broadcast %cst : f32 to vector<64x256xf32>
    %9 = arith.maximumf %7, %8 : vector<64x256xf32>
    %10 = arith.truncf %9 : vector<64x256xf32> to vector<64x256xbf16>
    %c0_5 = arith.constant 0 : index
    %c0_6 = arith.constant 0 : index
    %11 = vector.load %arg2[%c0_5, %c0_6] : memref<256x128xbf16, #tpu.memory_space<vmem>>, vector<256x128xbf16>
    %cst_7 = arith.constant dense<0.000000e+00> : vector<64x128xf32>
    %12 = tpu.matmul %10, %11, %cst_7 {dimension_numbers = #tpu.dot_dimension_numbers<[1], [0], [0], [1], [0, 0, 1, 1], [], []>} : vector<64x256xbf16>, vector<256x128xbf16>, vector<64x128xf32> -> vector<64x128xf32>
    %c0_8 = arith.constant 0 : index
    %c0_9 = arith.constant 0 : index
    %13 = vector.load %arg5[%c0_8, %c0_9] : memref<1x128xf32, #tpu.memory_space<vmem>>, vector<1x128xf32>
    %14 = vector.broadcast %13 : vector<1x128xf32> to vector<64x128xf32>
    %15 = arith.mulf %12, %14 : vector<64x128xf32>
    %c0_10 = arith.constant 0 : index
    %c0_11 = arith.constant 0 : index
    %16 = vector.load %arg6[%c0_10, %c0_11] : memref<1x128xf32, #tpu.memory_space<vmem>>, vector<1x128xf32>
    %17 = vector.broadcast %16 : vector<1x128xf32> to vector<64x128xf32>
    %18 = arith.addf %15, %17 : vector<64x128xf32>
    %cst_12 = arith.constant 0.000000e+00 : f32
    %19 = vector.broadcast %cst_12 : f32 to vector<64x128xf32>
    %20 = arith.maximumf %18, %19 : vector<64x128xf32>
    %21 = arith.truncf %20 : vector<64x128xf32> to vector<64x128xbf16>
    %c0_13 = arith.constant 0 : index
    %c0_14 = arith.constant 0 : index
    %22 = vector.load %arg7[%c0_13, %c0_14] : memref<64x128xbf16, #tpu.memory_space<vmem>>, vector<64x128xbf16>
    tpu.vector_store %arg7[%c0_13, %c0_14], %21 {strides = array<i32>} : memref<64x128xbf16, #tpu.memory_space<vmem>>, vector<64x128xbf16>,
    return
  }
  func.func @transform_0(%arg0: i32) -> (i32, i32) {
    %c0_i32 = arith.constant 0 : i32
    %c0_i32_0 = arith.constant 0 : i32
    return %arg0, %c0_i32 : i32, i32
  }
  func.func @transform_1(%arg0: i32) -> (i32, i32) {
    %c0_i32 = arith.constant 0 : i32
    %c0_i32_0 = arith.constant 0 : i32
    %c0_i32_1 = arith.constant 0 : i32
    return %c0_i32, %c0_i32_0 : i32, i32
  }
  func.func @transform_2(%arg0: i32) -> (i32, i32) {
    %c0_i32 = arith.constant 0 : i32
    %c0_i32_0 = arith.constant 0 : i32
    %c0_i32_1 = arith.constant 0 : i32
    return %c0_i32, %c0_i32_0 : i32, i32
  }
  func.func @transform_3(%arg0: i32) -> (i32, i32) {
    %c0_i32 = arith.constant 0 : i32
    %c0_i32_0 = arith.constant 0 : i32
    %c0_i32_1 = arith.constant 0 : i32
    return %c0_i32, %c0_i32_0 : i32, i32
  }
  func.func @transform_4(%arg0: i32) -> (i32, i32) {
    %c0_i32 = arith.constant 0 : i32
    %c0_i32_0 = arith.constant 0 : i32
    %c0_i32_1 = arith.constant 0 : i32
    return %c0_i32, %c0_i32_0 : i32, i32
  }
  func.func @transform_5(%arg0: i32) -> (i32, i32) {
    %c0_i32 = arith.constant 0 : i32
    %c0_i32_0 = arith.constant 0 : i32
    %c0_i32_1 = arith.constant 0 : i32
    return %c0_i32, %c0_i32_0 : i32, i32
  }
  func.func @transform_6(%arg0: i32) -> (i32, i32) {
    %c0_i32 = arith.constant 0 : i32
    %c0_i32_0 = arith.constant 0 : i32
    return %arg0, %c0_i32 : i32, i32
  }
}

module attributes {stable_mosaic.version = 11 : i64} {
  func.func @_conv_tap_kernel(%arg0: i32, %arg1: memref<1x10x10x128xbf16, #tpu.memory_space<vmem>>, %arg2: memref<9x128x32xbf16, #tpu.memory_space<vmem>>, %arg3: memref<1x32xf32, #tpu.memory_space<vmem>>, %arg4: memref<1x32xf32, #tpu.memory_space<vmem>>, %arg5: memref<1x64x32xbf16, #tpu.memory_space<vmem>>) attributes {dimension_semantics = [#tpu.dimension_semantics<parallel>], iteration_bounds = array<i64: 2>, scalar_prefetch = 0 : i64, scratch_operands = 0 : i64, tpu.core_type = #tpu.core_type<tc>, window_params = [{transform_indices = @transform_0, window_bounds = array<i64: 1, 10, 10, 128>}, {pipeline_mode = #tpu.pipeline_mode<synchronous>, transform_indices = @transform_1, window_bounds = array<i64: 9, 128, 32>}, {pipeline_mode = #tpu.pipeline_mode<synchronous>, transform_indices = @transform_2, window_bounds = array<i64: 1, 32>}, {pipeline_mode = #tpu.pipeline_mode<synchronous>, transform_indices = @transform_3, window_bounds = array<i64: 1, 32>}, {transform_indices = @transform_4, window_bounds = array<i64: 1, 64, 32>}]} {
    %cst = arith.constant 0.000000e+00 : f32
    %0 = vector.broadcast %cst : f32 to vector<64x32xf32>
    %c0 = arith.constant 0 : index
    %c0_0 = arith.constant 0 : index
    %c0_1 = arith.constant 0 : index
    %c0_2 = arith.constant 0 : index
    %1 = vector.load %arg1[%c0, %c0_0, %c0_1, %c0_2] : memref<1x10x10x128xbf16, #tpu.memory_space<vmem>>, vector<1x8x8x128xbf16>
    %2 = vector.shape_cast %1 : vector<1x8x8x128xbf16> to vector<8x8x128xbf16>
    %3 = vector.shape_cast %2 : vector<8x8x128xbf16> to vector<64x128xbf16>
    %c0_3 = arith.constant 0 : index
    %c0_4 = arith.constant 0 : index
    %c0_5 = arith.constant 0 : index
    %4 = vector.load %arg2[%c0_3, %c0_4, %c0_5] : memref<9x128x32xbf16, #tpu.memory_space<vmem>>, vector<1x128x32xbf16>
    %5 = vector.shape_cast %4 : vector<1x128x32xbf16> to vector<128x32xbf16>
    %cst_6 = arith.constant dense<0.000000e+00> : vector<64x32xf32>
    %6 = tpu.matmul %3, %5, %cst_6 {dimension_numbers = #tpu.dot_dimension_numbers<[1], [0], [0], [1], [0, 0, 1, 1], [], []>} : vector<64x128xbf16>, vector<128x32xbf16>, vector<64x32xf32> -> vector<64x32xf32>
    %7 = arith.addf %0, %6 : vector<64x32xf32>
    %c0_7 = arith.constant 0 : index
    %c0_8 = arith.constant 0 : index
    %c1 = arith.constant 1 : index
    %c0_9 = arith.constant 0 : index
    %8 = vector.load %arg1[%c0_7, %c0_8, %c1, %c0_9] : memref<1x10x10x128xbf16, #tpu.memory_space<vmem>>, vector<1x8x8x128xbf16>
    %9 = vector.shape_cast %8 : vector<1x8x8x128xbf16> to vector<8x8x128xbf16>
    %10 = vector.shape_cast %9 : vector<8x8x128xbf16> to vector<64x128xbf16>
    %c1_10 = arith.constant 1 : index
    %c0_11 = arith.constant 0 : index
    %c0_12 = arith.constant 0 : index
    %11 = vector.load %arg2[%c1_10, %c0_11, %c0_12] : memref<9x128x32xbf16, #tpu.memory_space<vmem>>, vector<1x128x32xbf16>
    %12 = vector.shape_cast %11 : vector<1x128x32xbf16> to vector<128x32xbf16>
    %cst_13 = arith.constant dense<0.000000e+00> : vector<64x32xf32>
    %13 = tpu.matmul %10, %12, %cst_13 {dimension_numbers = #tpu.dot_dimension_numbers<[1], [0], [0], [1], [0, 0, 1, 1], [], []>} : vector<64x128xbf16>, vector<128x32xbf16>, vector<64x32xf32> -> vector<64x32xf32>
    %14 = arith.addf %7, %13 : vector<64x32xf32>
    %c0_14 = arith.constant 0 : index
    %c0_15 = arith.constant 0 : index
    %c2 = arith.constant 2 : index
    %c0_16 = arith.constant 0 : index
    %15 = vector.load %arg1[%c0_14, %c0_15, %c2, %c0_16] : memref<1x10x10x128xbf16, #tpu.memory_space<vmem>>, vector<1x8x8x128xbf16>
    %16 = vector.shape_cast %15 : vector<1x8x8x128xbf16> to vector<8x8x128xbf16>
    %17 = vector.shape_cast %16 : vector<8x8x128xbf16> to vector<64x128xbf16>
    %c2_17 = arith.constant 2 : index
    %c0_18 = arith.constant 0 : index
    %c0_19 = arith.constant 0 : index
    %18 = vector.load %arg2[%c2_17, %c0_18, %c0_19] : memref<9x128x32xbf16, #tpu.memory_space<vmem>>, vector<1x128x32xbf16>
    %19 = vector.shape_cast %18 : vector<1x128x32xbf16> to vector<128x32xbf16>
    %cst_20 = arith.constant dense<0.000000e+00> : vector<64x32xf32>
    %20 = tpu.matmul %17, %19, %cst_20 {dimension_numbers = #tpu.dot_dimension_numbers<[1], [0], [0], [1], [0, 0, 1, 1], [], []>} : vector<64x128xbf16>, vector<128x32xbf16>, vector<64x32xf32> -> vector<64x32xf32>
    %21 = arith.addf %14, %20 : vector<64x32xf32>
    %c0_21 = arith.constant 0 : index
    %c1_22 = arith.constant 1 : index
    %c0_23 = arith.constant 0 : index
    %c0_24 = arith.constant 0 : index
    %22 = vector.load %arg1[%c0_21, %c1_22, %c0_23, %c0_24] : memref<1x10x10x128xbf16, #tpu.memory_space<vmem>>, vector<1x8x8x128xbf16>
    %23 = vector.shape_cast %22 : vector<1x8x8x128xbf16> to vector<8x8x128xbf16>
    %24 = vector.shape_cast %23 : vector<8x8x128xbf16> to vector<64x128xbf16>
    %c3 = arith.constant 3 : index
    %c0_25 = arith.constant 0 : index
    %c0_26 = arith.constant 0 : index
    %25 = vector.load %arg2[%c3, %c0_25, %c0_26] : memref<9x128x32xbf16, #tpu.memory_space<vmem>>, vector<1x128x32xbf16>
    %26 = vector.shape_cast %25 : vector<1x128x32xbf16> to vector<128x32xbf16>
    %cst_27 = arith.constant dense<0.000000e+00> : vector<64x32xf32>
    %27 = tpu.matmul %24, %26, %cst_27 {dimension_numbers = #tpu.dot_dimension_numbers<[1], [0], [0], [1], [0, 0, 1, 1], [], []>} : vector<64x128xbf16>, vector<128x32xbf16>, vector<64x32xf32> -> vector<64x32xf32>
    %28 = arith.addf %21, %27 : vector<64x32xf32>
    %c0_28 = arith.constant 0 : index
    %c1_29 = arith.constant 1 : index
    %c1_30 = arith.constant 1 : index
    %c0_31 = arith.constant 0 : index
    %29 = vector.load %arg1[%c0_28, %c1_29, %c1_30, %c0_31] : memref<1x10x10x128xbf16, #tpu.memory_space<vmem>>, vector<1x8x8x128xbf16>
    %30 = vector.shape_cast %29 : vector<1x8x8x128xbf16> to vector<8x8x128xbf16>
    %31 = vector.shape_cast %30 : vector<8x8x128xbf16> to vector<64x128xbf16>
    %c4 = arith.constant 4 : index
    %c0_32 = arith.constant 0 : index
    %c0_33 = arith.constant 0 : index
    %32 = vector.load %arg2[%c4, %c0_32, %c0_33] : memref<9x128x32xbf16, #tpu.memory_space<vmem>>, vector<1x128x32xbf16>
    %33 = vector.shape_cast %32 : vector<1x128x32xbf16> to vector<128x32xbf16>
    %cst_34 = arith.constant dense<0.000000e+00> : vector<64x32xf32>
    %34 = tpu.matmul %31, %33, %cst_34 {dimension_numbers = #tpu.dot_dimension_numbers<[1], [0], [0], [1], [0, 0, 1, 1], [], []>} : vector<64x128xbf16>, vector<128x32xbf16>, vector<64x32xf32> -> vector<64x32xf32>
    %35 = arith.addf %28, %34 : vector<64x32xf32>
    %c0_35 = arith.constant 0 : index
    %c1_36 = arith.constant 1 : index
    %c2_37 = arith.constant 2 : index
    %c0_38 = arith.constant 0 : index
    %36 = vector.load %arg1[%c0_35, %c1_36, %c2_37, %c0_38] : memref<1x10x10x128xbf16, #tpu.memory_space<vmem>>, vector<1x8x8x128xbf16>
    %37 = vector.shape_cast %36 : vector<1x8x8x128xbf16> to vector<8x8x128xbf16>
    %38 = vector.shape_cast %37 : vector<8x8x128xbf16> to vector<64x128xbf16>
    %c5 = arith.constant 5 : index
    %c0_39 = arith.constant 0 : index
    %c0_40 = arith.constant 0 : index
    %39 = vector.load %arg2[%c5, %c0_39, %c0_40] : memref<9x128x32xbf16, #tpu.memory_space<vmem>>, vector<1x128x32xbf16>
    %40 = vector.shape_cast %39 : vector<1x128x32xbf16> to vector<128x32xbf16>
    %cst_41 = arith.constant dense<0.000000e+00> : vector<64x32xf32>
    %41 = tpu.matmul %38, %40, %cst_41 {dimension_numbers = #tpu.dot_dimension_numbers<[1], [0], [0], [1], [0, 0, 1, 1], [], []>} : vector<64x128xbf16>, vector<128x32xbf16>, vector<64x32xf32> -> vector<64x32xf32>
    %42 = arith.addf %35, %41 : vector<64x32xf32>
    %c0_42 = arith.constant 0 : index
    %c2_43 = arith.constant 2 : index
    %c0_44 = arith.constant 0 : index
    %c0_45 = arith.constant 0 : index
    %43 = vector.load %arg1[%c0_42, %c2_43, %c0_44, %c0_45] : memref<1x10x10x128xbf16, #tpu.memory_space<vmem>>, vector<1x8x8x128xbf16>
    %44 = vector.shape_cast %43 : vector<1x8x8x128xbf16> to vector<8x8x128xbf16>
    %45 = vector.shape_cast %44 : vector<8x8x128xbf16> to vector<64x128xbf16>
    %c6 = arith.constant 6 : index
    %c0_46 = arith.constant 0 : index
    %c0_47 = arith.constant 0 : index
    %46 = vector.load %arg2[%c6, %c0_46, %c0_47] : memref<9x128x32xbf16, #tpu.memory_space<vmem>>, vector<1x128x32xbf16>
    %47 = vector.shape_cast %46 : vector<1x128x32xbf16> to vector<128x32xbf16>
    %cst_48 = arith.constant dense<0.000000e+00> : vector<64x32xf32>
    %48 = tpu.matmul %45, %47, %cst_48 {dimension_numbers = #tpu.dot_dimension_numbers<[1], [0], [0], [1], [0, 0, 1, 1], [], []>} : vector<64x128xbf16>, vector<128x32xbf16>, vector<64x32xf32> -> vector<64x32xf32>
    %49 = arith.addf %42, %48 : vector<64x32xf32>
    %c0_49 = arith.constant 0 : index
    %c2_50 = arith.constant 2 : index
    %c1_51 = arith.constant 1 : index
    %c0_52 = arith.constant 0 : index
    %50 = vector.load %arg1[%c0_49, %c2_50, %c1_51, %c0_52] : memref<1x10x10x128xbf16, #tpu.memory_space<vmem>>, vector<1x8x8x128xbf16>
    %51 = vector.shape_cast %50 : vector<1x8x8x128xbf16> to vector<8x8x128xbf16>
    %52 = vector.shape_cast %51 : vector<8x8x128xbf16> to vector<64x128xbf16>
    %c7 = arith.constant 7 : index
    %c0_53 = arith.constant 0 : index
    %c0_54 = arith.constant 0 : index
    %53 = vector.load %arg2[%c7, %c0_53, %c0_54] : memref<9x128x32xbf16, #tpu.memory_space<vmem>>, vector<1x128x32xbf16>
    %54 = vector.shape_cast %53 : vector<1x128x32xbf16> to vector<128x32xbf16>
    %cst_55 = arith.constant dense<0.000000e+00> : vector<64x32xf32>
    %55 = tpu.matmul %52, %54, %cst_55 {dimension_numbers = #tpu.dot_dimension_numbers<[1], [0], [0], [1], [0, 0, 1, 1], [], []>} : vector<64x128xbf16>, vector<128x32xbf16>, vector<64x32xf32> -> vector<64x32xf32>
    %56 = arith.addf %49, %55 : vector<64x32xf32>
    %c0_56 = arith.constant 0 : index
    %c2_57 = arith.constant 2 : index
    %c2_58 = arith.constant 2 : index
    %c0_59 = arith.constant 0 : index
    %57 = vector.load %arg1[%c0_56, %c2_57, %c2_58, %c0_59] : memref<1x10x10x128xbf16, #tpu.memory_space<vmem>>, vector<1x8x8x128xbf16>
    %58 = vector.shape_cast %57 : vector<1x8x8x128xbf16> to vector<8x8x128xbf16>
    %59 = vector.shape_cast %58 : vector<8x8x128xbf16> to vector<64x128xbf16>
    %c8 = arith.constant 8 : index
    %c0_60 = arith.constant 0 : index
    %c0_61 = arith.constant 0 : index
    %60 = vector.load %arg2[%c8, %c0_60, %c0_61] : memref<9x128x32xbf16, #tpu.memory_space<vmem>>, vector<1x128x32xbf16>
    %61 = vector.shape_cast %60 : vector<1x128x32xbf16> to vector<128x32xbf16>
    %cst_62 = arith.constant dense<0.000000e+00> : vector<64x32xf32>
    %62 = tpu.matmul %59, %61, %cst_62 {dimension_numbers = #tpu.dot_dimension_numbers<[1], [0], [0], [1], [0, 0, 1, 1], [], []>} : vector<64x128xbf16>, vector<128x32xbf16>, vector<64x32xf32> -> vector<64x32xf32>
    %63 = arith.addf %56, %62 : vector<64x32xf32>
    %c0_63 = arith.constant 0 : index
    %c0_64 = arith.constant 0 : index
    %64 = vector.load %arg3[%c0_63, %c0_64] : memref<1x32xf32, #tpu.memory_space<vmem>>, vector<1x32xf32>
    %65 = vector.broadcast %64 : vector<1x32xf32> to vector<64x32xf32>
    %66 = arith.mulf %63, %65 : vector<64x32xf32>
    %c0_65 = arith.constant 0 : index
    %c0_66 = arith.constant 0 : index
    %67 = vector.load %arg4[%c0_65, %c0_66] : memref<1x32xf32, #tpu.memory_space<vmem>>, vector<1x32xf32>
    %68 = vector.broadcast %67 : vector<1x32xf32> to vector<64x32xf32>
    %69 = arith.addf %66, %68 : vector<64x32xf32>
    %70 = arith.truncf %69 : vector<64x32xf32> to vector<64x32xbf16>
    %c0_67 = arith.constant 0 : index
    %c0_68 = arith.constant 0 : index
    %c0_69 = arith.constant 0 : index
    %71 = vector.load %arg5[%c0_67, %c0_68, %c0_69] : memref<1x64x32xbf16, #tpu.memory_space<vmem>>, vector<1x64x32xbf16>
    %72 = vector.shape_cast %71 : vector<1x64x32xbf16> to vector<64x32xbf16>
    %73 = vector.shape_cast %70 : vector<64x32xbf16> to vector<1x64x32xbf16>
    tpu.vector_store %arg5[%c0_67, %c0_68, %c0_69], %73 {strides = array<i32>} : memref<1x64x32xbf16, #tpu.memory_space<vmem>>, vector<1x64x32xbf16>,
    return
  }
  func.func @transform_0(%arg0: i32) -> (i32, i32, i32, i32) {
    %c0_i32 = arith.constant 0 : i32
    %c0_i32_0 = arith.constant 0 : i32
    %c0_i32_1 = arith.constant 0 : i32
    %c0_i32_2 = arith.constant 0 : i32
    return %arg0, %c0_i32, %c0_i32_0, %c0_i32_1 : i32, i32, i32, i32
  }
  func.func @transform_1(%arg0: i32) -> (i32, i32, i32) {
    %c0_i32 = arith.constant 0 : i32
    %c0_i32_0 = arith.constant 0 : i32
    %c0_i32_1 = arith.constant 0 : i32
    %c0_i32_2 = arith.constant 0 : i32
    return %c0_i32, %c0_i32_0, %c0_i32_1 : i32, i32, i32
  }
  func.func @transform_2(%arg0: i32) -> (i32, i32) {
    %c0_i32 = arith.constant 0 : i32
    %c0_i32_0 = arith.constant 0 : i32
    %c0_i32_1 = arith.constant 0 : i32
    return %c0_i32, %c0_i32_0 : i32, i32
  }
  func.func @transform_3(%arg0: i32) -> (i32, i32) {
    %c0_i32 = arith.constant 0 : i32
    %c0_i32_0 = arith.constant 0 : i32
    %c0_i32_1 = arith.constant 0 : i32
    return %c0_i32, %c0_i32_0 : i32, i32
  }
  func.func @transform_4(%arg0: i32) -> (i32, i32, i32) {
    %c0_i32 = arith.constant 0 : i32
    %c0_i32_0 = arith.constant 0 : i32
    %c0_i32_1 = arith.constant 0 : i32
    return %arg0, %c0_i32, %c0_i32_0 : i32, i32, i32
  }
}

module attributes {stable_mosaic.version = 11 : i64} {
  func.func @_transition_kernel(%arg0: i32, %arg1: memref<1x8x8x256xbf16, #tpu.memory_space<vmem>>, %arg2: memref<256x64xbf16, #tpu.memory_space<vmem>>, %arg3: memref<1x256xf32, #tpu.memory_space<vmem>>, %arg4: memref<1x256xf32, #tpu.memory_space<vmem>>, %arg5: memref<4x64xf32, #tpu.memory_space<vmem>>, %arg6: memref<1x4x64xf32, #tpu.memory_space<vmem>>) attributes {dimension_semantics = [#tpu.dimension_semantics<parallel>], iteration_bounds = array<i64: 2>, scalar_prefetch = 0 : i64, scratch_operands = 0 : i64, tpu.core_type = #tpu.core_type<tc>, window_params = [{transform_indices = @transform_0, window_bounds = array<i64: 1, 8, 8, 256>}, {pipeline_mode = #tpu.pipeline_mode<synchronous>, transform_indices = @transform_1, window_bounds = array<i64: 256, 64>}, {pipeline_mode = #tpu.pipeline_mode<synchronous>, transform_indices = @transform_2, window_bounds = array<i64: 1, 256>}, {pipeline_mode = #tpu.pipeline_mode<synchronous>, transform_indices = @transform_3, window_bounds = array<i64: 1, 256>}, {pipeline_mode = #tpu.pipeline_mode<synchronous>, transform_indices = @transform_4, window_bounds = array<i64: 4, 64>}, {transform_indices = @transform_5, window_bounds = array<i64: 1, 4, 64>}]} {
    %c0 = arith.constant 0 : index
    %c0_0 = arith.constant 0 : index
    %c0_1 = arith.constant 0 : index
    %c0_2 = arith.constant 0 : index
    %0 = vector.load %arg1[%c0, %c0_0, %c0_1, %c0_2] : memref<1x8x8x256xbf16, #tpu.memory_space<vmem>>, vector<1x8x8x256xbf16>
    %1 = vector.shape_cast %0 : vector<1x8x8x256xbf16> to vector<8x8x256xbf16>
    %2 = vector.shape_cast %1 : vector<8x8x256xbf16> to vector<64x256xbf16>
    %3 = arith.extf %2 : vector<64x256xbf16> to vector<64x256xf32>
    %c0_3 = arith.constant 0 : index
    %c0_4 = arith.constant 0 : index
    %4 = vector.load %arg3[%c0_3, %c0_4] : memref<1x256xf32, #tpu.memory_space<vmem>>, vector<1x256xf32>
    %5 = vector.broadcast %4 : vector<1x256xf32> to vector<64x256xf32>
    %6 = arith.mulf %3, %5 : vector<64x256xf32>
    %c0_5 = arith.constant 0 : index
    %c0_6 = arith.constant 0 : index
    %7 = vector.load %arg4[%c0_5, %c0_6] : memref<1x256xf32, #tpu.memory_space<vmem>>, vector<1x256xf32>
    %8 = vector.broadcast %7 : vector<1x256xf32> to vector<64x256xf32>
    %9 = arith.addf %6, %8 : vector<64x256xf32>
    %cst = arith.constant 0.000000e+00 : f32
    %10 = vector.broadcast %cst : f32 to vector<64x256xf32>
    %11 = arith.maximumf %9, %10 : vector<64x256xf32>
    %12 = arith.truncf %11 : vector<64x256xf32> to vector<64x256xbf16>
    %c0_7 = arith.constant 0 : index
    %c0_8 = arith.constant 0 : index
    %13 = vector.load %arg2[%c0_7, %c0_8] : memref<256x64xbf16, #tpu.memory_space<vmem>>, vector<256x64xbf16>
    %cst_9 = arith.constant dense<0.000000e+00> : vector<64x64xf32>
    %14 = tpu.matmul %12, %13, %cst_9 {dimension_numbers = #tpu.dot_dimension_numbers<[1], [0], [0], [1], [0, 0, 1, 1], [], []>} : vector<64x256xbf16>, vector<256x64xbf16>, vector<64x64xf32> -> vector<64x64xf32>
    %c0_10 = arith.constant 0 : index
    %c0_11 = arith.constant 0 : index
    %15 = vector.load %arg5[%c0_10, %c0_11] : memref<4x64xf32, #tpu.memory_space<vmem>>, vector<4x64xf32>
    %cst_12 = arith.constant dense<0.000000e+00> : vector<4x64xf32>
    %16 = tpu.matmul %15, %14, %cst_12 {dimension_numbers = #tpu.dot_dimension_numbers<[1], [0], [0], [1], [0, 0, 1, 1], [], []>} : vector<4x64xf32>, vector<64x64xf32>, vector<4x64xf32> -> vector<4x64xf32>
    %c0_13 = arith.constant 0 : index
    %c0_14 = arith.constant 0 : index
    %c0_15 = arith.constant 0 : index
    %17 = vector.load %arg6[%c0_13, %c0_14, %c0_15] : memref<1x4x64xf32, #tpu.memory_space<vmem>>, vector<1x4x64xf32>
    %18 = vector.shape_cast %17 : vector<1x4x64xf32> to vector<4x64xf32>
    %19 = vector.shape_cast %16 : vector<4x64xf32> to vector<1x4x64xf32>
    tpu.vector_store %arg6[%c0_13, %c0_14, %c0_15], %19 {strides = array<i32>} : memref<1x4x64xf32, #tpu.memory_space<vmem>>, vector<1x4x64xf32>,
    return
  }
  func.func @transform_0(%arg0: i32) -> (i32, i32, i32, i32) {
    %c0_i32 = arith.constant 0 : i32
    %c0_i32_0 = arith.constant 0 : i32
    %c0_i32_1 = arith.constant 0 : i32
    %c0_i32_2 = arith.constant 0 : i32
    return %arg0, %c0_i32, %c0_i32_0, %c0_i32_1 : i32, i32, i32, i32
  }
  func.func @transform_1(%arg0: i32) -> (i32, i32) {
    %c0_i32 = arith.constant 0 : i32
    %c0_i32_0 = arith.constant 0 : i32
    %c0_i32_1 = arith.constant 0 : i32
    return %c0_i32, %c0_i32_0 : i32, i32
  }
  func.func @transform_2(%arg0: i32) -> (i32, i32) {
    %c0_i32 = arith.constant 0 : i32
    %c0_i32_0 = arith.constant 0 : i32
    %c0_i32_1 = arith.constant 0 : i32
    return %c0_i32, %c0_i32_0 : i32, i32
  }
  func.func @transform_3(%arg0: i32) -> (i32, i32) {
    %c0_i32 = arith.constant 0 : i32
    %c0_i32_0 = arith.constant 0 : i32
    %c0_i32_1 = arith.constant 0 : i32
    return %c0_i32, %c0_i32_0 : i32, i32
  }
  func.func @transform_4(%arg0: i32) -> (i32, i32) {
    %c0_i32 = arith.constant 0 : i32
    %c0_i32_0 = arith.constant 0 : i32
    %c0_i32_1 = arith.constant 0 : i32
    return %c0_i32, %c0_i32_0 : i32, i32
  }
  func.func @transform_5(%arg0: i32) -> (i32, i32, i32) {
    %c0_i32 = arith.constant 0 : i32
    %c0_i32_0 = arith.constant 0 : i32
    %c0_i32_1 = arith.constant 0 : i32
    return %arg0, %c0_i32, %c0_i32_0 : i32, i32, i32
  }
}

</mosaic_0001>

<bundles_post_ra>
// kernel: input_conv_forward.16
= control target key start
LH: loop header
LB: loop body
LE: loop exit
PB: predicated region body
PF: predicated region fallthrough
CT: control target
= control target key end

     0   :  { %s785_s6 = smov 0   ;;  %s1055_s0 = inlined_call_operand.vmem [shape: bf16[8,9,9,64], index: 0, kind: input, shape index: {}]   ;;  %s1056_s1 = inlined_call_operand.vmem [shape: bf16[2,8,8,64], index: 1, kind: output, shape index: {}]  }
   0x1 LB: > { %s791_s7 = sadd.s32 4294967295, %s773_s6   ;;  %p694_p0 = scmp.ge.s32.totalorder %s773_s6, 1  ;;  %s773_s6 = sphi %s785_s6, %s11_s6  }
   0x2   : > { %p89_p1 = scmp.lt.s32.totalorder %s773_s6, 3 }
   0x4   : > { %p90_p2 = pnand %p694_p0, %p89_p1 }
   0x5   : > { %s695_s8 = sshll.u32 (!%p90_p2), %s791_s7, 2  ;;  %vm155_vm0 = vsmask.f32 (!%p90_p2), 3328  ;;  %vm156_vm1 = vsmask.f32 (!%p90_p2), 7440  ;;  %p117_p4 = scmp.lt.s32.totalorder (!%p90_p2), %s791_s7, 1 }
   0x6   : > { %93 = sbr.rel (%p90_p2) target bundleno = 100 (0x64), region = 24  ;;  %p111_p3 = scmp.lt.s32.totalorder (!%p90_p2), %s695_s8, 7  ;;  %vm815_vm2 = vmor (!%p90_p2), %vm155_vm0, %vm156_vm1  ;;  %vm626_vm3 = vcmask (!%p90_p2), 519168  }
   0xd   : > { %s1060_s8 = smov (!%p111_p3, %s695_s8), 7  ;;  %s1062_s7 = smov (!%p117_p4, %s791_s7), 1 }
   0xe   : > { %s758_s9 = smul.u32 72, %s1060_s8  ;;  %s757_s13 = sshll.u32 %s1062_s7, 5 }
   0xf   : > { %s880_s16 = scalar_lea.vmem %s1056_s1, %s757_s13 }
  0x10   : > { %s799_s12 = scalar_lea.vmem %s1055_s0, %s758_s9 }
  0x11   : > { %v122_v0 = vld [vmem:[%s799_s12] sm:$0xf]  ;;  %v147_v1 = vld [vmem:[%s799_s12 + $0x4] sm:$0x1]  ;;  %v707_v5 = vld [vmem:[%s799_s12 + $0x90] sm:$0xf] }
  0x12   : > { %v159_v2 = vshrl.u32 %v122_v0, 16  ;;  %v162_v3 = vshll.u32 %v122_v0, 16  ;;  %v168_v4 = vshll.u32 %v147_v1, 16  ;;  %v699_v6 = vld [vmem:[%s799_s12 + $0x48] sm:$0xf]  ;;  %v329_v8 = vshrl.u32 %v707_v5, 16 }
  0x13   : > { %v723_v7 = vld [vmem:[%s799_s12 + $0x94] sm:$0x1]  ;;  %v332_v9 = vshll.u32 %v707_v5, 16  ;;  %v807_v13 = vld [vmem:[%s799_s12 + $0x8] sm:$0xf]  ;;  %v139_v22 = vmax.bf16 %v699_v6, %v122_v0 }
  0x14   : > { %v161_v10 = vrot.slane %v159_v2, 4  ;;  %v164_v11 = vrot.slane %v162_v3, 5  ;;  %v338_v12 = vshll.u32 %v723_v7, 16  ;;  %v331_v14 = vrot.slane %v329_v8, 4  ;;  %v747_v16 = vld [vmem:[%s799_s12 + $0xc] sm:$0x1] }
  0x15   : > { %v334_v15 = vrot.slane %v332_v9, 5  ;;  %v170_v18 = vrot.slane %v168_v4, 5  ;;  %v499_v19 = vshrl.u32 %v807_v13, 16  ;;  %v502_v20 = vshll.u32 %v807_v13, 16  ;;  %v123_v21 = vld [vmem:[%s799_s12 + $0x8] sm:$0xf] }
  0x16   : > { %v165_v17 = vor.u32 %v164_v11, %v161_v10  ;;  %v508_v25 = vshll.u32 %v747_v16, 16  ;;  %v700_v26 = vld [vmem:[%s799_s12 + $0x50] sm:$0xf]  ;;  %v148_v27 = vld [vmem:[%s799_s12 + $0xc] sm:$0x1]  ;;  %v173_v28 = vshrl.u32 %v123_v21, 16 }
  0x17   : > { %v335_v24 = vor.u32 %v334_v15, %v331_v14  ;;  %v340_v30 = vrot.slane %v338_v12, 5  ;;  %v501_v31 = vrot.slane %v499_v19, 4  ;;  %v504_v32 = vrot.slane %v502_v20, 5  ;;  %v822_v33 = vld [vmem:[%s799_s12 + $0x98] sm:$0xf] }
  0x18   : > { %v166_v29 = vrot.slane %v165_v17, 4  ;;  %v140_v35 = vmax.bf16 %v700_v26, %v123_v21  ;;  %v175_v36 = vrot.slane %v173_v28, 4  ;;  %v176_v37 = vshll.u32 %v123_v21, 16  ;;  %v724_v41 = vld [vmem:[%s799_s12 + $0x9c] sm:$0x1] }
  0x19   : > { %v336_v34 = vrot.slane %v335_v24, 4  ;;  %v505_v39 = vor.u32 %v504_v32, %v501_v31  ;;  %v182_v40 = vshll.u32 %v148_v27, 16  ;;  %v343_v42 = vshrl.u32 %v822_v33, 16  ;;  %v830_v43 = vld [vmem:[%s799_s12 + $0x10] sm:$0xf] }
  0x1a   : > { %v171_v38 = vsel %vm815_vm2, %v166_v29, %v170_v18  ;;  %v832_v45 = vrot.slane %v508_v25, 5  ;;  %v178_v46 = vrot.slane %v176_v37, 5  ;;  %v346_v47 = vshll.u32 %v822_v33, 16  ;;  %v748_v48 = vld [vmem:[%s799_s12 + $0x14] sm:$0x1] }
  0x1b   : > { %v278_v44 = vmax.bf16 %v171_v38, %v139_v22  ;;  %v715_v49 = vld [vmem:[%s799_s12 + $0xd8] sm:$0xf]  ;;  %v506_v50 = vrot.slane %v505_v39, 4  ;;  %v184_v51 = vrot.slane %v182_v40, 5  ;;  %v345_v52 = vrot.slane %v343_v42, 4 }
  0x1c   : > { %v352_v53 = vshll.u32 %v724_v41, 16  ;;  %v179_v55 = vor.u32 %v178_v46, %v175_v36  ;;  %v348_v56 = vrot.slane %v346_v47, 5  ;;  %v513_v57 = vshrl.u32 %v830_v43, 16  ;;  %v844_v58 = vld [vmem:[%s799_s12 + $0x10] sm:$0xf] }
  0x1d   : > { %v295_v54 = vmax.bf16 %v707_v5, %v278_v44  ;;  %v341_v59 = vsel %vm815_vm2, %v336_v34, %v340_v30  ;;  %v516_v61 = vshll.u32 %v830_v43, 16  ;;  %v522_v62 = vshll.u32 %v748_v48, 16  ;;  %v149_v3 = vld [vmem:[%s799_s12 + $0x14] sm:$0x1]  ;;  %v857_v8 = vld [vmem:[%s799_s12 + $0xa0] sm:$0xf] }
  0x1e   : > { %v354_v60 = vrot.slane %v352_v53, 5  ;;  %v180_v0 = vrot.slane %v179_v55, 4  ;;  %v349_v1 = vor.u32 %v348_v56, %v345_v52  ;;  %v515_v2 = vrot.slane %v513_v57, 4  ;;  %v739_v10 = vld [vmem:[%s799_s12 + $0x50] sm:$0xf] }
  0x1f   : > { %v312_v63 = vmax.bf16 %v715_v49, %v295_v54  ;;  %v511_v4 = vsel %vm815_vm2, %v506_v50, %v832_v45  ;;  %v518_v5 = vrot.slane %v516_v61, 5  ;;  %v853_v6 = vrot.slane %v522_v62, 5  ;;  %v716_v16 = vld [vmem:[%s799_s12 + $0xe0] sm:$0xf]  ;;  %v725_v20 = vld [vmem:[%s799_s12 + $0xa4] sm:$0x1] }
  0x20   : > { %v187_v7 = vshrl.u32 %v844_v58, 16  ;;  %v185_v11 = vsel %vm815_vm2, %v180_v0, %v184_v51  ;;  %v350_v12 = vrot.slane %v349_v1, 4  ;;  %v190_v14 = vshll.u32 %v844_v58, 16  ;;  %v701_v24 = vld [vmem:[%s799_s12 + $0x58] sm:$0xf] }
  0x21   : > { %v448_v9 = vmax.bf16 %v341_v59, %v312_v63  ;;  %v279_v15 = vmax.bf16 %v185_v11, %v140_v35  ;;  %v519_v17 = vor.u32 %v518_v5, %v515_v2  ;;  %v196_v19 = vshll.u32 %v149_v3, 16  ;;  %v872_v27 = vld [vmem:[%s799_s12 + $0x18] sm:$0xf]  ;;  %v749_v36 = vld [vmem:[%s799_s12 + $0x1c] sm:$0x1] }
  0x22   : > { %v189_v18 = vrot.slane %v187_v7, 4  ;;  %v355_v22 = vsel %vm815_vm2, %v350_v12, %v354_v60  ;;  %v192_v25 = vrot.slane %v190_v14, 5  ;;  %v357_v26 = vshrl.u32 %v857_v8, 16  ;;  %v885_v40 = vld [vmem:[%s799_s12 + $0x18] sm:$0xf] }
  0x23   : > { %v465_v21 = vmax.bf16 %v807_v13, %v448_v9  ;;  %v296_v28 = vmax.bf16 %v822_v33, %v279_v15  ;;  %v520_v29 = vrot.slane %v519_v17, 4  ;;  %v198_v30 = vrot.slane %v196_v19, 5  ;;  %v892_v46 = vld [vmem:[%s799_s12 + $0x60] sm:$0xf]  ;;  %v740_v48 = vld [vmem:[%s799_s12 + $0x58] sm:$0xf] }
  0x24   : > { %v360_v31 = vshll.u32 %v857_v8, 16  ;;  %v193_v34 = vor.u32 %v192_v25, %v189_v18  ;;  %v359_v13 = vrot.slane %v357_v26, 4  ;;  %v366_v35 = vshll.u32 %v725_v20, 16  ;;  %v150_v52 = vld [vmem:[%s799_s12 + $0x1c] sm:$0x1] }
  0x25   : > { %v482_v32 = vmax.bf16 %v739_v10, %v465_v21  ;;  %v313_v37 = vmax.bf16 %v716_v16, %v296_v28  ;;  %v141_v33 = vmax.bf16 %v701_v24, %v844_v58  ;;  %v527_v39 = vshrl.u32 %v872_v27, 16  ;;  %v902_v57 = vld [vmem:[%s799_s12 + $0xa8] sm:$0xf]  ;;  %v726_v3 = vld [vmem:[%s799_s12 + $0xac] sm:$0x1] }
  0x26   : > { %v362_v38 = vrot.slane %v360_v31, 5  ;;  %v525_v42 = vsel %vm815_vm2, %v520_v29, %v853_v6  ;;  %v194_v44 = vrot.slane %v193_v34, 4  ;;  %v530_v45 = vshll.u32 %v872_v27, 16  ;;  %v717_v60 = vld [vmem:[%s799_s12 + $0xe8] sm:$0xf] }
  0x27   : > { %v618_v41 = vmax.bf16 %v511_v4, %v482_v32  ;;  %v449_v47 = vmax.bf16 %v355_v22, %v313_v37  ;;  %v529_v50 = vrot.slane %v527_v39, 4  ;;  %v536_v51 = vshll.u32 %v749_v36, 16  ;;  %v913_v7 = vld [vmem:[%s799_s12 + $0x20] sm:$0xf]  ;;  %v750_v14 = vld [vmem:[%s799_s12 + $0x24] sm:$0x1] }
  0x28   : > { %v363_v49 = vor.u32 %v362_v38, %v359_v13  ;;  %v199_v53 = vsel %vm815_vm2, %v194_v44, %v198_v30  ;;  %v368_v54 = vrot.slane %v366_v35, 5  ;;  %v532_v55 = vrot.slane %v530_v45, 5  ;;  %v921_v22 = vld [vmem:[%s799_s12 + $0x20] sm:$0xf]  ;;  %v151_v29 = vld [vmem:[%s799_s12 + $0x24] sm:$0x1] }
  0x29   : > { %627 = vst.msk [vmem:[%s880_s16] sm:$0xf] %vm626_vm3, %v618_v41  ;;  %v201_v56 = vshrl.u32 %v885_v40, 16  ;;  %v466_v58 = vmax.bf16 %v830_v43, %v449_v47  ;;  %v280_v59 = vmax.bf16 %v199_v53, %v141_v33  ;;  %v142_v62 = vmax.bf16 %v892_v46, %v885_v40  ;;  %v741_v30 = vld [vmem:[%s799_s12 + $0x60] sm:$0xf] }
  0x2a   : > { %v364_v61 = vrot.slane %v363_v49, 4  ;;  %v533_v63 = vor.u32 %v532_v55, %v529_v50  ;;  %v204_v1 = vshll.u32 %v885_v40, 16  ;;  %v210_v2 = vshll.u32 %v150_v52, 16  ;;  %v935_v38 = vld [vmem:[%s799_s12 + $0xb0] sm:$0xf] }
  0x2b   : > { %v203_v0 = vrot.slane %v201_v56, 4  ;;  %v483_v4 = vmax.bf16 %v740_v48, %v466_v58  ;;  %v297_v5 = vmax.bf16 %v857_v8, %v280_v59  ;;  %v538_v6 = vrot.slane %v536_v51, 5  ;;  %v718_v40 = vld [vmem:[%s799_s12 + $0xf0] sm:$0xf]  ;;  %v727_v48 = vld [vmem:[%s799_s12 + $0xb4] sm:$0x1] }
  0x2c   : > { %v371_v43 = vshrl.u32 %v902_v57, 16  ;;  %v369_v9 = vsel %vm815_vm2, %v364_v61, %v368_v54  ;;  %v534_v10 = vrot.slane %v533_v63, 4  ;;  %v206_v11 = vrot.slane %v204_v1, 5  ;;  %v943_v49 = vld [vmem:[%s799_s12 + $0x28] sm:$0xf] }
  0x2d   : > { %v374_v12 = vshll.u32 %v902_v57, 16  ;;  %v619_v15 = vmax.bf16 %v525_v42, %v483_v4  ;;  %v314_v16 = vmax.bf16 %v717_v60, %v297_v5  ;;  %v380_v17 = vshll.u32 %v726_v3, 16  ;;  %v703_v51 = vld [vmem:[%s799_s12 + $0x68] sm:$0xf]  ;;  %v751_v63 = vld [vmem:[%s799_s12 + $0x2c] sm:$0x1] }
  0x2e   : > { %v373_v8 = vrot.slane %v371_v43, 4  ;;  %v207_v18 = vor.u32 %v206_v11, %v203_v0  ;;  %v212_v19 = vrot.slane %v210_v2, 5  ;;  %v541_v21 = vshrl.u32 %v913_v7, 16  ;;  %v127_v4 = vld [vmem:[%s799_s12 + $0x28] sm:$0xf] }
  0x2f   : > { %v376_v20 = vrot.slane %v374_v12, 5  ;;  %628 = vst.msk [vmem:[%s880_s16 + $0x4] sm:$0xf] %vm626_vm3, %v619_v15  ;;  %v450_v24 = vmax.bf16 %v369_v9, %v314_v16  ;;  %v539_v25 = vsel %vm815_vm2, %v534_v10, %v538_v6  ;;  %v544_v26 = vshll.u32 %v913_v7, 16  ;;  %v704_v5 = vld [vmem:[%s799_s12 + $0x70] sm:$0xf] }
  0x30   : > { %v550_v28 = vshll.u32 %v750_v14, 16  ;;  %v208_v31 = vrot.slane %v207_v18, 4  ;;  %v382_v34 = vrot.slane %v380_v17, 5  ;;  %v543_v13 = vrot.slane %v541_v21, 4  ;;  %v152_v16 = vld [vmem:[%s799_s12 + $0x2c] sm:$0x1] }
  0x31   : > { %v377_v32 = vor.u32 %v376_v20, %v373_v8  ;;  %v467_v35 = vmax.bf16 %v872_v27, %v450_v24  ;;  %v546_v36 = vrot.slane %v544_v26, 5  ;;  %v215_v33 = vshrl.u32 %v921_v22, 16  ;;  %v964_v8 = vld [vmem:[%s799_s12 + $0xb8] sm:$0xf]  ;;  %v742_v17 = vld [vmem:[%s799_s12 + $0x68] sm:$0xf] }
  0x32   : > { %v931_v37 = vrot.slane %v550_v28, 5  ;;  %v213_v39 = vsel %vm815_vm2, %v208_v31, %v212_v19  ;;  %v218_v42 = vshll.u32 %v921_v22, 16  ;;  %v224_v44 = vshll.u32 %v151_v29, 16 }
  0x33   : > { %v378_v41 = vrot.slane %v377_v32, 4  ;;  %v484_v45 = vmax.bf16 %v741_v30, %v467_v35  ;;  %v281_v46 = vmax.bf16 %v213_v39, %v142_v62  ;;  %v547_v47 = vor.u32 %v546_v36, %v543_v13  ;;  %v728_v32 = vld [vmem:[%s799_s12 + $0xbc] sm:$0x1] }
  0x34   : > { %v217_v27 = vrot.slane %v215_v33, 4  ;;  %v220_v52 = vrot.slane %v218_v42, 5  ;;  %v226_v53 = vrot.slane %v224_v44, 5  ;;  %v385_v54 = vshrl.u32 %v935_v38, 16  ;;  %v752_v42 = vld [vmem:[%s799_s12 + $0x34] sm:$0x1] }
  0x35   : > { %v383_v50 = vsel %vm815_vm2, %v378_v41, %v382_v34  ;;  %v620_v55 = vmax.bf16 %v539_v25, %v484_v45  ;;  %v298_v56 = vmax.bf16 %v902_v57, %v281_v46  ;;  %v548_v58 = vrot.slane %v547_v47, 4  ;;  %v719_v25 = vld [vmem:[%s799_s12 + $0xf8] sm:$0xf] }
  0x36   : > { %v388_v59 = vshll.u32 %v935_v38, 16  ;;  %v221_v60 = vor.u32 %v220_v52, %v217_v27  ;;  %v387_v61 = vrot.slane %v385_v54, 4  ;;  %v394_v62 = vshll.u32 %v727_v48, 16 }
  0x37   : > { %v555_v0 = vshrl.u32 %v943_v49, 16  ;;  %629 = vst.msk [vmem:[%s880_s16 + $0x8] sm:$0xf] %vm626_vm3, %v620_v55  ;;  %v315_v1 = vmax.bf16 %v718_v40, %v298_v56  ;;  %v143_v2 = vmax.bf16 %v703_v51, %v921_v22  ;;  %v558_v57 = vshll.u32 %v943_v49, 16  ;;  %v984_v51 = vld [vmem:[%s799_s12 + $0x30] sm:$0xf] }
  0x38   : > { %v390_v3 = vrot.slane %v388_v59, 5  ;;  %v553_v6 = vsel %vm815_vm2, %v548_v58, %v931_v37  ;;  %v222_v43 = vrot.slane %v221_v60, 4  ;;  %v396_v9 = vrot.slane %v394_v62, 5  ;;  %v153_v55 = vld [vmem:[%s799_s12 + $0x34] sm:$0x1] }
  0x39   : > { %v557_v10 = vrot.slane %v555_v0, 4  ;;  %v451_v11 = vmax.bf16 %v383_v50, %v315_v1  ;;  %v560_v14 = vrot.slane %v558_v57, 5  ;;  %v564_v15 = vshll.u32 %v751_v63, 16  ;;  %v743_v56 = vld [vmem:[%s799_s12 + $0x70] sm:$0xf] }
  0x3a   : > { %v391_v12 = vor.u32 %v390_v3, %v387_v61  ;;  %v227_v18 = vsel %vm815_vm2, %v222_v43, %v226_v53  ;;  %v144_v19 = vmax.bf16 %v704_v5, %v127_v4  ;;  %v229_v20 = vshrl.u32 %v127_v4, 16  ;;  %v993_v62 = vld [vmem:[%s799_s12 + $0xc0] sm:$0xf] }
  0x3b   : > { %v232_v21 = vshll.u32 %v127_v4, 16  ;;  %v468_v22 = vmax.bf16 %v913_v7, %v451_v11  ;;  %v282_v24 = vmax.bf16 %v227_v18, %v143_v2  ;;  %v561_v28 = vor.u32 %v560_v14, %v557_v10  ;;  %v977_v7 = vld [vmem:[%s799_s12 + $0x30] sm:$0xf]  ;;  %v720_v3 = vld [vmem:[%s799_s12 + $0x100] sm:$0xf] }
  0x3c   : > { %v392_v26 = vrot.slane %v391_v12, 4  ;;  %v231_v29 = vrot.slane %v229_v20, 4  ;;  %v238_v31 = vshll.u32 %v152_v16, 16  ;;  %v399_v34 = vshrl.u32 %v964_v8, 16  ;;  %v1005_v12 = vld [vmem:[%s799_s12 + $0x38] sm:$0xf] }
  0x3d   : > { %v234_v30 = vrot.slane %v232_v21, 5  ;;  %v485_v13 = vmax.bf16 %v742_v17, %v468_v22  ;;  %v299_v35 = vmax.bf16 %v935_v38, %v282_v24  ;;  %v566_v37 = vrot.slane %v564_v15, 5  ;;  %v705_v17 = vld [vmem:[%s799_s12 + $0x78] sm:$0xf]  ;;  %v753_v22 = vld [vmem:[%s799_s12 + $0x3c] sm:$0x1] }
  0x3e   : > { %v397_v36 = vsel %vm815_vm2, %v392_v26, %v396_v9  ;;  %v240_v39 = vrot.slane %v238_v31, 5  ;;  %v401_v40 = vrot.slane %v399_v34, 4  ;;  %v402_v41 = vshll.u32 %v964_v8, 16  ;;  %v744_v24 = vld [vmem:[%s799_s12 + $0x78] sm:$0xf] }
  0x3f   : > { %v235_v33 = vor.u32 %v234_v30, %v231_v29  ;;  %v621_v44 = vmax.bf16 %v553_v6, %v485_v13  ;;  %v316_v45 = vmax.bf16 %v719_v25, %v299_v35  ;;  %v562_v46 = vrot.slane %v561_v28, 4  ;;  %v129_v13 = vld [vmem:[%s799_s12 + $0x38] sm:$0xf]  ;;  %v154_v35 = vld [vmem:[%s799_s12 + $0x3c] sm:$0x1] }
  0x40   : > { %v408_v38 = vshll.u32 %v728_v32, 16  ;;  %v404_v27 = vrot.slane %v402_v41, 5  ;;  %v569_v48 = vshrl.u32 %v977_v7, 16  ;;  %v572_v50 = vshll.u32 %v977_v7, 16 }
  0x41   : > { %v236_v47 = vrot.slane %v235_v33, 4  ;;  %630 = vst.msk [vmem:[%s880_s16 + $0xc] sm:$0xf] %vm626_vm3, %v621_v44  ;;  %v452_v52 = vmax.bf16 %v397_v36, %v316_v45  ;;  %v578_v54 = vshll.u32 %v752_v42, 16  ;;  %v567_v0 = vsel %vm815_vm2, %v562_v46, %v566_v37  ;;  %v714_v46 = vld [vmem:[%s799_s12 + $0xc8] sm:$0xf] }
  0x42   : > { %v410_v53 = vrot.slane %v408_v38, 5  ;;  %v405_v59 = vor.u32 %v404_v27, %v401_v40  ;;  %v571_v60 = vrot.slane %v569_v48, 4  ;;  %v574_v61 = vrot.slane %v572_v50, 5  ;;  %v706_v40 = vld [vmem:[%s799_s12 + $0x80] sm:$0xf] }
  0x43   : > { %v241_v58 = vsel %vm815_vm2, %v236_v47, %v240_v39  ;;  %v469_v63 = vmax.bf16 %v943_v49, %v452_v52  ;;  %v243_v2 = vshrl.u32 %v984_v51, 16  ;;  %v246_v5 = vshll.u32 %v984_v51, 16  ;;  %v729_v49 = vld [vmem:[%s799_s12 + $0xc4] sm:$0x1]  ;;  %v721_v52 = vld [vmem:[%s799_s12 + $0x108] sm:$0xf] }
  0x44   : > { %v283_v1 = vmax.bf16 %v241_v58, %v144_v19  ;;  %v406_v57 = vrot.slane %v405_v59, 4  ;;  %v575_v4 = vor.u32 %v574_v61, %v571_v60  ;;  %v252_v6 = vshll.u32 %v153_v55, 16  ;;  %v730_v55 = vld [vmem:[%s799_s12 + $0xcc] sm:$0x1]  ;;  %v738_v60 = vld [vmem:[%s799_s12 + $0x40] sm:$0xf] }
  0x45   : > { %v486_v43 = vmax.bf16 %v743_v56, %v469_v63  ;;  %v245_v10 = vrot.slane %v243_v2, 4  ;;  %v413_v11 = vshrl.u32 %v993_v62, 16  ;;  %v580_v16 = vrot.slane %v578_v54, 5  ;;  %v754_v2 = vld [vmem:[%s799_s12 + $0x44] sm:$0x1] }
  0x46   : > { %v300_v9 = vmax.bf16 %v964_v8, %v283_v1  ;;  %v411_v14 = vsel %vm815_vm2, %v406_v57, %v410_v53  ;;  %v576_v15 = vrot.slane %v575_v4, 4  ;;  %v248_v18 = vrot.slane %v246_v5, 5 }
  0x47   : > { %v622_v19 = vmax.bf16 %v567_v0, %v486_v43  ;;  %v415_v21 = vrot.slane %v413_v11, 4  ;;  %v416_v8 = vshll.u32 %v993_v62, 16  ;;  %v254_v26 = vrot.slane %v252_v6, 5 }
  0x48   : > { %v317_v20 = vmax.bf16 %v720_v3, %v300_v9  ;;  %v249_v25 = vor.u32 %v248_v18, %v245_v10  ;;  %v422_v28 = vshll.u32 %v729_v49, 16  ;;  %v583_v29 = vshrl.u32 %v1005_v12, 16  ;;  %v745_v18 = vld [vmem:[%s799_s12 + $0x80] sm:$0xf] }
  0x49   : > { %631 = vst.msk [vmem:[%s880_s16 + $0x10] sm:$0xf] %vm626_vm3, %v622_v19  ;;  %v145_v31 = vmax.bf16 %v705_v17, %v984_v51  ;;  %v418_v32 = vrot.slane %v416_v8, 5  ;;  %v586_v34 = vshll.u32 %v1005_v12, 16  ;;  %v581_v36 = vsel %vm815_vm2, %v576_v15, %v580_v16 }
  0x4a   : > { %v453_v30 = vmax.bf16 %v411_v14, %v317_v20  ;;  %v250_v37 = vrot.slane %v249_v25, 4  ;;  %v585_v33 = vrot.slane %v583_v29, 4  ;;  %v592_v39 = vshll.u32 %v753_v22, 16 }
  0x4b   : > { %v419_v42 = vor.u32 %v418_v32, %v415_v21  ;;  %v424_v44 = vrot.slane %v422_v28, 5  ;;  %v588_v45 = vrot.slane %v586_v34, 5  ;;  %v257_v47 = vshrl.u32 %v129_v13, 16  ;;  %v722_v28 = vld [vmem:[%s799_s12 + $0x110] sm:$0xf] }
  0x4c   : > { %v470_v41 = vmax.bf16 %v977_v7, %v453_v30  ;;  %v255_v38 = vsel %vm815_vm2, %v250_v37, %v254_v26  ;;  %v260_v27 = vshll.u32 %v129_v13, 16  ;;  %v266_v48 = vshll.u32 %v154_v35, 16  ;;  %v746_v37 = vld [vmem:[%s799_s12 + $0x88] sm:$0xf] }
  0x4d   : > { %v284_v51 = vmax.bf16 %v255_v38, %v145_v31  ;;  %v420_v53 = vrot.slane %v419_v42, 4  ;;  %v146_v54 = vmax.bf16 %v706_v40, %v129_v13  ;;  %v589_v7 = vor.u32 %v588_v45, %v585_v33 }
  0x4e   : > { %v487_v50 = vmax.bf16 %v744_v24, %v470_v41  ;;  %v259_v56 = vrot.slane %v257_v47, 4  ;;  %v262_v58 = vrot.slane %v260_v27, 5  ;;  %v427_v59 = vshrl.u32 %v714_v46, 16 }
  0x4f   : > { %v301_v63 = vmax.bf16 %v993_v62, %v284_v51  ;;  %v425_v0 = vsel %vm815_vm2, %v420_v53, %v424_v44  ;;  %v268_v1 = vrot.slane %v266_v48, 5  ;;  %v430_v4 = vshll.u32 %v714_v46, 16 }
  0x50   : > { %v623_v61 = vmax.bf16 %v581_v36, %v487_v50  ;;  %v263_v3 = vor.u32 %v262_v58, %v259_v56  ;;  %v429_v57 = vrot.slane %v427_v59, 4  ;;  %v436_v5 = vshll.u32 %v730_v55, 16 }
  0x51   : > { %v318_v6 = vmax.bf16 %v721_v52, %v301_v63  ;;  %v594_v43 = vrot.slane %v592_v39, 5  ;;  %v597_v9 = vshrl.u32 %v738_v60, 16  ;;  %v600_v10 = vshll.u32 %v738_v60, 16 }
  0x52   : > { %632 = vst.msk [vmem:[%s880_s16 + $0x14] sm:$0xf] %vm626_vm3, %v623_v61  ;;  %v590_v49 = vrot.slane %v589_v7, 4  ;;  %v264_v11 = vrot.slane %v263_v3, 4  ;;  %v432_v62 = vrot.slane %v430_v4, 5  ;;  %v606_v14 = vshll.u32 %v754_v2, 16 }
  0x53   : > { %v454_v15 = vmax.bf16 %v425_v0, %v318_v6  ;;  %v599_v16 = vrot.slane %v597_v9, 4  ;;  %v602_v17 = vrot.slane %v600_v10, 5  ;;  %v438_v21 = vrot.slane %v436_v5, 5 }
  0x54   : > { %v269_v19 = vsel %vm815_vm2, %v264_v11, %v268_v1  ;;  %v433_v20 = vor.u32 %v432_v62, %v429_v57  ;;  %v608_v25 = vrot.slane %v606_v14, 5  ;;  %v595_v26 = vsel %vm815_vm2, %v590_v49, %v594_v43 }
  0x55   : > { %v471_v8 = vmax.bf16 %v1005_v12, %v454_v15  ;;  %v285_v22 = vmax.bf16 %v269_v19, %v146_v54  ;;  %v603_v24 = vor.u32 %v602_v17, %v599_v16 }
  0x56   : > { %v434_v29 = vrot.slane %v433_v20, 4 }
  0x57   : > { %v488_v30 = vmax.bf16 %v745_v18, %v471_v8  ;;  %v302_v31 = vmax.bf16 %v714_v46, %v285_v22  ;;  %v604_v32 = vrot.slane %v603_v24, 4 }
  0x58   : > { %v439_v34 = vsel %vm815_vm2, %v434_v29, %v438_v21 }
  0x59   : > { %v624_v13 = vmax.bf16 %v595_v26, %v488_v30  ;;  %v319_v35 = vmax.bf16 %v722_v28, %v302_v31  ;;  %v609_v12 = vsel %vm815_vm2, %v604_v32, %v608_v25 }
  0x5b   : > { %633 = vst.msk [vmem:[%s880_s16 + $0x18] sm:$0xf] %vm626_vm3, %v624_v13  ;;  %v455_v36 = vmax.bf16 %v439_v34, %v319_v35 }
  0x5d   : > { %v472_v33 = vmax.bf16 %v738_v60, %v455_v36 }
  0x5f   : > { %v489_v39 = vmax.bf16 %v746_v37, %v472_v33 }
  0x61   : > { %v625_v40 = vmax.bf16 %v609_v12, %v489_v39 }
  0x63   : > { %634 = vst.msk [vmem:[%s880_s16 + $0x1c] sm:$0xf] %vm626_vm3, %v625_v40 }
  0x64 PF: > { %s11_s6 = sadd.s32 1, %s773_s6  }
  0x65   : > { %p8_p5 = scmp.ge.s32.totalorder %s11_s6, 4  }
  0x67   :  { %10 = sbr.rel (!%p8_p5) target bundleno = 1 (0x1), region = 59 }

// kernel: input_conv_forward.17
= control target key start
LH: loop header
LB: loop body
LE: loop exit
PB: predicated region body
PF: predicated region fallthrough
CT: control target
= control target key end

     0   :  { %s883_s21 = smov 0   ;;  %s1018_s0 = inlined_call_operand.vmem [shape: bf16[128,256], index: 0, kind: input, shape index: {}]   ;;  %s1019_s1 = inlined_call_operand.vmem [shape: bf16[256,128], index: 1, kind: input, shape index: {}]   ;;  %s1020_s2 = inlined_call_operand.vmem [shape: f32[1,256], index: 2, kind: input, shape index: {}]   ;;  %s1021_s3 = inlined_call_operand.vmem [shape: f32[1,256], index: 3, kind: input, shape index: {}]   ;;  %s1022_s4 = inlined_call_operand.vmem [shape: f32[1,128], index: 4, kind: input, shape index: {}]   ;;  %s1023_s5 = inlined_call_operand.vmem [shape: f32[1,128], index: 5, kind: input, shape index: {}]   ;;  %s1024_s6 = inlined_call_operand.vmem [shape: bf16[128,128], index: 6, kind: output, shape index: {}]  }
   0x1 LB: > { %s690_s22 = sadd.s32 4294967295, %s846_s21   ;;  %p694_p0 = scmp.ge.s32.totalorder %s846_s21, 1  ;;  %s846_s21 = sphi %s883_s21, %s16_s21  }
   0x2   : > { %p214_p1 = scmp.lt.s32.totalorder %s846_s21, 3 }
   0x4   : > { %p215_p2 = pnand %p694_p0, %p214_p1 }
   0x5   : > { %v824_v0 = vld [vmem:[%s1019_s1 + $0x40] sm:$0xff] (!%p215_p2)   ;;  %s695_s25 = sshll.u32 (!%p215_p2), %s690_s22, 3  ;;  %v826_v2 = vld [vmem:[%s1019_s1 + $0x48] sm:$0xff] (!%p215_p2)   ;;  %v828_v4 = vld [vmem:[%s1019_s1 + $0x50] sm:$0xff] (!%p215_p2)   ;;  %v285_v5 = vlaneseq (!%p215_p2) }
   0x6   : > { %218 = sbr.rel (%p215_p2) target bundleno = 273 (0x111), region = 44  ;;  %v825_v1 = vld [vmem:[%s1019_s1] sm:$0xff] (!%p215_p2)   ;;  %760 = vmatprep.subr.bf16.mxu0 (!%p215_p2), %v824_v0  ;;  %800 = vmatprep.subr.bf16.mxu1 (!%p215_p2), %v824_v0  ;;  %p246_p3 = scmp.lt.s32.totalorder (!%p215_p2), %s695_s25, 15  ;;  %v827_v3 = vld [vmem:[%s1019_s1 + $0x8] sm:$0xff] (!%p215_p2)   ;;  %v829_v6 = vld [vmem:[%s1019_s1 + $0x10] sm:$0xff] (!%p215_p2)  }
   0x7   : > { %761 = vmatpush3.bf16.msra.mxu0 (!%p215_p2), %v825_v1  ;;  %808 = vmatpush3.bf16.msra.mxu1 (!%p215_p2), %v825_v1  ;;  %v830_v7 = vld [vmem:[%s1019_s1 + $0x58] sm:$0xff] (!%p215_p2)   ;;  %v286_v8 = vshrl.u32 (!%p215_p2), %v285_v5, 7  ;;  %v832_v10 = vld [vmem:[%s1019_s1 + $0x60] sm:$0xff] (!%p215_p2)   ;;  %v834_v14 = vld [vmem:[%s1019_s1 + $0x68] sm:$0xff] (!%p215_p2)  }
   0x8   : > { %762 = vmatprep.subr.bf16.mxu0 (!%p215_p2), %v826_v2  ;;  %801 = vmatprep.subr.bf16.mxu1 (!%p215_p2), %v826_v2  ;;  %v831_v9 = vld [vmem:[%s1019_s1 + $0x18] sm:$0xff] (!%p215_p2)   ;;  %v833_v12 = vld [vmem:[%s1019_s1 + $0x20] sm:$0xff] (!%p215_p2)   ;;  %v835_v30 = vld [vmem:[%s1019_s1 + $0x28] sm:$0xff] (!%p215_p2)  }
   0x9   : > { %v287_v11 = vsub.s32 (!%p215_p2), 0, %v286_v8  ;;  %v291_v13 = vsub.s32 (!%p215_p2), 1, %v286_v8  ;;  %v283_v17 = vld [vmem:[%s1020_s2] sm:$0x3] (!%p215_p2)  ;;  %v836_v35 = vld [vmem:[%s1019_s1 + $0x70] sm:$0xff] (!%p215_p2)   ;;  %v838_v54 = vld [vmem:[%s1019_s1 + $0x78] sm:$0xff] (!%p215_p2)  }
   0xa   : > { %v311_v22 = vld [vmem:[%s1021_s3] sm:$0x3] (!%p215_p2)  ;;  %v837_v49 = vld [vmem:[%s1019_s1 + $0x30] sm:$0xff] (!%p215_p2)   ;;  %v839_v5 = vld [vmem:[%s1019_s1 + $0x38] sm:$0xff] (!%p215_p2)  }
   0xb   : > { %763 = vmatpush3.bf16.msra.mxu0 (!%p215_p2), %v827_v3  ;;  %809 = vmatpush3.bf16.msra.mxu1 (!%p215_p2), %v827_v3  ;;  %v942_v25 = vrot.slane (!%p215_p2), %v283_v17, %v287_v11  ;;  %v944_v26 = vrot.slane (!%p215_p2), %v283_v17, %v291_v13  ;;  %v946_v27 = vrot.slane (!%p215_p2), %v311_v22, %v287_v11 }
   0xc   : > { %764 = vmatprep.subr.bf16.mxu0 (!%p215_p2), %v828_v4  ;;  %802 = vmatprep.subr.bf16.mxu1 (!%p215_p2), %v828_v4  ;;  %v948_v28 = vrot.slane (!%p215_p2), %v311_v22, %v291_v13 }
   0xd   : > { %s1026_s25 = smov (!%p246_p3, %s695_s25), 15 }
   0xe   : > { %s728_s14 = sshll.u32 %s1026_s25, 3  ;;  %s699_s23 = sshll.u32 %s1026_s25, 2 }
   0xf   : > { %765 = vmatpush3.bf16.msra.mxu0 %v829_v6  ;;  %810 = vmatpush3.bf16.msra.mxu1 %v829_v6  ;;  %s924_s22 = scalar_lea.vmem %s1018_s0, %s728_s14  ;;  %s256_s27 = scalar_lea.vmem %s1024_s6, %s699_s23 }
  0x10   : > { %766 = vmatprep.subr.bf16.mxu0 %v830_v7  ;;  %803 = vmatprep.subr.bf16.mxu1 %v830_v7  ;;  %v259_v15 = vld [vmem:[%s924_s22] sm:$0xff]  ;;  %v260_v16 = vld [vmem:[%s924_s22 + $0x8] sm:$0xff]  ;;  %v951_v29 = vld [vmem:[%s924_s22 + $0x10] sm:$0xff] }
  0x11   : > { %v267_v18 = vunpack.c.l.bf16 %v259_v15  ;;  %v268_v19 = vunpack.c.h.bf16 %v259_v15  ;;  %v269_v20 = vunpack.c.l.bf16 %v260_v16  ;;  %v270_v21 = vunpack.c.h.bf16 %v260_v16  ;;  %v263_v23 = vld [vmem:[%s924_s22 + $0x20] sm:$0xff]  ;;  %v264_v24 = vld [vmem:[%s924_s22 + $0x28] sm:$0xff]  ;;  %v262_v39 = vld [vmem:[%s924_s22 + $0x18] sm:$0xff] }
  0x12   : > { %v275_v31 = vunpack.c.l.bf16 %v263_v23  ;;  %v276_v32 = vunpack.c.h.bf16 %v263_v23  ;;  %v277_v33 = vunpack.c.l.bf16 %v264_v24  ;;  %v278_v34 = vunpack.c.h.bf16 %v264_v24  ;;  %v265_v59 = vld [vmem:[%s924_s22 + $0x30] sm:$0xff]  ;;  %v266_v0 = vld [vmem:[%s924_s22 + $0x38] sm:$0xff] }
  0x13   : > { %767 = vmatpush3.bf16.msra.mxu0 %v831_v9  ;;  %811 = vmatpush3.bf16.msra.mxu1 %v831_v9  ;;  %v296_v36 = vmul.f32 %v944_v26, %v268_v19  ;;  %v298_v37 = vmul.f32 %v944_v26, %v270_v21  ;;  %v295_v38 = vmul.f32 %v942_v25, %v267_v18  ;;  %v272_v40 = vunpack.c.h.bf16 %v951_v29 }
  0x14   : > { %768 = vmatprep.subr.bf16.mxu0 %v832_v10  ;;  %804 = vmatprep.subr.bf16.mxu1 %v832_v10  ;;  %v304_v41 = vmul.f32 %v944_v26, %v276_v32  ;;  %v306_v42 = vmul.f32 %v944_v26, %v278_v34  ;;  %v297_v43 = vmul.f32 %v942_v25, %v269_v20  ;;  %v274_v53 = vunpack.c.h.bf16 %v262_v39 }
  0x15   : > { %v303_v44 = vmul.f32 %v942_v25, %v275_v31  ;;  %v324_v45 = vadd.f32 %v948_v28, %v296_v36  ;;  %v326_v46 = vadd.f32 %v948_v28, %v298_v37  ;;  %v323_v47 = vadd.f32 %v946_v27, %v295_v38 }
  0x16   : > { %v305_v48 = vmul.f32 %v942_v25, %v277_v33  ;;  %v332_v50 = vadd.f32 %v948_v28, %v304_v41  ;;  %v334_v51 = vadd.f32 %v948_v28, %v306_v42  ;;  %v325_v52 = vadd.f32 %v946_v27, %v297_v43 }
  0x17   : > { %769 = vmatpush3.bf16.msra.mxu0 %v833_v12  ;;  %812 = vmatpush3.bf16.msra.mxu1 %v833_v12  ;;  %v340_v55 = vmax.f32 %v324_v45, 0.0  ;;  %v342_v56 = vmax.f32 %v326_v46, 0.0  ;;  %v339_v57 = vmax.f32 %v323_v47, 0.0  ;;  %v331_v58 = vadd.f32 %v946_v27, %v303_v44  ;;  %v716_v46 = vld [vmem:[%s1022_s4] ss:$0 sm:$0xff] }
  0x18   : > { %770 = vmatprep.subr.bf16.mxu0 %v834_v14  ;;  %805 = vmatprep.subr.bf16.mxu1 %v834_v14  ;;  %v348_v60 = vmax.f32 %v332_v50, 0.0  ;;  %v350_v61 = vmax.f32 %v334_v51, 0.0  ;;  %v341_v62 = vmax.f32 %v325_v52, 0.0  ;;  %v333_v63 = vadd.f32 %v946_v27, %v305_v48  ;;  %v717_v51 = vld [vmem:[%s1023_s5] ss:$0 sm:$0xff] }
  0x19   : > { %v356_v1 = vpack.c.bf16 %v342_v56, %v340_v55  ;;  %v347_v2 = vmax.f32 %v331_v58, 0.0  ;;  %v300_v3 = vmul.f32 %v944_v26, %v272_v40  ;;  %v302_v4 = vmul.f32 %v944_v26, %v274_v53 }
  0x1a   : > { %v360_v6 = vpack.c.bf16 %v350_v61, %v348_v60  ;;  %v355_v7 = vpack.c.bf16 %v341_v62, %v339_v57  ;;  %v349_v8 = vmax.f32 %v333_v63, 0.0  ;;  %v280_v9 = vunpack.c.h.bf16 %v265_v59 }
  0x1b   : > { %771 = vmatpush3.bf16.msra.mxu0 %v835_v30  ;;  %813 = vmatpush3.bf16.msra.mxu1 %v835_v30  ;;  %v328_v10 = vadd.f32 %v948_v28, %v300_v3  ;;  %v330_v11 = vadd.f32 %v948_v28, %v302_v4  ;;  %v282_v12 = vunpack.c.h.bf16 %v266_v0  ;;  %v271_v13 = vunpack.c.l.bf16 %v951_v29 }
  0x1c   : > { %772 = vmatprep.subr.bf16.mxu0 %v836_v35  ;;  %806 = vmatprep.subr.bf16.mxu1 %v836_v35  ;;  %v359_v14 = vpack.c.bf16 %v349_v8, %v347_v2  ;;  %v308_v15 = vmul.f32 %v944_v26, %v280_v9  ;;  %v273_v16 = vunpack.c.l.bf16 %v262_v39  ;;  %v279_v17 = vunpack.c.l.bf16 %v265_v59 }
  0x1d   : > { %523 = vmatprep.mubr.bf16.mxu0 %v356_v1  ;;  %539 = vmatprep.mubr.bf16.mxu1 %v360_v6  ;;  %v344_v18 = vmax.f32 %v328_v10, 0.0  ;;  %v346_v19 = vmax.f32 %v330_v11, 0.0  ;;  %v310_v20 = vmul.f32 %v944_v26, %v282_v12  ;;  %v299_v21 = vmul.f32 %v942_v25, %v271_v13 }
  0x1e   : > { %v336_v22 = vadd.f32 %v948_v28, %v308_v15  ;;  %v301_v23 = vmul.f32 %v942_v25, %v273_v16  ;;  %v281_v24 = vunpack.c.l.bf16 %v266_v0  ;;  %v307_v29 = vmul.f32 %v942_v25, %v279_v17 }
  0x1f   : > { %773 = vmatpush3.bf16.msra.mxu0 %v837_v49  ;;  %814 = vmatpush3.bf16.msra.mxu1 %v837_v49  ;;  %v358_v30 = vpack.c.bf16 %v346_v19, %v344_v18  ;;  %v338_v31 = vadd.f32 %v948_v28, %v310_v20  ;;  %v327_v32 = vadd.f32 %v946_v27, %v299_v21 }
  0x20   : > { %774 = vmatprep.subr.bf16.mxu0 %v838_v54  ;;  %807 = vmatprep.subr.bf16.mxu1 %v838_v54  ;;  %v352_v33 = vmax.f32 %v336_v22, 0.0  ;;  %v329_v34 = vadd.f32 %v946_v27, %v301_v23  ;;  %v309_v26 = vmul.f32 %v942_v25, %v281_v24  ;;  %v335_v35 = vadd.f32 %v946_v27, %v307_v29 }
  0x21   : > { %v354_v36 = vmax.f32 %v338_v31, 0.0  ;;  %v343_v37 = vmax.f32 %v327_v32, 0.0 }
  0x22   : > { %v345_v38 = vmax.f32 %v329_v34, 0.0  ;;  %v337_v39 = vadd.f32 %v946_v27, %v309_v26  ;;  %v351_v40 = vmax.f32 %v335_v35, 0.0 }
  0x23   : > { %775 = vmatpush3.bf16.msra.mxu0 %v839_v5  ;;  %815 = vmatpush3.bf16.msra.mxu1 %v839_v5  ;;  %v362_v41 = vpack.c.bf16 %v354_v36, %v352_v33 }
  0x24   : > { %v353_v28 = vmax.f32 %v337_v39, 0.0  ;;  %v357_v42 = vpack.c.bf16 %v345_v38, %v343_v37 }
  0x26   : > { %524 = vmatmul.mubr.bf16.vlgmr.msra.gmra.mrb[0].mxu0 %v355_v7  ;;  %540 = vmatmul.mubr.bf16.vlgmr.msra.gmra.mrb[0].mxu1 %v359_v14  ;;  %v361_v43 = vpack.c.bf16 %v353_v28, %v351_v40 }
  0x27   : > { %531 = vmatprep.mubr.bf16.mxu0 %v358_v30  ;;  %547 = vmatprep.mubr.bf16.mxu1 %v362_v41 }
  0x2e   : > { %532 = vmatmul.mubr.bf16.gmra.mrb[4].mxu0 %v357_v42  ;;  %548 = vmatmul.mubr.bf16.gmra.mrb[4].mxu1 %v361_v43 }
  0xf9   : > { %v776_v44 = vpop.f32.mrb[0].mxu0  ;;  %v788_v25 = vpop.f32.mrb[0].mxu1 }
  0xfa   : > { %v777_v45 = vpop.f32.mrb[1].mxu0  ;;  %v789_v47 = vpop.f32.mrb[1].mxu1 }
  0xfb   : > { %v778_v48 = vadd.f32 %v777_v45, %v776_v44  ;;  %v790_v49 = vadd.f32 %v789_v47, %v788_v25  ;;  %v779_v27 = vpop.f32.mrb[2].mxu0  ;;  %v791_v50 = vpop.f32.mrb[2].mxu1 }
  0xfc   : > { %v780_v52 = vpop.f32.mrb[3].mxu0  ;;  %v792_v53 = vpop.f32.mrb[3].mxu1 }
  0xfd   : > { %v563_v54 = vmul.f32 %v778_v48, %v716_v46  ;;  %v567_v55 = vmul.f32 %v790_v49, %v716_v46  ;;  %v781_v56 = vadd.f32 %v780_v52, %v779_v27  ;;  %v793_v57 = vadd.f32 %v792_v53, %v791_v50 }
  0xff   : > { %v578_v58 = vadd.f32 %v717_v51, %v563_v54  ;;  %v582_v59 = vadd.f32 %v717_v51, %v567_v55  ;;  %v564_v60 = vmul.f32 %v781_v56, %v716_v46  ;;  %v568_v61 = vmul.f32 %v793_v57, %v716_v46 }
 0x101   : > { %v579_v62 = vadd.f32 %v717_v51, %v564_v60  ;;  %v583_v63 = vadd.f32 %v717_v51, %v568_v61  ;;  %v782_v0 = vpop.f32.mrb[4].mxu0  ;;  %v794_v1 = vpop.f32.mrb[4].mxu1  ;;  %v586_v2 = vmax.f32 %v578_v58, 0.0  ;;  %v590_v3 = vmax.f32 %v582_v59, 0.0 }
 0x102   : > { %v783_v4 = vpop.f32.mrb[5].mxu0  ;;  %v795_v5 = vpop.f32.mrb[5].mxu1 }
 0x103   : > { %v587_v6 = vmax.f32 %v579_v62, 0.0  ;;  %v591_v7 = vmax.f32 %v583_v63, 0.0  ;;  %v784_v8 = vadd.f32 %v783_v4, %v782_v0  ;;  %v796_v9 = vadd.f32 %v795_v5, %v794_v1  ;;  %v785_v10 = vpop.f32.mrb[6].mxu0  ;;  %v797_v11 = vpop.f32.mrb[6].mxu1 }
 0x104   : > { %v786_v12 = vpop.f32.mrb[7].mxu0  ;;  %v798_v13 = vpop.f32.mrb[7].mxu1 }
 0x105   : > { %v740_v14 = vpack.c.bf16 %v587_v6, %v586_v2  ;;  %v750_v15 = vpack.c.bf16 %v591_v7, %v590_v3  ;;  %v565_v16 = vmul.f32 %v784_v8, %v716_v46  ;;  %v569_v17 = vmul.f32 %v796_v9, %v716_v46 }
 0x106   : > { %v787_v18 = vadd.f32 %v786_v12, %v785_v10  ;;  %v799_v19 = vadd.f32 %v798_v13, %v797_v11 }
 0x107   : > { %741 = vst [vmem:[%s256_s27] sm:$0xff] %v740_v14   ;;  %758 = vst [vmem:[%s256_s27 + $0x10] sm:$0xff] %v750_v15   ;;  %v580_v20 = vadd.f32 %v717_v51, %v565_v16  ;;  %v584_v21 = vadd.f32 %v717_v51, %v569_v17 }
 0x108   : > { %v566_v22 = vmul.f32 %v787_v18, %v716_v46  ;;  %v570_v23 = vmul.f32 %v799_v19, %v716_v46 }
 0x109   : > { %v588_v30 = vmax.f32 %v580_v20, 0.0  ;;  %v592_v31 = vmax.f32 %v584_v21, 0.0 }
 0x10a   : > { %v581_v24 = vadd.f32 %v717_v51, %v566_v22  ;;  %v585_v29 = vadd.f32 %v717_v51, %v570_v23 }
 0x10c   : > { %v589_v32 = vmax.f32 %v581_v24, 0.0  ;;  %v593_v33 = vmax.f32 %v585_v29, 0.0 }
 0x10e   : > { %v745_v34 = vpack.c.bf16 %v589_v32, %v588_v30  ;;  %v755_v26 = vpack.c.bf16 %v593_v33, %v592_v31 }
 0x110   : > { %757 = vst [vmem:[%s256_s27 + $0x8] sm:$0xff] %v745_v34   ;;  %759 = vst [vmem:[%s256_s27 + $0x18] sm:$0xff] %v755_v26  }
 0x111 PF: > { %s16_s21 = sadd.s32 1, %s846_s21  }
 0x112   : > { %p13_p4 = scmp.ge.s32.totalorder %s16_s21, 4  }
 0x114   :  { %15 = sbr.rel (!%p13_p4) target bundleno = 1 (0x1), region = 74 }

// kernel: input_conv_forward.15
= control target key start
LH: loop header
LB: loop body
LE: loop exit
PB: predicated region body
PF: predicated region fallthrough
CT: control target
= control target key end

     0   :  { %s12011_s15 = smov 0   ;;  %s15157_s0 = inlined_call_operand.vmem [shape: bf16[2,19,19,12], index: 0, kind: input, shape index: {}]   ;;  %s15158_s1 = inlined_call_operand.vmem [shape: bf16[16,12,64], index: 1, kind: input, shape index: {}]   ;;  %s15159_s2 = inlined_call_operand.vmem [shape: f32[1,64], index: 2, kind: input, shape index: {}]   ;;  %s15160_s3 = inlined_call_operand.vmem [shape: f32[1,64], index: 3, kind: input, shape index: {}]   ;;  %s15161_s4 = inlined_call_operand.vmem [shape: bf16[2,256,64], index: 4, kind: output, shape index: {}]  }
   0x1 LB: > { %s9450_s16 = sadd.s32 4294967295, %s11984_s15   ;;  %p9454_p0 = scmp.ge.s32.totalorder %s11984_s15, 1  ;;  %s11984_s15 = sphi %s12011_s15, %s14_s15  }
   0x2   : > { %p162_p1 = scmp.lt.s32.totalorder %s11984_s15, 3 }
   0x4   : > { %p163_p2 = pnand %p9454_p0, %p162_p1 }
   0x6   : > { %166 = sbr.rel (%p163_p2) target bundleno = 964 (0x3c4), region = 36 }
   0xd   : > { %vm741_vm0 = vcmask 1045504   ;;  %p188_p3 = scmp.lt.s32.totalorder %s9450_s16, 1  ;;  %v11806_v0 = vld [vmem:[%s15158_s1 + $0x40] sm:$0x3f]   ;;  %v11809_v1 = vld [vmem:[%s15158_s1 + $0x8] sm:$0x3f]  }
   0xe   : > { %11789 = vmatprep.subr.msk.bf16.mxu0 %vm741_vm0, %v11806_v0  ;;  %v4780_v2 = vsel %vm741_vm0, %v11806_v0, 0  ;;  %vm692_vm1 = vcmask 97280   ;;  %11781 = vmatprep.subr.msk.bf16.mxu1 %vm741_vm0, %v11809_v1  ;;  %v743_v3 = vsel %vm741_vm0, %v11809_v1, 0  ;;  %vm249_vm2 = vsmask.f32 3328 }
   0xf   : > { %s15617_s16 = smov (!%p188_p3, %s9450_s16), 1  ;;  %11030 = vmatpush3.bf16.msra.mxu0 %v4780_v2  ;;  %10758 = vmatpush3.bf16.msra.mxu1 %v743_v3  ;;  %vm250_vm3 = vsmask.f32 7440  ;;  %v11811_v4 = vld [vmem:[%s15158_s1] sm:$0x3f]   ;;  %v15383_v38 = vmov 0 }
  0x10   : > { %s11797_s21 = smul.u32 228, %s15617_s16  ;;  %v11813_v5 = vld [vmem:[%s15158_s1 + $0x48] sm:$0x3f]   ;;  %11782 = vmatprep.subr.msk.bf16.mxu1 %vm741_vm0, %v11811_v4  ;;  %v12069_v20 = vsel %vm741_vm0, %v11811_v4, 0  ;;  %vm12092_vm4 = vmor %vm249_vm2, %vm250_vm3  ;;  %vm1251_vm5 = vcmask 1042432   ;;  %vm1252_vm6 = vcmask 1046532  }
  0x11   : > { %11790 = vmatprep.subr.msk.bf16.mxu0 %vm741_vm0, %v11813_v5  ;;  %v5512_v8 = vsel %vm741_vm0, %v11813_v5, 0  ;;  %v15384_v38 = vsel %vm12092_vm4, 4294967295, %v15383_v38  ;;  %vm12799_vm7 = vmor %vm1251_vm5, %vm1252_vm6  ;;  %vm1682_vm8 = vsmask.f32 2304  ;;  %vm1683_vm9 = vsmask.f32 6416 }
  0x12   : > { %s12038_s26 = scalar_lea.vmem %s15157_s0, %s11797_s21  ;;  %15385 = vst [vmem:[#allocation6_spill] sm:$0xff] %v15384_v38  ;;  %vm13193_vm10 = vmor %vm1682_vm8, %vm1683_vm9  ;;  %s10452_s9 = sshll.u32 %s15617_s16, 7  ;;  %vm9362_vm11 = vcmask 519168  }
  0x13   : > { %v11807_v6 = vld [vmem:[%s12038_s26 + $0x18] sm:$0xff]   ;;  %v11808_v7 = vld [vmem:[%s12038_s26 + $0x24] sm:$0xff]   ;;  %v11810_v9 = vld [vmem:[%s12038_s26 + $0x30] sm:$0xff]   ;;  %s15031_s12 = scalar_lea.vmem %s15161_s4, %s10452_s9 }
  0x14   : > { %11031 = vmatprep.mubr.msk.bf16.mxu0 %vm692_vm1, %v11807_v6  ;;  %v12052_v10 = vld [vmem:[%s12038_s26] sm:$0xf]  ;;  %v12055_v11 = vld [vmem:[%s12038_s26 + $0x4] sm:$0xf]  ;;  %v12058_v12 = vld [vmem:[%s12038_s26 + $0x8] sm:$0x1] }
  0x15   : > { %11032 = vmatmul.mubr.msk.bf16.vlgmr.msra.gmra.mrb[0].mxu0 %vm692_vm1, %v11808_v7  ;;  %15379 = vst [vmem:[#allocation2_spill] sm:$0xff] %v12058_v12  ;;  %v253_v13 = vshrl.u32 %v12052_v10, 16  ;;  %v256_v14 = vshll.u32 %v12052_v10, 16  ;;  %v262_v15 = vshll.u32 %v12055_v11, 16  ;;  %v266_v16 = vshrl.u32 %v12055_v11, 16  ;;  %v11812_v19 = vld [vmem:[%s12038_s26 + $0x3c] sm:$0xff]  }
  0x16   : > { %11035 = vmatprep.mubr.msk.bf16.mxu0 %vm692_vm1, %v11810_v9  ;;  %11064 = vmatpush3.bf16.msra.mxu0 %v5512_v8  ;;  %v272_v17 = vshll.u32 %v12058_v12, 16  ;;  %v12074_v26 = vld [vmem:[%s12038_s26 + $0xc] sm:$0xf]  ;;  %v12082_v31 = vld [vmem:[%s12038_s26 + $0x10] sm:$0xf]  ;;  %v11815_v62 = vld [vmem:[%s12038_s26 + $0x54] sm:$0xff]  }
  0x17   : > { %v255_v22 = vrot.slane %v253_v13, 4  ;;  %v258_v23 = vrot.slane %v256_v14, 5  ;;  %v264_v24 = vrot.slane %v262_v15, 5  ;;  %v268_v25 = vrot.slane %v266_v16, 4  ;;  %v11814_v27 = vld [vmem:[%s12038_s26 + $0x48] sm:$0xff]  }
  0x18   : > { %v274_v28 = vrot.slane %v272_v17, 5  ;;  %v12077_v29 = vrot.slane %v266_v16, 5  ;;  %v12079_v30 = vrot.slane %v262_v15, 6  ;;  %v277_v32 = vshrl.u32 %v12074_v26, 16  ;;  %v12086_v35 = vld [vmem:[%s12038_s26 + $0x14] sm:$0x1] }
  0x19   : > { %v259_v33 = vor.u32 %v258_v23, %v255_v22  ;;  %v269_v34 = vor.u32 %v268_v25, %v264_v24  ;;  %15382 = vst [vmem:[#allocation5_spill] sm:$0xff] %v12086_v35  ;;  %v280_v36 = vshll.u32 %v12074_v26, 16  ;;  %v286_v37 = vshll.u32 %v12082_v31, 16  ;;  %v12100_v47 = vld [vmem:[%s12038_s26 + $0x18] sm:$0xf]  ;;  %v11816_v17 = vld [vmem:[%s12038_s26 + $0x60] sm:$0xff]  }
  0x1a   : > { %15380 = vst [vmem:[#allocation3_spill] sm:$0xff] %v12077_v29  ;;  %15381 = vst [vmem:[#allocation4_spill] sm:$0xff] %v12079_v30  ;;  %v279_v39 = vrot.slane %v277_v32, 4  ;;  %v290_v40 = vshrl.u32 %v12082_v31, 16  ;;  %v296_v41 = vshll.u32 %v12086_v35, 16  ;;  %v301_v57 = vshrl.u32 %v12100_v47, 16 }
  0x1b   : > { %v260_v43 = vrot.slane %v259_v33, 4  ;;  %v270_v44 = vrot.slane %v269_v34, 4  ;;  %v282_v45 = vrot.slane %v280_v36, 5  ;;  %v288_v46 = vrot.slane %v286_v37, 5  ;;  %v12104_v52 = vld [vmem:[%s12038_s26 + $0x1c] sm:$0xf] }
  0x1c   : > { %v292_v48 = vrot.slane %v290_v40, 4  ;;  %v298_v49 = vrot.slane %v296_v41, 5  ;;  %v1717_v50 = vrot.slane %v290_v40, 5  ;;  %v1718_v51 = vrot.slane %v286_v37, 6  ;;  %15386 = vst [vmem:[#allocation7_spill] sm:$0xff] %v12104_v52 }
  0x1d   : > { %11036 = vmatmul.mubr.msk.bf16.gmra.mrb[4].mxu0 %vm692_vm1, %v11812_v19  ;;  %v265_v53 = vsel %vm12092_vm4, %v260_v43, %v264_v24  ;;  %v275_v54 = vsel %vm12092_vm4, %v270_v44, %v274_v28  ;;  %v283_v55 = vor.u32 %v282_v45, %v279_v39  ;;  %v235_v56 = vld [vmem:[%s12038_s26 + $0x20] sm:$0x1]  ;;  %v304_v61 = vshll.u32 %v12100_v47, 16  ;;  %v12118_v63 = vld [vmem:[%s12038_s26 + $0x24] sm:$0xf] }
  0x1e   : > { %11039 = vmatprep.mubr.msk.bf16.mxu0 %vm692_vm1, %v11814_v27  ;;  %v9460_v58 = vcombine.low %v265_v53, %v275_v54  ;;  %v293_v59 = vor.u32 %v292_v48, %v288_v46  ;;  %v12113_v60 = vor.u32 %v1718_v51, %v1717_v50  ;;  %v303_v1 = vrot.slane %v301_v57, 4  ;;  %v12123_v4 = vld [vmem:[%s12038_s26 + $0x28] sm:$0xf]  ;;  %v236_v9 = vld [vmem:[%s12038_s26 + $0x2c] sm:$0x1] }
  0x1f   : > { %v284_v0 = vrot.slane %v283_v55, 4  ;;  %v15184_v2 = vshll.u32 %v12104_v52, 16  ;;  %v15185_v3 = vshrl.u32 %v12104_v52, 16  ;;  %15388 = vst [vmem:[#allocation9_spill] sm:$0xff] %v12123_v4  ;;  %v306_v7 = vrot.slane %v304_v61, 5  ;;  %v11817_v57 = vld [vmem:[%s12038_s26 + $0x6c] sm:$0xff]  }
  0x20   : > { %15387 = vst [vmem:[#allocation8_spill] sm:$0xff] %v12113_v60  ;;  %10759 = vmatprep.mubr.msk.bf16.mxu1 %vm692_vm1, %v9460_v58  ;;  %v294_v5 = vrot.slane %v293_v59, 4  ;;  %v320_v8 = vshll.u32 %v235_v56, 16  ;;  %v325_v16 = vshrl.u32 %v12118_v63, 16  ;;  %v328_v24 = vshll.u32 %v12118_v63, 16 }
  0x21   : > { %v289_v13 = vsel %vm12092_vm4, %v284_v0, %v288_v46  ;;  %v312_v14 = vrot.slane %v15184_v2, 5  ;;  %v316_v15 = vrot.slane %v15185_v3, 4  ;;  %v307_v22 = vor.u32 %v306_v7, %v303_v1  ;;  %v12140_v25 = vld [vmem:[%s12038_s26 + $0x30] sm:$0xf]  ;;  %v12144_v34 = vld [vmem:[%s12038_s26 + $0x34] sm:$0xf] }
  0x22   : > { %v299_v19 = vsel %vm12092_vm4, %v294_v5, %v298_v49  ;;  %v322_v23 = vrot.slane %v320_v8, 5  ;;  %v327_v32 = vrot.slane %v325_v16, 4  ;;  %v15180_v33 = vshll.u32 %v12123_v4, 16  ;;  %15389 = vst [vmem:[#allocation10_spill] sm:$0xff] %v12144_v34  ;;  %v237_v51 = vld [vmem:[%s12038_s26 + $0x38] sm:$0x1] }
  0x23   : > { %v9461_v27 = vcombine.low %v289_v13, %v299_v19  ;;  %v317_v28 = vor.u32 %v316_v15, %v312_v14  ;;  %v308_v36 = vrot.slane %v307_v22, 4  ;;  %v330_v37 = vrot.slane %v328_v24, 5  ;;  %v12161_v53 = vld [vmem:[%s12038_s26 + $0x3c] sm:$0xf]  ;;  %v12168_v58 = vld [vmem:[%s12038_s26 + $0x40] sm:$0xf] }
  0x24   : > { %v15183_v39 = vshrl.u32 %v12123_v4, 16  ;;  %v344_v40 = vshll.u32 %v236_v9, 16  ;;  %v336_v43 = vrot.slane %v15180_v33, 5  ;;  %v349_v44 = vshrl.u32 %v12140_v25, 16  ;;  %15390 = vst [vmem:[#allocation11_spill] sm:$0xff] %v12168_v58  ;;  %v11818_v13 = vld [vmem:[%s12038_s26 + $0x78] sm:$0xff]  }
  0x25   : > { %11040 = vmatmul.mubr.msk.bf16.gmra.mrb[8].mxu0 %vm692_vm1, %v11815_v62  ;;  %10760 = vmatmul.mubr.msk.bf16.vlgmr.msra.gmra.mrb[0].mxu1 %vm692_vm1, %v9461_v27  ;;  %v318_v41 = vrot.slane %v317_v28, 4  ;;  %v352_v45 = vshll.u32 %v12140_v25, 16  ;;  %v313_v46 = vsel %vm12092_vm4, %v308_v36, %v312_v14  ;;  %v331_v48 = vor.u32 %v330_v37, %v327_v32  ;;  %v238_v8 = vld [vmem:[%s12038_s26 + $0x44] sm:$0x1]  ;;  %v12183_v19 = vld [vmem:[%s12038_s26 + $0x48] sm:$0xf] }
  0x26   : > { %11043 = vmatprep.mubr.msk.bf16.mxu0 %vm692_vm1, %v11816_v17  ;;  %10792 = vmatpush3.bf16.msra.mxu1 %v12069_v20  ;;  %v340_v49 = vrot.slane %v15183_v39, 4  ;;  %v346_v50 = vrot.slane %v344_v40, 5  ;;  %v351_v55 = vrot.slane %v349_v44, 4  ;;  %v15176_v20 = vshll.u32 %v12144_v34, 16  ;;  %v12187_v28 = vld [vmem:[%s12038_s26 + $0x4c] sm:$0xf] }
  0x27   : > { %v323_v54 = vsel %vm12092_vm4, %v318_v41, %v322_v23  ;;  %v354_v56 = vrot.slane %v352_v45, 5  ;;  %v332_v61 = vrot.slane %v331_v48, 4  ;;  %v15179_v0 = vshrl.u32 %v12144_v34, 16  ;;  %15391 = vst [vmem:[#allocation12_spill] sm:$0xff] %v12187_v28  ;;  %v9950_v3 = vld [vmem:[%s12038_s26 + $0x24] sm:$0xf] }
  0x28   : > { %v9462_v59 = vcombine.low %v313_v46, %v323_v54  ;;  %v341_v62 = vor.u32 %v340_v49, %v336_v43  ;;  %v360_v5 = vrot.slane %v15176_v20, 5  ;;  %v368_v7 = vshll.u32 %v237_v51, 16  ;;  %v239_v46 = vld [vmem:[%s12038_s26 + $0x50] sm:$0x1]  ;;  %v11819_v54 = vld [vmem:[%s12038_s26 + $0x84] sm:$0xff]  }
  0x29   : > { %v355_v1 = vor.u32 %v354_v56, %v351_v55  ;;  %v373_v9 = vshrl.u32 %v12161_v53, 16  ;;  %v337_v14 = vsel %vm12092_vm4, %v332_v61, %v336_v43  ;;  %v364_v16 = vrot.slane %v15179_v0, 4  ;;  %v12204_v55 = vld [vmem:[%s12038_s26 + $0x54] sm:$0xf]  ;;  %v9956_v35 = vld [vmem:[%s12038_s26 + $0x3c] sm:$0xf] }
  0x2a   : > { %10763 = vmatprep.mubr.msk.bf16.mxu1 %vm692_vm1, %v9462_v59  ;;  %v342_v15 = vrot.slane %v341_v62, 4  ;;  %v376_v17 = vshll.u32 %v12161_v53, 16  ;;  %v370_v23 = vrot.slane %v368_v7, 5  ;;  %v15172_v27 = vshll.u32 %v12168_v58, 16 }
  0x2b   : > { %v356_v22 = vrot.slane %v355_v1, 4  ;;  %v375_v24 = vrot.slane %v373_v9, 4  ;;  %v365_v36 = vor.u32 %v364_v16, %v360_v5  ;;  %v15173_v40 = vshrl.u32 %v12168_v58, 16  ;;  %v240_v16 = vld [vmem:[%s12038_s26 + $0x5c] sm:$0x1] }
  0x2c   : > { %v347_v32 = vsel %vm12092_vm4, %v342_v15, %v346_v50  ;;  %v378_v37 = vrot.slane %v376_v17, 5  ;;  %v384_v44 = vrot.slane %v15172_v27, 5  ;;  %v392_v45 = vshll.u32 %v238_v8, 16  ;;  %v12213_v8 = vld [vmem:[%s12038_s26 + $0x58] sm:$0xf]  ;;  %v11820_v17 = vld [vmem:[%s12038_s26 + $0x90] sm:$0xff]  }
  0x2d   : > { %11044 = vmatmul.mubr.msk.bf16.gmra.mrb[12].mxu0 %vm692_vm1, %v11817_v57  ;;  %v9463_v41 = vcombine.low %v337_v14, %v347_v32  ;;  %v361_v43 = vsel %vm12092_vm4, %v356_v22, %v360_v5  ;;  %v366_v48 = vrot.slane %v365_v36, 4  ;;  %v388_v50 = vrot.slane %v15173_v40, 4  ;;  %15392 = vst [vmem:[#allocation13_spill] sm:$0xff] %v12213_v8  ;;  %v12225_v36 = vld [vmem:[%s12038_s26 + $0x60] sm:$0xf] }
  0x2e   : > { %11047 = vmatprep.mubr.msk.bf16.mxu0 %vm692_vm1, %v11818_v13  ;;  %v379_v49 = vor.u32 %v378_v37, %v375_v24  ;;  %v397_v51 = vshrl.u32 %v12183_v19, 16  ;;  %v394_v56 = vrot.slane %v392_v45, 5  ;;  %v400_v57 = vshll.u32 %v12183_v19, 16 }
  0x2f   : > { %10764 = vmatmul.mubr.msk.bf16.gmra.mrb[4].mxu1 %vm692_vm1, %v9463_v41  ;;  %v15168_v59 = vshll.u32 %v12187_v28, 16  ;;  %v15169_v61 = vshrl.u32 %v12187_v28, 16  ;;  %v371_v62 = vsel %vm12092_vm4, %v366_v48, %v370_v23  ;;  %v389_v5 = vor.u32 %v388_v50, %v384_v44  ;;  %v12235_v50 = vld [vmem:[%s12038_s26 + $0x64] sm:$0xf] }
  0x30   : > { %v380_v1 = vrot.slane %v379_v49, 4  ;;  %v399_v7 = vrot.slane %v397_v51, 4  ;;  %v9464_v9 = vcombine.low %v361_v43, %v371_v62  ;;  %v402_v13 = vrot.slane %v400_v57, 5  ;;  %15393 = vst [vmem:[#allocation14_spill] sm:$0xff] %v12235_v50 }
  0x31   : > { %v408_v14 = vrot.slane %v15168_v59, 5  ;;  %v412_v15 = vrot.slane %v15169_v61, 4  ;;  %v390_v23 = vrot.slane %v389_v5, 4  ;;  %v416_v24 = vshll.u32 %v239_v46, 16  ;;  %v241_v5 = vld [vmem:[%s12038_s26 + $0x68] sm:$0x1] }
  0x32   : > { %v385_v22 = vsel %vm12092_vm4, %v380_v1, %v384_v44  ;;  %v421_v32 = vshrl.u32 %v12204_v55, 16  ;;  %10767 = vmatprep.mubr.msk.bf16.mxu1 %vm692_vm1, %v9464_v9  ;;  %v403_v37 = vor.u32 %v402_v13, %v399_v7  ;;  %v424_v43 = vshll.u32 %v12204_v55, 16  ;;  %v12245_v13 = vld [vmem:[%s12038_s26 + $0x6c] sm:$0xf] }
  0x33   : > { %v413_v41 = vor.u32 %v412_v15, %v408_v14  ;;  %v15162_v45 = vshll.u32 %v12213_v8, 16  ;;  %v395_v48 = vsel %vm12092_vm4, %v390_v23, %v394_v56  ;;  %v418_v44 = vrot.slane %v416_v24, 5 }
  0x34   : > { %v423_v46 = vrot.slane %v421_v32, 4  ;;  %v15163_v49 = vshrl.u32 %v12213_v8, 16  ;;  %v9465_v51 = vcombine.low %v385_v22, %v395_v48  ;;  %v404_v57 = vrot.slane %v403_v37, 4  ;;  %v11822_v48 = vld [vmem:[%s12038_s26 + $0xa8] sm:$0xff]  }
  0x35   : > { %11048 = vmatmul.mubr.msk.bf16.gmra.mrb[16].mxu0 %vm692_vm1, %v11819_v54  ;;  %v414_v62 = vrot.slane %v413_v41, 4  ;;  %v426_v1 = vrot.slane %v424_v43, 5  ;;  %v432_v56 = vrot.slane %v15162_v45, 5  ;;  %v440_v7 = vshll.u32 %v240_v16, 16  ;;  %v11821_v41 = vld [vmem:[%s12038_s26 + $0x9c] sm:$0xff]  }
  0x36   : > { %11051 = vmatprep.mubr.msk.bf16.mxu0 %vm692_vm1, %v11820_v17  ;;  %v436_v54 = vrot.slane %v15163_v49, 4  ;;  %v445_v9 = vshrl.u32 %v12225_v36, 16  ;;  %v409_v15 = vsel %vm12092_vm4, %v404_v57, %v408_v14  ;;  %v448_v23 = vshll.u32 %v12225_v36, 16  ;;  %v12255_v43 = vld [vmem:[%s12038_s26 + $0x70] sm:$0xf] }
  0x37   : > { %10768 = vmatmul.mubr.msk.bf16.gmra.mrb[8].mxu1 %vm692_vm1, %v9465_v51  ;;  %v419_v17 = vsel %vm12092_vm4, %v414_v62, %v418_v44  ;;  %v427_v22 = vor.u32 %v426_v1, %v423_v46  ;;  %v442_v37 = vrot.slane %v440_v7, 5  ;;  %15394 = vst [vmem:[#allocation15_spill] sm:$0xff] %v12255_v43  ;;  %v15164_v49 = vshll.u32 %v12235_v50, 16  ;;  %v242_v57 = vld [vmem:[%s12038_s26 + $0x74] sm:$0x1] }
  0x38   : > { %v9466_v24 = vcombine.low %v409_v15, %v419_v17  ;;  %v437_v32 = vor.u32 %v436_v54, %v432_v56  ;;  %v447_v16 = vrot.slane %v445_v9, 4  ;;  %v450_v45 = vrot.slane %v448_v23, 5  ;;  %v12271_v17 = vld [vmem:[%s12038_s26 + $0x78] sm:$0xf] }
  0x39   : > { %v428_v51 = vrot.slane %v427_v22, 4  ;;  %v15166_v14 = vshrl.u32 %v12235_v50, 16  ;;  %v464_v46 = vshll.u32 %v241_v5, 16  ;;  %v469_v62 = vshrl.u32 %v12245_v13, 16 }
  0x3a   : > { %10771 = vmatprep.mubr.msk.bf16.mxu1 %vm692_vm1, %v9466_v24  ;;  %v438_v44 = vrot.slane %v437_v32, 4  ;;  %v472_v1 = vshll.u32 %v12245_v13, 16  ;;  %v451_v7 = vor.u32 %v450_v45, %v447_v16  ;;  %v456_v9 = vrot.slane %v15164_v49, 5 }
  0x3b   : > { %v433_v54 = vsel %vm12092_vm4, %v428_v51, %v432_v56  ;;  %v460_v15 = vrot.slane %v15166_v14, 4  ;;  %v466_v22 = vrot.slane %v464_v46, 5  ;;  %v471_v23 = vrot.slane %v469_v62, 4  ;;  %v12279_v51 = vld [vmem:[%s12038_s26 + $0x7c] sm:$0xf]  ;;  %v11824_v14 = vld [vmem:[%s12038_s26 + $0xc0] sm:$0xff]  }
  0x3c   : > { %v443_v5 = vsel %vm12092_vm4, %v438_v44, %v442_v37  ;;  %v474_v24 = vrot.slane %v472_v1, 5  ;;  %v452_v45 = vrot.slane %v451_v7, 4  ;;  %v15165_v16 = vshll.u32 %v12255_v43, 16  ;;  %15395 = vst [vmem:[#allocation16_spill] sm:$0xff] %v12279_v51  ;;  %v243_v1 = vld [vmem:[%s12038_s26 + $0x80] sm:$0x1] }
  0x3d   : > { %11052 = vmatmul.mubr.msk.bf16.gmra.mrb[20].mxu0 %vm692_vm1, %v11821_v41  ;;  %v9467_v32 = vcombine.low %v433_v54, %v443_v5  ;;  %v461_v56 = vor.u32 %v460_v15, %v456_v9  ;;  %v15167_v37 = vshrl.u32 %v12255_v43, 16  ;;  %v488_v44 = vshll.u32 %v242_v57, 16  ;;  %v11823_v7 = vld [vmem:[%s12038_s26 + $0xb4] sm:$0xff]  }
  0x3e   : > { %11055 = vmatprep.mubr.msk.bf16.mxu0 %vm692_vm1, %v11822_v48  ;;  %v475_v49 = vor.u32 %v474_v24, %v471_v23  ;;  %v493_v41 = vshrl.u32 %v12271_v17, 16  ;;  %v457_v46 = vsel %vm12092_vm4, %v452_v45, %v456_v9  ;;  %v480_v48 = vrot.slane %v15165_v16, 5  ;;  %v12294_v24 = vld [vmem:[%s12038_s26 + $0x84] sm:$0xf]  ;;  %v12301_v16 = vld [vmem:[%s12038_s26 + $0x88] sm:$0xf] }
  0x3f   : > { %10772 = vmatmul.mubr.msk.bf16.gmra.mrb[12].mxu1 %vm692_vm1, %v9467_v32  ;;  %v462_v62 = vrot.slane %v461_v56, 4  ;;  %v496_v54 = vshll.u32 %v12271_v17, 16  ;;  %v484_v57 = vrot.slane %v15167_v37, 4  ;;  %v490_v5 = vrot.slane %v488_v44, 5  ;;  %15396 = vst [vmem:[#allocation17_spill] sm:$0xff] %v12301_v16 }
  0x40   : > { %v476_v15 = vrot.slane %v475_v49, 4  ;;  %v495_v23 = vrot.slane %v493_v41, 4  ;;  %v15170_v45 = vshll.u32 %v12279_v51, 16  ;;  %v15171_v56 = vshrl.u32 %v12279_v51, 16 }
  0x41   : > { %v467_v9 = vsel %vm12092_vm4, %v462_v62, %v466_v22  ;;  %v498_v32 = vrot.slane %v496_v54, 5  ;;  %v485_v44 = vor.u32 %v484_v57, %v480_v48  ;;  %v512_v59 = vshll.u32 %v243_v1, 16  ;;  %v244_v62 = vld [vmem:[%s12038_s26 + $0x8c] sm:$0x1] }
  0x42   : > { %v9468_v49 = vcombine.low %v457_v46, %v467_v9  ;;  %v481_v37 = vsel %vm12092_vm4, %v476_v15, %v480_v48  ;;  %v504_v61 = vrot.slane %v15170_v45, 5  ;;  %v508_v22 = vrot.slane %v15171_v56, 4  ;;  %v12319_v45 = vld [vmem:[%s12038_s26 + $0x90] sm:$0xf]  ;;  %v12326_v56 = vld [vmem:[%s12038_s26 + $0x94] sm:$0xf] }
  0x43   : > { %v499_v41 = vor.u32 %v498_v32, %v495_v23  ;;  %v517_v54 = vshrl.u32 %v12294_v24, 16  ;;  %v486_v46 = vrot.slane %v485_v44, 4  ;;  %v514_v9 = vrot.slane %v512_v59, 5  ;;  %15397 = vst [vmem:[#allocation18_spill] sm:$0xff] %v12326_v56 }
  0x44   : > { %10775 = vmatprep.mubr.msk.bf16.mxu1 %vm692_vm1, %v9468_v49  ;;  %v520_v48 = vshll.u32 %v12294_v24, 16  ;;  %v15174_v1 = vshll.u32 %v12301_v16, 16  ;;  %v509_v57 = vor.u32 %v508_v22, %v504_v61  ;;  %v15175_v32 = vshrl.u32 %v12301_v16, 16 }
  0x45   : > { %11056 = vmatmul.mubr.msk.bf16.gmra.mrb[24].mxu0 %vm692_vm1, %v11823_v7  ;;  %v500_v15 = vrot.slane %v499_v41, 4  ;;  %v519_v23 = vrot.slane %v517_v54, 4  ;;  %v491_v59 = vsel %vm12092_vm4, %v486_v46, %v490_v5  ;;  %v536_v44 = vshll.u32 %v244_v62, 16  ;;  %v245_v5 = vld [vmem:[%s12038_s26 + $0x98] sm:$0x1]  ;;  %v11825_v62 = vld [vmem:[%s12038_s26 + $0xcc] sm:$0xff]  }
  0x46   : > { %11059 = vmatprep.mubr.msk.bf16.mxu0 %vm692_vm1, %v11824_v14  ;;  %v522_v49 = vrot.slane %v520_v48, 5  ;;  %v528_v7 = vrot.slane %v15174_v1, 5  ;;  %v9469_v41 = vcombine.low %v481_v37, %v491_v59  ;;  %v510_v54 = vrot.slane %v509_v57, 4  ;;  %v12342_v57 = vld [vmem:[%s12038_s26 + $0x9c] sm:$0xf] }
  0x47   : > { %v505_v22 = vsel %vm12092_vm4, %v500_v15, %v504_v61  ;;  %v532_v14 = vrot.slane %v15175_v32, 4  ;;  %v538_v40 = vrot.slane %v536_v44, 5  ;;  %v541_v46 = vshrl.u32 %v12319_v45, 16  ;;  %v12345_v32 = vld [vmem:[%s12038_s26 + $0xa0] sm:$0xf] }
  0x48   : > { %v523_v27 = vor.u32 %v522_v49, %v519_v23  ;;  %v544_v48 = vshll.u32 %v12319_v45, 16  ;;  %10776 = vmatmul.mubr.msk.bf16.gmra.mrb[16].mxu1 %vm692_vm1, %v9469_v41  ;;  %v515_v37 = vsel %vm12092_vm4, %v510_v54, %v514_v9  ;;  %v15177_v61 = vshll.u32 %v12326_v56, 16  ;;  %15398 = vst [vmem:[#allocation19_spill] sm:$0xff] %v12345_v32 }
  0x49   : > { %v533_v59 = vor.u32 %v532_v14, %v528_v7  ;;  %v15178_v15 = vshrl.u32 %v12326_v56, 16  ;;  %v9470_v23 = vcombine.low %v505_v22, %v515_v37  ;;  %v543_v44 = vrot.slane %v541_v46, 4  ;;  %v246_v14 = vld [vmem:[%s12038_s26 + $0xa4] sm:$0x1] }
  0x4a   : > { %v524_v49 = vrot.slane %v523_v27, 4  ;;  %v546_v1 = vrot.slane %v544_v48, 5  ;;  %v552_v41 = vrot.slane %v15177_v61, 5  ;;  %v560_v54 = vshll.u32 %v245_v5, 16  ;;  %v9947_v61 = vld [vmem:[%s12038_s26 + $0x18] sm:$0xf] }
  0x4b   : > { %v534_v20 = vrot.slane %v533_v59, 4  ;;  %v556_v9 = vrot.slane %v15178_v15, 4  ;;  %10779 = vmatprep.mubr.msk.bf16.mxu1 %vm692_vm1, %v9470_v23  ;;  %v565_v46 = vshrl.u32 %v12342_v57, 16  ;;  %v568_v48 = vshll.u32 %v12342_v57, 16 }
  0x4c   : > { %v529_v22 = vsel %vm12092_vm4, %v524_v49, %v528_v7  ;;  %v547_v27 = vor.u32 %v546_v1, %v543_v44  ;;  %v562_v5 = vrot.slane %v560_v54, 5  ;;  %v15181_v23 = vshll.u32 %v12345_v32, 16  ;;  %v12363_v49 = vld [vmem:[%s12038_s26 + $0x1c] sm:$0xf]  ;;  %v12371_v54 = vld [vmem:[%s12038_s26 + $0x20] sm:$0x1] }
  0x4d   : > { %11060 = vmatmul.mubr.msk.bf16.gmra.mrb[28].mxu0 %vm692_vm1, %v11825_v62  ;;  %v539_v37 = vsel %vm12092_vm4, %v534_v20, %v538_v40  ;;  %v557_v59 = vor.u32 %v556_v9, %v552_v41  ;;  %v567_v7 = vrot.slane %v565_v46, 4  ;;  %v570_v1 = vrot.slane %v568_v48, 5  ;;  %v12376_v46 = vld [vmem:[%s15158_s1 + $0x10] sm:$0x3f]  }
  0x4e   : > { %v9471_v15 = vcombine.low %v529_v22, %v539_v37  ;;  %v548_v0 = vrot.slane %v547_v27, 4  ;;  %v576_v44 = vrot.slane %v15181_v23, 5  ;;  %v15182_v33 = vshrl.u32 %v12345_v32, 16  ;;  %v12385_v37 = vld [vmem:[%s12038_s26 + $0xa8] sm:$0xf]  ;;  %11783 = vmatprep.subr.msk.bf16.mxu1 %vm741_vm0, %v12376_v46 }
  0x4f   : > { %v558_v62 = vrot.slane %v557_v59, 4  ;;  %v584_v20 = vshll.u32 %v246_v14, 16  ;;  %v571_v9 = vor.u32 %v570_v1, %v567_v7  ;;  %v5024_v22 = vshrl.u32 %v9947_v61, 16  ;;  %v12388_v23 = vld [vmem:[%s12038_s26 + $0xac] sm:$0xf] }
  0x50   : > { %v553_v40 = vsel %vm12092_vm4, %v548_v0, %v552_v41  ;;  %v5027_v27 = vshll.u32 %v9947_v61, 16  ;;  %10780 = vmatmul.mubr.msk.bf16.gmra.mrb[20].mxu1 %vm692_vm1, %v9471_v15  ;;  %v580_v0 = vrot.slane %v15182_v33, 4  ;;  %v15186_v48 = vshll.u32 %v12363_v49, 16  ;;  %15399 = vst [vmem:[#allocation20_spill] sm:$0xff] %v12388_v23  ;;  %v247_v33 = vld [vmem:[%s12038_s26 + $0xb0] sm:$0x1] }
  0x51   : > { %v563_v14 = vsel %vm12092_vm4, %v558_v62, %v562_v5  ;;  %v586_v41 = vrot.slane %v584_v20, 5  ;;  %v572_v59 = vrot.slane %v571_v9, 4  ;;  %v5026_v7 = vrot.slane %v5024_v22, 4 }
  0x52   : > { %v9472_v61 = vcombine.low %v553_v40, %v563_v14  ;;  %v5029_v1 = vrot.slane %v5027_v27, 5  ;;  %v581_v15 = vor.u32 %v580_v0, %v576_v44  ;;  %v5035_v5 = vrot.slane %v15186_v48, 5 }
  0x53   : > { %v15187_v62 = vshrl.u32 %v12363_v49, 16  ;;  %v5043_v20 = vshll.u32 %v12371_v54, 16  ;;  %v577_v40 = vsel %vm12092_vm4, %v572_v59, %v576_v44  ;;  %v589_v22 = vshrl.u32 %v12385_v37, 16 }
  0x54   : > { %10783 = vmatprep.mubr.msk.bf16.mxu1 %vm692_vm1, %v9472_v61  ;;  %v5030_v9 = vor.u32 %v5029_v1, %v5026_v7  ;;  %v592_v27 = vshll.u32 %v12385_v37, 16  ;;  %v582_v14 = vrot.slane %v581_v15, 4  ;;  %v15188_v2 = vshll.u32 %v12388_v23, 16  ;;  %v12408_v61 = vld [vmem:[%s15158_s1 + $0x50] sm:$0x3f]  }
  0x55   : > { %v5039_v0 = vrot.slane %v15187_v62, 4  ;;  %v5045_v39 = vrot.slane %v5043_v20, 5  ;;  %v591_v59 = vrot.slane %v589_v22, 4  ;;  %v15189_v1 = vshrl.u32 %v12388_v23, 16  ;;  %v12417_v62 = vld [vmem:[%s12038_s26 + $0x28] sm:$0xf]  ;;  %11791 = vmatprep.subr.msk.bf16.mxu0 %vm741_vm0, %v12408_v61 }
  0x56   : > { %v5031_v44 = vrot.slane %v5030_v9, 4  ;;  %v594_v7 = vrot.slane %v592_v27, 5  ;;  %v587_v15 = vsel %vm12092_vm4, %v582_v14, %v586_v41  ;;  %v600_v20 = vrot.slane %v15188_v2, 5  ;;  %v12426_v41 = vld [vmem:[%s12038_s26 + $0x2c] sm:$0x1] }
  0x57   : > { %v5040_v6 = vor.u32 %v5039_v0, %v5035_v5  ;;  %v608_v48 = vshll.u32 %v247_v33, 16  ;;  %v9473_v9 = vcombine.low %v577_v40, %v587_v15  ;;  %v604_v42 = vrot.slane %v15189_v1, 4 }
  0x58   : > { %v5036_v22 = vsel %vm12092_vm4, %v5031_v44, %v5035_v5  ;;  %v595_v27 = vor.u32 %v594_v7, %v591_v59  ;;  %v5048_v33 = vshrl.u32 %v9950_v3, 16  ;;  %v5051_v2 = vshll.u32 %v9950_v3, 16  ;;  %v12432_v44 = vld [vmem:[%s12038_s26 + $0xb4] sm:$0xf]  ;;  %v12438_v3 = vld [vmem:[%s12038_s26 + $0xb8] sm:$0xf] }
  0x59   : > { %v5041_v14 = vrot.slane %v5040_v6, 4  ;;  %v610_v0 = vrot.slane %v608_v48, 5  ;;  %10784 = vmatmul.mubr.msk.bf16.gmra.mrb[24].mxu1 %vm692_vm1, %v9473_v9  ;;  %v605_v21 = vor.u32 %v604_v42, %v600_v20  ;;  %v15190_v40 = vshll.u32 %v12417_v62, 16  ;;  %15400 = vst [vmem:[#allocation21_spill] sm:$0xff] %v12438_v3 }
  0x5a   : > { %v596_v18 = vrot.slane %v595_v27, 4  ;;  %v15191_v5 = vshrl.u32 %v12417_v62, 16  ;;  %v5050_v7 = vrot.slane %v5048_v33, 4  ;;  %v5053_v15 = vrot.slane %v5051_v2, 5  ;;  %v248_v2 = vld [vmem:[%s12038_s26 + $0xbc] sm:$0x1] }
  0x5b   : > { %v5046_v59 = vsel %vm12092_vm4, %v5041_v14, %v5045_v39  ;;  %v5067_v6 = vshll.u32 %v12426_v41, 16  ;;  %v606_v9 = vrot.slane %v605_v21, 4  ;;  %v5059_v27 = vrot.slane %v15190_v40, 5 }
  0x5c   : > { %v9997_v48 = vcombine.low %v5036_v22, %v5046_v59  ;;  %v601_v42 = vsel %vm12092_vm4, %v596_v18, %v600_v20  ;;  %v5054_v1 = vor.u32 %v5053_v15, %v5050_v7  ;;  %v5063_v39 = vrot.slane %v15191_v5, 4  ;;  %v9953_v59 = vld [vmem:[%s12038_s26 + $0x30] sm:$0xf]  ;;  %v12456_v5 = vld [vmem:[%s12038_s26 + $0x34] sm:$0xf] }
  0x5d   : > { %v5069_v14 = vrot.slane %v5067_v6, 5  ;;  %v613_v33 = vshrl.u32 %v12432_v44, 16  ;;  %v611_v22 = vsel %vm12092_vm4, %v606_v9, %v610_v0  ;;  %v616_v18 = vshll.u32 %v12432_v44, 16 }
  0x5e   : > { %11065 = vmatprep.mubr.msk.bf16.mxu0 %vm692_vm1, %v9997_v48  ;;  %v15194_v21 = vshll.u32 %v12438_v3, 16  ;;  %v15196_v20 = vshrl.u32 %v12438_v3, 16  ;;  %v9474_v7 = vcombine.low %v601_v42, %v611_v22  ;;  %v5055_v15 = vrot.slane %v5054_v1, 4 }
  0x5f   : > { %v5064_v40 = vor.u32 %v5063_v39, %v5059_v27  ;;  %v615_v6 = vrot.slane %v613_v33, 4  ;;  %v618_v60 = vrot.slane %v616_v18, 5  ;;  %v632_v9 = vshll.u32 %v248_v2, 16  ;;  %v12466_v18 = vld [vmem:[%s12038_s26 + $0x38] sm:$0x1] }
  0x60   : > { %v624_v48 = vrot.slane %v15194_v21, 5  ;;  %v628_v0 = vrot.slane %v15196_v20, 4  ;;  %10787 = vmatprep.mubr.msk.bf16.mxu1 %vm692_vm1, %v9474_v7  ;;  %v5060_v1 = vsel %vm12092_vm4, %v5055_v15, %v5059_v27  ;;  %v5072_v39 = vshrl.u32 %v9953_v59, 16  ;;  %v12474_v27 = vld [vmem:[%s12038_s26 + $0x40] sm:$0xf] }
  0x61   : > { %v5065_v42 = vrot.slane %v5064_v40, 4  ;;  %v5075_v33 = vshll.u32 %v9953_v59, 16  ;;  %v619_v22 = vor.u32 %v618_v60, %v615_v6  ;;  %v634_v29 = vrot.slane %v632_v9, 5 }
  0x62   : > { %v629_v30 = vor.u32 %v628_v0, %v624_v48  ;;  %v15198_v21 = vshll.u32 %v12456_v5, 16  ;;  %v5074_v20 = vrot.slane %v5072_v39, 4  ;;  %v15199_v12 = vshrl.u32 %v12456_v5, 16 }
  0x63   : > { %v5070_v2 = vsel %vm12092_vm4, %v5065_v42, %v5069_v14  ;;  %v5077_v7 = vrot.slane %v5075_v33, 5  ;;  %v620_v59 = vrot.slane %v619_v22, 4  ;;  %v5091_v9 = vshll.u32 %v12466_v18, 16 }
  0x64   : > { %v9998_v40 = vcombine.low %v5060_v1, %v5070_v2  ;;  %v630_v60 = vrot.slane %v629_v30, 4  ;;  %v5083_v15 = vrot.slane %v15198_v21, 5  ;;  %v5087_v0 = vrot.slane %v15199_v12, 4  ;;  %v12487_v30 = vld [vmem:[%s12038_s26 + $0x44] sm:$0x1] }
  0x65   : > { %v5078_v6 = vor.u32 %v5077_v7, %v5074_v20  ;;  %v5096_v14 = vshrl.u32 %v9956_v35, 16  ;;  %v625_v42 = vsel %vm12092_vm4, %v620_v59, %v624_v48  ;;  %v5099_v39 = vshll.u32 %v9956_v35, 16  ;;  %v9959_v59 = vld [vmem:[%s12038_s26 + $0x48] sm:$0xf] }
  0x66   : > { %11066 = vmatmul.mubr.msk.bf16.vlgmr.msra.gmra.mrb[0].mxu0 %vm692_vm1, %v9998_v40  ;;  %v635_v1 = vsel %vm12092_vm4, %v630_v60, %v634_v29  ;;  %v15200_v20 = vshll.u32 %v12474_v27, 16  ;;  %v5088_v2 = vor.u32 %v5087_v0, %v5083_v15  ;;  %v5093_v7 = vrot.slane %v5091_v9, 5  ;;  %v12501_v0 = vld [vmem:[%s12038_s26 + $0x4c] sm:$0xf] }
  0x67   : > { %v9475_v33 = vcombine.low %v625_v42, %v635_v1  ;;  %v5079_v22 = vrot.slane %v5078_v6, 4  ;;  %v5098_v21 = vrot.slane %v5096_v14, 4  ;;  %v5101_v12 = vrot.slane %v5099_v39, 5 }
  0x68   : > { %v5107_v40 = vrot.slane %v15200_v20, 5  ;;  %v15201_v48 = vshrl.u32 %v12474_v27, 16  ;;  %v5089_v35 = vrot.slane %v5088_v2, 4  ;;  %v5115_v60 = vshll.u32 %v12487_v30, 16 }
  0x69   : > { %10788 = vmatmul.mubr.msk.bf16.gmra.mrb[28].mxu1 %vm692_vm1, %v9475_v33  ;;  %v5084_v29 = vsel %vm12092_vm4, %v5079_v22, %v5083_v15  ;;  %v9494_v6 = vcombine.low %v12074_v26, %v12082_v31  ;;  %v15401_v9 = vcombine.low %v12052_v10, %v12055_v11  ;;  %v5102_v14 = vor.u32 %v5101_v12, %v5098_v21  ;;  %v12514_v26 = vld [vmem:[%s12038_s26 + $0x50] sm:$0x1] }
  0x6a   : > { %v5111_v42 = vrot.slane %v15201_v48, 4  ;;  %v1471_v15 = vsel %vm741_vm0, %v12376_v46, 0  ;;  %v5988_v1 = vsel %vm741_vm0, %v12408_v61, 0  ;;  %v5094_v31 = vsel %vm12092_vm4, %v5089_v35, %v5093_v7  ;;  %v9962_v46 = vld [vmem:[%s12038_s26 + $0x54] sm:$0xf] }
  0x6b   : > { %10793 = vmatprep.mubr.msk.bf16.mxu1 %vm692_vm1, %v15401_v9  ;;  %v5117_v10 = vrot.slane %v5115_v60, 5  ;;  %11098 = vmatpush3.bf16.msra.mxu0 %v5988_v1  ;;  %v5120_v11 = vshrl.u32 %v9959_v59, 16  ;;  %v5123_v39 = vshll.u32 %v9959_v59, 16  ;;  %v9999_v12 = vcombine.low %v5084_v29, %v5094_v31  ;;  %v12523_v48 = vld [vmem:[%s12038_s26 + $0x58] sm:$0xf] }
  0x6c   : > { %v5103_v21 = vrot.slane %v5102_v14, 4  ;;  %v5112_v33 = vor.u32 %v5111_v42, %v5107_v40  ;;  %v15204_v22 = vshll.u32 %v12501_v0, 16  ;;  %v15205_v61 = vshrl.u32 %v12501_v0, 16  ;;  %v12535_v1 = vld [vmem:[%s12038_s26 + $0x5c] sm:$0x1] }
  0x6d   : > { %v5122_v2 = vrot.slane %v5120_v11, 4  ;;  %v5125_v9 = vrot.slane %v5123_v39, 5  ;;  %v5139_v20 = vshll.u32 %v12514_v26, 16  ;;  %11069 = vmatprep.mubr.msk.bf16.mxu0 %vm692_vm1, %v9999_v12  ;;  %v9495_v35 = vcombine.low %v12100_v47, %v12104_v52 }
  0x6e   : > { %v5108_v7 = vsel %vm12092_vm4, %v5103_v21, %v5107_v40  ;;  %v5113_v59 = vrot.slane %v5112_v33, 4  ;;  %v5131_v29 = vrot.slane %v15204_v22, 5  ;;  %v5135_v14 = vrot.slane %v15205_v61, 4  ;;  %v9965_v21 = vld [vmem:[%s12038_s26 + $0x60] sm:$0xf] }
  0x6f   : > { %v5126_v60 = vor.u32 %v5125_v9, %v5122_v2  ;;  %v5141_v42 = vrot.slane %v5139_v20, 5  ;;  %v5144_v31 = vshrl.u32 %v9962_v46, 16  ;;  %v5147_v40 = vshll.u32 %v9962_v46, 16  ;;  %v12544_v20 = vld [vmem:[%s12038_s26 + $0x64] sm:$0xf] }
  0x70   : > { %v5118_v11 = vsel %vm12092_vm4, %v5113_v59, %v5117_v10  ;;  %v15202_v39 = vshll.u32 %v12523_v48, 16  ;;  %v15203_v12 = vshrl.u32 %v12523_v48, 16  ;;  %v5136_v2 = vor.u32 %v5135_v14, %v5131_v29  ;;  %v12564_v22 = vld [vmem:[%s15158_s1 + $0x18] sm:$0x3f]  }
  0x71   : > { %v10000_v47 = vcombine.low %v5108_v7, %v5118_v11  ;;  %10794 = vmatmul.mubr.msk.bf16.vlgmr.msra.gmra.mrb[0].mxu1 %vm692_vm1, %v9494_v6  ;;  %v5127_v33 = vrot.slane %v5126_v60, 4  ;;  %v5146_v9 = vrot.slane %v5144_v31, 4  ;;  %v5149_v10 = vrot.slane %v5147_v40, 5  ;;  %v12553_v11 = vld [vmem:[%s12038_s26 + $0x68] sm:$0x1] }
  0x72   : > { %10826 = vmatpush3.bf16.msra.mxu1 %v1471_v15  ;;  %10797 = vmatprep.mubr.msk.bf16.mxu1 %vm692_vm1, %v9495_v35  ;;  %v5155_v46 = vrot.slane %v15202_v39, 5  ;;  %v5159_v59 = vrot.slane %v15203_v12, 4  ;;  %v5163_v7 = vshll.u32 %v12535_v1, 16  ;;  %v5137_v15 = vrot.slane %v5136_v2, 4  ;;  %v9968_v12 = vld [vmem:[%s12038_s26 + $0x6c] sm:$0xf] }
  0x73   : > { %11070 = vmatmul.mubr.msk.bf16.gmra.mrb[4].mxu0 %vm692_vm1, %v10000_v47  ;;  %v5132_v6 = vsel %vm12092_vm4, %v5127_v33, %v5131_v29  ;;  %v9496_v35 = vcombine.low %v12118_v63, %v12123_v4  ;;  %v5168_v60 = vshrl.u32 %v9965_v21, 16  ;;  %v5150_v14 = vor.u32 %v5149_v10, %v5146_v9  ;;  %v12571_v63 = vld [vmem:[%s12038_s26 + $0x70] sm:$0xf]  ;;  %11784 = vmatprep.subr.msk.bf16.mxu1 %vm741_vm0, %v12564_v22  ;;  %v9971_v4 = vld [vmem:[%s12038_s26 + $0x78] sm:$0xf] }
  0x74   : > { %v5160_v31 = vor.u32 %v5159_v59, %v5155_v46  ;;  %v5165_v40 = vrot.slane %v5163_v7, 5  ;;  %v5171_v39 = vshll.u32 %v9965_v21, 16  ;;  %v5142_v47 = vsel %vm12092_vm4, %v5137_v15, %v5141_v42  ;;  %15402 = vst [vmem:[#allocation22_spill] sm:$0xff] %v12571_v63 }
  0x75   : > { %v5170_v61 = vrot.slane %v5168_v60, 4  ;;  %v15206_v29 = vshll.u32 %v12544_v20, 16  ;;  %v15207_v33 = vshrl.u32 %v12544_v20, 16  ;;  %v10001_v2 = vcombine.low %v5132_v6, %v5142_v47  ;;  %v12585_v6 = vld [vmem:[%s15158_s1 + $0x58] sm:$0x3f]  }
  0x76   : > { %v5151_v9 = vrot.slane %v5150_v14, 4  ;;  %v5161_v21 = vrot.slane %v5160_v31, 4  ;;  %v5173_v10 = vrot.slane %v5171_v39, 5  ;;  %v5187_v7 = vshll.u32 %v12553_v11, 16  ;;  %v12593_v31 = vld [vmem:[%s12038_s26 + $0x74] sm:$0x1]  ;;  %11792 = vmatprep.subr.msk.bf16.mxu0 %vm741_vm0, %v12585_v6 }
  0x77   : > { %v5179_v59 = vrot.slane %v15206_v29, 5  ;;  %v5183_v42 = vrot.slane %v15207_v33, 4  ;;  %v9497_v15 = vcombine.low %v12140_v25, %v12144_v34  ;;  %11073 = vmatprep.mubr.msk.bf16.mxu0 %vm692_vm1, %v10001_v2  ;;  %15403 = vst [vmem:[#allocation23_spill] sm:$0xff] %v12593_v31  ;;  %v5192_v47 = vshrl.u32 %v9968_v12, 16 }
  0x78   : > { %v5156_v39 = vsel %vm12092_vm4, %v5151_v9, %v5155_v46  ;;  %v5166_v60 = vsel %vm12092_vm4, %v5161_v21, %v5165_v40  ;;  %v5174_v14 = vor.u32 %v5173_v10, %v5170_v61  ;;  %v5189_v33 = vrot.slane %v5187_v7, 5  ;;  %v12607_v10 = vld [vmem:[%s12038_s26 + $0x7c] sm:$0xf] }
  0x79   : > { %v10002_v29 = vcombine.low %v5156_v39, %v5166_v60  ;;  %10798 = vmatmul.mubr.msk.bf16.gmra.mrb[4].mxu1 %vm692_vm1, %v9496_v35  ;;  %v5184_v25 = vor.u32 %v5183_v42, %v5179_v59  ;;  %v5195_v34 = vshll.u32 %v9968_v12, 16  ;;  %v5194_v40 = vrot.slane %v5192_v47, 4  ;;  %15404 = vst [vmem:[#allocation24_spill] sm:$0xff] %v12607_v10  ;;  %v9974_v47 = vld [vmem:[%s12038_s26 + $0x84] sm:$0xf] }
  0x7a   : > { %v5175_v46 = vrot.slane %v5174_v14, 4  ;;  %10801 = vmatprep.mubr.msk.bf16.mxu1 %vm692_vm1, %v9497_v15  ;;  %v15214_v61 = vshll.u32 %v12571_v63, 16  ;;  %v15217_v2 = vshrl.u32 %v12571_v63, 16  ;;  %v5211_v12 = vshll.u32 %v12593_v31, 16  ;;  %v12625_v63 = vld [vmem:[%s12038_s26 + $0x88] sm:$0xf] }
  0x7b   : > { %11074 = vmatmul.mubr.msk.bf16.gmra.mrb[8].mxu0 %vm692_vm1, %v10002_v29  ;;  %v5185_v35 = vrot.slane %v5184_v25, 4  ;;  %v5197_v9 = vrot.slane %v5195_v34, 5  ;;  %v9498_v21 = vcombine.low %v12161_v53, %v12168_v58  ;;  %v12616_v29 = vld [vmem:[%s12038_s26 + $0x80] sm:$0x1]  ;;  %v5216_v34 = vshrl.u32 %v9971_v4, 16 }
  0x7c   : > { %v5180_v42 = vsel %vm12092_vm4, %v5175_v46, %v5179_v59  ;;  %v5203_v7 = vrot.slane %v15214_v61, 5  ;;  %v5207_v15 = vrot.slane %v15217_v2, 4  ;;  %v5213_v53 = vrot.slane %v5211_v12, 5 }
  0x7d   : > { %v5190_v39 = vsel %vm12092_vm4, %v5185_v35, %v5189_v33  ;;  %v5198_v60 = vor.u32 %v5197_v9, %v5194_v40  ;;  %v5219_v14 = vshll.u32 %v9971_v4, 16  ;;  %v5218_v59 = vrot.slane %v5216_v34, 4  ;;  %v12638_v34 = vld [vmem:[%s12038_s26 + $0x8c] sm:$0x1] }
  0x7e   : > { %v10003_v25 = vcombine.low %v5180_v42, %v5190_v39  ;;  %v5208_v58 = vor.u32 %v5207_v15, %v5203_v7  ;;  %v15222_v46 = vshll.u32 %v12607_v10, 16  ;;  %v15224_v2 = vshrl.u32 %v12607_v10, 16 }
  0x7f   : > { %v5199_v61 = vrot.slane %v5198_v60, 4  ;;  %v5221_v52 = vrot.slane %v5219_v14, 5  ;;  %v5235_v31 = vshll.u32 %v12616_v29, 16  ;;  %v9499_v40 = vcombine.low %v12183_v19, %v12187_v28 }
  0x80   : > { %11077 = vmatprep.mubr.msk.bf16.mxu0 %vm692_vm1, %v10003_v25  ;;  %v5209_v33 = vrot.slane %v5208_v58, 4  ;;  %v5227_v4 = vrot.slane %v15222_v46, 5  ;;  %v5240_v35 = vshrl.u32 %v9974_v47, 16  ;;  %v5231_v42 = vrot.slane %v15224_v2, 4  ;;  %v12647_v25 = vld [vmem:[%s12038_s26 + $0x94] sm:$0xf] }
  0x81   : > { %v5204_v9 = vsel %vm12092_vm4, %v5199_v61, %v5203_v7  ;;  %10802 = vmatmul.mubr.msk.bf16.gmra.mrb[8].mxu1 %vm692_vm1, %v9498_v21  ;;  %v5222_v12 = vor.u32 %v5221_v52, %v5218_v59  ;;  %v5237_v15 = vrot.slane %v5235_v31, 5  ;;  %v5243_v39 = vshll.u32 %v9974_v47, 16  ;;  %v9977_v61 = vld [vmem:[%s12038_s26 + $0x90] sm:$0xf]  ;;  %15405 = vst [vmem:[#allocation25_spill] sm:$0xff] %v12647_v25 }
  0x82   : > { %v5214_v58 = vsel %vm12092_vm4, %v5209_v33, %v5213_v53  ;;  %10805 = vmatprep.mubr.msk.bf16.mxu1 %vm692_vm1, %v9499_v40  ;;  %v5242_v19 = vrot.slane %v5240_v35, 4  ;;  %v15221_v60 = vshll.u32 %v12625_v63, 16  ;;  %v5232_v52 = vor.u32 %v5231_v42, %v5227_v4 }
  0x83   : > { %v10004_v7 = vcombine.low %v5204_v9, %v5214_v58  ;;  %v5223_v21 = vrot.slane %v5222_v12, 4  ;;  %v15223_v14 = vshrl.u32 %v12625_v63, 16  ;;  %v5245_v31 = vrot.slane %v5243_v39, 5  ;;  %v12660_v58 = vld [vmem:[%s12038_s26 + $0x98] sm:$0x1] }
  0x84   : > { %v5251_v59 = vrot.slane %v15221_v60, 5  ;;  %v5259_v53 = vshll.u32 %v12638_v34, 16  ;;  %v9500_v47 = vcombine.low %v12204_v55, %v12213_v8  ;;  %v5233_v40 = vrot.slane %v5232_v52, 4 }
  0x85   : > { %11078 = vmatmul.mubr.msk.bf16.gmra.mrb[12].mxu0 %vm692_vm1, %v10004_v7  ;;  %v5228_v33 = vsel %vm12092_vm4, %v5223_v21, %v5227_v4  ;;  %v5255_v35 = vrot.slane %v15223_v14, 4  ;;  %v5264_v9 = vshrl.u32 %v9977_v61, 16  ;;  %v5246_v12 = vor.u32 %v5245_v31, %v5242_v19  ;;  %v9980_v21 = vld [vmem:[%s12038_s26 + $0x9c] sm:$0xf]  ;;  %v12670_v31 = vld [vmem:[%s12038_s26 + $0xa0] sm:$0xf] }
  0x86   : > { %v5261_v42 = vrot.slane %v5259_v53, 5  ;;  %v5267_v39 = vshll.u32 %v9977_v61, 16  ;;  %v15225_v60 = vshll.u32 %v12647_v25, 16  ;;  %v5238_v55 = vsel %vm12092_vm4, %v5233_v40, %v5237_v15 }
  0x87   : > { %v5256_v7 = vor.u32 %v5255_v35, %v5251_v59  ;;  %v5266_v46 = vrot.slane %v5264_v9, 4  ;;  %v15226_v4 = vshrl.u32 %v12647_v25, 16  ;;  %v10005_v52 = vcombine.low %v5228_v33, %v5238_v55  ;;  %v12682_v9 = vld [vmem:[%s12038_s26 + $0xa4] sm:$0x1] }
  0x88   : > { %v5247_v14 = vrot.slane %v5246_v12, 4  ;;  %v5269_v2 = vrot.slane %v5267_v39, 5  ;;  %v5275_v19 = vrot.slane %v15225_v60, 5  ;;  %v5283_v53 = vshll.u32 %v12660_v58, 16 }
  0x89   : > { %v5257_v61 = vrot.slane %v5256_v7, 4  ;;  %10806 = vmatmul.mubr.msk.bf16.gmra.mrb[12].mxu1 %vm692_vm1, %v9500_v47  ;;  %v5279_v15 = vrot.slane %v15226_v4, 4  ;;  %v9501_v40 = vcombine.low %v12225_v36, %v12235_v50  ;;  %11081 = vmatprep.mubr.msk.bf16.mxu0 %vm692_vm1, %v10005_v52  ;;  %v5288_v12 = vshrl.u32 %v9980_v21, 16  ;;  %v9983_v52 = vld [vmem:[%s12038_s26 + $0xa8] sm:$0xf] }
  0x8a   : > { %v5252_v33 = vsel %vm12092_vm4, %v5247_v14, %v5251_v59  ;;  %v5270_v35 = vor.u32 %v5269_v2, %v5266_v46  ;;  %v5291_v39 = vshll.u32 %v9980_v21, 16  ;;  %v5285_v7 = vrot.slane %v5283_v53, 5  ;;  %v12690_v2 = vld [vmem:[%s12038_s26 + $0xac] sm:$0xf] }
  0x8b   : > { %v5262_v47 = vsel %vm12092_vm4, %v5257_v61, %v5261_v42  ;;  %v5280_v55 = vor.u32 %v5279_v15, %v5275_v19  ;;  %10809 = vmatprep.mubr.msk.bf16.mxu1 %vm692_vm1, %v9501_v40  ;;  %v15229_v36 = vshll.u32 %v12670_v31, 16  ;;  %v5290_v50 = vrot.slane %v5288_v12, 4  ;;  %v12697_v61 = vld [vmem:[%s12038_s26 + $0xb0] sm:$0x1] }
  0x8c   : > { %v10006_v60 = vcombine.low %v5252_v33, %v5262_v47  ;;  %v5271_v4 = vrot.slane %v5270_v35, 4  ;;  %v5293_v14 = vrot.slane %v5291_v39, 5  ;;  %v15233_v42 = vshrl.u32 %v12670_v31, 16 }
  0x8d   : > { %v5281_v46 = vrot.slane %v5280_v55, 4  ;;  %v5299_v59 = vrot.slane %v15229_v36, 5  ;;  %v5307_v21 = vshll.u32 %v12682_v9, 16  ;;  %v9502_v40 = vcombine.low %v12245_v13, %v12255_v43  ;;  %v9986_v55 = vld [vmem:[%s12038_s26 + $0xb4] sm:$0xf] }
  0x8e   : > { %11082 = vmatmul.mubr.msk.bf16.gmra.mrb[16].mxu0 %vm692_vm1, %v10006_v60  ;;  %v5276_v15 = vsel %vm12092_vm4, %v5271_v4, %v5275_v19  ;;  %v5294_v53 = vor.u32 %v5293_v14, %v5290_v50  ;;  %v5312_v33 = vshrl.u32 %v9983_v52, 16  ;;  %v5303_v12 = vrot.slane %v15233_v42, 4  ;;  %v12711_v50 = vld [vmem:[%s12038_s26 + $0xb8] sm:$0xf] }
  0x8f   : > { %v5286_v35 = vsel %vm12092_vm4, %v5281_v46, %v5285_v7  ;;  %v5309_v39 = vrot.slane %v5307_v21, 5  ;;  %v5315_v47 = vshll.u32 %v9983_v52, 16  ;;  %v15232_v4 = vshll.u32 %v12690_v2, 16 }
  0x90   : > { %v10007_v36 = vcombine.low %v5276_v15, %v5286_v35  ;;  %v5295_v60 = vrot.slane %v5294_v53, 4  ;;  %v5314_v8 = vrot.slane %v5312_v33, 4  ;;  %v5304_v19 = vor.u32 %v5303_v12, %v5299_v59  ;;  %v12724_v15 = vld [vmem:[%s12038_s26 + $0xbc] sm:$0x1] }
  0x91   : > { %10810 = vmatmul.mubr.msk.bf16.gmra.mrb[16].mxu1 %vm692_vm1, %v9502_v40  ;;  %v5317_v13 = vrot.slane %v5315_v47, 5  ;;  %v15234_v7 = vshrl.u32 %v12690_v2, 16  ;;  %v5331_v14 = vshll.u32 %v12697_v61, 16  ;;  %v5323_v46 = vrot.slane %v15232_v4, 5 }
  0x92   : > { %11085 = vmatprep.mubr.msk.bf16.mxu0 %vm692_vm1, %v10007_v36  ;;  %v5300_v52 = vsel %vm12092_vm4, %v5295_v60, %v5299_v59  ;;  %v9503_v21 = vcombine.low %v12271_v17, %v12279_v51  ;;  %v5336_v53 = vshrl.u32 %v9986_v55, 16  ;;  %v5305_v40 = vrot.slane %v5304_v19, 4  ;;  %v9989_v19 = vld [vmem:[%s12038_s26 + $0xc0] sm:$0xf]  ;;  %v9992_v51 = vld [vmem:[%s12038_s26 + $0xcc] sm:$0xf] }
  0x93   : > { %v5318_v33 = vor.u32 %v5317_v13, %v5314_v8  ;;  %v5327_v35 = vrot.slane %v15234_v7, 4  ;;  %v5333_v36 = vrot.slane %v5331_v14, 5  ;;  %v5339_v12 = vshll.u32 %v9986_v55, 16  ;;  %v12736_v13 = vld [vmem:[%s12038_s26 + $0xc4] sm:$0xf] }
  0x94   : > { %10813 = vmatprep.mubr.msk.bf16.mxu1 %vm692_vm1, %v9503_v21  ;;  %v5338_v59 = vrot.slane %v5336_v53, 4  ;;  %v15235_v47 = vshll.u32 %v12711_v50, 16  ;;  %v15238_v17 = vshrl.u32 %v12711_v50, 16  ;;  %v5310_v60 = vsel %vm12092_vm4, %v5305_v40, %v5309_v39  ;;  %v12743_v53 = vld [vmem:[%s12038_s26 + $0xc8] sm:$0x1] }
  0x95   : > { %v5319_v4 = vrot.slane %v5318_v33, 4  ;;  %v5328_v42 = vor.u32 %v5327_v35, %v5323_v46  ;;  %v5355_v8 = vshll.u32 %v12724_v15, 16  ;;  %v10008_v14 = vcombine.low %v5300_v52, %v5310_v60 }
  0x96   : > { %v5341_v7 = vrot.slane %v5339_v12, 5  ;;  %v5347_v55 = vrot.slane %v15235_v47, 5  ;;  %v5351_v21 = vrot.slane %v15238_v17, 4  ;;  %v9504_v35 = vcombine.low %v12294_v24, %v12301_v16  ;;  %v12758_v24 = vld [vmem:[%s12038_s26 + $0xd0] sm:$0xf] }
  0x97   : > { %v5324_v39 = vsel %vm12092_vm4, %v5319_v4, %v5323_v46  ;;  %v5329_v40 = vrot.slane %v5328_v42, 4  ;;  %v5357_v33 = vrot.slane %v5355_v8, 5  ;;  %11086 = vmatmul.mubr.msk.bf16.gmra.mrb[20].mxu0 %vm692_vm1, %v10008_v14  ;;  %v5360_v60 = vshrl.u32 %v9989_v19, 16 }
  0x98   : > { %v5342_v52 = vor.u32 %v5341_v7, %v5338_v59  ;;  %v5352_v12 = vor.u32 %v5351_v21, %v5347_v55  ;;  %v5363_v47 = vshll.u32 %v9989_v19, 16  ;;  %v15239_v4 = vshll.u32 %v12736_v13, 16 }
  0x99   : > { %v5334_v17 = vsel %vm12092_vm4, %v5329_v40, %v5333_v36  ;;  %10814 = vmatmul.mubr.msk.bf16.gmra.mrb[20].mxu1 %vm692_vm1, %v9504_v35  ;;  %v15240_v42 = vshrl.u32 %v12736_v13, 16  ;;  %v5379_v46 = vshll.u32 %v12743_v53, 16  ;;  %v5362_v19 = vrot.slane %v5360_v60, 4  ;;  %v12765_v35 = vld [vmem:[%s12038_s26 + $0xd4] sm:$0x1] }
  0x9a   : > { %v10009_v8 = vcombine.low %v5324_v39, %v5334_v17  ;;  %v5343_v7 = vrot.slane %v5342_v52, 4  ;;  %v5353_v59 = vrot.slane %v5352_v12, 4  ;;  %v5365_v14 = vrot.slane %v5363_v47, 5 }
  0x9b   : > { %v5371_v21 = vrot.slane %v15239_v4, 5  ;;  %v5375_v36 = vrot.slane %v15240_v42, 4  ;;  %v5381_v40 = vrot.slane %v5379_v46, 5  ;;  %v9505_v47 = vcombine.low %v12319_v45, %v12326_v56  ;;  %v12775_v46 = vld [vmem:[%s12038_s26 + $0x18] sm:$0xe] }
  0x9c   : > { %11089 = vmatprep.mubr.msk.bf16.mxu0 %vm692_vm1, %v10009_v8  ;;  %v5348_v17 = vsel %vm12092_vm4, %v5343_v7, %v5347_v55  ;;  %v5358_v39 = vsel %vm12092_vm4, %v5353_v59, %v5357_v33  ;;  %v5384_v52 = vshrl.u32 %v9992_v51, 16  ;;  %v5366_v60 = vor.u32 %v5365_v14, %v5362_v19  ;;  %v12782_v7 = vld [vmem:[%s12038_s26 + $0x24] sm:$0xe]  ;;  %v11891_v56 = vld [vmem:[%s12038_s26 + $0x2c] sm:$0x1] }
  0x9d   : > { %v10010_v12 = vcombine.low %v5348_v17, %v5358_v39  ;;  %v5376_v4 = vor.u32 %v5375_v36, %v5371_v21  ;;  %v5387_v42 = vshll.u32 %v9992_v51, 16  ;;  %10817 = vmatprep.mubr.msk.bf16.mxu1 %vm692_vm1, %v9505_v47  ;;  %v15243_v16 = vshll.u32 %v12758_v24, 16  ;;  %v12792_v39 = vld [vmem:[%s12038_s26 + $0x30] sm:$0xe] }
  0x9e   : > { %v5386_v8 = vrot.slane %v5384_v52, 4  ;;  %v15244_v55 = vshrl.u32 %v12758_v24, 16  ;;  %v5403_v33 = vshll.u32 %v12765_v35, 16  ;;  %v5367_v45 = vrot.slane %v5366_v60, 4 }
  0x9f   : > { %v5377_v59 = vrot.slane %v5376_v4, 4  ;;  %v5389_v17 = vrot.slane %v5387_v42, 5  ;;  %v9506_v51 = vcombine.low %v12342_v57, %v12345_v32  ;;  %11090 = vmatmul.mubr.msk.bf16.gmra.mrb[24].mxu0 %vm692_vm1, %v10010_v12  ;;  %v5395_v19 = vrot.slane %v15243_v16, 5  ;;  %v11890_v32 = vld [vmem:[%s12038_s26 + $0x28] sm:$0xf] }
  0xa0   : > { %v5399_v14 = vrot.slane %v15244_v55, 4  ;;  %v5405_v36 = vrot.slane %v5403_v33, 5  ;;  %v5372_v4 = vsel %vm12092_vm4, %v5367_v45, %v5371_v21  ;;  %v10046_v60 = vrot.slane %v12775_v46, 9  ;;  %v12810_v45 = vld [vmem:[%s12038_s26] sm:$0xe] }
  0xa1   : > { %v5382_v57 = vsel %vm12092_vm4, %v5377_v59, %v5381_v40  ;;  %v5390_v42 = vor.u32 %v5389_v17, %v5386_v8  ;;  %10818 = vmatmul.mubr.msk.bf16.gmra.mrb[24].mxu1 %vm692_vm1, %v9506_v51  ;;  %v5773_v33 = vrot.slane %v12363_v49, 5  ;;  %v5776_v21 = vrot.slane %v12371_v54, 5  ;;  %v12813_v59 = vld [vmem:[%s12038_s26 + $0x3c] sm:$0xe] }
  0xa2   : > { %v10011_v47 = vcombine.low %v5372_v4, %v5382_v57  ;;  %v5400_v52 = vor.u32 %v5399_v14, %v5395_v19  ;;  %v9507_v40 = vcombine.low %v12385_v37, %v12388_v23  ;;  %v10047_v8 = vrot.slane %v12782_v7, 9 }
  0xa3   : > { %v5391_v16 = vrot.slane %v5390_v42, 4  ;;  %v5774_v51 = vsel %vm12799_vm7, %v10046_v60, %v5773_v33  ;;  %v5775_v14 = vrot.slane %v5773_v33, 4  ;;  %v5780_v4 = vrot.slane %v12417_v62, 5 }
  0xa4   : > { %11093 = vmatprep.mubr.msk.bf16.mxu0 %vm692_vm1, %v10011_v47  ;;  %v5401_v17 = vrot.slane %v5400_v52, 4  ;;  %10821 = vmatprep.mubr.msk.bf16.mxu1 %vm692_vm1, %v9507_v40  ;;  %v5783_v37 = vrot.slane %v12426_v41, 5  ;;  %v9508_v57 = vcombine.low %v12432_v44, %v12438_v3  ;;  %v10048_v42 = vrot.slane %v12792_v39, 9  ;;  %v12904_v3 = vld [vmem:[%s15158_s1 + $0x20] sm:$0x3f]  }
  0xa5   : > { %v5396_v54 = vsel %vm12092_vm4, %v5391_v16, %v5395_v19  ;;  %v5777_v52 = vsel %vm12799_vm7, %v5775_v14, %v5776_v21  ;;  %v5781_v60 = vsel %vm12799_vm7, %v10047_v8, %v5780_v4  ;;  %v5782_v16 = vrot.slane %v5780_v4, 4  ;;  %v12833_v19 = vld [vmem:[%s12038_s26 + $0xc] sm:$0xe]  ;;  %v11886_v21 = vld [vmem:[%s12038_s26 + $0x4] sm:$0xf] }
  0xa6   : > { %v5406_v47 = vsel %vm12092_vm4, %v5401_v17, %v5405_v36  ;;  %v10064_v41 = vcombine.low %v5774_v51, %v5777_v52  ;;  %v5787_v40 = vrot.slane %v12456_v5, 5  ;;  %v5790_v44 = vrot.slane %v12466_v18, 5 }
  0xa7   : > { %v10012_v33 = vcombine.low %v5396_v54, %v5406_v47  ;;  %v5784_v55 = vsel %vm12799_vm7, %v5782_v16, %v5783_v37  ;;  %v9526_v36 = vrot.slane %v12810_v45, 9  ;;  %v1256_v17 = vrot.slane %v11886_v21, 5  ;;  %v12848_v54 = vld [vmem:[%s12038_s26 + $0x48] sm:$0xe]  ;;  %v15408_v21 = vld [vmem:[#allocation2_spill] sm:$0xff] }
  0xa8   : > { %v10049_v8 = vrot.slane %v12813_v59, 9  ;;  %v10065_v14 = vcombine.low %v5781_v60, %v5784_v55  ;;  %v5788_v18 = vsel %vm12799_vm7, %v10048_v42, %v5787_v40  ;;  %v5789_v51 = vrot.slane %v5787_v40, 4  ;;  %v12866_v40 = vld [vmem:[%s12038_s26 + $0x54] sm:$0xe] }
  0xa9   : > { %11094 = vmatmul.mubr.msk.bf16.gmra.mrb[28].mxu0 %vm692_vm1, %v10012_v33  ;;  %10822 = vmatmul.mubr.msk.bf16.gmra.mrb[28].mxu1 %vm692_vm1, %v9508_v57  ;;  %v5794_v4 = vrot.slane %v12474_v27, 5  ;;  %v1257_v37 = vsel %vm12799_vm7, %v9526_v36, %v1256_v17  ;;  %v1258_v47 = vrot.slane %v1256_v17, 4  ;;  %v5797_v52 = vrot.slane %v12487_v30, 5  ;;  %v12856_v57 = vld [vmem:[%s12038_s26 + $0x18] sm:$0xe] }
  0xaa   : > { %11099 = vmatprep.mubr.msk.bf16.mxu0 %vm692_vm1, %v10064_v41  ;;  %v9527_v55 = vrot.slane %v12833_v19, 9  ;;  %v5791_v42 = vsel %vm12799_vm7, %v5789_v51, %v5790_v44  ;;  %v11887_v33 = vld [vmem:[%s12038_s26 + $0x10] sm:$0xf]  ;;  %v15409_v30 = vrot.slane %v15408_v21, 5  ;;  %v2158_v38 = vsel %vm741_vm0, %v12564_v22, 0 }
  0xab   : > { %v12862_v60 = vsel %vm12799_vm7, %v10049_v8, %v5794_v4  ;;  %v5796_v16 = vrot.slane %v5794_v4, 4  ;;  %v1263_v41 = vrot.slane %v11887_v33, 5  ;;  %v10066_v36 = vcombine.low %v5788_v18, %v5791_v42  ;;  %v12883_v42 = vld [vmem:[%s12038_s26 + $0x24] sm:$0xe] }
  0xac   : > { %v1260_v17 = vsel %vm12799_vm7, %v1258_v47, %v15409_v30  ;;  %v6672_v44 = vsel %vm741_vm0, %v12585_v6, 0  ;;  %v10050_v22 = vrot.slane %v12848_v54, 9  ;;  %v5801_v6 = vrot.slane %v12501_v0, 5  ;;  %v11889_v30 = vld [vmem:[%s12038_s26 + $0x20] sm:$0x1] }
  0xad   : > { %v9544_v8 = vcombine.low %v1257_v37, %v1260_v17  ;;  %v12878_v51 = vsel %vm12799_vm7, %v5796_v16, %v5797_v52  ;;  %v1264_v18 = vsel %vm12799_vm7, %v9527_v55, %v1263_v41  ;;  %v1265_v4 = vrot.slane %v1263_v41, 4  ;;  %v15410_v52 = vld [vmem:[#allocation5_spill] sm:$0xff]  ;;  %v12899_v47 = vld [vmem:[%s12038_s26 + $0x60] sm:$0xe] }
  0xae   : > { %v5804_v37 = vrot.slane %v12514_v26, 5  ;;  %v15411_v16 = vrot.slane %v15410_v52, 5  ;;  %v9528_v33 = vrot.slane %v12856_v57, 9  ;;  %v11888_v41 = vld [vmem:[%s12038_s26 + $0x1c] sm:$0xf]  ;;  %v1273_v17 = vrot.slane %v11889_v30, 5 }
  0xaf   : > { %10827 = vmatprep.mubr.msk.bf16.mxu1 %vm692_vm1, %v9544_v8  ;;  %v1270_v21 = vrot.slane %v11888_v41, 5  ;;  %v5802_v8 = vsel %vm12799_vm7, %v10050_v22, %v5801_v6  ;;  %v10051_v52 = vrot.slane %v12866_v40, 9  ;;  %v12915_v41 = vld [vmem:[%s15158_s1 + $0x60] sm:$0x3f]   ;;  %v5808_v22 = vrot.slane %v12523_v48, 5 }
  0xb0   : > { %v1267_v55 = vsel %vm12799_vm7, %v1265_v4, %v15411_v16  ;;  %v5803_v4 = vrot.slane %v5801_v6, 4  ;;  %v12910_v16 = vld [vmem:[%s12038_s26 + $0x30] sm:$0xe]  ;;  %v5811_v6 = vrot.slane %v12535_v1, 5  ;;  %v9529_v23 = vrot.slane %v12883_v42, 9 }
  0xb1   : > { %v9545_v26 = vcombine.low %v1264_v18, %v1267_v55  ;;  %15412 = vst [vmem:[#allocation2_spill] sm:$0xff] %v12910_v16  ;;  %11100 = vmatmul.mubr.msk.bf16.vlgmr.msra.gmra.mrb[0].mxu0 %vm692_vm1, %v10065_v14  ;;  %v1271_v18 = vsel %vm12799_vm7, %v9528_v33, %v1270_v21  ;;  %v1272_v55 = vrot.slane %v1270_v21, 4  ;;  %v1277_v14 = vrot.slane %v11890_v32, 5  ;;  %v12930_v33 = vld [vmem:[%s12038_s26 + $0x6c] sm:$0xe] }
  0xb2   : > { %11103 = vmatprep.mubr.msk.bf16.mxu0 %vm692_vm1, %v10066_v36  ;;  %v5805_v30 = vsel %vm12799_vm7, %v5803_v4, %v5804_v37  ;;  %v1280_v43 = vrot.slane %v11891_v56, 5  ;;  %15413 = vst [vmem:[#allocation5_spill] sm:$0xff] %v12930_v33  ;;  %11132 = vmatpush3.bf16.msra.mxu0 %v6672_v44  ;;  %v12936_v36 = vsel %vm12799_vm7, %v10051_v52, %v5808_v22  ;;  %v5810_v37 = vrot.slane %v5808_v22, 4  ;;  %v12942_v44 = vld [vmem:[%s12038_s26 + $0x3c] sm:$0xe] }
  0xb3   : > { %10828 = vmatmul.mubr.msk.bf16.vlgmr.msra.gmra.mrb[0].mxu1 %vm692_vm1, %v9545_v26  ;;  %v10068_v21 = vcombine.low %v5802_v8, %v5805_v30  ;;  %v1274_v1 = vsel %vm12799_vm7, %v1272_v55, %v1273_v17  ;;  %v1278_v32 = vsel %vm12799_vm7, %v9529_v23, %v1277_v14  ;;  %v1279_v56 = vrot.slane %v1277_v14, 4  ;;  %11793 = vmatprep.subr.msk.bf16.mxu0 %vm741_vm0, %v12915_v41  ;;  %v11892_v55 = vld [vmem:[%s12038_s26 + $0x34] sm:$0xf]  ;;  %v12963_v14 = vld [vmem:[%s12038_s26 + $0x78] sm:$0xe] }
  0xb4   : > { %10860 = vmatpush3.bf16.msra.mxu1 %v2158_v38  ;;  %v9546_v26 = vcombine.low %v1271_v18, %v1274_v1  ;;  %v10052_v38 = vrot.slane %v12899_v47, 9  ;;  %v12950_v17 = vsel %vm12799_vm7, %v5810_v37, %v5811_v6  ;;  %v5815_v8 = vrot.slane %v12544_v20, 5  ;;  %v11893_v6 = vld [vmem:[%s12038_s26 + $0x38] sm:$0x1] }
  0xb5   : > { %11785 = vmatprep.subr.msk.bf16.mxu1 %vm741_vm0, %v12904_v3  ;;  %v5818_v23 = vrot.slane %v12553_v11, 5  ;;  %v9530_v4 = vrot.slane %v12910_v16, 9  ;;  %v10069_v52 = vcombine.low %v12936_v36, %v12950_v17  ;;  %v1281_v18 = vsel %vm12799_vm7, %v1279_v56, %v1280_v43  ;;  %v15414_v56 = vld [vmem:[#allocation22_spill] sm:$0xff] }
  0xb6   : > { %10831 = vmatprep.mubr.msk.bf16.mxu1 %vm692_vm1, %v9546_v26  ;;  %v1284_v22 = vrot.slane %v11892_v55, 5  ;;  %v1287_v30 = vrot.slane %v11893_v6, 5  ;;  %v9547_v11 = vcombine.low %v1278_v32, %v1281_v18  ;;  %v5816_v1 = vsel %vm12799_vm7, %v10052_v38, %v5815_v8  ;;  %v15415_v55 = vld [vmem:[#allocation23_spill] sm:$0xff] }
  0xb7   : > { %v5817_v37 = vrot.slane %v5815_v8, 4  ;;  %v10053_v26 = vrot.slane %v12930_v33, 9  ;;  %v5822_v17 = vrot.slane %v15414_v56, 5  ;;  %v5825_v28 = vrot.slane %v15415_v55, 5  ;;  %v1209_v6 = vld [vmem:[%s12038_s26 + $0x48] sm:$0xe] }
  0xb8   : > { %v1285_v36 = vsel %vm12799_vm7, %v9530_v4, %v1284_v22  ;;  %v1286_v43 = vrot.slane %v1284_v22, 4  ;;  %v15416_v16 = vcombine.low %v12862_v60, %v12878_v51  ;;  %v9531_v38 = vrot.slane %v12942_v44, 9  ;;  %v11894_v8 = vld [vmem:[%s12038_s26 + $0x40] sm:$0xf]  ;;  %v11895_v4 = vld [vmem:[%s12038_s26 + $0x44] sm:$0x1] }
  0xb9   : > { %v5819_v32 = vsel %vm12799_vm7, %v5817_v37, %v5818_v23  ;;  %v1291_v18 = vrot.slane %v11894_v8, 5  ;;  %v1294_v22 = vrot.slane %v11895_v4, 5  ;;  %v10039_v33 = vld [vmem:[%s12038_s26 + $0x84] sm:$0xe]  ;;  %v12989_v51 = vsel %vm12799_vm7, %v10053_v26, %v5822_v17  ;;  %v10040_v4 = vld [vmem:[%s12038_s26 + $0x90] sm:$0xe] }
  0xba   : > { %11104 = vmatmul.mubr.msk.bf16.gmra.mrb[4].mxu0 %vm692_vm1, %v15416_v16  ;;  %v10070_v55 = vcombine.low %v5816_v1, %v5819_v32  ;;  %v1288_v60 = vsel %vm12799_vm7, %v1286_v43, %v1287_v30  ;;  %v5824_v16 = vrot.slane %v5822_v17, 4  ;;  %v5829_v30 = vrot.slane %v12607_v10, 5  ;;  %v11896_v32 = vld [vmem:[%s12038_s26 + $0x4c] sm:$0xf]  ;;  %v11899_v10 = vld [vmem:[%s12038_s26 + $0x5c] sm:$0x1] }
  0xbb   : > { %11107 = vmatprep.mubr.msk.bf16.mxu0 %vm692_vm1, %v10068_v21  ;;  %10832 = vmatmul.mubr.msk.bf16.gmra.mrb[4].mxu1 %vm692_vm1, %v9547_v11  ;;  %v9548_v23 = vcombine.low %v1285_v36, %v1288_v60  ;;  %v1292_v37 = vsel %vm12799_vm7, %v9531_v38, %v1291_v18  ;;  %v1293_v8 = vrot.slane %v1291_v18, 4  ;;  %v10054_v21 = vrot.slane %v12963_v14, 9  ;;  %v1210_v11 = vld [vmem:[%s12038_s26 + $0x54] sm:$0xe]  ;;  %v11897_v18 = vld [vmem:[%s12038_s26 + $0x50] sm:$0x1] }
  0xbc   : > { %v12997_v1 = vsel %vm12799_vm7, %v5824_v16, %v5825_v28  ;;  %v5832_v26 = vrot.slane %v12616_v29, 5  ;;  %v9532_v43 = vrot.slane %v1209_v6, 9  ;;  %v1298_v38 = vrot.slane %v11896_v32, 5  ;;  %v1211_v32 = vld [vmem:[%s12038_s26 + $0x60] sm:$0xe] }
  0xbd   : > { %10835 = vmatprep.mubr.msk.bf16.mxu1 %vm692_vm1, %v9548_v23  ;;  %v1295_v17 = vsel %vm12799_vm7, %v1293_v8, %v1294_v22  ;;  %v1301_v28 = vrot.slane %v11897_v18, 5  ;;  %v13011_v29 = vsel %vm12799_vm7, %v10054_v21, %v5829_v30  ;;  %v5831_v6 = vrot.slane %v5829_v30, 4 }
  0xbe   : > { %v9549_v60 = vcombine.low %v1292_v37, %v1295_v17  ;;  %v10055_v16 = vrot.slane %v10039_v33, 9  ;;  %v1299_v23 = vsel %vm12799_vm7, %v9532_v43, %v1298_v38  ;;  %v1300_v36 = vrot.slane %v1298_v38, 4  ;;  %v11898_v17 = vld [vmem:[%s12038_s26 + $0x58] sm:$0xf] }
  0xbf   : > { %v5836_v22 = vrot.slane %v12625_v63, 5  ;;  %v5839_v8 = vrot.slane %v12638_v34, 5  ;;  %v5833_v18 = vsel %vm12799_vm7, %v5831_v6, %v5832_v26  ;;  %v9533_v37 = vrot.slane %v1210_v11, 9  ;;  %v10041_v26 = vld [vmem:[%s12038_s26 + $0x9c] sm:$0xe] }
  0xc0   : > { %v1305_v21 = vrot.slane %v11898_v17, 5  ;;  %v1308_v30 = vrot.slane %v11899_v10, 5  ;;  %v10072_v33 = vcombine.low %v13011_v29, %v5833_v18  ;;  %v1302_v43 = vsel %vm12799_vm7, %v1300_v36, %v1301_v28  ;;  %v1212_v36 = vld [vmem:[%s12038_s26 + $0x6c] sm:$0xe]  ;;  %v11901_v18 = vld [vmem:[%s12038_s26 + $0x68] sm:$0x1] }
  0xc1   : > { %v13028_v34 = vsel %vm12799_vm7, %v10055_v16, %v5836_v22  ;;  %v5838_v38 = vrot.slane %v5836_v22, 4  ;;  %v9550_v10 = vcombine.low %v1299_v23, %v1302_v43  ;;  %v10056_v29 = vrot.slane %v10040_v4, 9  ;;  %v11900_v4 = vld [vmem:[%s12038_s26 + $0x64] sm:$0xf]  ;;  %v1213_v43 = vld [vmem:[%s12038_s26 + $0x78] sm:$0xe] }
  0xc2   : > { %11108 = vmatmul.mubr.msk.bf16.gmra.mrb[8].mxu0 %vm692_vm1, %v10069_v52  ;;  %v1306_v52 = vsel %vm12799_vm7, %v9533_v37, %v1305_v21  ;;  %v1307_v11 = vrot.slane %v1305_v21, 4  ;;  %v5843_v6 = vrot.slane %v12647_v25, 5  ;;  %v9534_v16 = vrot.slane %v1211_v32, 9  ;;  %v10042_v37 = vld [vmem:[%s12038_s26 + $0xa8] sm:$0xe] }
  0xc3   : > { %11111 = vmatprep.mubr.msk.bf16.mxu0 %vm692_vm1, %v10070_v55  ;;  %10836 = vmatmul.mubr.msk.bf16.gmra.mrb[8].mxu1 %vm692_vm1, %v9549_v60  ;;  %v13038_v28 = vsel %vm12799_vm7, %v5838_v38, %v5839_v8  ;;  %v5846_v55 = vrot.slane %v12660_v58, 5  ;;  %v1312_v22 = vrot.slane %v11900_v4, 5  ;;  %v1315_v8 = vrot.slane %v11901_v18, 5  ;;  %v11903_v60 = vld [vmem:[%s12038_s26 + $0x74] sm:$0x1] }
  0xc4   : > { %10839 = vmatprep.mubr.msk.bf16.mxu1 %vm692_vm1, %v9550_v10  ;;  %v1309_v23 = vsel %vm12799_vm7, %v1307_v11, %v1308_v30  ;;  %v13052_v58 = vsel %vm12799_vm7, %v10056_v29, %v5843_v6  ;;  %v5845_v32 = vrot.slane %v5843_v6, 4  ;;  %v10057_v21 = vrot.slane %v10041_v26, 9  ;;  %v10043_v25 = vld [vmem:[%s12038_s26 + $0xb4] sm:$0xe] }
  0xc5   : > { %v9551_v17 = vcombine.low %v1306_v52, %v1309_v23  ;;  %v1313_v38 = vsel %vm12799_vm7, %v9534_v16, %v1312_v22  ;;  %v1314_v30 = vrot.slane %v1312_v22, 4  ;;  %v5850_v10 = vrot.slane %v12670_v31, 5  ;;  %v11902_v52 = vld [vmem:[%s12038_s26 + $0x70] sm:$0xf] }
  0xc6   : > { %v5853_v11 = vrot.slane %v12682_v9, 5  ;;  %v5847_v4 = vsel %vm12799_vm7, %v5845_v32, %v5846_v55  ;;  %v9535_v18 = vrot.slane %v1212_v36, 9  ;;  %v1319_v23 = vrot.slane %v11902_v52, 5  ;;  %v1215_v52 = vld [vmem:[%s12038_s26 + $0x90] sm:$0xe] }
  0xc7   : > { %v1322_v29 = vrot.slane %v11903_v60, 5  ;;  %v10074_v26 = vcombine.low %v13052_v58, %v5847_v4  ;;  %v1316_v6 = vsel %vm12799_vm7, %v1314_v30, %v1315_v8  ;;  %v13069_v16 = vsel %vm12799_vm7, %v10057_v21, %v5850_v10  ;;  %v1214_v21 = vld [vmem:[%s12038_s26 + $0x84] sm:$0xe]  ;;  %v11905_v30 = vld [vmem:[%s12038_s26 + $0x80] sm:$0x1] }
  0xc8   : > { %v5852_v9 = vrot.slane %v5850_v10, 4  ;;  %v15417_v55 = vcombine.low %v12989_v51, %v12997_v1  ;;  %v9552_v36 = vcombine.low %v1313_v38, %v1316_v6  ;;  %v1320_v60 = vsel %vm12799_vm7, %v9535_v18, %v1319_v23 }
  0xc9   : > { %v1321_v22 = vrot.slane %v1319_v23, 4  ;;  %v10058_v58 = vrot.slane %v10042_v37, 9  ;;  %v5857_v51 = vrot.slane %v12690_v2, 5  ;;  %v5860_v1 = vrot.slane %v12697_v61, 5 }
  0xca   : > { %11112 = vmatmul.mubr.msk.bf16.gmra.mrb[12].mxu0 %vm692_vm1, %v15417_v55  ;;  %v13081_v8 = vsel %vm12799_vm7, %v5852_v9, %v5853_v11  ;;  %v9536_v32 = vrot.slane %v1213_v43, 9  ;;  %v1329_v10 = vrot.slane %v11905_v30, 5  ;;  %v10044_v11 = vld [vmem:[%s12038_s26 + $0xc0] sm:$0xe]  ;;  %v10059_v18 = vrot.slane %v10043_v25, 9 }
  0xcb   : > { %11115 = vmatprep.mubr.msk.bf16.mxu0 %vm692_vm1, %v10072_v33  ;;  %10840 = vmatmul.mubr.msk.bf16.gmra.mrb[12].mxu1 %vm692_vm1, %v9551_v17  ;;  %v10075_v37 = vcombine.low %v13069_v16, %v13081_v8  ;;  %v1323_v33 = vsel %vm12799_vm7, %v1321_v22, %v1322_v29  ;;  %v11904_v17 = vld [vmem:[%s12038_s26 + $0x7c] sm:$0xf]  ;;  %v13096_v61 = vsel %vm12799_vm7, %v10058_v58, %v5857_v51  ;;  %v5859_v43 = vrot.slane %v5857_v51, 4  ;;  %v11907_v58 = vld [vmem:[%s12038_s26 + $0x8c] sm:$0x1] }
  0xcc   : > { %10843 = vmatprep.mubr.msk.bf16.mxu1 %vm692_vm1, %v9552_v36  ;;  %v1326_v38 = vrot.slane %v11904_v17, 5  ;;  %v9553_v4 = vcombine.low %v1320_v60, %v1323_v33  ;;  %v5864_v6 = vrot.slane %v12711_v50, 5  ;;  %v5867_v9 = vrot.slane %v12724_v15, 5  ;;  %v11906_v60 = vld [vmem:[%s12038_s26 + $0x88] sm:$0xf] }
  0xcd   : > { %v13105_v55 = vsel %vm12799_vm7, %v5859_v43, %v5860_v1  ;;  %v9537_v36 = vrot.slane %v1214_v21, 9  ;;  %v1333_v22 = vrot.slane %v11906_v60, 5  ;;  %v1336_v51 = vrot.slane %v11907_v58, 5  ;;  %v10045_v25 = vld [vmem:[%s12038_s26 + $0xcc] sm:$0xe] }
  0xce   : > { %v1327_v23 = vsel %vm12799_vm7, %v9536_v32, %v1326_v38  ;;  %v1328_v29 = vrot.slane %v1326_v38, 4  ;;  %v10076_v33 = vcombine.low %v13096_v61, %v13105_v55  ;;  %v13116_v15 = vsel %vm12799_vm7, %v10059_v18, %v5864_v6 }
  0xcf   : > { %v5866_v1 = vrot.slane %v5864_v6, 4  ;;  %v1334_v21 = vsel %vm12799_vm7, %v9537_v36, %v1333_v22  ;;  %v1335_v38 = vrot.slane %v1333_v22, 4  ;;  %v10060_v30 = vrot.slane %v10044_v11, 9 }
  0xd0   : > { %v1330_v32 = vsel %vm12799_vm7, %v1328_v29, %v1329_v10  ;;  %v15418_v43 = vcombine.low %v13028_v34, %v13038_v28  ;;  %v5871_v61 = vrot.slane %v12736_v13, 5  ;;  %v5874_v18 = vrot.slane %v12743_v53, 5  ;;  %v1216_v29 = vld [vmem:[%s12038_s26 + $0x9c] sm:$0xe]  ;;  %v11908_v28 = vld [vmem:[%s12038_s26 + $0x94] sm:$0xf] }
  0xd1   : > { %v9554_v17 = vcombine.low %v1327_v23, %v1330_v32  ;;  %v13126_v10 = vsel %vm12799_vm7, %v5866_v1, %v5867_v9  ;;  %v9538_v23 = vrot.slane %v1215_v52, 9  ;;  %v1337_v34 = vsel %vm12799_vm7, %v1335_v38, %v1336_v51  ;;  %v11909_v9 = vld [vmem:[%s12038_s26 + $0x98] sm:$0x1]  ;;  %v11910_v1 = vld [vmem:[%s12038_s26 + $0xa0] sm:$0xf] }
  0xd2   : > { %11116 = vmatmul.mubr.msk.bf16.gmra.mrb[16].mxu0 %vm692_vm1, %v15418_v43  ;;  %v10077_v11 = vcombine.low %v13116_v15, %v13126_v10  ;;  %v1340_v6 = vrot.slane %v11908_v28, 5  ;;  %v1343_v55 = vrot.slane %v11909_v9, 5  ;;  %v9555_v53 = vcombine.low %v1334_v21, %v1337_v34  ;;  %v11911_v21 = vld [vmem:[%s12038_s26 + $0xa4] sm:$0x1]  ;;  %v1217_v9 = vld [vmem:[%s12038_s26 + $0xa8] sm:$0xe] }
  0xd3   : > { %11119 = vmatprep.mubr.msk.bf16.mxu0 %vm692_vm1, %v10074_v26  ;;  %10844 = vmatmul.mubr.msk.bf16.gmra.mrb[16].mxu1 %vm692_vm1, %v9553_v4  ;;  %v13142_v26 = vsel %vm12799_vm7, %v10060_v30, %v5871_v61  ;;  %v5873_v4 = vrot.slane %v5871_v61, 4  ;;  %v10061_v52 = vrot.slane %v10045_v25, 9  ;;  %v5878_v22 = vrot.slane %v12758_v24, 5  ;;  %v11915_v10 = vld [vmem:[%s12038_s26 + $0xbc] sm:$0x1] }
  0xd4   : > { %10847 = vmatprep.mubr.msk.bf16.mxu1 %vm692_vm1, %v9554_v17  ;;  %v1341_v36 = vsel %vm12799_vm7, %v9538_v23, %v1340_v6  ;;  %v1342_v60 = vrot.slane %v1340_v6, 4  ;;  %v5881_v58 = vrot.slane %v12765_v35, 5  ;;  %v9539_v32 = vrot.slane %v1216_v29, 9  ;;  %v10097_v29 = vld [vmem:[%s12038_s26 + $0x20] sm:$0x3] }
  0xd5   : > { %v13150_v51 = vsel %vm12799_vm7, %v5873_v4, %v5874_v18  ;;  %v1347_v17 = vrot.slane %v11910_v1, 5  ;;  %v1350_v38 = vrot.slane %v11911_v21, 5  ;;  %v13160_v43 = vsel %vm12799_vm7, %v10061_v52, %v5878_v22  ;;  %v11913_v21 = vld [vmem:[%s12038_s26 + $0xb0] sm:$0x1] }
  0xd6   : > { %v10078_v25 = vcombine.low %v13142_v26, %v13150_v51  ;;  %v1344_v30 = vsel %vm12799_vm7, %v1342_v60, %v1343_v55  ;;  %v5880_v35 = vrot.slane %v5878_v22, 4  ;;  %v6200_v28 = vshrl.u32 %v12775_v46, 16 }
  0xd7   : > { %v9556_v61 = vcombine.low %v1341_v36, %v1344_v30  ;;  %v1348_v18 = vsel %vm12799_vm7, %v9539_v32, %v1347_v17  ;;  %v1349_v23 = vrot.slane %v1347_v17, 4  ;;  %v6203_v6 = vshll.u32 %v12775_v46, 16  ;;  %v11912_v32 = vld [vmem:[%s12038_s26 + $0xac] sm:$0xf] }
  0xd8   : > { %v13167_v34 = vsel %vm12799_vm7, %v5880_v35, %v5881_v58  ;;  %v15419_v4 = vshrl.u32 %v12363_v49, 16  ;;  %v15420_v36 = vshll.u32 %v12363_v49, 16  ;;  %v6202_v8 = vrot.slane %v6200_v28, 5 }
  0xd9   : > { %v10079_v55 = vcombine.low %v13160_v43, %v13167_v34  ;;  %v1351_v26 = vsel %vm12799_vm7, %v1349_v23, %v1350_v38  ;;  %v6214_v60 = vshrl.u32 %v10097_v29, 16  ;;  %v6217_v58 = vshll.u32 %v10097_v29, 16 }
  0xda   : > { %11120 = vmatmul.mubr.msk.bf16.gmra.mrb[20].mxu0 %vm692_vm1, %v10075_v37  ;;  %v6208_v52 = vrot.slane %v15419_v4, 5  ;;  %v6209_v46 = vrot.slane %v15420_v36, 6  ;;  %v9557_v16 = vcombine.low %v1348_v18, %v1351_v26  ;;  %v6205_v37 = vrot.slane %v6203_v6, 6  ;;  %v1218_v4 = vld [vmem:[%s12038_s26 + $0xb4] sm:$0xe] }
  0xdb   : > { %11123 = vmatprep.mubr.msk.bf16.mxu0 %vm692_vm1, %v10076_v33  ;;  %10848 = vmatmul.mubr.msk.bf16.gmra.mrb[20].mxu1 %vm692_vm1, %v9555_v53  ;;  %v9540_v51 = vrot.slane %v1217_v9, 9  ;;  %v1354_v1 = vrot.slane %v11912_v32, 5  ;;  %v6216_v17 = vrot.slane %v6214_v60, 5  ;;  %v1357_v38 = vrot.slane %v11913_v21, 5  ;;  %v10098_v33 = vld [vmem:[%s12038_s26 + $0x2c] sm:$0x3] }
  0xdc   : > { %10851 = vmatprep.mubr.msk.bf16.mxu1 %vm692_vm1, %v9556_v61  ;;  %v6210_v22 = vor.u32 %v6209_v46, %v6208_v52  ;;  %v6206_v49 = vor.u32 %v6205_v37, %v6202_v8  ;;  %v6223_v30 = vshrl.u32 %v12782_v7, 16  ;;  %v6219_v61 = vrot.slane %v6217_v58, 6 }
  0xdd   : > { %v1355_v18 = vsel %vm12799_vm7, %v9540_v51, %v1354_v1  ;;  %v1356_v23 = vrot.slane %v1354_v1, 4  ;;  %v6226_v6 = vshll.u32 %v12782_v7, 16  ;;  %v15423_v9 = vshrl.u32 %v12417_v62, 16 }
  0xde   : > { %v6212_v35 = vrot.slane %v6210_v22, 4  ;;  %v6207_v29 = vrot.slane %v6206_v49, 4  ;;  %v6225_v28 = vrot.slane %v6223_v30, 5  ;;  %v6220_v52 = vor.u32 %v6219_v61, %v6216_v17  ;;  %v10099_v30 = vld [vmem:[%s12038_s26 + $0x38] sm:$0x3] }
  0xdf   : > { %v6231_v26 = vrot.slane %v15423_v9, 5  ;;  %v1358_v36 = vsel %vm12799_vm7, %v1356_v23, %v1357_v38  ;;  %v15424_v46 = vshll.u32 %v12417_v62, 16  ;;  %v6237_v37 = vshrl.u32 %v10098_v33, 16  ;;  %v11914_v38 = vld [vmem:[%s12038_s26 + $0xb8] sm:$0xf] }
  0xe0   : > { %v6211_v60 = vsel %vm13193_vm10, %v6207_v29, %v6210_v22  ;;  %v9558_v58 = vcombine.low %v1355_v18, %v1358_v36  ;;  %v6228_v51 = vrot.slane %v6226_v6, 6  ;;  %v6240_v7 = vshll.u32 %v10098_v33, 16 }
  0xe1   : > { %v6232_v8 = vrot.slane %v15424_v46, 6  ;;  %v6221_v32 = vsel %vm13193_vm10, %v6212_v35, %v6220_v52  ;;  %v6239_v1 = vrot.slane %v6237_v37, 5  ;;  %v9541_v49 = vrot.slane %v1218_v4, 9 }
  0xe2   : > { %11124 = vmatmul.mubr.msk.bf16.gmra.mrb[24].mxu0 %vm692_vm1, %v10077_v11  ;;  %v10115_v22 = vcombine.low %v6211_v60, %v6221_v32  ;;  %v6229_v17 = vor.u32 %v6228_v51, %v6225_v28  ;;  %v6242_v21 = vrot.slane %v6240_v7, 6  ;;  %v1361_v33 = vrot.slane %v11914_v38, 5 }
  0xe3   : > { %v6233_v62 = vor.u32 %v6232_v8, %v6231_v26  ;;  %11127 = vmatprep.mubr.msk.bf16.mxu0 %vm692_vm1, %v10078_v25  ;;  %10852 = vmatmul.mubr.msk.bf16.gmra.mrb[24].mxu1 %vm692_vm1, %v9557_v16  ;;  %v1364_v11 = vrot.slane %v11915_v10, 5  ;;  %v6246_v35 = vshrl.u32 %v12792_v39, 16  ;;  %v6249_v61 = vshll.u32 %v12792_v39, 16  ;;  %v1666_v8 = vld [vmem:[%s12038_s26 + $0x8] sm:$0x3] }
  0xe4   : > { %10855 = vmatprep.mubr.msk.bf16.mxu1 %vm692_vm1, %v9558_v58  ;;  %v6230_v18 = vrot.slane %v6229_v17, 4  ;;  %v6243_v25 = vor.u32 %v6242_v21, %v6239_v1  ;;  %v1362_v16 = vsel %vm12799_vm7, %v9541_v49, %v1361_v33  ;;  %v1363_v23 = vrot.slane %v1361_v33, 4  ;;  %v15427_v17 = vld [vmem:[#allocation3_spill] sm:$0xff]  ;;  %v15428_v21 = vld [vmem:[#allocation4_spill] sm:$0xff] }
  0xe5   : > { %v6235_v15 = vrot.slane %v6233_v62, 4  ;;  %v6248_v29 = vrot.slane %v6246_v35, 5  ;;  %v6251_v28 = vrot.slane %v6249_v61, 6  ;;  %v15425_v6 = vshrl.u32 %v12456_v5, 16 }
  0xe6   : > { %v15426_v26 = vshll.u32 %v12456_v5, 16  ;;  %v6234_v52 = vsel %vm13193_vm10, %v6230_v18, %v6233_v62  ;;  %v1365_v36 = vsel %vm12799_vm7, %v1363_v23, %v1364_v11  ;;  %v6260_v46 = vshrl.u32 %v10099_v30, 16 }
  0xe7   : > { %v6254_v9 = vrot.slane %v15425_v6, 5  ;;  %v6244_v39 = vsel %vm13193_vm10, %v6235_v15, %v6243_v25  ;;  %v9559_v60 = vcombine.low %v1362_v16, %v1365_v36  ;;  %v6252_v58 = vor.u32 %v6251_v28, %v6248_v29 }
  0xe8   : > { %v6255_v4 = vrot.slane %v15426_v26, 6  ;;  %v10116_v37 = vcombine.low %v6234_v52, %v6244_v39  ;;  %v6262_v7 = vrot.slane %v6260_v46, 5  ;;  %v6263_v32 = vshll.u32 %v10099_v30, 16 }
  0xe9   : > { %v1686_v5 = vshrl.u32 %v12810_v45, 16  ;;  %v1689_v1 = vshll.u32 %v12810_v45, 16  ;;  %v6253_v62 = vrot.slane %v6252_v58, 4  ;;  %v1696_v38 = vor.u32 %v15428_v21, %v15427_v17  ;;  %v10100_v45 = vld [vmem:[%s12038_s26 + $0x44] sm:$0x3] }
  0xea   : > { %v6256_v51 = vor.u32 %v6255_v4, %v6254_v9  ;;  %11128 = vmatmul.mubr.msk.bf16.gmra.mrb[28].mxu0 %vm692_vm1, %v10079_v55  ;;  %v1700_v33 = vshrl.u32 %v1666_v8, 16  ;;  %v6265_v15 = vrot.slane %v6263_v32, 6  ;;  %v1703_v30 = vshll.u32 %v1666_v8, 16  ;;  %v1667_v58 = vld [vmem:[%s12038_s26 + $0x14] sm:$0x3] }
  0xeb   : > { %11133 = vmatprep.mubr.msk.bf16.mxu0 %vm692_vm1, %v10115_v22  ;;  %10856 = vmatmul.mubr.msk.bf16.gmra.mrb[28].mxu1 %vm692_vm1, %v9559_v60  ;;  %v1688_v10 = vrot.slane %v1686_v5, 5  ;;  %v1691_v11 = vrot.slane %v1689_v1, 6  ;;  %v1698_v34 = vrot.slane %v1696_v38, 4  ;;  %v6269_v35 = vshrl.u32 %v12813_v59, 16 }
  0xec   : > { %v6258_v49 = vrot.slane %v6256_v51, 4  ;;  %v6257_v43 = vsel %vm13193_vm10, %v6253_v62, %v6256_v51  ;;  %v1702_v55 = vrot.slane %v1700_v33, 5  ;;  %v6266_v61 = vor.u32 %v6265_v15, %v6262_v7 }
  0xed   : > { %v1692_v18 = vor.u32 %v1691_v11, %v1688_v10  ;;  %v1705_v25 = vrot.slane %v1703_v30, 6  ;;  %v6272_v22 = vshll.u32 %v12813_v59, 16  ;;  %v6271_v16 = vrot.slane %v6269_v35, 5  ;;  %v10101_v11 = vld [vmem:[%s12038_s26 + $0x50] sm:$0x3] }
  0xee   : > { %v15429_v23 = vshrl.u32 %v12474_v27, 16  ;;  %v15430_v28 = vshll.u32 %v12474_v27, 16  ;;  %v6283_v9 = vshrl.u32 %v10100_v45, 16  ;;  %v6267_v26 = vsel %vm13193_vm10, %v6258_v49, %v6266_v61 }
  0xef   : > { %v1693_v4 = vrot.slane %v1692_v18, 4  ;;  %v1706_v52 = vor.u32 %v1705_v25, %v1702_v55  ;;  %v6274_v39 = vrot.slane %v6272_v22, 6  ;;  %v10117_v36 = vcombine.low %v6257_v43, %v6267_v26  ;;  %v15433_v26 = vld [vmem:[#allocation8_spill] sm:$0xff] }
  0xf0   : > { %v6277_v29 = vrot.slane %v15429_v23, 5  ;;  %v6278_v6 = vrot.slane %v15430_v28, 6  ;;  %v6285_v8 = vrot.slane %v6283_v9, 5  ;;  %v6286_v60 = vshll.u32 %v10100_v45, 16 }
  0xf1   : > { %v1697_v59 = vsel %vm13193_vm10, %v1693_v4, %v1696_v38  ;;  %v1707_v51 = vsel %vm13193_vm10, %v1698_v34, %v1706_v52  ;;  %v6275_v27 = vor.u32 %v6274_v39, %v6271_v16  ;;  %v1709_v7 = vshrl.u32 %v12833_v19, 16  ;;  %v11854_v34 = vld [vmem:[%s15158_s1 + $0x68] sm:$0x3f]  }
  0xf2   : > { %v6279_v46 = vor.u32 %v6278_v6, %v6277_v29  ;;  %11134 = vmatmul.mubr.msk.bf16.vlgmr.msra.gmra.mrb[0].mxu0 %vm692_vm1, %v10116_v37  ;;  %v9579_v32 = vcombine.low %v1697_v59, %v1707_v51  ;;  %v6288_v1 = vrot.slane %v6286_v60, 6  ;;  %v1712_v62 = vshll.u32 %v12833_v19, 16 }
  0xf3   : > { %11137 = vmatprep.mubr.msk.bf16.mxu0 %vm692_vm1, %v10117_v36  ;;  %v6276_v49 = vrot.slane %v6275_v27, 4  ;;  %v1711_v17 = vrot.slane %v1709_v7, 5  ;;  %v1723_v21 = vshrl.u32 %v1667_v58, 16  ;;  %v1726_v38 = vshll.u32 %v1667_v58, 16  ;;  %v1668_v58 = vld [vmem:[%s12038_s26 + $0x20] sm:$0x3] }
  0xf4   : > { %v6281_v5 = vrot.slane %v6279_v46, 4  ;;  %10861 = vmatprep.mubr.msk.bf16.mxu1 %vm692_vm1, %v9579_v32  ;;  %v6289_v33 = vor.u32 %v6288_v1, %v6285_v8  ;;  %v1714_v15 = vrot.slane %v1712_v62, 6  ;;  %v2523_v10 = vsel %vm741_vm0, %v12904_v3, 0  ;;  %v13300_v32 = vld [vmem:[%s15158_s1 + $0x28] sm:$0x3f]  }
  0xf5   : > { %v7037_v37 = vsel %vm741_vm0, %v12915_v41, 0  ;;  %v6280_v19 = vsel %vm13193_vm10, %v6276_v49, %v6279_v46  ;;  %v1725_v30 = vrot.slane %v1723_v21, 5  ;;  %v1728_v45 = vrot.slane %v1726_v38, 6  ;;  %v15435_v1 = vld [vmem:[#allocation7_spill] sm:$0xff] }
  0xf6   : > { %11166 = vmatpush3.bf16.msra.mxu0 %v7037_v37  ;;  %v6292_v43 = vshrl.u32 %v12848_v54, 16  ;;  %v6290_v55 = vsel %vm13193_vm10, %v6281_v5, %v6289_v33  ;;  %v1715_v3 = vor.u32 %v1714_v15, %v1711_v17  ;;  %v6295_v35 = vshll.u32 %v12848_v54, 16 }
  0xf7   : > { %v15431_v41 = vshrl.u32 %v12501_v0, 16  ;;  %v10118_v18 = vcombine.low %v6280_v19, %v6290_v55  ;;  %v1729_v25 = vor.u32 %v1728_v45, %v1725_v30  ;;  %v15432_v16 = vshll.u32 %v12501_v0, 16  ;;  %11794 = vmatprep.subr.msk.bf16.mxu0 %vm741_vm0, %v11854_v34  ;;  %v10102_v45 = vld [vmem:[%s12038_s26 + $0x5c] sm:$0x3] }
  0xf8   : > { %v6294_v22 = vrot.slane %v6292_v43, 5  ;;  %v1716_v29 = vrot.slane %v1715_v3, 4  ;;  %v6297_v28 = vrot.slane %v6295_v35, 6  ;;  %v6306_v6 = vshrl.u32 %v10101_v11, 16 }
  0xf9   : > { %v6300_v61 = vrot.slane %v15431_v41, 5  ;;  %v6301_v23 = vrot.slane %v15432_v16, 6  ;;  %v6309_v9 = vshll.u32 %v10101_v11, 16  ;;  %v15434_v4 = vrot.slane %v15433_v26, 4 }
  0xfa   : > { %v1732_v39 = vshrl.u32 %v12856_v57, 16  ;;  %v1735_v36 = vshll.u32 %v12856_v57, 16  ;;  %11138 = vmatmul.mubr.msk.bf16.gmra.mrb[4].mxu0 %vm692_vm1, %v10118_v18  ;;  %v1720_v0 = vsel %vm13193_vm10, %v1716_v29, %v15433_v26  ;;  %v6298_v46 = vor.u32 %v6297_v28, %v6294_v22 }
  0xfb   : > { %v1730_v54 = vsel %vm13193_vm10, %v15434_v4, %v1729_v25  ;;  %v6302_v52 = vor.u32 %v6301_v23, %v6300_v61  ;;  %v6308_v8 = vrot.slane %v6306_v6, 5  ;;  %v6311_v60 = vrot.slane %v6309_v9, 6  ;;  %v1669_v9 = vld [vmem:[%s12038_s26 + $0x2c] sm:$0x3] }
  0xfc   : > { %v9580_v59 = vcombine.low %v1720_v0, %v1730_v54  ;;  %v1734_v27 = vrot.slane %v1732_v39, 5  ;;  %v1737_v7 = vrot.slane %v1735_v36, 6  ;;  %v6299_v57 = vrot.slane %v6298_v46, 4  ;;  %v15440_v36 = vld [vmem:[#allocation9_spill] sm:$0xff] }
  0xfd   : > { %v6304_v51 = vrot.slane %v6302_v52, 4  ;;  %v6312_v5 = vor.u32 %v6311_v60, %v6308_v8  ;;  %v15436_v62 = vshrl.u32 %v15435_v1, 16  ;;  %v15437_v17 = vshll.u32 %v15435_v1, 16 }
  0xfe   : > { %10862 = vmatmul.mubr.msk.bf16.vlgmr.msra.gmra.mrb[0].mxu1 %vm692_vm1, %v9580_v59  ;;  %v1738_v38 = vor.u32 %v1737_v7, %v1734_v27  ;;  %v1746_v33 = vshrl.u32 %v1668_v58, 16  ;;  %v1749_v15 = vshll.u32 %v1668_v58, 16  ;;  %v6315_v37 = vshrl.u32 %v12866_v40, 16 }
  0xff   : > { %v1740_v49 = vrot.slane %v15436_v62, 5  ;;  %v1741_v21 = vrot.slane %v15437_v17, 6  ;;  %10894 = vmatpush3.bf16.msra.mxu1 %v2523_v10  ;;  %v6303_v11 = vsel %vm13193_vm10, %v6299_v57, %v6302_v52  ;;  %v6313_v19 = vsel %vm13193_vm10, %v6304_v51, %v6312_v5 }
 0x100   : > { %v6318_v43 = vshll.u32 %v12866_v40, 16  ;;  %v10119_v34 = vcombine.low %v6303_v11, %v6313_v19  ;;  %v1739_v55 = vrot.slane %v1738_v38, 4  ;;  %v1748_v3 = vrot.slane %v1746_v33, 5  ;;  %11786 = vmatprep.subr.msk.bf16.mxu1 %vm741_vm0, %v13300_v32  ;;  %v10103_v38 = vld [vmem:[%s12038_s26 + $0x68] sm:$0x3] }
 0x101   : > { %v1742_v30 = vor.u32 %v1741_v21, %v1740_v49  ;;  %v1751_v35 = vrot.slane %v1749_v15, 6  ;;  %v6317_v10 = vrot.slane %v6315_v37, 5  ;;  %v15438_v18 = vshrl.u32 %v12523_v48, 16 }
 0x102   : > { %v6320_v61 = vrot.slane %v6318_v43, 6  ;;  %11141 = vmatprep.mubr.msk.bf16.mxu0 %vm692_vm1, %v10119_v34  ;;  %v15439_v16 = vshll.u32 %v12523_v48, 16  ;;  %v6329_v29 = vshrl.u32 %v10102_v45, 16  ;;  %v6332_v6 = vshll.u32 %v10102_v45, 16 }
 0x103   : > { %v1744_v41 = vrot.slane %v1742_v30, 4  ;;  %v6323_v25 = vrot.slane %v15438_v18, 5  ;;  %v1743_v22 = vsel %vm13193_vm10, %v1739_v55, %v1742_v30  ;;  %v1752_v40 = vor.u32 %v1751_v35, %v1748_v3 }
 0x104   : > { %v6324_v23 = vrot.slane %v15439_v16, 6  ;;  %v6321_v28 = vor.u32 %v6320_v61, %v6317_v10  ;;  %v1755_v26 = vshrl.u32 %v12883_v42, 16  ;;  %v1758_v4 = vshll.u32 %v12883_v42, 16 }
 0x105   : > { %v1753_v54 = vsel %vm13193_vm10, %v1744_v41, %v1752_v40  ;;  %v6331_v39 = vrot.slane %v6329_v29, 5  ;;  %v15441_v0 = vshrl.u32 %v15440_v36, 16  ;;  %v6334_v60 = vrot.slane %v6332_v6, 6 }
 0x106   : > { %v6325_v52 = vor.u32 %v6324_v23, %v6323_v25  ;;  %v9581_v8 = vcombine.low %v1743_v22, %v1753_v54  ;;  %v6322_v48 = vrot.slane %v6321_v28, 4  ;;  %v1757_v58 = vrot.slane %v1755_v26, 5  ;;  %v15445_v25 = vld [vmem:[#allocation2_spill] sm:$0xff] }
 0x107   : > { %v1763_v46 = vrot.slane %v15441_v0, 5  ;;  %v1760_v51 = vrot.slane %v1758_v4, 6  ;;  %v15442_v27 = vshll.u32 %v15440_v36, 16  ;;  %v1769_v57 = vshrl.u32 %v1669_v9, 16 }
 0x108   : > { %v6327_v59 = vrot.slane %v6325_v52, 4  ;;  %10865 = vmatprep.mubr.msk.bf16.mxu1 %vm692_vm1, %v9581_v8  ;;  %v6326_v42 = vsel %vm13193_vm10, %v6322_v48, %v6325_v52  ;;  %v6335_v5 = vor.u32 %v6334_v60, %v6331_v39  ;;  %v1772_v1 = vshll.u32 %v1669_v9, 16  ;;  %v15446_v39 = vld [vmem:[#allocation10_spill] sm:$0xff] }
 0x109   : > { %v1764_v7 = vrot.slane %v15442_v27, 6  ;;  %v6338_v62 = vshrl.u32 %v12899_v47, 16  ;;  %v1761_v49 = vor.u32 %v1760_v51, %v1757_v58  ;;  %v1771_v21 = vrot.slane %v1769_v57, 5  ;;  %v15449_v57 = vld [vmem:[#allocation5_spill] sm:$0xff] }
 0x10a   : > { %v6341_v33 = vshll.u32 %v12899_v47, 16  ;;  %v6336_v15 = vsel %vm13193_vm10, %v6327_v59, %v6335_v5  ;;  %v1774_v37 = vrot.slane %v1772_v1, 6  ;;  %v15443_v19 = vshrl.u32 %v12544_v20, 16 }
 0x10b   : > { %v1765_v17 = vor.u32 %v1764_v7, %v1763_v46  ;;  %v6340_v11 = vrot.slane %v6338_v62, 5  ;;  %v10120_v45 = vcombine.low %v6326_v42, %v6336_v15  ;;  %v1762_v43 = vrot.slane %v1761_v49, 4  ;;  %v10104_v7 = vld [vmem:[%s12038_s26 + $0x74] sm:$0x3] }
 0x10c   : > { %v6346_v30 = vrot.slane %v15443_v19, 5  ;;  %v6343_v55 = vrot.slane %v6341_v33, 6  ;;  %v1775_v3 = vor.u32 %v1774_v37, %v1771_v21  ;;  %v15444_v35 = vshll.u32 %v12544_v20, 16  ;;  %v1670_v20 = vld [vmem:[%s12038_s26 + $0x38] sm:$0x3] }
 0x10d   : > { %v1767_v34 = vrot.slane %v1765_v17, 4  ;;  %v6352_v10 = vshrl.u32 %v10103_v38, 16  ;;  %v6355_v61 = vshll.u32 %v10103_v38, 16  ;;  %11142 = vmatmul.mubr.msk.bf16.gmra.mrb[8].mxu0 %vm692_vm1, %v10120_v45  ;;  %v1766_v47 = vsel %vm13193_vm10, %v1762_v43, %v1765_v17 }
 0x10e   : > { %v6347_v41 = vrot.slane %v15444_v35, 6  ;;  %v6344_v18 = vor.u32 %v6343_v55, %v6340_v11  ;;  %v1778_v22 = vshrl.u32 %v15445_v25, 16  ;;  %v1781_v40 = vshll.u32 %v15445_v25, 16 }
 0x10f   : > { %v1776_v16 = vsel %vm13193_vm10, %v1767_v34, %v1775_v3  ;;  %v6354_v29 = vrot.slane %v6352_v10, 5  ;;  %v6357_v28 = vrot.slane %v6355_v61, 6  ;;  %v15447_v36 = vshrl.u32 %v15446_v39, 16  ;;  %v1671_v3 = vld [vmem:[%s12038_s26 + $0x44] sm:$0x3] }
 0x110   : > { %v6348_v23 = vor.u32 %v6347_v41, %v6346_v30  ;;  %v9582_v6 = vcombine.low %v1766_v47, %v1776_v16  ;;  %v6345_v9 = vrot.slane %v6344_v18, 4  ;;  %v1780_v26 = vrot.slane %v1778_v22, 5  ;;  %v15452_v18 = vld [vmem:[#allocation11_spill] sm:$0xff] }
 0x111   : > { %v1783_v4 = vrot.slane %v1781_v40, 6  ;;  %v6358_v52 = vor.u32 %v6357_v28, %v6354_v29  ;;  %v1786_v0 = vrot.slane %v15447_v36, 5  ;;  %v15448_v46 = vshll.u32 %v15446_v39, 16 }
 0x112   : > { %v6350_v54 = vrot.slane %v6348_v23, 4  ;;  %10866 = vmatmul.mubr.msk.bf16.gmra.mrb[4].mxu1 %vm692_vm1, %v9582_v6  ;;  %v6349_v48 = vsel %vm13193_vm10, %v6345_v9, %v6348_v23  ;;  %v1792_v58 = vshrl.u32 %v1670_v20, 16  ;;  %v1795_v59 = vshll.u32 %v1670_v20, 16 }
 0x113   : > { %v1787_v8 = vrot.slane %v15448_v46, 6  ;;  %v1784_v60 = vor.u32 %v1783_v4, %v1780_v26  ;;  %v6361_v42 = vshrl.u32 %v15449_v57, 16  ;;  %v6364_v5 = vshll.u32 %v15449_v57, 16 }
 0x114   : > { %v6359_v51 = vsel %vm13193_vm10, %v6350_v54, %v6358_v52  ;;  %v1794_v49 = vrot.slane %v1792_v58, 5  ;;  %v1797_v17 = vrot.slane %v1795_v59, 6  ;;  %v15450_v15 = vshrl.u32 %v15414_v56, 16  ;;  %v15455_v58 = vld [vmem:[#allocation24_spill] sm:$0xff] }
 0x115   : > { %v1788_v27 = vor.u32 %v1787_v8, %v1786_v0  ;;  %v10121_v1 = vcombine.low %v6349_v48, %v6359_v51  ;;  %v1785_v62 = vrot.slane %v1784_v60, 4  ;;  %v6363_v38 = vrot.slane %v6361_v42, 5  ;;  %v10105_v0 = vld [vmem:[%s12038_s26 + $0x80] sm:$0x3] }
 0x116   : > { %v6366_v33 = vrot.slane %v6364_v5, 6  ;;  %v6369_v37 = vrot.slane %v15450_v15, 5  ;;  %v1798_v19 = vor.u32 %v1797_v17, %v1794_v49  ;;  %v15451_v30 = vshll.u32 %v15414_v56, 16 }
 0x117   : > { %v1790_v21 = vrot.slane %v1788_v27, 4  ;;  %11145 = vmatprep.mubr.msk.bf16.mxu0 %vm692_vm1, %v10121_v1  ;;  %v1789_v11 = vsel %vm13193_vm10, %v1785_v62, %v1788_v27  ;;  %v6375_v43 = vshrl.u32 %v10104_v7, 16  ;;  %v6378_v55 = vshll.u32 %v10104_v7, 16 }
 0x118   : > { %v6370_v45 = vrot.slane %v15451_v30, 6  ;;  %v6367_v34 = vor.u32 %v6366_v33, %v6363_v38  ;;  %v1801_v35 = vshrl.u32 %v12942_v44, 16  ;;  %v1804_v41 = vshll.u32 %v12942_v44, 16  ;;  %v11916_v38 = vld [vmem:[%s12038_s26 + $0x48] sm:$0xe] }
 0x119   : > { %v1799_v10 = vsel %vm13193_vm10, %v1790_v21, %v1798_v19  ;;  %v6377_v47 = vrot.slane %v6375_v43, 5  ;;  %v15453_v25 = vshrl.u32 %v15452_v18, 16  ;;  %v6380_v16 = vrot.slane %v6378_v55, 6 }
 0x11a   : > { %v6371_v61 = vor.u32 %v6370_v45, %v6369_v37  ;;  %v9583_v40 = vcombine.low %v1789_v11, %v1799_v10  ;;  %v6368_v56 = vrot.slane %v6367_v34, 4  ;;  %v1803_v23 = vrot.slane %v1801_v35, 5  ;;  %v1672_v45 = vld [vmem:[%s12038_s26 + $0x50] sm:$0x3] }
 0x11b   : > { %v1809_v22 = vrot.slane %v15453_v25, 5  ;;  %v1806_v28 = vrot.slane %v1804_v41, 6  ;;  %v15454_v20 = vshll.u32 %v15452_v18, 16  ;;  %v1815_v9 = vshrl.u32 %v1671_v3, 16  ;;  %v15458_v10 = vld [vmem:[#allocation12_spill] sm:$0xff] }
 0x11c   : > { %v6373_v29 = vrot.slane %v6371_v61, 4  ;;  %10869 = vmatprep.mubr.msk.bf16.mxu1 %vm692_vm1, %v9583_v40  ;;  %v6372_v44 = vsel %vm13193_vm10, %v6368_v56, %v6371_v61  ;;  %v6381_v26 = vor.u32 %v6380_v16, %v6377_v47  ;;  %v1818_v4 = vshll.u32 %v1671_v3, 16 }
 0x11d   : > { %v1810_v6 = vrot.slane %v15454_v20, 6  ;;  %v6384_v54 = vshrl.u32 %v12963_v14, 16  ;;  %v1807_v52 = vor.u32 %v1806_v28, %v1803_v23  ;;  %v1817_v36 = vrot.slane %v1815_v9, 5  ;;  %v10106_v28 = vld [vmem:[%s12038_s26 + $0x8c] sm:$0x3] }
 0x11e   : > { %v6387_v46 = vshll.u32 %v12963_v14, 16  ;;  %v6382_v8 = vsel %vm13193_vm10, %v6373_v29, %v6381_v26  ;;  %v1820_v48 = vrot.slane %v1818_v4, 6  ;;  %v15456_v59 = vshrl.u32 %v15455_v58, 16  ;;  %v11917_v20 = vld [vmem:[%s12038_s26 + $0x84] sm:$0xe] }
 0x11f   : > { %v1811_v39 = vor.u32 %v1810_v6, %v1809_v22  ;;  %v6386_v60 = vrot.slane %v6384_v54, 5  ;;  %v10122_v27 = vcombine.low %v6372_v44, %v6382_v8  ;;  %v1808_v7 = vrot.slane %v1807_v52, 4 }
 0x120   : > { %v6392_v51 = vrot.slane %v15456_v59, 5  ;;  %v6389_v42 = vrot.slane %v6387_v46, 6  ;;  %v1821_v5 = vor.u32 %v1820_v48, %v1817_v36  ;;  %v15457_v1 = vshll.u32 %v15455_v58, 16 }
 0x121   : > { %v1813_v57 = vrot.slane %v1811_v39, 4  ;;  %v6398_v49 = vshrl.u32 %v10105_v0, 16  ;;  %v6401_v14 = vshll.u32 %v10105_v0, 16  ;;  %11146 = vmatmul.mubr.msk.bf16.gmra.mrb[12].mxu0 %vm692_vm1, %v10122_v27  ;;  %v1812_v17 = vsel %vm13193_vm10, %v1808_v7, %v1811_v39  ;;  %v1673_v7 = vld [vmem:[%s12038_s26 + $0x5c] sm:$0x3] }
 0x122   : > { %v6393_v62 = vrot.slane %v15457_v1, 6  ;;  %v6390_v21 = vor.u32 %v6389_v42, %v6386_v60  ;;  %v1824_v33 = vshrl.u32 %v11916_v38, 16  ;;  %v1827_v15 = vshll.u32 %v11916_v38, 16 }
 0x123   : > { %v1822_v37 = vsel %vm13193_vm10, %v1813_v57, %v1821_v5  ;;  %v6400_v19 = vrot.slane %v6398_v49, 5  ;;  %v6403_v30 = vrot.slane %v6401_v14, 6  ;;  %v15459_v61 = vshrl.u32 %v15458_v10, 16  ;;  %v11918_v57 = vld [vmem:[%s12038_s26 + $0x54] sm:$0xe]  ;;  %v15463_v14 = vld [vmem:[#allocation13_spill] sm:$0xff] }
 0x124   : > { %v6394_v11 = vor.u32 %v6393_v62, %v6392_v51  ;;  %v9584_v43 = vcombine.low %v1812_v17, %v1822_v37  ;;  %v6391_v34 = vrot.slane %v6390_v21, 4  ;;  %v1826_v55 = vrot.slane %v1824_v33, 5 }
 0x125   : > { %v1829_v3 = vrot.slane %v1827_v15, 6  ;;  %v6404_v41 = vor.u32 %v6403_v30, %v6400_v19  ;;  %v1832_v47 = vrot.slane %v15459_v61, 5  ;;  %v15460_v18 = vshll.u32 %v15458_v10, 16 }
 0x126   : > { %v6396_v35 = vrot.slane %v6394_v11, 4  ;;  %10870 = vmatmul.mubr.msk.bf16.gmra.mrb[8].mxu1 %vm692_vm1, %v9584_v43  ;;  %v6395_v22 = vsel %vm13193_vm10, %v6391_v34, %v6394_v11  ;;  %v1838_v56 = vshrl.u32 %v1672_v45, 16  ;;  %v1841_v16 = vshll.u32 %v1672_v45, 16 }
 0x127   : > { %v1833_v25 = vrot.slane %v15460_v18, 6  ;;  %v1830_v40 = vor.u32 %v1829_v3, %v1826_v55  ;;  %v6407_v6 = vshrl.u32 %v11917_v20, 16  ;;  %v6410_v9 = vshll.u32 %v11917_v20, 16  ;;  %v11919_v3 = vld [vmem:[%s12038_s26 + $0x90] sm:$0xe] }
 0x128   : > { %v6405_v23 = vsel %vm13193_vm10, %v6396_v35, %v6404_v41  ;;  %v1840_v4 = vrot.slane %v1838_v56, 5  ;;  %v1843_v54 = vrot.slane %v1841_v16, 6  ;;  %v15461_v0 = vshrl.u32 %v12625_v63, 16  ;;  %v15466_v56 = vld [vmem:[#allocation25_spill] sm:$0xff] }
 0x129   : > { %v1834_v29 = vor.u32 %v1833_v25, %v1832_v47  ;;  %v10123_v44 = vcombine.low %v6395_v22, %v6405_v23  ;;  %v1831_v26 = vrot.slane %v1830_v40, 4  ;;  %v6409_v39 = vrot.slane %v6407_v6, 5  ;;  %v10107_v47 = vld [vmem:[%s12038_s26 + $0x98] sm:$0x3] }
 0x12a   : > { %v6412_v36 = vrot.slane %v6410_v9, 6  ;;  %v6415_v46 = vrot.slane %v15461_v0, 5  ;;  %v1844_v48 = vor.u32 %v1843_v54, %v1840_v4  ;;  %v15462_v60 = vshll.u32 %v12625_v63, 16 }
 0x12b   : > { %v1836_v52 = vrot.slane %v1834_v29, 4  ;;  %11149 = vmatprep.mubr.msk.bf16.mxu0 %vm692_vm1, %v10123_v44  ;;  %v1835_v8 = vsel %vm13193_vm10, %v1831_v26, %v1834_v29  ;;  %v6421_v59 = vshrl.u32 %v10106_v28, 16  ;;  %v6424_v27 = vshll.u32 %v10106_v28, 16 }
 0x12c   : > { %v6416_v58 = vrot.slane %v15462_v60, 6  ;;  %v6413_v51 = vor.u32 %v6412_v36, %v6409_v39  ;;  %v1847_v42 = vshrl.u32 %v11918_v57, 16  ;;  %v1850_v5 = vshll.u32 %v11918_v57, 16  ;;  %v11920_v36 = vld [vmem:[%s12038_s26 + $0x60] sm:$0xe] }
 0x12d   : > { %v1845_v1 = vsel %vm13193_vm10, %v1836_v52, %v1844_v48  ;;  %v6423_v49 = vrot.slane %v6421_v59, 5  ;;  %v15464_v17 = vshrl.u32 %v15463_v14, 16  ;;  %v6426_v63 = vrot.slane %v6424_v27, 6  ;;  %v1674_v59 = vld [vmem:[%s12038_s26 + $0x68] sm:$0x3] }
 0x12e   : > { %v6417_v62 = vor.u32 %v6416_v58, %v6415_v46  ;;  %v9585_v38 = vcombine.low %v1835_v8, %v1845_v1  ;;  %v6414_v33 = vrot.slane %v6413_v51, 4  ;;  %v1849_v15 = vrot.slane %v1847_v42, 5  ;;  %v15469_v1 = vld [vmem:[#allocation14_spill] sm:$0xff] }
 0x12f   : > { %v1855_v21 = vrot.slane %v15464_v17, 5  ;;  %v1852_v11 = vrot.slane %v1850_v5, 6  ;;  %v15465_v19 = vshll.u32 %v15463_v14, 16  ;;  %v1861_v45 = vshrl.u32 %v1673_v7, 16 }
 0x130   : > { %v6419_v37 = vrot.slane %v6417_v62, 4  ;;  %10873 = vmatprep.mubr.msk.bf16.mxu1 %vm692_vm1, %v9585_v38  ;;  %v6418_v43 = vsel %vm13193_vm10, %v6414_v33, %v6417_v62  ;;  %v6427_v34 = vor.u32 %v6426_v63, %v6423_v49  ;;  %v1864_v55 = vshll.u32 %v1673_v7, 16 }
 0x131   : > { %v1856_v30 = vrot.slane %v15465_v19, 6  ;;  %v6430_v35 = vshrl.u32 %v11919_v3, 16  ;;  %v1853_v41 = vor.u32 %v1852_v11, %v1849_v15  ;;  %v1863_v61 = vrot.slane %v1861_v45, 5  ;;  %v10108_v11 = vld [vmem:[%s12038_s26 + $0xa4] sm:$0x3] }
 0x132   : > { %v6433_v18 = vshll.u32 %v11919_v3, 16  ;;  %v6428_v25 = vsel %vm13193_vm10, %v6419_v37, %v6427_v34  ;;  %v1866_v22 = vrot.slane %v1864_v55, 6  ;;  %v15467_v16 = vshrl.u32 %v15466_v56, 16  ;;  %v11921_v19 = vld [vmem:[%s12038_s26 + $0x9c] sm:$0xe] }
 0x133   : > { %v1857_v10 = vor.u32 %v1856_v30, %v1855_v21  ;;  %v6432_v40 = vrot.slane %v6430_v35, 5  ;;  %v10124_v29 = vcombine.low %v6418_v43, %v6428_v25  ;;  %v1854_v28 = vrot.slane %v1853_v41, 4 }
 0x134   : > { %v6438_v23 = vrot.slane %v15467_v16, 5  ;;  %v6435_v6 = vrot.slane %v6433_v18, 6  ;;  %v1867_v9 = vor.u32 %v1866_v22, %v1863_v61  ;;  %v15468_v44 = vshll.u32 %v15466_v56, 16 }
 0x135   : > { %v1859_v20 = vrot.slane %v1857_v10, 4  ;;  %v6444_v4 = vshrl.u32 %v10107_v47, 16  ;;  %v6447_v54 = vshll.u32 %v10107_v47, 16  ;;  %11150 = vmatmul.mubr.msk.bf16.gmra.mrb[16].mxu0 %vm692_vm1, %v10124_v29  ;;  %v1858_v52 = vsel %vm13193_vm10, %v1854_v28, %v1857_v10  ;;  %v1675_v29 = vld [vmem:[%s12038_s26 + $0x74] sm:$0x3] }
 0x136   : > { %v6439_v26 = vrot.slane %v15468_v44, 6  ;;  %v6436_v39 = vor.u32 %v6435_v6, %v6432_v40  ;;  %v1870_v0 = vshrl.u32 %v11920_v36, 16  ;;  %v1873_v46 = vshll.u32 %v11920_v36, 16  ;;  %v11922_v28 = vld [vmem:[%s12038_s26 + $0x6c] sm:$0xe] }
 0x137   : > { %v1868_v8 = vsel %vm13193_vm10, %v1859_v20, %v1867_v9  ;;  %v6446_v60 = vrot.slane %v6444_v4, 5  ;;  %v6449_v58 = vrot.slane %v6447_v54, 6  ;;  %v15470_v62 = vshrl.u32 %v15469_v1, 16  ;;  %v15474_v4 = vld [vmem:[#allocation15_spill] sm:$0xff] }
 0x138   : > { %v6440_v48 = vor.u32 %v6439_v26, %v6438_v23  ;;  %v9586_v51 = vcombine.low %v1858_v52, %v1868_v8  ;;  %v6437_v27 = vrot.slane %v6436_v39, 4  ;;  %v1872_v7 = vrot.slane %v1870_v0, 5 }
 0x139   : > { %v1875_v57 = vrot.slane %v1873_v46, 6  ;;  %v6450_v5 = vor.u32 %v6449_v58, %v6446_v60  ;;  %v1878_v49 = vrot.slane %v15470_v62, 5  ;;  %v15471_v14 = vshll.u32 %v15469_v1, 16  ;;  %v10109_v62 = vld [vmem:[%s12038_s26 + $0xb0] sm:$0x3] }
 0x13a   : > { %v6442_v42 = vrot.slane %v6440_v48, 4  ;;  %10874 = vmatmul.mubr.msk.bf16.gmra.mrb[12].mxu1 %vm692_vm1, %v9586_v51  ;;  %v6441_v21 = vsel %vm13193_vm10, %v6437_v27, %v6440_v48  ;;  %v1884_v33 = vshrl.u32 %v1674_v59, 16  ;;  %v1887_v63 = vshll.u32 %v1674_v59, 16 }
 0x13b   : > { %v1879_v17 = vrot.slane %v15471_v14, 6  ;;  %v1876_v38 = vor.u32 %v1875_v57, %v1872_v7  ;;  %v6453_v30 = vshrl.u32 %v11921_v19, 16  ;;  %v6456_v45 = vshll.u32 %v11921_v19, 16  ;;  %v11923_v7 = vld [vmem:[%s12038_s26 + $0xa8] sm:$0xe] }
 0x13c   : > { %v6451_v15 = vsel %vm13193_vm10, %v6442_v42, %v6450_v5  ;;  %v1886_v55 = vrot.slane %v1884_v33, 5  ;;  %v1889_v3 = vrot.slane %v1887_v63, 6  ;;  %v15472_v61 = vshrl.u32 %v12670_v31, 16 }
 0x13d   : > { %v1880_v37 = vor.u32 %v1879_v17, %v1878_v49  ;;  %v10125_v43 = vcombine.low %v6441_v21, %v6451_v15  ;;  %v1877_v34 = vrot.slane %v1876_v38, 4  ;;  %v6455_v41 = vrot.slane %v6453_v30, 5 }
 0x13e   : > { %v6458_v10 = vrot.slane %v6456_v45, 6  ;;  %v6461_v47 = vrot.slane %v15472_v61, 5  ;;  %v1890_v25 = vor.u32 %v1889_v3, %v1886_v55  ;;  %v15473_v22 = vshll.u32 %v12670_v31, 16 }
 0x13f   : > { %v1882_v35 = vrot.slane %v1880_v37, 4  ;;  %11153 = vmatprep.mubr.msk.bf16.mxu0 %vm692_vm1, %v10125_v43  ;;  %v1881_v18 = vsel %vm13193_vm10, %v1877_v34, %v1880_v37  ;;  %v6467_v56 = vshrl.u32 %v10108_v11, 16  ;;  %v6470_v23 = vshll.u32 %v10108_v11, 16 }
 0x140   : > { %v6462_v40 = vrot.slane %v15473_v22, 6  ;;  %v6459_v16 = vor.u32 %v6458_v10, %v6455_v41  ;;  %v1893_v20 = vshrl.u32 %v11922_v28, 16  ;;  %v1896_v6 = vshll.u32 %v11922_v28, 16  ;;  %v1676_v22 = vld [vmem:[%s12038_s26 + $0x80] sm:$0x3]  ;;  %v15479_v28 = vld [vmem:[#allocation16_spill] sm:$0xff] }
 0x141   : > { %v1891_v9 = vsel %vm13193_vm10, %v1882_v35, %v1890_v25  ;;  %v6469_v26 = vrot.slane %v6467_v56, 5  ;;  %v15475_v54 = vshrl.u32 %v15474_v4, 16  ;;  %v6472_v31 = vrot.slane %v6470_v23, 6  ;;  %v11924_v35 = vld [vmem:[%s12038_s26 + $0x78] sm:$0xe] }
 0x142   : > { %v6463_v44 = vor.u32 %v6462_v40, %v6461_v47  ;;  %v9587_v39 = vcombine.low %v1881_v18, %v1891_v9  ;;  %v6460_v36 = vrot.slane %v6459_v16, 4  ;;  %v1895_v0 = vrot.slane %v1893_v20, 5 }
 0x143   : > { %v1901_v52 = vrot.slane %v15475_v54, 5  ;;  %v1898_v8 = vrot.slane %v1896_v6, 6  ;;  %v15476_v48 = vshll.u32 %v15474_v4, 16  ;;  %v1907_v58 = vshrl.u32 %v1675_v29, 16 }
 0x144   : > { %v6465_v46 = vrot.slane %v6463_v44, 4  ;;  %10877 = vmatprep.mubr.msk.bf16.mxu1 %vm692_vm1, %v9587_v39  ;;  %v6464_v59 = vsel %vm13193_vm10, %v6460_v36, %v6463_v44  ;;  %v6473_v51 = vor.u32 %v6472_v31, %v6469_v26  ;;  %v1910_v27 = vshll.u32 %v1675_v29, 16  ;;  %v10110_v31 = vld [vmem:[%s12038_s26 + $0xbc] sm:$0x3] }
 0x145   : > { %v1902_v60 = vrot.slane %v15476_v48, 6  ;;  %v6476_v57 = vshrl.u32 %v11923_v7, 16  ;;  %v1899_v42 = vor.u32 %v1898_v8, %v1895_v0  ;;  %v1909_v1 = vrot.slane %v1907_v58, 5  ;;  %v11925_v0 = vld [vmem:[%s12038_s26 + $0xb4] sm:$0xe] }
 0x146   : > { %v6479_v49 = vshll.u32 %v11923_v7, 16  ;;  %v6474_v14 = vsel %vm13193_vm10, %v6465_v46, %v6473_v51  ;;  %v1912_v17 = vrot.slane %v1910_v27, 6  ;;  %v15477_v38 = vshrl.u32 %v12690_v2, 16 }
 0x147   : > { %v1903_v5 = vor.u32 %v1902_v60, %v1901_v52  ;;  %v6478_v21 = vrot.slane %v6476_v57, 5  ;;  %v10126_v63 = vcombine.low %v6464_v59, %v6474_v14  ;;  %v1900_v15 = vrot.slane %v1899_v42, 4 }
 0x148   : > { %v6484_v33 = vrot.slane %v15477_v38, 5  ;;  %v6481_v11 = vrot.slane %v6479_v49, 6  ;;  %v1913_v19 = vor.u32 %v1912_v17, %v1909_v1  ;;  %v15478_v30 = vshll.u32 %v12690_v2, 16  ;;  %v1677_v38 = vld [vmem:[%s12038_s26 + $0x8c] sm:$0x3] }
 0x149   : > { %v1905_v37 = vrot.slane %v1903_v5, 4  ;;  %v6490_v43 = vshrl.u32 %v10109_v62, 16  ;;  %v6493_v34 = vshll.u32 %v10109_v62, 16  ;;  %11154 = vmatmul.mubr.msk.bf16.gmra.mrb[20].mxu0 %vm692_vm1, %v10126_v63  ;;  %v1904_v55 = vsel %vm13193_vm10, %v1900_v15, %v1903_v5 }
 0x14a   : > { %v6485_v45 = vrot.slane %v15478_v30, 6  ;;  %v6482_v3 = vor.u32 %v6481_v11, %v6478_v21  ;;  %v1916_v41 = vshrl.u32 %v11924_v35, 16  ;;  %v1919_v10 = vshll.u32 %v11924_v35, 16  ;;  %v15484_v30 = vld [vmem:[#allocation17_spill] sm:$0xff] }
 0x14b   : > { %v1914_v61 = vsel %vm13193_vm10, %v1905_v37, %v1913_v19  ;;  %v6492_v18 = vrot.slane %v6490_v43, 5  ;;  %v6495_v25 = vrot.slane %v6493_v34, 6  ;;  %v15480_v20 = vshrl.u32 %v15479_v28, 16 }
 0x14c   : > { %v6486_v47 = vor.u32 %v6485_v45, %v6484_v33  ;;  %v9588_v2 = vcombine.low %v1904_v55, %v1914_v61  ;;  %v6483_v40 = vrot.slane %v6482_v3, 4  ;;  %v1918_v56 = vrot.slane %v1916_v41, 5  ;;  %v11926_v33 = vld [vmem:[%s12038_s26 + $0x84] sm:$0xe] }
 0x14d   : > { %v1921_v16 = vrot.slane %v1919_v10, 6  ;;  %v6496_v29 = vor.u32 %v6495_v25, %v6492_v18  ;;  %v1924_v6 = vrot.slane %v15480_v20, 5  ;;  %v15481_v9 = vshll.u32 %v15479_v28, 16 }
 0x14e   : > { %v6488_v23 = vrot.slane %v6486_v47, 4  ;;  %10878 = vmatmul.mubr.msk.bf16.gmra.mrb[16].mxu1 %vm692_vm1, %v9588_v2  ;;  %v6487_v26 = vsel %vm13193_vm10, %v6483_v40, %v6486_v47  ;;  %v1930_v54 = vshrl.u32 %v1676_v22, 16  ;;  %v1933_v52 = vshll.u32 %v1676_v22, 16  ;;  %v11927_v2 = vld [vmem:[%s12038_s26 + $0xc0] sm:$0xe] }
 0x14f   : > { %v1925_v44 = vrot.slane %v15481_v9, 6  ;;  %v1922_v4 = vor.u32 %v1921_v16, %v1918_v56  ;;  %v6499_v46 = vshrl.u32 %v11925_v0, 16  ;;  %v6502_v8 = vshll.u32 %v11925_v0, 16 }
 0x150   : > { %v6497_v39 = vsel %vm13193_vm10, %v6488_v23, %v6496_v29  ;;  %v1932_v58 = vrot.slane %v1930_v54, 5  ;;  %v1935_v59 = vrot.slane %v1933_v52, 6  ;;  %v15482_v57 = vshrl.u32 %v12711_v50, 16  ;;  %v10111_v29 = vld [vmem:[%s12038_s26 + $0xc8] sm:$0x3] }
 0x151   : > { %v1926_v36 = vor.u32 %v1925_v44, %v1924_v6  ;;  %v10127_v48 = vcombine.low %v6487_v26, %v6497_v39  ;;  %v1923_v60 = vrot.slane %v1922_v4, 4  ;;  %v6501_v27 = vrot.slane %v6499_v46, 5 }
 0x152   : > { %v6504_v7 = vrot.slane %v6502_v8, 6  ;;  %v6507_v42 = vrot.slane %v15482_v57, 5  ;;  %v1936_v1 = vor.u32 %v1935_v59, %v1932_v58  ;;  %v15483_v62 = vshll.u32 %v12711_v50, 16  ;;  %v11928_v58 = vld [vmem:[%s12038_s26 + $0x90] sm:$0xe] }
 0x153   : > { %v1928_v51 = vrot.slane %v1926_v36, 4  ;;  %11157 = vmatprep.mubr.msk.bf16.mxu0 %vm692_vm1, %v10127_v48  ;;  %v1927_v5 = vsel %vm13193_vm10, %v1923_v60, %v1926_v36  ;;  %v6513_v14 = vshrl.u32 %v10110_v31, 16  ;;  %v6516_v21 = vshll.u32 %v10110_v31, 16 }
 0x154   : > { %v6508_v49 = vrot.slane %v15483_v62, 6  ;;  %v6505_v17 = vor.u32 %v6504_v7, %v6501_v27  ;;  %v1939_v63 = vshrl.u32 %v11926_v33, 16  ;;  %v1942_v15 = vshll.u32 %v11926_v33, 16 }
 0x155   : > { %v1937_v37 = vsel %vm13193_vm10, %v1928_v51, %v1936_v1  ;;  %v6515_v19 = vrot.slane %v6513_v14, 5  ;;  %v15485_v45 = vshrl.u32 %v15484_v30, 16  ;;  %v6518_v50 = vrot.slane %v6516_v21, 6  ;;  %v15489_v21 = vld [vmem:[#allocation18_spill] sm:$0xff] }
 0x156   : > { %v6509_v11 = vor.u32 %v6508_v49, %v6507_v42  ;;  %v9589_v34 = vcombine.low %v1927_v5, %v1937_v37  ;;  %v6506_v55 = vrot.slane %v6505_v17, 4  ;;  %v1941_v3 = vrot.slane %v1939_v63, 5  ;;  %v1678_v5 = vld [vmem:[%s12038_s26 + $0x98] sm:$0x3] }
 0x157   : > { %v1947_v43 = vrot.slane %v15485_v45, 5  ;;  %v1944_v41 = vrot.slane %v1942_v15, 6  ;;  %v15486_v10 = vshll.u32 %v15484_v30, 16  ;;  %v1953_v47 = vshrl.u32 %v1677_v38, 16 }
 0x158   : > { %v6511_v35 = vrot.slane %v6509_v11, 4  ;;  %10881 = vmatprep.mubr.msk.bf16.mxu1 %vm692_vm1, %v9589_v34  ;;  %v6510_v18 = vsel %vm13193_vm10, %v6506_v55, %v6509_v11  ;;  %v6519_v25 = vor.u32 %v6518_v50, %v6515_v19  ;;  %v1956_v22 = vshll.u32 %v1677_v38, 16  ;;  %v10112_v34 = vld [vmem:[%s12038_s26 + $0xd4] sm:$0x3]  ;;  %v11929_v55 = vld [vmem:[%s12038_s26 + $0xcc] sm:$0xe] }
 0x159   : > { %v1948_v61 = vrot.slane %v15486_v10, 6  ;;  %v6522_v40 = vshrl.u32 %v11927_v2, 16  ;;  %v1945_v56 = vor.u32 %v1944_v41, %v1941_v3  ;;  %v1955_v23 = vrot.slane %v1953_v47, 5 }
 0x15a   : > { %v6525_v28 = vshll.u32 %v11927_v2, 16  ;;  %v6520_v20 = vsel %vm13193_vm10, %v6511_v35, %v6519_v25  ;;  %v1958_v6 = vrot.slane %v1956_v22, 6  ;;  %v15487_v44 = vshrl.u32 %v12736_v13, 16 }
 0x15b   : > { %v1949_v16 = vor.u32 %v1948_v61, %v1947_v43  ;;  %v6524_v9 = vrot.slane %v6522_v40, 5  ;;  %v10128_v4 = vcombine.low %v6510_v18, %v6520_v20  ;;  %v1946_v54 = vrot.slane %v1945_v56, 4 }
 0x15c   : > { %v6530_v26 = vrot.slane %v15487_v44, 5  ;;  %v6527_v39 = vrot.slane %v6525_v28, 6  ;;  %v1959_v36 = vor.u32 %v1958_v6, %v1955_v23  ;;  %v15488_v31 = vshll.u32 %v12736_v13, 16  ;;  %v1679_v6 = vld [vmem:[%s12038_s26 + $0xa4] sm:$0x3] }
 0x15d   : > { %v1951_v52 = vrot.slane %v1949_v16, 4  ;;  %v6536_v46 = vshrl.u32 %v10111_v29, 16  ;;  %v6539_v8 = vshll.u32 %v10111_v29, 16  ;;  %11158 = vmatmul.mubr.msk.bf16.gmra.mrb[24].mxu0 %vm692_vm1, %v10128_v4  ;;  %v1950_v48 = vsel %vm13193_vm10, %v1946_v54, %v1949_v16 }
 0x15e   : > { %v6531_v0 = vrot.slane %v15488_v31, 6  ;;  %v6528_v60 = vor.u32 %v6527_v39, %v6524_v9  ;;  %v1962_v59 = vshrl.u32 %v11928_v58, 16  ;;  %v1965_v51 = vshll.u32 %v11928_v58, 16  ;;  %v11930_v9 = vld [vmem:[%s12038_s26 + $0x9c] sm:$0xe]  ;;  %v15494_v39 = vld [vmem:[#allocation19_spill] sm:$0xff] }
 0x15f   : > { %v1960_v27 = vsel %vm13193_vm10, %v1951_v52, %v1959_v36  ;;  %v6538_v57 = vrot.slane %v6536_v46, 5  ;;  %v6541_v42 = vrot.slane %v6539_v8, 6  ;;  %v15490_v38 = vshrl.u32 %v15489_v21, 16 }
 0x160   : > { %v6532_v7 = vor.u32 %v6531_v0, %v6530_v26  ;;  %v9590_v13 = vcombine.low %v1950_v48, %v1960_v27  ;;  %v6529_v1 = vrot.slane %v6528_v60, 4  ;;  %v1964_v62 = vrot.slane %v1962_v59, 5 }
 0x161   : > { %v1967_v49 = vrot.slane %v1965_v51, 6  ;;  %v6542_v17 = vor.u32 %v6541_v42, %v6538_v57  ;;  %v1970_v33 = vrot.slane %v15490_v38, 5  ;;  %v15491_v63 = vshll.u32 %v15489_v21, 16  ;;  %v11931_v42 = vld [vmem:[%s12038_s26 + $0xa8] sm:$0xe] }
 0x162   : > { %v6534_v14 = vrot.slane %v6532_v7, 4  ;;  %10882 = vmatmul.mubr.msk.bf16.gmra.mrb[20].mxu1 %vm692_vm1, %v9590_v13  ;;  %v6533_v37 = vsel %vm13193_vm10, %v6529_v1, %v6532_v7  ;;  %v1976_v19 = vshrl.u32 %v1678_v5, 16  ;;  %v1979_v30 = vshll.u32 %v1678_v5, 16  ;;  %v11848_v38 = vld [vmem:[%s12038_s26 + $0x24] sm:$0xff]  }
 0x163   : > { %v1971_v15 = vrot.slane %v15491_v63, 6  ;;  %v1968_v11 = vor.u32 %v1967_v49, %v1964_v62  ;;  %v6545_v50 = vshrl.u32 %v11929_v55, 16  ;;  %v6548_v3 = vshll.u32 %v11929_v55, 16  ;;  %v1680_v49 = vld [vmem:[%s12038_s26 + $0xb0] sm:$0x3] }
 0x164   : > { %v6543_v45 = vsel %vm13193_vm10, %v6534_v14, %v6542_v17  ;;  %v1978_v10 = vrot.slane %v1976_v19, 5  ;;  %v1981_v61 = vrot.slane %v1979_v30, 6  ;;  %v15492_v22 = vshrl.u32 %v12758_v24, 16  ;;  %v15497_v63 = vld [vmem:[#allocation20_spill] sm:$0xff] }
 0x165   : > { %v1972_v43 = vor.u32 %v1971_v15, %v1970_v33  ;;  %v10129_v35 = vcombine.low %v6533_v37, %v6543_v45  ;;  %v1969_v41 = vrot.slane %v1968_v11, 4  ;;  %v6547_v18 = vrot.slane %v6545_v50, 5 }
 0x166   : > { %v6550_v25 = vrot.slane %v6548_v3, 6  ;;  %v6553_v2 = vrot.slane %v15492_v22, 5  ;;  %v1982_v56 = vor.u32 %v1981_v61, %v1978_v10  ;;  %v15493_v16 = vshll.u32 %v12758_v24, 16  ;;  %v11932_v10 = vld [vmem:[%s12038_s26 + $0xb4] sm:$0xe] }
 0x167   : > { %v1974_v47 = vrot.slane %v1972_v43, 4  ;;  %11161 = vmatprep.mubr.msk.bf16.mxu0 %vm692_vm1, %v10129_v35  ;;  %v1973_v40 = vsel %vm13193_vm10, %v1969_v41, %v1972_v43  ;;  %v6559_v29 = vshrl.u32 %v10112_v34, 16  ;;  %v6562_v20 = vshll.u32 %v10112_v34, 16 }
 0x168   : > { %v6554_v23 = vrot.slane %v15493_v16, 6  ;;  %v6551_v28 = vor.u32 %v6550_v25, %v6547_v18  ;;  %v1985_v44 = vshrl.u32 %v11930_v9, 16  ;;  %v1988_v26 = vshll.u32 %v11930_v9, 16  ;;  %v15500_v9 = vld [vmem:[#allocation21_spill] sm:$0xff] }
 0x169   : > { %v1983_v4 = vsel %vm13193_vm10, %v1974_v47, %v1982_v56  ;;  %v6561_v52 = vrot.slane %v6559_v29, 5  ;;  %v15495_v36 = vshrl.u32 %v15494_v39, 16  ;;  %v6564_v24 = vrot.slane %v6562_v20, 6 }
 0x16a   : > { %v6555_v54 = vor.u32 %v6554_v23, %v6553_v2  ;;  %v9591_v0 = vcombine.low %v1973_v40, %v1983_v4  ;;  %v6552_v46 = vrot.slane %v6551_v28, 4  ;;  %v1987_v8 = vrot.slane %v1985_v44, 5  ;;  %v1681_v40 = vld [vmem:[%s12038_s26 + $0xbc] sm:$0x3] }
 0x16b   : > { %v1993_v31 = vrot.slane %v15495_v36, 5  ;;  %v1990_v60 = vrot.slane %v1988_v26, 6  ;;  %v15496_v58 = vshll.u32 %v15494_v39, 16  ;;  %v1999_v51 = vshrl.u32 %v1679_v6, 16 }
 0x16c   : > { %v6557_v48 = vrot.slane %v6555_v54, 4  ;;  %10885 = vmatprep.mubr.msk.bf16.mxu1 %vm692_vm1, %v9591_v0  ;;  %v6556_v27 = vsel %vm13193_vm10, %v6552_v46, %v6555_v54  ;;  %v6565_v7 = vor.u32 %v6564_v24, %v6561_v52  ;;  %v2002_v57 = vshll.u32 %v1679_v6, 16  ;;  %v11849_v6 = vld [vmem:[%s12038_s26 + $0x30] sm:$0xff]   ;;  %v11850_v52 = vld [vmem:[%s12038_s26 + $0x3c] sm:$0xff]   ;;  %v10215_v46 = vld [vmem:[%s12038_s26 + $0x24] sm:$0xf] }
 0x16d   : > { %v1994_v59 = vrot.slane %v15496_v58, 6  ;;  %v2008_v5 = vshrl.u32 %v11931_v42, 16  ;;  %v1991_v13 = vor.u32 %v1990_v60, %v1987_v8  ;;  %v2001_v62 = vrot.slane %v1999_v51, 5  ;;  %v13588_v24 = vld [vmem:[%s12038_s26 + $0x28] sm:$0xf] }
 0x16e   : > { %v2011_v14 = vshll.u32 %v11931_v42, 16  ;;  %v6566_v17 = vsel %vm13193_vm10, %v6557_v48, %v6565_v7  ;;  %v2004_v21 = vrot.slane %v2002_v57, 6  ;;  %v15498_v15 = vshrl.u32 %v15497_v63, 16  ;;  %v11933_v58 = vld [vmem:[%s15158_s1 + $0x68] sm:$0x3f]  }
 0x16f   : > { %v1995_v1 = vor.u32 %v1994_v59, %v1993_v31  ;;  %v2010_v33 = vrot.slane %v2008_v5, 5  ;;  %v10130_v11 = vcombine.low %v6556_v27, %v6566_v17  ;;  %v1992_v19 = vrot.slane %v1991_v13, 4  ;;  %v10217_v51 = vld [vmem:[%s12038_s26 + $0x2c] sm:$0x1]  ;;  %v10218_v27 = vld [vmem:[%s12038_s26 + $0x30] sm:$0xf] }
 0x170   : > { %v2016_v37 = vrot.slane %v15498_v15, 5  ;;  %v2013_v45 = vrot.slane %v2011_v14, 6  ;;  %v2005_v43 = vor.u32 %v2004_v21, %v2001_v62  ;;  %v15499_v34 = vshll.u32 %v15497_v63, 16  ;;  %v13605_v13 = vld [vmem:[%s15158_s1 + $0x70] sm:$0x3f]  }
 0x171   : > { %v1997_v30 = vrot.slane %v1995_v1, 4  ;;  %v2022_v50 = vshrl.u32 %v1680_v49, 16  ;;  %v2025_v3 = vshll.u32 %v1680_v49, 16  ;;  %11162 = vmatmul.mubr.msk.bf16.gmra.mrb[28].mxu0 %vm692_vm1, %v10130_v11  ;;  %v1996_v35 = vsel %vm13193_vm10, %v1992_v19, %v1995_v1  ;;  %v10220_v11 = vld [vmem:[%s12038_s26 + $0x38] sm:$0x1] }
 0x172   : > { %v2017_v55 = vrot.slane %v15499_v34, 6  ;;  %v2014_v41 = vor.u32 %v2013_v45, %v2010_v33  ;;  %v2031_v61 = vshrl.u32 %v11932_v10, 16  ;;  %v2034_v47 = vshll.u32 %v11932_v10, 16  ;;  %11167 = vmatprep.mubr.msk.bf16.mxu0 %vm692_vm1, %v11848_v38  ;;  %v13614_v33 = vld [vmem:[%s12038_s26 + $0x34] sm:$0xf]  ;;  %v11851_v45 = vld [vmem:[%s12038_s26 + $0xc] sm:$0xff]  }
 0x173   : > { %v2006_v18 = vsel %vm13193_vm10, %v1997_v30, %v2005_v43  ;;  %v2024_v22 = vrot.slane %v2022_v50, 5  ;;  %v2027_v2 = vrot.slane %v2025_v3, 6  ;;  %v15501_v44 = vshrl.u32 %v15500_v9, 16  ;;  %v10221_v50 = vld [vmem:[%s12038_s26 + $0x3c] sm:$0xf] }
 0x174   : > { %v2018_v25 = vor.u32 %v2017_v55, %v2016_v37  ;;  %v9592_v56 = vcombine.low %v1996_v35, %v2006_v18  ;;  %v2015_v16 = vrot.slane %v2014_v41, 4  ;;  %v2033_v23 = vrot.slane %v2031_v61, 5  ;;  %v11853_v61 = vld [vmem:[%s12038_s26 + $0x48] sm:$0xff]  }
 0x175   : > { %v2036_v29 = vrot.slane %v2034_v47, 6  ;;  %v2028_v20 = vor.u32 %v2027_v2, %v2024_v22  ;;  %v2039_v26 = vrot.slane %v15501_v44, 5  ;;  %v15502_v4 = vshll.u32 %v15500_v9, 16  ;;  %v13632_v2 = vld [vmem:[%s12038_s26 + $0x40] sm:$0xf] }
 0x176   : > { %v2020_v28 = vrot.slane %v2018_v25, 4  ;;  %10886 = vmatmul.mubr.msk.bf16.gmra.mrb[24].mxu1 %vm692_vm1, %v9592_v56  ;;  %v2019_v39 = vsel %vm13193_vm10, %v2015_v16, %v2018_v25  ;;  %v2045_v31 = vshrl.u32 %v1681_v40, 16  ;;  %v2048_v0 = vshll.u32 %v1681_v40, 16  ;;  %15503 = vst [vmem:[#allocation22_spill] sm:$0xff] %v13632_v2  ;;  %v11856_v40 = vld [vmem:[%s12038_s26 + $0x54] sm:$0xff]  }
 0x177   : > { %v2040_v54 = vrot.slane %v15502_v4, 6  ;;  %v2037_v36 = vor.u32 %v2036_v29, %v2033_v23  ;;  %v13594_v60 = vsel %vm741_vm0, %v13300_v32, 0  ;;  %v7769_v59 = vsel %vm741_vm0, %v11933_v58, 0  ;;  %v10223_v44 = vld [vmem:[%s12038_s26 + $0x44] sm:$0x1]  ;;  %v11855_v58 = vld [vmem:[%s12038_s26 + $0x18] sm:$0xff]  }
 0x178   : > { %v2029_v8 = vsel %vm13193_vm10, %v2020_v28, %v2028_v20  ;;  %v2047_v42 = vrot.slane %v2045_v31, 5  ;;  %v2050_v5 = vrot.slane %v2048_v0, 6  ;;  %v7281_v1 = vshrl.u32 %v10215_v46, 16 }
 0x179   : > { %v2041_v48 = vor.u32 %v2040_v54, %v2039_v26  ;;  %v9593_v7 = vcombine.low %v2019_v39, %v2029_v8  ;;  %v2038_v57 = vrot.slane %v2037_v36, 4  ;;  %v7284_v62 = vshll.u32 %v10215_v46, 16  ;;  %11168 = vmatmul.mubr.msk.bf16.vlgmr.msra.gmra.mrb[0].mxu0 %vm692_vm1, %v11849_v6  ;;  %v9679_v36 = vld [vmem:[%s12038_s26 + $0xc] sm:$0xf] }
 0x17a   : > { %v15313_v49 = vshll.u32 %v13588_v24, 16  ;;  %v2051_v17 = vor.u32 %v2050_v5, %v2047_v42  ;;  %v15316_v21 = vshrl.u32 %v13588_v24, 16  ;;  %v7300_v38 = vshll.u32 %v10217_v51, 16  ;;  %11171 = vmatprep.mubr.msk.bf16.mxu0 %vm692_vm1, %v11850_v52  ;;  %11200 = vmatpush3.bf16.msra.mxu0 %v7769_v59  ;;  %v11857_v42 = vld [vmem:[%s12038_s26 + $0x24] sm:$0xff]  }
 0x17b   : > { %v2043_v32 = vrot.slane %v2041_v48, 4  ;;  %10889 = vmatprep.mubr.msk.bf16.mxu1 %vm692_vm1, %v9593_v7  ;;  %v2042_v14 = vsel %vm13193_vm10, %v2038_v57, %v2041_v48  ;;  %v7283_v63 = vrot.slane %v7281_v1, 4  ;;  %v7286_v15 = vrot.slane %v7284_v62, 5  ;;  %11795 = vmatprep.subr.msk.bf16.mxu0 %vm741_vm0, %v13605_v13  ;;  %v13651_v48 = vld [vmem:[%s12038_s26 + $0x10] sm:$0xf] }
 0x17c   : > { %v7292_v37 = vrot.slane %v15313_v49, 5  ;;  %v7305_v19 = vshrl.u32 %v10218_v27, 16  ;;  %v7296_v43 = vrot.slane %v15316_v21, 4  ;;  %v7302_v34 = vrot.slane %v7300_v38, 5  ;;  %15505 = vst [vmem:[#allocation23_spill] sm:$0xff] %v13651_v48 }
 0x17d   : > { %v2052_v30 = vsel %vm13193_vm10, %v2043_v32, %v2051_v17  ;;  %v7308_v55 = vshll.u32 %v10218_v27, 16  ;;  %v7287_v35 = vor.u32 %v7286_v15, %v7283_v63  ;;  %v15307_v10 = vshll.u32 %v13614_v33, 16  ;;  %v10224_v57 = vld [vmem:[%s12038_s26 + $0x48] sm:$0xf]  ;;  %v9681_v62 = vld [vmem:[%s12038_s26 + $0x14] sm:$0x1] }
 0x17e   : > { %v9594_v3 = vcombine.low %v2042_v14, %v2052_v30  ;;  %v7307_v41 = vrot.slane %v7305_v19, 4  ;;  %v7297_v47 = vor.u32 %v7296_v43, %v7292_v37  ;;  %v15309_v25 = vshrl.u32 %v13614_v33, 16  ;;  %v9712_v49 = vld [vmem:[%s12038_s26 + $0x90] sm:$0xf] }
 0x17f   : > { %v7310_v18 = vrot.slane %v7308_v55, 5  ;;  %v7324_v22 = vshll.u32 %v10220_v11, 16  ;;  %v7288_v56 = vrot.slane %v7287_v35, 4  ;;  %v7316_v16 = vrot.slane %v15307_v10, 5  ;;  %v11858_v11 = vld [vmem:[%s12038_s26 + $0x60] sm:$0xff]   ;;  %v11860_v55 = vld [vmem:[%s12038_s26 + $0x6c] sm:$0xff]  }
 0x180   : > { %10890 = vmatmul.mubr.msk.bf16.gmra.mrb[28].mxu1 %vm692_vm1, %v9594_v3  ;;  %v7329_v23 = vshrl.u32 %v10221_v50, 16  ;;  %v7332_v29 = vshll.u32 %v10221_v50, 16  ;;  %v7298_v28 = vrot.slane %v7297_v47, 4  ;;  %v7320_v6 = vrot.slane %v15309_v25, 4  ;;  %v14123_v10 = vld [vmem:[%s12038_s26 + $0x88] sm:$0xf] }
 0x181   : > { %10895 = vmatprep.mubr.msk.bf16.mxu1 %vm692_vm1, %v11851_v45  ;;  %v7311_v20 = vor.u32 %v7310_v18, %v7307_v41  ;;  %v7326_v9 = vrot.slane %v7324_v22, 5  ;;  %v7293_v4 = vsel %vm12092_vm4, %v7288_v56, %v7292_v37  ;;  %v15301_v39 = vshll.u32 %v13632_v2, 16  ;;  %11172 = vmatmul.mubr.msk.bf16.gmra.mrb[4].mxu0 %vm692_vm1, %v11853_v61  ;;  %v13670_v37 = vld [vmem:[%s15158_s1 + $0x30] sm:$0x3f]  }
 0x182   : > { %v7331_v54 = vrot.slane %v7329_v23, 4  ;;  %v7334_v52 = vrot.slane %v7332_v29, 5  ;;  %v7303_v31 = vsel %vm12092_vm4, %v7298_v28, %v7302_v34  ;;  %v7321_v46 = vor.u32 %v7320_v6, %v7316_v16  ;;  %11175 = vmatprep.mubr.msk.bf16.mxu0 %vm692_vm1, %v11856_v40  ;;  %v13677_v34 = vld [vmem:[%s12038_s26 + $0x4c] sm:$0xf]  ;;  %v10226_v22 = vld [vmem:[%s12038_s26 + $0x50] sm:$0x1] }
 0x183   : > { %v7312_v0 = vrot.slane %v7311_v20, 4  ;;  %v15304_v8 = vshrl.u32 %v13632_v2, 16  ;;  %v13655_v59 = vcombine.low %v7293_v4, %v7303_v31  ;;  %v7340_v27 = vrot.slane %v15301_v39, 5  ;;  %15506 = vst [vmem:[#allocation3_spill] sm:$0xff] %v13677_v34  ;;  %v9682_v29 = vld [vmem:[%s12038_s26 + $0x18] sm:$0xf] }
 0x184   : > { %v7335_v51 = vor.u32 %v7334_v52, %v7331_v54  ;;  %v7348_v7 = vshll.u32 %v10223_v44, 16  ;;  %v7322_v32 = vrot.slane %v7321_v46, 4  ;;  %v2767_v14 = vshrl.u32 %v9679_v36, 16  ;;  %v13701_v44 = vld [vmem:[%s12038_s26 + $0x1c] sm:$0xf]  ;;  %v11859_v4 = vld [vmem:[%s12038_s26 + $0x30] sm:$0xff]  }
 0x185   : > { %v7317_v5 = vsel %vm12092_vm4, %v7312_v0, %v7316_v16  ;;  %v7344_v1 = vrot.slane %v15304_v8, 4  ;;  %v2770_v63 = vshll.u32 %v9679_v36, 16  ;;  %v15287_v15 = vshll.u32 %v13651_v48, 16  ;;  %15507 = vst [vmem:[#allocation4_spill] sm:$0xff] %v13701_v44  ;;  %v11861_v0 = vld [vmem:[%s12038_s26 + $0x3c] sm:$0xff]   ;;  %v15537_v12 = vld [vmem:[#allocation23_spill] sm:$0xff] }
 0x186   : > { %v7336_v17 = vrot.slane %v7335_v51, 4  ;;  %v7350_v38 = vrot.slane %v7348_v7, 5  ;;  %v7327_v19 = vsel %vm12092_vm4, %v7322_v32, %v7326_v9  ;;  %v2769_v45 = vrot.slane %v2767_v14, 4  ;;  %v14080_v39 = vld [vmem:[%s12038_s26 + $0x7c] sm:$0xf] }
 0x187   : > { %v7345_v30 = vor.u32 %v7344_v1, %v7340_v27  ;;  %v15295_v43 = vshrl.u32 %v13651_v48, 16  ;;  %v13681_v50 = vcombine.low %v7317_v5, %v7327_v19  ;;  %v2772_v35 = vrot.slane %v2770_v63, 5  ;;  %v11862_v1 = vld [vmem:[%s12038_s26 + $0x78] sm:$0xff]   ;;  %v10227_v63 = vld [vmem:[%s12038_s26 + $0x54] sm:$0xf] }
 0x188   : > { %10896 = vmatmul.mubr.msk.bf16.vlgmr.msra.gmra.mrb[0].mxu1 %vm692_vm1, %v11855_v58  ;;  %v7341_v3 = vsel %vm12092_vm4, %v7336_v17, %v7340_v27  ;;  %v2778_v41 = vrot.slane %v15287_v15, 5  ;;  %v2786_v18 = vshll.u32 %v9681_v62, 16  ;;  %v7353_v40 = vshrl.u32 %v10224_v57, 16  ;;  %v9699_v15 = vld [vmem:[%s12038_s26 + $0x5c] sm:$0x1] }
 0x189   : > { %10928 = vmatpush3.bf16.msra.mxu1 %v13594_v60  ;;  %10899 = vmatprep.mubr.msk.bf16.mxu1 %vm692_vm1, %v11857_v42  ;;  %v7346_v61 = vrot.slane %v7345_v30, 4  ;;  %v2782_v47 = vrot.slane %v15295_v43, 4  ;;  %v2773_v56 = vor.u32 %v2772_v35, %v2769_v45  ;;  %v7356_v16 = vshll.u32 %v10224_v57, 16  ;;  %v9684_v42 = vld [vmem:[%s12038_s26 + $0x20] sm:$0x1] }
 0x18a   : > { %11787 = vmatprep.subr.msk.bf16.mxu1 %vm741_vm0, %v13670_v37  ;;  %v15284_v23 = vshll.u32 %v13677_v34, 16  ;;  %v15286_v60 = vshrl.u32 %v13677_v34, 16  ;;  %11176 = vmatmul.mubr.msk.bf16.gmra.mrb[8].mxu0 %vm692_vm1, %v11858_v11  ;;  %v2788_v6 = vrot.slane %v2786_v18, 5  ;;  %v7355_v9 = vrot.slane %v7353_v40, 4  ;;  %v11864_v11 = vld [vmem:[%s12038_s26 + $0x84] sm:$0xff]  }
 0x18b   : > { %v7351_v28 = vsel %vm12092_vm4, %v7346_v61, %v7350_v38  ;;  %v2783_v20 = vor.u32 %v2782_v47, %v2778_v41  ;;  %11179 = vmatprep.mubr.msk.bf16.mxu0 %vm692_vm1, %v11860_v55  ;;  %v2774_v52 = vrot.slane %v2773_v56, 4  ;;  %v7358_v36 = vrot.slane %v7356_v16, 5  ;;  %v13733_v47 = vld [vmem:[%s12038_s26 + $0x58] sm:$0xf]  ;;  %v10229_v56 = vld [vmem:[%s12038_s26 + $0x5c] sm:$0x1] }
 0x18c   : > { %v13705_v54 = vcombine.low %v7341_v3, %v7351_v28  ;;  %v7364_v31 = vrot.slane %v15284_v23, 5  ;;  %v7368_v58 = vrot.slane %v15286_v60, 4  ;;  %v7372_v51 = vshll.u32 %v10226_v22, 16  ;;  %15508 = vst [vmem:[#allocation8_spill] sm:$0xff] %v13733_v47  ;;  %v14332_v34 = vld [vmem:[%s12038_s26 + $0xc] sm:$0xe] }
 0x18d   : > { %v2784_v46 = vrot.slane %v2783_v20, 4  ;;  %v2791_v27 = vshrl.u32 %v9682_v29, 16  ;;  %v2779_v7 = vsel %vm12092_vm4, %v2774_v52, %v2778_v41  ;;  %v7359_v57 = vor.u32 %v7358_v36, %v7355_v9  ;;  %v11863_v9 = vld [vmem:[%s12038_s26 + $0x48] sm:$0xff]   ;;  %15520 = vst [vmem:[#allocation15_spill] sm:$0xff] %v14332_v34  ;;  %v11938_v2 = vld [vmem:[%s12038_s26 + $0x40] sm:$0xf] }
 0x18e   : > { %v2794_v5 = vshll.u32 %v9682_v29, 16  ;;  %v15278_v32 = vshll.u32 %v13701_v44, 16  ;;  %v7369_v14 = vor.u32 %v7368_v58, %v7364_v31  ;;  %v7374_v17 = vrot.slane %v7372_v51, 5  ;;  %v14341_v48 = vld [vmem:[%s12038_s26 + $0x48] sm:$0xe] }
 0x18f   : > { %v2789_v62 = vsel %vm12092_vm4, %v2784_v46, %v2788_v6  ;;  %v2793_v38 = vrot.slane %v2791_v27, 4  ;;  %v7360_v30 = vrot.slane %v7359_v57, 4  ;;  %v15282_v35 = vshrl.u32 %v13701_v44, 16  ;;  %v9685_v6 = vld [vmem:[%s12038_s26 + $0x24] sm:$0xf] }
 0x190   : > { %10900 = vmatmul.mubr.msk.bf16.gmra.mrb[4].mxu1 %vm692_vm1, %v11859_v4  ;;  %v13722_v19 = vcombine.low %v2779_v7, %v2789_v62  ;;  %v2796_v45 = vrot.slane %v2794_v5, 5  ;;  %v2802_v55 = vrot.slane %v15278_v32, 5  ;;  %v7370_v3 = vrot.slane %v7369_v14, 4  ;;  %v13756_v27 = vld [vmem:[%s12038_s26 + $0x28] sm:$0xf]  ;;  %v11866_v62 = vld [vmem:[%s12038_s26 + $0x90] sm:$0xff]  }
 0x191   : > { %10903 = vmatprep.mubr.msk.bf16.mxu1 %vm692_vm1, %v11861_v0  ;;  %v2810_v41 = vshll.u32 %v9684_v42, 16  ;;  %v13730_v61 = vsel %vm741_vm0, %v13670_v37, 0  ;;  %v7365_v18 = vsel %vm12092_vm4, %v7360_v30, %v7364_v31  ;;  %v13739_v40 = vsel %vm741_vm0, %v13605_v13, 0  ;;  %v11865_v31 = vld [vmem:[%s12038_s26 + $0x54] sm:$0xff]   ;;  %15509 = vst [vmem:[#allocation7_spill] sm:$0xff] %v13756_v27  ;;  %v11868_v14 = vld [vmem:[%s12038_s26 + $0x9c] sm:$0xff]  }
 0x192   : > { %v2797_v22 = vor.u32 %v2796_v45, %v2793_v38  ;;  %v7377_v16 = vshrl.u32 %v10227_v63, 16  ;;  %11180 = vmatmul.mubr.msk.bf16.gmra.mrb[12].mxu0 %vm692_vm1, %v11862_v1  ;;  %v7375_v29 = vsel %vm12092_vm4, %v7370_v3, %v7374_v17  ;;  %v2806_v37 = vrot.slane %v15282_v35, 4  ;;  %v9687_v42 = vld [vmem:[%s12038_s26 + $0x2c] sm:$0x1]  ;;  %v11936_v44 = vld [vmem:[%s12038_s26 + $0x34] sm:$0xf] }
 0x193   : > { %v2812_v28 = vrot.slane %v2810_v41, 5  ;;  %v7380_v20 = vshll.u32 %v10227_v63, 16  ;;  %11183 = vmatprep.mubr.msk.bf16.mxu0 %vm692_vm1, %v11864_v11  ;;  %v13750_v13 = vcombine.low %v7365_v18, %v7375_v29  ;;  %v15276_v36 = vshll.u32 %v13733_v47, 16  ;;  %v10230_v41 = vld [vmem:[%s12038_s26 + $0x60] sm:$0xf] }
 0x194   : > { %v2798_v4 = vrot.slane %v2797_v22, 4  ;;  %v7379_v52 = vrot.slane %v7377_v16, 4  ;;  %v2807_v0 = vor.u32 %v2806_v37, %v2802_v55  ;;  %v15277_v58 = vshrl.u32 %v13733_v47, 16  ;;  %v13775_v29 = vld [vmem:[%s12038_s26 + $0x64] sm:$0xf] }
 0x195   : > { %v7382_v46 = vrot.slane %v7380_v20, 5  ;;  %v7396_v51 = vshll.u32 %v10229_v56, 16  ;;  %v7388_v57 = vrot.slane %v15276_v36, 5  ;;  %v2815_v5 = vshrl.u32 %v9685_v6, 16  ;;  %15510 = vst [vmem:[#allocation9_spill] sm:$0xff] %v13775_v29 }
 0x196   : > { %v2803_v7 = vsel %vm12092_vm4, %v2798_v4, %v2802_v55  ;;  %v2818_v1 = vshll.u32 %v9685_v6, 16  ;;  %v2808_v17 = vrot.slane %v2807_v0, 4  ;;  %v7392_v63 = vrot.slane %v15277_v58, 4  ;;  %v10232_v4 = vld [vmem:[%s12038_s26 + $0x68] sm:$0x1] }
 0x197   : > { %v7383_v38 = vor.u32 %v7382_v46, %v7379_v52  ;;  %v7398_v11 = vrot.slane %v7396_v51, 5  ;;  %v2817_v30 = vrot.slane %v2815_v5, 4  ;;  %v15271_v55 = vshll.u32 %v13756_v27, 16  ;;  %v11867_v46 = vld [vmem:[%s12038_s26 + $0x60] sm:$0xff]  }
 0x198   : > { %10904 = vmatmul.mubr.msk.bf16.gmra.mrb[8].mxu1 %vm692_vm1, %v11863_v9  ;;  %v2820_v45 = vrot.slane %v2818_v1, 5  ;;  %v15272_v3 = vshrl.u32 %v13756_v27, 16  ;;  %v2813_v18 = vsel %vm12092_vm4, %v2808_v17, %v2812_v28  ;;  %v7393_v56 = vor.u32 %v7392_v63, %v7388_v57  ;;  %v9688_v1 = vld [vmem:[%s12038_s26 + $0x30] sm:$0xf]  ;;  %v14285_v27 = vld [vmem:[%s12038_s26 + $0xbc] sm:$0x1] }
 0x199   : > { %10907 = vmatprep.mubr.msk.bf16.mxu1 %vm692_vm1, %v11865_v31  ;;  %v7384_v22 = vrot.slane %v7383_v38, 4  ;;  %v2834_v16 = vshll.u32 %v9687_v42, 16  ;;  %v13777_v37 = vcombine.low %v2803_v7, %v2813_v18  ;;  %v2826_v6 = vrot.slane %v15271_v55, 5  ;;  %v11869_v17 = vld [vmem:[%s12038_s26 + $0x6c] sm:$0xff]  }
 0x19a   : > { %v2821_v20 = vor.u32 %v2820_v45, %v2817_v30  ;;  %v2830_v9 = vrot.slane %v15272_v3, 4  ;;  %11184 = vmatmul.mubr.msk.bf16.gmra.mrb[16].mxu0 %vm692_vm1, %v11866_v62  ;;  %v7394_v52 = vrot.slane %v7393_v56, 4  ;;  %v7401_v0 = vshrl.u32 %v10230_v41, 16  ;;  %v13796_v30 = vld [vmem:[%s12038_s26 + $0x34] sm:$0xf]  ;;  %v11870_v45 = vld [vmem:[%s12038_s26 + $0xa8] sm:$0xff]  }
 0x19b   : > { %v7389_v28 = vsel %vm12092_vm4, %v7384_v22, %v7388_v57  ;;  %v2836_v31 = vrot.slane %v2834_v16, 5  ;;  %11187 = vmatprep.mubr.msk.bf16.mxu0 %vm692_vm1, %v11868_v14  ;;  %v7404_v42 = vshll.u32 %v10230_v41, 16  ;;  %v15267_v5 = vshll.u32 %v13775_v29, 16  ;;  %15511 = vst [vmem:[#allocation2_spill] sm:$0xff] %v13796_v30 }
 0x19c   : > { %v2822_v51 = vrot.slane %v2821_v20, 4  ;;  %v2831_v7 = vor.u32 %v2830_v9, %v2826_v6  ;;  %v7399_v62 = vsel %vm12092_vm4, %v7394_v52, %v7398_v11  ;;  %v7403_v57 = vrot.slane %v7401_v0, 4  ;;  %v9690_v20 = vld [vmem:[%s12038_s26 + $0x38] sm:$0x1] }
 0x19d   : > { %v15270_v38 = vshrl.u32 %v13775_v29, 16  ;;  %v7420_v63 = vshll.u32 %v10232_v4, 16  ;;  %v13799_v14 = vcombine.low %v7389_v28, %v7399_v62  ;;  %v7406_v22 = vrot.slane %v7404_v42, 5  ;;  %v11872_v4 = vld [vmem:[%s12038_s26 + $0xb4] sm:$0xff]  }
 0x19e   : > { %v2827_v41 = vsel %vm12092_vm4, %v2822_v51, %v2826_v6  ;;  %v2832_v18 = vrot.slane %v2831_v7, 4  ;;  %v7412_v56 = vrot.slane %v15267_v5, 5  ;;  %v2839_v9 = vshrl.u32 %v9688_v1, 16  ;;  %v10233_v51 = vld [vmem:[%s12038_s26 + $0x6c] sm:$0xf] }
 0x19f   : > { %v7416_v11 = vrot.slane %v15270_v38, 4  ;;  %v7422_v16 = vrot.slane %v7420_v63, 5  ;;  %v7407_v6 = vor.u32 %v7406_v22, %v7403_v57  ;;  %v2842_v52 = vshll.u32 %v9688_v1, 16 }
 0x1a0   : > { %10908 = vmatmul.mubr.msk.bf16.gmra.mrb[12].mxu1 %vm692_vm1, %v11867_v46  ;;  %v2837_v28 = vsel %vm12092_vm4, %v2832_v18, %v2836_v31  ;;  %v15268_v0 = vshll.u32 %v13796_v30, 16  ;;  %v2841_v62 = vrot.slane %v2839_v9, 4  ;;  %v15269_v63 = vshrl.u32 %v13796_v30, 16  ;;  %v13819_v46 = vld [vmem:[%s12038_s26 + $0x70] sm:$0xf] }
 0x1a1   : > { %10911 = vmatprep.mubr.msk.bf16.mxu1 %vm692_vm1, %v11869_v17  ;;  %v13815_v7 = vcombine.low %v2827_v41, %v2837_v28  ;;  %v7417_v42 = vor.u32 %v7416_v11, %v7412_v56  ;;  %15512 = vst [vmem:[#allocation10_spill] sm:$0xff] %v13819_v46  ;;  %v7408_v5 = vrot.slane %v7407_v6, 4  ;;  %v2844_v31 = vrot.slane %v2842_v52, 5  ;;  %v11871_v17 = vld [vmem:[%s12038_s26 + $0x78] sm:$0xff]   ;;  %v10235_v52 = vld [vmem:[%s12038_s26 + $0x74] sm:$0x1] }
 0x1a2   : > { %v2850_v1 = vrot.slane %v15268_v0, 5  ;;  %v2858_v57 = vshll.u32 %v9690_v20, 16  ;;  %11188 = vmatmul.mubr.msk.bf16.gmra.mrb[20].mxu0 %vm692_vm1, %v11870_v45  ;;  %v2854_v18 = vrot.slane %v15269_v63, 4  ;;  %v7425_v22 = vshrl.u32 %v10233_v51, 16  ;;  %v9691_v45 = vld [vmem:[%s12038_s26 + $0x3c] sm:$0xf] }
 0x1a3   : > { %v7418_v41 = vrot.slane %v7417_v42, 4  ;;  %v7428_v11 = vshll.u32 %v10233_v51, 16  ;;  %11191 = vmatprep.mubr.msk.bf16.mxu0 %vm692_vm1, %v11872_v4  ;;  %v7413_v9 = vsel %vm12092_vm4, %v7408_v5, %v7412_v56  ;;  %v2845_v28 = vor.u32 %v2844_v31, %v2841_v62  ;;  %v11873_v42 = vld [vmem:[%s12038_s26 + $0x84] sm:$0xff]   ;;  %v13837_v4 = vld [vmem:[%s12038_s26 + $0x40] sm:$0xf] }
 0x1a4   : > { %v2860_v6 = vrot.slane %v2858_v57, 5  ;;  %v15273_v20 = vshll.u32 %v13819_v46, 16  ;;  %v2855_v63 = vor.u32 %v2854_v18, %v2850_v1  ;;  %v7427_v51 = vrot.slane %v7425_v22, 4  ;;  %15513 = vst [vmem:[#allocation5_spill] sm:$0xff] %v13837_v4  ;;  %v11874_v31 = vld [vmem:[%s12038_s26 + $0xc0] sm:$0xff]   ;;  %v11876_v22 = vld [vmem:[%s12038_s26 + $0xcc] sm:$0xff]  }
 0x1a5   : > { %v7423_v0 = vsel %vm12092_vm4, %v7418_v41, %v7422_v16  ;;  %v7430_v38 = vrot.slane %v7428_v11, 5  ;;  %v2846_v5 = vrot.slane %v2845_v28, 4  ;;  %v15274_v62 = vshrl.u32 %v13819_v46, 16  ;;  %v9693_v41 = vld [vmem:[%s12038_s26 + $0x44] sm:$0x1] }
 0x1a6   : > { %v13839_v55 = vcombine.low %v7413_v9, %v7423_v0  ;;  %v7436_v56 = vrot.slane %v15273_v20, 5  ;;  %v2856_v57 = vrot.slane %v2855_v63, 4  ;;  %v7444_v16 = vshll.u32 %v10235_v52, 16  ;;  %v10236_v20 = vld [vmem:[%s12038_s26 + $0x78] sm:$0xf] }
 0x1a7   : > { %v7431_v3 = vor.u32 %v7430_v38, %v7427_v51  ;;  %v2863_v18 = vshrl.u32 %v9691_v45, 16  ;;  %v2851_v0 = vsel %vm12092_vm4, %v2846_v5, %v2850_v1  ;;  %v7440_v11 = vrot.slane %v15274_v62, 4  ;;  %v13858_v51 = vld [vmem:[%s12038_s26 + $0x7c] sm:$0xf]  ;;  %v14262_v46 = vld [vmem:[%s12038_s26 + $0x24] sm:$0xe] }
 0x1a8   : > { %10912 = vmatmul.mubr.msk.bf16.gmra.mrb[16].mxu1 %vm692_vm1, %v11871_v17  ;;  %v2866_v9 = vshll.u32 %v9691_v45, 16  ;;  %v15275_v28 = vshll.u32 %v13837_v4, 16  ;;  %v2861_v38 = vsel %vm12092_vm4, %v2856_v57, %v2860_v6  ;;  %v7446_v17 = vrot.slane %v7444_v16, 5  ;;  %15514 = vst [vmem:[#allocation11_spill] sm:$0xff] %v13858_v51 }
 0x1a9   : > { %10915 = vmatprep.mubr.msk.bf16.mxu1 %vm692_vm1, %v11873_v42  ;;  %v7432_v63 = vrot.slane %v7431_v3, 4  ;;  %v2865_v52 = vrot.slane %v2863_v18, 4  ;;  %v13860_v1 = vcombine.low %v2851_v0, %v2861_v38  ;;  %v7441_v5 = vor.u32 %v7440_v11, %v7436_v56  ;;  %v11875_v42 = vld [vmem:[%s12038_s26 + $0x90] sm:$0xff]   ;;  %v11877_v18 = vld [vmem:[%s12038_s26 + $0x9c] sm:$0xff]  }
 0x1aa   : > { %v2868_v62 = vrot.slane %v2866_v9, 5  ;;  %v2874_v45 = vrot.slane %v15275_v28, 5  ;;  %11192 = vmatmul.mubr.msk.bf16.gmra.mrb[24].mxu0 %vm692_vm1, %v11874_v31  ;;  %v15279_v3 = vshrl.u32 %v13837_v4, 16  ;;  %v2882_v57 = vshll.u32 %v9693_v41, 16  ;;  %v10238_v9 = vld [vmem:[%s12038_s26 + $0x80] sm:$0x1] }
 0x1ab   : > { %v7437_v6 = vsel %vm12092_vm4, %v7432_v63, %v7436_v56  ;;  %v7449_v16 = vshrl.u32 %v10236_v20, 16  ;;  %11195 = vmatprep.mubr.msk.bf16.mxu0 %vm692_vm1, %v11876_v22  ;;  %v7442_v0 = vrot.slane %v7441_v5, 4  ;;  %v7452_v38 = vshll.u32 %v10236_v20, 16  ;;  %v9694_v63 = vld [vmem:[%s12038_s26 + $0x48] sm:$0xf] }
 0x1ac   : > { %v2869_v11 = vor.u32 %v2868_v62, %v2865_v52  ;;  %v15280_v31 = vshll.u32 %v13858_v51, 16  ;;  %v2878_v28 = vrot.slane %v15279_v3, 4  ;;  %v2884_v36 = vrot.slane %v2882_v57, 5  ;;  %v13882_v20 = vld [vmem:[%s12038_s26 + $0x4c] sm:$0xf]  ;;  %v11878_v52 = vld [vmem:[%s12038_s26 + $0xd8] sm:$0xff]  }
 0x1ad   : > { %v7451_v56 = vrot.slane %v7449_v16, 4  ;;  %v15281_v41 = vshrl.u32 %v13858_v51, 16  ;;  %v7447_v22 = vsel %vm12092_vm4, %v7442_v0, %v7446_v17  ;;  %v7454_v32 = vrot.slane %v7452_v38, 5  ;;  %15515 = vst [vmem:[#allocation24_spill] sm:$0xff] %v13882_v20  ;;  %v14247_v51 = vld [vmem:[%s12038_s26 + $0xac] sm:$0xf] }
 0x1ae   : > { %v2870_v58 = vrot.slane %v2869_v11, 4  ;;  %v7460_v62 = vrot.slane %v15280_v31, 5  ;;  %v13885_v5 = vcombine.low %v7437_v6, %v7447_v22  ;;  %v2879_v3 = vor.u32 %v2878_v28, %v2874_v45  ;;  %v9696_v11 = vld [vmem:[%s12038_s26 + $0x50] sm:$0x1] }
 0x1af   : > { %v7464_v57 = vrot.slane %v15281_v41, 4  ;;  %v7468_v16 = vshll.u32 %v10238_v9, 16  ;;  %v7455_v0 = vor.u32 %v7454_v32, %v7451_v56  ;;  %v2887_v38 = vshrl.u32 %v9694_v63, 16  ;;  %v10239_v32 = vld [vmem:[%s12038_s26 + $0x84] sm:$0xf] }
 0x1b0   : > { %10916 = vmatmul.mubr.msk.bf16.gmra.mrb[20].mxu1 %vm692_vm1, %v11875_v42  ;;  %v2875_v17 = vsel %vm12092_vm4, %v2870_v58, %v2874_v45  ;;  %v2890_v31 = vshll.u32 %v9694_v63, 16  ;;  %v2880_v6 = vrot.slane %v2879_v3, 4  ;;  %v15283_v41 = vshll.u32 %v13882_v20, 16  ;;  %v13903_v63 = vld [vmem:[%s12038_s26 + $0x88] sm:$0xf] }
 0x1b1   : > { %10919 = vmatprep.mubr.msk.bf16.mxu1 %vm692_vm1, %v11877_v18  ;;  %v7465_v28 = vor.u32 %v7464_v57, %v7460_v62  ;;  %v7470_v22 = vrot.slane %v7468_v16, 5  ;;  %v7456_v9 = vrot.slane %v7455_v0, 4  ;;  %v2889_v35 = vrot.slane %v2887_v38, 4  ;;  %15516 = vst [vmem:[#allocation12_spill] sm:$0xff] %v13903_v63  ;;  %v11879_v57 = vld [vmem:[%s12038_s26 + $0xa8] sm:$0xff]   ;;  %v11880_v38 = vld [vmem:[%s12038_s26 + $0xb4] sm:$0xff]  }
 0x1b2   : > { %v2892_v42 = vrot.slane %v2890_v31, 5  ;;  %v15285_v58 = vshrl.u32 %v13882_v20, 16  ;;  %11196 = vmatmul.mubr.msk.bf16.gmra.mrb[28].mxu0 %vm692_vm1, %v11878_v52  ;;  %v2885_v45 = vsel %vm12092_vm4, %v2880_v6, %v2884_v36  ;;  %v2898_v3 = vrot.slane %v15283_v41, 5  ;;  %v10241_v0 = vld [vmem:[%s12038_s26 + $0x8c] sm:$0x1] }
 0x1b3   : > { %v7466_v18 = vrot.slane %v7465_v28, 4  ;;  %v2906_v56 = vshll.u32 %v9696_v11, 16  ;;  %11201 = vmatprep.mubr.msk.bf16.mxu0 %vm692_vm1, %v13655_v59  ;;  %v13908_v31 = vcombine.low %v2875_v17, %v2885_v45  ;;  %v7461_v52 = vsel %vm12092_vm4, %v7456_v9, %v7460_v62  ;;  %v9697_v59 = vld [vmem:[%s12038_s26 + $0x54] sm:$0xf]  ;;  %v13923_v62 = vld [vmem:[%s12038_s26 + $0x58] sm:$0xf] }
 0x1b4   : > { %v2893_v16 = vor.u32 %v2892_v42, %v2889_v35  ;;  %v2902_v36 = vrot.slane %v15285_v58, 4  ;;  %v7473_v28 = vshrl.u32 %v10239_v32, 16  ;;  %v7476_v41 = vshll.u32 %v10239_v32, 16  ;;  %15517 = vst [vmem:[#allocation13_spill] sm:$0xff] %v13923_v62 }
 0x1b5   : > { %v7471_v11 = vsel %vm12092_vm4, %v7466_v18, %v7470_v22  ;;  %v2908_v6 = vrot.slane %v2906_v56, 5  ;;  %v15289_v35 = vshll.u32 %v13903_v63, 16  ;;  %v15291_v58 = vshrl.u32 %v13903_v63, 16 }
 0x1b6   : > { %v13919_v17 = vcombine.low %v7461_v52, %v7471_v11  ;;  %v2894_v45 = vrot.slane %v2893_v16, 4  ;;  %v2903_v23 = vor.u32 %v2902_v36, %v2898_v3  ;;  %v7475_v9 = vrot.slane %v7473_v28, 4  ;;  %v10242_v52 = vld [vmem:[%s12038_s26 + $0x90] sm:$0xf] }
 0x1b7   : > { %v7478_v42 = vrot.slane %v7476_v41, 5  ;;  %v7492_v60 = vshll.u32 %v10241_v0, 16  ;;  %v7484_v18 = vrot.slane %v15289_v35, 5  ;;  %v2911_v56 = vshrl.u32 %v9697_v59, 16 }
 0x1b8   : > { %10920 = vmatmul.mubr.msk.bf16.gmra.mrb[24].mxu1 %vm692_vm1, %v11879_v57  ;;  %v2899_v22 = vsel %vm12092_vm4, %v2894_v45, %v2898_v3  ;;  %v2904_v32 = vrot.slane %v2903_v23, 4  ;;  %v7488_v16 = vrot.slane %v15291_v58, 4  ;;  %v2914_v0 = vshll.u32 %v9697_v59, 16  ;;  %v13939_v3 = vld [vmem:[%s15158_s1 + $0x78] sm:$0x3f]  }
 0x1b9   : > { %10923 = vmatprep.mubr.msk.bf16.mxu1 %vm692_vm1, %v11880_v38  ;;  %v7479_v41 = vor.u32 %v7478_v42, %v7475_v9  ;;  %v7494_v36 = vrot.slane %v7492_v60, 5  ;;  %v2913_v57 = vrot.slane %v2911_v56, 4  ;;  %v15288_v11 = vshll.u32 %v13923_v62, 16  ;;  %v13950_v9 = vld [vmem:[%s12038_s26 + $0x94] sm:$0xf]  ;;  %v11881_v42 = vld [vmem:[%s12038_s26 + $0xc0] sm:$0xff]  }
 0x1ba   : > { %v2909_v23 = vsel %vm12092_vm4, %v2904_v32, %v2908_v6  ;;  %v15290_v38 = vshrl.u32 %v13923_v62, 16  ;;  %11202 = vmatmul.mubr.msk.bf16.vlgmr.msra.gmra.mrb[0].mxu0 %vm692_vm1, %v13681_v50  ;;  %v7489_v59 = vor.u32 %v7488_v16, %v7484_v18  ;;  %v2916_v45 = vrot.slane %v2914_v0, 5  ;;  %15518 = vst [vmem:[#allocation25_spill] sm:$0xff] %v13950_v9  ;;  %v13963_v0 = vld [vmem:[%s12038_s26 + $0x98] sm:$0x1] }
 0x1bb   : > { %v13947_v28 = vcombine.low %v2899_v22, %v2909_v23  ;;  %v7480_v60 = vrot.slane %v7479_v41, 4  ;;  %11205 = vmatprep.mubr.msk.bf16.mxu0 %vm692_vm1, %v13705_v54  ;;  %11234 = vmatpush3.bf16.msra.mxu0 %v13739_v40  ;;  %v2922_v6 = vrot.slane %v15288_v11, 5  ;;  %v2930_v22 = vshll.u32 %v9699_v15, 16  ;;  %v9700_v15 = vld [vmem:[%s12038_s26 + $0x60] sm:$0xf] }
 0x1bc   : > { %v2926_v50 = vrot.slane %v15290_v38, 4  ;;  %v7497_v32 = vshrl.u32 %v10242_v52, 16  ;;  %v7490_v41 = vrot.slane %v7489_v59, 4  ;;  %v2917_v16 = vor.u32 %v2916_v45, %v2913_v57  ;;  %11796 = vmatprep.subr.msk.bf16.mxu0 %vm741_vm0, %v13939_v3  ;;  %v14209_v62 = vld [vmem:[%s12038_s26 + $0xa0] sm:$0xf] }
 0x1bd   : > { %v7485_v56 = vsel %vm12092_vm4, %v7480_v60, %v7484_v18  ;;  %v7500_v54 = vshll.u32 %v10242_v52, 16  ;;  %v2932_v23 = vrot.slane %v2930_v22, 5  ;;  %v15292_v35 = vshll.u32 %v13950_v9, 16  ;;  %v13973_v60 = vld [vmem:[%s12038_s26 + $0x64] sm:$0xf] }
 0x1be   : > { %v2927_v40 = vor.u32 %v2926_v50, %v2922_v6  ;;  %v7499_v11 = vrot.slane %v7497_v32, 4  ;;  %v7495_v38 = vsel %vm12092_vm4, %v7490_v41, %v7494_v36  ;;  %v2918_v58 = vrot.slane %v2917_v16, 4 }
 0x1bf   : > { %v7502_v18 = vrot.slane %v7500_v54, 5  ;;  %v15294_v57 = vshrl.u32 %v13950_v9, 16  ;;  %v13976_v52 = vcombine.low %v7485_v56, %v7495_v38  ;;  %v7508_v45 = vrot.slane %v15292_v35, 5 }
 0x1c0   : > { %10924 = vmatmul.mubr.msk.bf16.gmra.mrb[28].mxu1 %vm692_vm1, %v11881_v42  ;;  %v2928_v59 = vrot.slane %v2927_v40, 4  ;;  %v7516_v50 = vshll.u32 %v13963_v0, 16  ;;  %v2923_v36 = vsel %vm12092_vm4, %v2918_v58, %v2922_v6  ;;  %v13988_v42 = vld [vmem:[%s12038_s26 + $0x68] sm:$0x1]  ;;  %v2935_v38 = vshrl.u32 %v9700_v15, 16 }
 0x1c1   : > { %10929 = vmatprep.mubr.msk.bf16.mxu1 %vm692_vm1, %v13722_v19  ;;  %v7503_v22 = vor.u32 %v7502_v18, %v7499_v11  ;;  %v7512_v32 = vrot.slane %v15294_v57, 4  ;;  %v2938_v16 = vshll.u32 %v9700_v15, 16  ;;  %v15293_v54 = vshll.u32 %v13973_v60, 16  ;;  %v10245_v19 = vld [vmem:[%s12038_s26 + $0x9c] sm:$0xf] }
 0x1c2   : > { %v2933_v56 = vsel %vm12092_vm4, %v2928_v59, %v2932_v23  ;;  %v7518_v41 = vrot.slane %v7516_v50, 5  ;;  %11206 = vmatmul.mubr.msk.bf16.gmra.mrb[4].mxu0 %vm692_vm1, %v13750_v13  ;;  %v2937_v40 = vrot.slane %v2935_v38, 4  ;;  %v13999_v18 = vld [vmem:[%s12038_s26 + $0xa0] sm:$0xf]  ;;  %v15296_v59 = vshrl.u32 %v13973_v60, 16 }
 0x1c3   : > { %v13996_v58 = vcombine.low %v2923_v36, %v2933_v56  ;;  %v7504_v11 = vrot.slane %v7503_v22, 4  ;;  %v7513_v6 = vor.u32 %v7512_v32, %v7508_v45  ;;  %11209 = vmatprep.mubr.msk.bf16.mxu0 %vm692_vm1, %v13799_v14  ;;  %v2940_v23 = vrot.slane %v2938_v16, 5  ;;  %v14008_v13 = vld [vmem:[%s12038_s26 + $0xa4] sm:$0x1]  ;;  %v9703_v56 = vld [vmem:[%s12038_s26 + $0x6c] sm:$0xf] }
 0x1c4   : > { %v2946_v15 = vrot.slane %v15293_v54, 5  ;;  %v2954_v50 = vshll.u32 %v13988_v42, 16  ;;  %v7521_v32 = vshrl.u32 %v10245_v19, 16  ;;  %v7524_v38 = vshll.u32 %v10245_v19, 16  ;;  %v14019_v57 = vld [vmem:[%s15158_s1 + $0x38] sm:$0x3f]  }
 0x1c5   : > { %v7509_v36 = vsel %vm12092_vm4, %v7504_v11, %v7508_v45  ;;  %v7514_v22 = vrot.slane %v7513_v6, 4  ;;  %v2941_v35 = vor.u32 %v2940_v23, %v2937_v40  ;;  %v2950_v14 = vrot.slane %v15296_v59, 4  ;;  %v14025_v6 = vld [vmem:[%s12038_s26 + $0x70] sm:$0xf] }
 0x1c6   : > { %v2956_v16 = vrot.slane %v2954_v50, 5  ;;  %v15297_v54 = vshll.u32 %v13999_v18, 16  ;;  %v7523_v45 = vrot.slane %v7521_v32, 4  ;;  %v7526_v11 = vrot.slane %v7524_v38, 5 }
 0x1c7   : > { %v7519_v43 = vsel %vm12092_vm4, %v7514_v22, %v7518_v41  ;;  %v15299_v19 = vshrl.u32 %v13999_v18, 16  ;;  %v2942_v23 = vrot.slane %v2941_v35, 4  ;;  %v2951_v50 = vor.u32 %v2950_v14, %v2946_v15 }
 0x1c8   : > { %10930 = vmatmul.mubr.msk.bf16.vlgmr.msra.gmra.mrb[0].mxu1 %vm692_vm1, %v13777_v37  ;;  %v14029_v40 = vcombine.low %v7509_v36, %v7519_v43  ;;  %v7532_v59 = vrot.slane %v15297_v54, 5  ;;  %v7527_v41 = vor.u32 %v7526_v11, %v7523_v45  ;;  %v7540_v32 = vshll.u32 %v14008_v13, 16  ;;  %v14042_v36 = vld [vmem:[%s12038_s26 + $0x74] sm:$0x1]  ;;  %v10248_v54 = vld [vmem:[%s12038_s26 + $0xa8] sm:$0xf] }
 0x1c9   : > { %10962 = vmatpush3.bf16.msra.mxu1 %v13730_v61  ;;  %10933 = vmatprep.mubr.msk.bf16.mxu1 %vm692_vm1, %v13815_v7  ;;  %v7536_v22 = vrot.slane %v15299_v19, 4  ;;  %v2959_v37 = vshrl.u32 %v9703_v56, 16  ;;  %v2947_v43 = vsel %vm12092_vm4, %v2942_v23, %v2946_v15  ;;  %v2952_v35 = vrot.slane %v2951_v50, 4 }
 0x1ca   : > { %v2962_v38 = vshll.u32 %v9703_v56, 16  ;;  %v15298_v61 = vshll.u32 %v14025_v6, 16  ;;  %11788 = vmatprep.subr.msk.bf16.mxu1 %vm741_vm0, %v14019_v57  ;;  %11210 = vmatmul.mubr.msk.bf16.gmra.mrb[8].mxu0 %vm692_vm1, %v13839_v55  ;;  %v7528_v7 = vrot.slane %v7527_v41, 4  ;;  %v7542_v45 = vrot.slane %v7540_v32, 5  ;;  %v14058_v55 = vld [vmem:[%s12038_s26 + $0xac] sm:$0xf] }
 0x1cb   : > { %v7537_v14 = vor.u32 %v7536_v22, %v7532_v59  ;;  %v2961_v11 = vrot.slane %v2959_v37, 4  ;;  %11213 = vmatprep.mubr.msk.bf16.mxu0 %vm692_vm1, %v13885_v5  ;;  %v2957_v15 = vsel %vm12092_vm4, %v2952_v35, %v2956_v16  ;;  %v15300_v50 = vshrl.u32 %v14025_v6, 16  ;;  %v14068_v35 = vld [vmem:[%s12038_s26 + $0xb0] sm:$0x1] }
 0x1cc   : > { %v2964_v56 = vrot.slane %v2962_v38, 5  ;;  %v2970_v23 = vrot.slane %v15298_v61, 5  ;;  %v14060_v41 = vcombine.low %v2947_v43, %v2957_v15  ;;  %v7533_v22 = vsel %vm12092_vm4, %v7528_v7, %v7532_v59  ;;  %v9706_v7 = vld [vmem:[%s12038_s26 + $0x78] sm:$0xf] }
 0x1cd   : > { %v7538_v32 = vrot.slane %v7537_v14, 4  ;;  %v2978_v5 = vshll.u32 %v14042_v36, 16  ;;  %v2974_v16 = vrot.slane %v15300_v50, 4  ;;  %v7545_v38 = vshrl.u32 %v10248_v54, 16 }
 0x1ce   : > { %v2965_v37 = vor.u32 %v2964_v56, %v2961_v11  ;;  %v7548_v61 = vshll.u32 %v10248_v54, 16  ;;  %v15302_v15 = vshll.u32 %v14058_v55, 16  ;;  %v15303_v59 = vshrl.u32 %v14058_v55, 16 }
 0x1cf   : > { %v7543_v19 = vsel %vm12092_vm4, %v7538_v32, %v7542_v45  ;;  %v2980_v43 = vrot.slane %v2978_v5, 5  ;;  %v2975_v56 = vor.u32 %v2974_v16, %v2970_v23  ;;  %v7547_v50 = vrot.slane %v7545_v38, 4  ;;  %v14094_v38 = vld [vmem:[%s12038_s26 + $0x80] sm:$0x1] }
 0x1d0   : > { %10934 = vmatmul.mubr.msk.bf16.gmra.mrb[4].mxu1 %vm692_vm1, %v13860_v1  ;;  %v14077_v14 = vcombine.low %v7533_v22, %v7543_v19  ;;  %v2966_v11 = vrot.slane %v2965_v37, 4  ;;  %v7550_v54 = vrot.slane %v7548_v61, 5  ;;  %v7556_v45 = vrot.slane %v15302_v15, 5 }
 0x1d1   : > { %10937 = vmatprep.mubr.msk.bf16.mxu1 %vm692_vm1, %v13908_v31  ;;  %v7560_v32 = vrot.slane %v15303_v59, 4  ;;  %v7564_v1 = vshll.u32 %v14068_v35, 16  ;;  %v2976_v22 = vrot.slane %v2975_v56, 4  ;;  %v2983_v5 = vshrl.u32 %v9706_v7, 16  ;;  %v10251_v59 = vld [vmem:[%s12038_s26 + $0xb4] sm:$0xf] }
 0x1d2   : > { %v2971_v19 = vsel %vm12092_vm4, %v2966_v11, %v2970_v23  ;;  %v2986_v37 = vshll.u32 %v9706_v7, 16  ;;  %11214 = vmatmul.mubr.msk.bf16.gmra.mrb[12].mxu0 %vm692_vm1, %v13919_v17  ;;  %v7551_v31 = vor.u32 %v7550_v54, %v7547_v50  ;;  %v15305_v15 = vshll.u32 %v14080_v39, 16  ;;  %v14104_v50 = vld [vmem:[%s12038_s26 + $0xb8] sm:$0xf] }
 0x1d3   : > { %v7561_v61 = vor.u32 %v7560_v32, %v7556_v45  ;;  %v7566_v16 = vrot.slane %v7564_v1, 5  ;;  %11217 = vmatprep.mubr.msk.bf16.mxu0 %vm692_vm1, %v13976_v52  ;;  %v2981_v23 = vsel %vm12092_vm4, %v2976_v22, %v2980_v43  ;;  %v2985_v11 = vrot.slane %v2983_v5, 4 }
 0x1d4   : > { %v2988_v7 = vrot.slane %v2986_v37, 5  ;;  %v15306_v17 = vshrl.u32 %v14080_v39, 16  ;;  %v9737_v56 = vcombine.low %v2971_v19, %v2981_v23  ;;  %v7552_v54 = vrot.slane %v7551_v31, 4  ;;  %v14116_v19 = vld [vmem:[%s12038_s26 + $0xbc] sm:$0x1] }
 0x1d5   : > { %v7562_v32 = vrot.slane %v7561_v61, 4  ;;  %v2994_v1 = vrot.slane %v15305_v15, 5  ;;  %v3002_v43 = vshll.u32 %v14094_v38, 16  ;;  %v7569_v22 = vshrl.u32 %v10251_v59, 16  ;;  %v9709_v23 = vld [vmem:[%s12038_s26 + $0x84] sm:$0xf] }
 0x1d6   : > { %v2989_v8 = vor.u32 %v2988_v7, %v2985_v11  ;;  %v2998_v52 = vrot.slane %v15306_v17, 4  ;;  %v7557_v5 = vsel %vm12092_vm4, %v7552_v54, %v7556_v45  ;;  %v7572_v31 = vshll.u32 %v10251_v59, 16 }
 0x1d7   : > { %v7567_v37 = vsel %vm12092_vm4, %v7562_v32, %v7566_v16  ;;  %v15308_v61 = vshll.u32 %v14104_v50, 16  ;;  %v3004_v17 = vrot.slane %v3002_v43, 5  ;;  %v7571_v45 = vrot.slane %v7569_v22, 4 }
 0x1d8   : > { %10938 = vmatmul.mubr.msk.bf16.gmra.mrb[8].mxu1 %vm692_vm1, %v13947_v28  ;;  %v10276_v11 = vcombine.low %v7557_v5, %v7567_v37  ;;  %v2990_v7 = vrot.slane %v2989_v8, 4  ;;  %v2999_v15 = vor.u32 %v2998_v52, %v2994_v1  ;;  %v7574_v16 = vrot.slane %v7572_v31, 5  ;;  %v14134_v52 = vld [vmem:[%s12038_s26 + $0x8c] sm:$0x1]  ;;  %v10254_v31 = vld [vmem:[%s12038_s26 + $0xc0] sm:$0xf] }
 0x1d9   : > { %10941 = vmatprep.mubr.msk.bf16.mxu1 %vm692_vm1, %v13996_v58  ;;  %v7580_v59 = vrot.slane %v15308_v61, 5  ;;  %v15310_v54 = vshrl.u32 %v14104_v50, 16  ;;  %v7588_v8 = vshll.u32 %v14116_v19, 16  ;;  %v3007_v43 = vshrl.u32 %v9709_v23, 16 }
 0x1da   : > { %v2995_v28 = vsel %vm12092_vm4, %v2990_v7, %v2994_v1  ;;  %v3000_v32 = vrot.slane %v2999_v15, 4  ;;  %11218 = vmatmul.mubr.msk.bf16.gmra.mrb[16].mxu0 %vm692_vm1, %v14029_v40  ;;  %v7575_v58 = vor.u32 %v7574_v16, %v7571_v45  ;;  %v3010_v5 = vshll.u32 %v9709_v23, 16  ;;  %v14148_v23 = vld [vmem:[%s12038_s26 + $0xc4] sm:$0xf] }
 0x1db   : > { %v7584_v22 = vrot.slane %v15310_v54, 4  ;;  %v15311_v37 = vshll.u32 %v14123_v10, 16  ;;  %11221 = vmatprep.mubr.msk.bf16.mxu0 %vm692_vm1, %v14077_v14  ;;  %v7590_v1 = vrot.slane %v7588_v8, 5  ;;  %v3009_v7 = vrot.slane %v3007_v43, 4 }
 0x1dc   : > { %v3005_v15 = vsel %vm12092_vm4, %v3000_v32, %v3004_v17  ;;  %v15312_v61 = vshrl.u32 %v14123_v10, 16  ;;  %v7576_v45 = vrot.slane %v7575_v58, 4  ;;  %v3012_v25 = vrot.slane %v3010_v5, 5  ;;  %v14158_v58 = vld [vmem:[%s12038_s26 + $0xc8] sm:$0x1] }
 0x1dd   : > { %v9738_v40 = vcombine.low %v2995_v28, %v3005_v15  ;;  %v7585_v16 = vor.u32 %v7584_v22, %v7580_v59  ;;  %v3018_v54 = vrot.slane %v15311_v37, 5  ;;  %v3026_v17 = vshll.u32 %v14134_v52, 16 }
 0x1de   : > { %v3022_v14 = vrot.slane %v15312_v61, 4  ;;  %v7593_v32 = vshrl.u32 %v10254_v31, 16  ;;  %v7581_v8 = vsel %vm12092_vm4, %v7576_v45, %v7580_v59  ;;  %v3013_v43 = vor.u32 %v3012_v25, %v3009_v7 }
 0x1df   : > { %v7586_v28 = vrot.slane %v7585_v16, 4  ;;  %v7596_v22 = vshll.u32 %v10254_v31, 16  ;;  %v3028_v15 = vrot.slane %v3026_v17, 5  ;;  %v15314_v61 = vshll.u32 %v14148_v23, 16  ;;  %v14169_v31 = vld [vmem:[%s12038_s26 + $0x94] sm:$0xf] }
 0x1e0   : > { %10942 = vmatmul.mubr.msk.bf16.gmra.mrb[12].mxu1 %vm692_vm1, %v14060_v41  ;;  %v3023_v5 = vor.u32 %v3022_v14, %v3018_v54  ;;  %v7595_v37 = vrot.slane %v7593_v32, 4  ;;  %v3014_v45 = vrot.slane %v3013_v43, 4  ;;  %v15315_v7 = vshrl.u32 %v14148_v23, 16 }
 0x1e1   : > { %10945 = vmatprep.mubr.msk.bf16.mxu1 %vm692_vm1, %v9737_v56  ;;  %v7591_v59 = vsel %vm12092_vm4, %v7586_v28, %v7590_v1  ;;  %v7598_v25 = vrot.slane %v7596_v22, 5  ;;  %v7604_v14 = vrot.slane %v15314_v61, 5  ;;  %v7612_v17 = vshll.u32 %v14158_v58, 16  ;;  %v14180_v28 = vld [vmem:[%s12038_s26 + $0x98] sm:$0x1] }
 0x1e2   : > { %v10277_v41 = vcombine.low %v7581_v8, %v7591_v59  ;;  %v3024_v16 = vrot.slane %v3023_v5, 4  ;;  %11222 = vmatmul.mubr.msk.bf16.gmra.mrb[20].mxu0 %vm692_vm1, %v10276_v11  ;;  %v3019_v56 = vsel %vm12092_vm4, %v3014_v45, %v3018_v54  ;;  %v7608_v32 = vrot.slane %v15315_v7, 4  ;;  %v10257_v59 = vld [vmem:[%s12038_s26 + $0xcc] sm:$0xf] }
 0x1e3   : > { %v7599_v1 = vor.u32 %v7598_v25, %v7595_v37  ;;  %v3031_v43 = vshrl.u32 %v9712_v49, 16  ;;  %v7614_v22 = vrot.slane %v7612_v17, 5  ;;  %v3034_v5 = vshll.u32 %v9712_v49, 16  ;;  %v14188_v25 = vld [vmem:[%s12038_s26 + $0xd0] sm:$0xf] }
 0x1e4   : > { %11225 = vmatprep.mubr.msk.bf16.mxu0 %vm692_vm1, %v10277_v41  ;;  %v3029_v8 = vsel %vm12092_vm4, %v3024_v16, %v3028_v15  ;;  %v15317_v11 = vshll.u32 %v14169_v31, 16  ;;  %v7609_v37 = vor.u32 %v7608_v32, %v7604_v14  ;;  %v15320_v21 = vshrl.u32 %v14169_v31, 16  ;;  %v14197_v17 = vld [vmem:[%s12038_s26 + $0xd4] sm:$0x1] }
 0x1e5   : > { %v9739_v61 = vcombine.low %v3019_v56, %v3029_v8  ;;  %v7600_v54 = vrot.slane %v7599_v1, 4  ;;  %v3033_v45 = vrot.slane %v3031_v43, 4  ;;  %v3036_v7 = vrot.slane %v3034_v5, 5 }
 0x1e6   : > { %v3042_v41 = vrot.slane %v15317_v11, 5  ;;  %v3050_v15 = vshll.u32 %v14180_v28, 16  ;;  %v7610_v16 = vrot.slane %v7609_v37, 4  ;;  %v7617_v56 = vshrl.u32 %v10257_v59, 16  ;;  %v9715_v11 = vld [vmem:[%s12038_s26 + $0x9c] sm:$0xf] }
 0x1e7   : > { %v7605_v49 = vsel %vm12092_vm4, %v7600_v54, %v7604_v14  ;;  %v7620_v1 = vshll.u32 %v10257_v59, 16  ;;  %v3037_v32 = vor.u32 %v3036_v7, %v3033_v45  ;;  %v3046_v43 = vrot.slane %v15320_v21, 4 }
 0x1e8   : > { %10946 = vmatmul.mubr.msk.bf16.gmra.mrb[16].mxu1 %vm692_vm1, %v9738_v40  ;;  %v3052_v8 = vrot.slane %v3050_v15, 5  ;;  %v15321_v5 = vshll.u32 %v14188_v25, 16  ;;  %v7615_v14 = vsel %vm12092_vm4, %v7610_v16, %v7614_v22  ;;  %v7619_v54 = vrot.slane %v7617_v56, 4 }
 0x1e9   : > { %10949 = vmatprep.mubr.msk.bf16.mxu1 %vm692_vm1, %v9739_v61  ;;  %v7622_v37 = vrot.slane %v7620_v1, 5  ;;  %v15322_v59 = vshrl.u32 %v14188_v25, 16  ;;  %v10278_v40 = vcombine.low %v7605_v49, %v7615_v14  ;;  %v3038_v7 = vrot.slane %v3037_v32, 4  ;;  %v14220_v1 = vld [vmem:[%s12038_s26 + $0xa4] sm:$0x1] }
 0x1ea   : > { %v3047_v45 = vor.u32 %v3046_v43, %v3042_v41  ;;  %v7628_v15 = vrot.slane %v15321_v5, 5  ;;  %v7636_v22 = vshll.u32 %v14197_v17, 16  ;;  %v3055_v16 = vshrl.u32 %v9715_v11, 16 }
 0x1eb   : > { %v7623_v21 = vor.u32 %v7622_v37, %v7619_v54  ;;  %v7632_v61 = vrot.slane %v15322_v59, 4  ;;  %11226 = vmatmul.mubr.msk.bf16.gmra.mrb[24].mxu0 %vm692_vm1, %v10278_v40  ;;  %v3043_v56 = vsel %vm12092_vm4, %v3038_v7, %v3042_v41  ;;  %v3058_v32 = vshll.u32 %v9715_v11, 16  ;;  %v10260_v59 = vld [vmem:[%s12038_s26 + $0xd8] sm:$0xf]  ;;  %v14230_v7 = vld [vmem:[%s12038_s26 + $0xdc] sm:$0xf] }
 0x1ec   : > { %v3048_v49 = vrot.slane %v3047_v45, 4  ;;  %v15327_v43 = vshll.u32 %v14209_v62, 16  ;;  %v7638_v37 = vrot.slane %v7636_v22, 5  ;;  %v3057_v5 = vrot.slane %v3055_v16, 4  ;;  %v14238_v16 = vld [vmem:[%s12038_s26 + $0xe0] sm:$0x1] }
 0x1ed   : > { %v7624_v14 = vrot.slane %v7623_v21, 4  ;;  %v7633_v54 = vor.u32 %v7632_v61, %v7628_v15  ;;  %v3060_v20 = vrot.slane %v3058_v32, 5  ;;  %v15328_v41 = vshrl.u32 %v14209_v62, 16 }
 0x1ee   : > { %v3053_v63 = vsel %vm12092_vm4, %v3048_v49, %v3052_v8  ;;  %v3066_v40 = vrot.slane %v15327_v43, 5  ;;  %v3074_v61 = vshll.u32 %v14220_v1, 16  ;;  %v7641_v49 = vshrl.u32 %v10260_v59, 16 }
 0x1ef   : > { %v9740_v11 = vcombine.low %v3043_v56, %v3053_v63  ;;  %v7629_v21 = vsel %vm12092_vm4, %v7624_v14, %v7628_v15  ;;  %v7634_v45 = vrot.slane %v7633_v54, 4  ;;  %v3061_v22 = vor.u32 %v3060_v20, %v3057_v5  ;;  %v9718_v54 = vld [vmem:[%s12038_s26 + $0xa8] sm:$0xf] }
 0x1f0   : > { %v3070_v8 = vrot.slane %v15328_v41, 4  ;;  %v7644_v32 = vshll.u32 %v10260_v59, 16  ;;  %v3076_v56 = vrot.slane %v3074_v61, 5  ;;  %v15333_v15 = vshll.u32 %v14230_v7, 16 }
 0x1f1   : > { %10950 = vmatmul.mubr.msk.bf16.gmra.mrb[20].mxu1 %vm692_vm1, %v9740_v11  ;;  %v7639_v63 = vsel %vm12092_vm4, %v7634_v45, %v7638_v37  ;;  %v15336_v14 = vshrl.u32 %v14230_v7, 16  ;;  %v3062_v20 = vrot.slane %v3061_v22, 4  ;;  %v7643_v41 = vrot.slane %v7641_v49, 4 }
 0x1f2   : > { %v10279_v43 = vcombine.low %v7629_v21, %v7639_v63  ;;  %v3071_v5 = vor.u32 %v3070_v8, %v3066_v40  ;;  %v7646_v59 = vrot.slane %v7644_v32, 5  ;;  %v7652_v11 = vrot.slane %v15333_v15, 5  ;;  %v14258_v32 = vld [vmem:[%s12038_s26 + $0xb0] sm:$0x1] }
 0x1f3   : > { %v7656_v37 = vrot.slane %v15336_v14, 4  ;;  %v7660_v45 = vshll.u32 %v14238_v16, 16  ;;  %v3067_v21 = vsel %vm12092_vm4, %v3062_v20, %v3066_v40  ;;  %v3079_v22 = vshrl.u32 %v9718_v54, 16 }
 0x1f4   : > { %11229 = vmatprep.mubr.msk.bf16.mxu0 %vm692_vm1, %v10279_v43  ;;  %v3072_v61 = vrot.slane %v3071_v5, 4  ;;  %v3082_v8 = vshll.u32 %v9718_v54, 16  ;;  %v7647_v49 = vor.u32 %v7646_v59, %v7643_v41  ;;  %v15339_v15 = vshll.u32 %v14247_v51, 16 }
 0x1f5   : > { %v7657_v63 = vor.u32 %v7656_v37, %v7652_v11  ;;  %v7662_v4 = vrot.slane %v7660_v45, 5  ;;  %v3081_v43 = vrot.slane %v3079_v22, 4  ;;  %v15340_v40 = vshrl.u32 %v14247_v51, 16  ;;  %v11934_v22 = vld [vmem:[%s12038_s26 + $0x28] sm:$0xf] }
 0x1f6   : > { %v3077_v14 = vsel %vm12092_vm4, %v3072_v61, %v3076_v56  ;;  %v3084_v30 = vrot.slane %v3082_v8, 5  ;;  %v7648_v41 = vrot.slane %v7647_v49, 4  ;;  %v3090_v5 = vrot.slane %v15339_v15, 5  ;;  %v9721_v61 = vld [vmem:[%s12038_s26 + $0xb4] sm:$0xf] }
 0x1f7   : > { %v9741_v54 = vcombine.low %v3067_v21, %v3077_v14  ;;  %v7658_v20 = vrot.slane %v7657_v63, 4  ;;  %v3094_v37 = vrot.slane %v15340_v40, 4  ;;  %v3098_v56 = vshll.u32 %v14258_v32, 16  ;;  %v14282_v63 = vld [vmem:[%s12038_s26 + $0xb8] sm:$0xf] }
 0x1f8   : > { %v3085_v59 = vor.u32 %v3084_v30, %v3081_v43  ;;  %v10314_v45 = vrot.slane %v14262_v46, 9  ;;  %v7653_v14 = vsel %vm12092_vm4, %v7648_v41, %v7652_v11  ;;  %v8030_v8 = vrot.slane %v11934_v22, 5  ;;  %v11935_v30 = vld [vmem:[%s12038_s26 + $0x2c] sm:$0x1] }
 0x1f9   : > { %10953 = vmatprep.mubr.msk.bf16.mxu1 %vm692_vm1, %v9741_v54  ;;  %v7663_v21 = vsel %vm12092_vm4, %v7658_v20, %v7662_v4  ;;  %v8033_v49 = vrot.slane %v11935_v30, 5  ;;  %v3095_v40 = vor.u32 %v3094_v37, %v3090_v5  ;;  %v3100_v29 = vrot.slane %v3098_v56, 5  ;;  %v14295_v56 = vld [vmem:[%s12038_s26 + $0x30] sm:$0xe] }
 0x1fa   : > { %v10280_v43 = vcombine.low %v7653_v14, %v7663_v21  ;;  %v3086_v15 = vrot.slane %v3085_v59, 4  ;;  %v8031_v11 = vsel %vm12799_vm7, %v10314_v45, %v8030_v8  ;;  %v8032_v54 = vrot.slane %v8030_v8, 4  ;;  %v9724_v8 = vld [vmem:[%s12038_s26 + $0xc0] sm:$0xf] }
 0x1fb   : > { %v3103_v41 = vshrl.u32 %v9721_v61, 16  ;;  %v3106_v4 = vshll.u32 %v9721_v61, 16  ;;  %v3096_v22 = vrot.slane %v3095_v40, 4  ;;  %v15349_v59 = vshll.u32 %v14282_v63, 16 }
 0x1fc   : > { %11230 = vmatmul.mubr.msk.bf16.gmra.mrb[28].mxu0 %vm692_vm1, %v10280_v43  ;;  %v3091_v20 = vsel %vm12092_vm4, %v3086_v15, %v3090_v5  ;;  %v15350_v37 = vshrl.u32 %v14282_v63, 16  ;;  %v8034_v14 = vsel %vm12799_vm7, %v8032_v54, %v8033_v49  ;;  %v3122_v61 = vshll.u32 %v14285_v27, 16  ;;  %v14308_v43 = vld [vmem:[%s12038_s26 + $0xc4] sm:$0xf] }
 0x1fd   : > { %v3105_v45 = vrot.slane %v3103_v41, 4  ;;  %v3108_v21 = vrot.slane %v3106_v4, 5  ;;  %v3101_v15 = vsel %vm12092_vm4, %v3096_v22, %v3100_v29  ;;  %v10332_v40 = vcombine.low %v8031_v11, %v8034_v14  ;;  %15519 = vst [vmem:[#allocation14_spill] sm:$0xff] %v14308_v43  ;;  %v11937_v11 = vld [vmem:[%s12038_s26 + $0x38] sm:$0x1] }
 0x1fe   : > { %v3114_v5 = vrot.slane %v15349_v59, 5  ;;  %v3118_v30 = vrot.slane %v15350_v37, 4  ;;  %v9742_v49 = vcombine.low %v3091_v20, %v3101_v15  ;;  %v3124_v41 = vrot.slane %v3122_v61, 5  ;;  %v14315_v14 = vld [vmem:[%s12038_s26 + $0xc8] sm:$0x1] }
 0x1ff   : > { %v3109_v54 = vor.u32 %v3108_v21, %v3105_v45  ;;  %v10315_v4 = vrot.slane %v14295_v56, 9  ;;  %11235 = vmatprep.mubr.msk.bf16.mxu0 %vm692_vm1, %v10332_v40  ;;  %v8037_v29 = vrot.slane %v11936_v44, 5  ;;  %v8040_v22 = vrot.slane %v11937_v11, 5  ;;  %v14321_v61 = vld [vmem:[%s12038_s26 + $0x3c] sm:$0xe] }
 0x200   : > { %v3119_v47 = vor.u32 %v3118_v30, %v3114_v5  ;;  %v3127_v59 = vshrl.u32 %v9724_v8, 16  ;;  %10954 = vmatmul.mubr.msk.bf16.gmra.mrb[24].mxu1 %vm692_vm1, %v9742_v49  ;;  %v3130_v20 = vshll.u32 %v9724_v8, 16  ;;  %v15353_v45 = vshll.u32 %v14308_v43, 16 }
 0x201   : > { %v3110_v37 = vrot.slane %v3109_v54, 4  ;;  %v15356_v21 = vshrl.u32 %v14308_v43, 16  ;;  %v8038_v44 = vsel %vm12799_vm7, %v10315_v4, %v8037_v29  ;;  %v8039_v40 = vrot.slane %v8037_v29, 4 }
 0x202   : > { %v3120_v15 = vrot.slane %v3119_v47, 4  ;;  %v3129_v30 = vrot.slane %v3127_v59, 4  ;;  %v3132_v49 = vrot.slane %v3130_v20, 5  ;;  %v3138_v8 = vrot.slane %v15353_v45, 5 }
 0x203   : > { %v3115_v11 = vsel %vm12092_vm4, %v3110_v37, %v3114_v5  ;;  %v3142_v54 = vrot.slane %v15356_v21, 4  ;;  %v8041_v59 = vsel %vm12799_vm7, %v8039_v40, %v8040_v22  ;;  %v3146_v4 = vshll.u32 %v14315_v14, 16 }
 0x204   : > { %v3125_v47 = vsel %vm12092_vm4, %v3120_v15, %v3124_v41  ;;  %v10316_v37 = vrot.slane %v14321_v61, 9  ;;  %v10333_v29 = vcombine.low %v8038_v44, %v8041_v59  ;;  %v3133_v20 = vor.u32 %v3132_v49, %v3129_v30  ;;  %v11939_v41 = vld [vmem:[%s12038_s26 + $0x44] sm:$0x1]  ;;  %v11941_v49 = vld [vmem:[%s12038_s26 + $0x14] sm:$0x1] }
 0x205   : > { %v9743_v5 = vcombine.low %v3115_v11, %v3125_v47  ;;  %v3143_v45 = vor.u32 %v3142_v54, %v3138_v8  ;;  %v3148_v21 = vrot.slane %v3146_v4, 5  ;;  %v8044_v43 = vrot.slane %v11938_v2, 5  ;;  %v11940_v11 = vld [vmem:[%s12038_s26 + $0x10] sm:$0xf]  ;;  %v11942_v4 = vld [vmem:[%s12038_s26 + $0x4c] sm:$0xf] }
 0x206   : > { %v8047_v15 = vrot.slane %v11939_v41, 5  ;;  %v9778_v22 = vrot.slane %v14332_v34, 9  ;;  %11236 = vmatmul.mubr.msk.bf16.vlgmr.msra.gmra.mrb[0].mxu0 %vm692_vm1, %v10333_v29  ;;  %v3134_v40 = vrot.slane %v3133_v20, 4  ;;  %v3516_v30 = vrot.slane %v11940_v11, 5  ;;  %v14355_v34 = vld [vmem:[%s12038_s26 + $0x18] sm:$0xe] }
 0x207   : > { %10957 = vmatprep.mubr.msk.bf16.mxu1 %vm692_vm1, %v9743_v5  ;;  %v3144_v44 = vrot.slane %v3143_v45, 4  ;;  %v3519_v54 = vrot.slane %v11941_v49, 5  ;;  %v8045_v47 = vsel %vm12799_vm7, %v10316_v37, %v8044_v43  ;;  %v8046_v2 = vrot.slane %v8044_v43, 4 }
 0x208   : > { %v10317_v59 = vrot.slane %v14341_v48, 9  ;;  %v8051_v41 = vrot.slane %v11942_v4, 5  ;;  %v3139_v5 = vsel %vm12092_vm4, %v3134_v40, %v3138_v8  ;;  %v3517_v29 = vsel %vm12799_vm7, %v9778_v22, %v3516_v30  ;;  %v14368_v4 = vld [vmem:[%s12038_s26 + $0x54] sm:$0xe] }
 0x209   : > { %v3149_v45 = vsel %vm12092_vm4, %v3144_v44, %v3148_v21  ;;  %v3518_v37 = vrot.slane %v3516_v30, 4  ;;  %v8048_v20 = vsel %vm12799_vm7, %v8046_v2, %v8047_v15  ;;  %v11943_v21 = vld [vmem:[%s12038_s26 + $0x50] sm:$0x1]  ;;  %v9779_v40 = vrot.slane %v14355_v34, 9  ;;  %v11944_v44 = vld [vmem:[%s12038_s26 + $0x1c] sm:$0xf] }
 0x20a   : > { %v9744_v43 = vcombine.low %v3139_v5, %v3149_v45  ;;  %v8052_v11 = vsel %vm12799_vm7, %v10317_v59, %v8051_v41  ;;  %v8053_v49 = vrot.slane %v8051_v41, 4  ;;  %v10334_v8 = vcombine.low %v8045_v47, %v8048_v20  ;;  %v11945_v2 = vld [vmem:[%s12038_s26 + $0x20] sm:$0x1]  ;;  %v14380_v41 = vld [vmem:[%s12038_s26 + $0x24] sm:$0xe] }
 0x20b   : > { %v3520_v26 = vsel %vm12799_vm7, %v3518_v37, %v3519_v54  ;;  %v8054_v22 = vrot.slane %v11943_v21, 5  ;;  %v3523_v30 = vrot.slane %v11944_v44, 5  ;;  %v3526_v59 = vrot.slane %v11945_v2, 5  ;;  %15521 = vst [vmem:[#allocation16_spill] sm:$0xff] %v14380_v41  ;;  %v11948_v44 = vld [vmem:[%s12038_s26 + $0x28] sm:$0xf] }
 0x20c   : > { %10958 = vmatmul.mubr.msk.bf16.gmra.mrb[28].mxu1 %vm692_vm1, %v9744_v43  ;;  %v9796_v15 = vcombine.low %v3517_v29, %v3520_v26  ;;  %v4415_v47 = vsel %vm741_vm0, %v14019_v57, 0  ;;  %11239 = vmatprep.mubr.msk.bf16.mxu0 %vm692_vm1, %v10334_v8  ;;  %v8929_v5 = vsel %vm741_vm0, %v13939_v3, 0  ;;  %v10318_v45 = vrot.slane %v14368_v4, 9  ;;  %v11946_v29 = vld [vmem:[%s12038_s26 + $0x58] sm:$0xf] }
 0x20d   : > { %v8055_v54 = vsel %vm12799_vm7, %v8053_v49, %v8054_v22  ;;  %v8058_v37 = vrot.slane %v11946_v29, 5  ;;  %v14390_v43 = vld [vmem:[%s12038_s26 + $0x60] sm:$0xe]  ;;  %v3524_v20 = vsel %vm12799_vm7, %v9779_v40, %v3523_v30  ;;  %v3525_v8 = vrot.slane %v3523_v30, 4  ;;  %11268 = vmatpush3.bf16.msra.mxu0 %v8929_v5  ;;  %v11947_v49 = vld [vmem:[%s12038_s26 + $0x5c] sm:$0x1] }
 0x20e   : > { %15522 = vst [vmem:[#allocation17_spill] sm:$0xff] %v14390_v43  ;;  %10963 = vmatprep.mubr.msk.bf16.mxu1 %vm692_vm1, %v9796_v15  ;;  %v10335_v57 = vcombine.low %v8052_v11, %v8055_v54  ;;  %v8061_v26 = vrot.slane %v11947_v49, 5  ;;  %v9780_v22 = vrot.slane %v14380_v41, 9  ;;  %v3530_v2 = vrot.slane %v11948_v44, 5  ;;  %v11949_v40 = vld [vmem:[%s12038_s26 + $0x2c] sm:$0x1] }
 0x20f   : > { %v8059_v3 = vsel %vm12799_vm7, %v10318_v45, %v8058_v37  ;;  %v8060_v21 = vrot.slane %v8058_v37, 4  ;;  %v3527_v11 = vsel %vm12799_vm7, %v3525_v8, %v3526_v59  ;;  %v3533_v15 = vrot.slane %v11949_v40, 5  ;;  %v11950_v54 = vld [vmem:[%s12038_s26 + $0x64] sm:$0xf]  ;;  %v14407_v45 = vld [vmem:[%s12038_s26 + $0x30] sm:$0xe] }
 0x210   : > { %11240 = vmatmul.mubr.msk.bf16.gmra.mrb[4].mxu0 %vm692_vm1, %v10335_v57  ;;  %v10319_v30 = vrot.slane %v14390_v43, 9  ;;  %v8065_v5 = vrot.slane %v11950_v54, 5  ;;  %v9797_v29 = vcombine.low %v3524_v20, %v3527_v11  ;;  %v3531_v57 = vsel %vm12799_vm7, %v9780_v22, %v3530_v2  ;;  %v14414_v59 = vld [vmem:[%s12038_s26 + $0x6c] sm:$0xe]  ;;  %v11951_v54 = vld [vmem:[%s12038_s26 + $0x68] sm:$0x1] }
 0x211   : > { %v8062_v37 = vsel %vm12799_vm7, %v8060_v21, %v8061_v26  ;;  %v3532_v49 = vrot.slane %v3530_v2, 4  ;;  %15523 = vst [vmem:[#allocation18_spill] sm:$0xff] %v14414_v59  ;;  %v8068_v43 = vrot.slane %v11951_v54, 5  ;;  %v9781_v26 = vrot.slane %v14407_v45, 9  ;;  %v11952_v21 = vld [vmem:[%s12038_s26 + $0x34] sm:$0xf] }
 0x212   : > { %v10336_v8 = vcombine.low %v8059_v3, %v8062_v37  ;;  %v8066_v44 = vsel %vm12799_vm7, %v10319_v30, %v8065_v5  ;;  %v8067_v40 = vrot.slane %v8065_v5, 4  ;;  %v3537_v11 = vrot.slane %v11952_v21, 5  ;;  %v11953_v22 = vld [vmem:[%s12038_s26 + $0x38] sm:$0x1]  ;;  %v14425_v41 = vld [vmem:[%s12038_s26 + $0x3c] sm:$0xe] }
 0x213   : > { %v3534_v20 = vsel %vm12799_vm7, %v3532_v49, %v3533_v15  ;;  %v3540_v2 = vrot.slane %v11953_v22, 5  ;;  %15524 = vst [vmem:[#allocation19_spill] sm:$0xff] %v14425_v41  ;;  %v10320_v15 = vrot.slane %v14414_v59, 9  ;;  %v11954_v5 = vld [vmem:[%s12038_s26 + $0x70] sm:$0xf]  ;;  %v9782_v21 = vrot.slane %v14425_v41, 9 }
 0x214   : > { %10964 = vmatmul.mubr.msk.bf16.vlgmr.msra.gmra.mrb[0].mxu1 %vm692_vm1, %v9797_v29  ;;  %11243 = vmatprep.mubr.msk.bf16.mxu0 %vm692_vm1, %v10336_v8  ;;  %v9798_v3 = vcombine.low %v3531_v57, %v3534_v20  ;;  %v8069_v30 = vsel %vm12799_vm7, %v8067_v40, %v8068_v43  ;;  %v8072_v37 = vrot.slane %v11954_v5, 5  ;;  %v14434_v49 = vld [vmem:[%s12038_s26 + $0x78] sm:$0xe]  ;;  %v3538_v29 = vsel %vm12799_vm7, %v9781_v26, %v3537_v11  ;;  %v11955_v57 = vld [vmem:[%s12038_s26 + $0x74] sm:$0x1] }
 0x215   : > { %15525 = vst [vmem:[#allocation20_spill] sm:$0xff] %v14434_v49  ;;  %10996 = vmatpush3.bf16.msra.mxu1 %v4415_v47  ;;  %v10337_v54 = vcombine.low %v8066_v44, %v8069_v30  ;;  %v3539_v8 = vrot.slane %v3537_v11, 4  ;;  %v8075_v20 = vrot.slane %v11955_v57, 5  ;;  %v11956_v22 = vld [vmem:[%s12038_s26 + $0x40] sm:$0xf]  ;;  %v10321_v11 = vrot.slane %v14434_v49, 9 }
 0x216   : > { %10967 = vmatprep.mubr.msk.bf16.mxu1 %vm692_vm1, %v9798_v3  ;;  %v8073_v43 = vsel %vm12799_vm7, %v10320_v15, %v8072_v37  ;;  %v8074_v40 = vrot.slane %v8072_v37, 4  ;;  %v3544_v47 = vrot.slane %v11956_v22, 5  ;;  %v11957_v26 = vld [vmem:[%s12038_s26 + $0x44] sm:$0x1]  ;;  %v11958_v5 = vld [vmem:[%s12038_s26 + $0x7c] sm:$0xf] }
 0x217   : > { %v3541_v44 = vsel %vm12799_vm7, %v3539_v8, %v3540_v2  ;;  %v3547_v30 = vrot.slane %v11957_v26, 5  ;;  %v8079_v3 = vrot.slane %v11958_v5, 5  ;;  %v14450_v57 = vld [vmem:[%s12038_s26 + $0x48] sm:$0xe]  ;;  %v14458_v22 = vld [vmem:[%s12038_s26 + $0x84] sm:$0xe] }
 0x218   : > { %11244 = vmatmul.mubr.msk.bf16.gmra.mrb[8].mxu0 %vm692_vm1, %v10337_v54  ;;  %v9799_v15 = vcombine.low %v3538_v29, %v3541_v44  ;;  %v8076_v37 = vsel %vm12799_vm7, %v8074_v40, %v8075_v20  ;;  %v3545_v2 = vsel %vm12799_vm7, %v9782_v21, %v3544_v47  ;;  %v3546_v8 = vrot.slane %v3544_v47, 4  ;;  %15526 = vst [vmem:[#allocation21_spill] sm:$0xff] %v14458_v22  ;;  %v11959_v41 = vld [vmem:[%s12038_s26 + $0x80] sm:$0x1]  ;;  %v11960_v40 = vld [vmem:[%s12038_s26 + $0x4c] sm:$0xf] }
 0x219   : > { %v10338_v26 = vcombine.low %v8073_v43, %v8076_v37  ;;  %v8080_v5 = vsel %vm12799_vm7, %v10321_v11, %v8079_v3  ;;  %v8081_v49 = vrot.slane %v8079_v3, 4  ;;  %v8082_v54 = vrot.slane %v11959_v41, 5  ;;  %v11961_v47 = vld [vmem:[%s12038_s26 + $0x50] sm:$0x1]  ;;  %v14469_v59 = vld [vmem:[%s12038_s26 + $0x54] sm:$0xe] }
 0x21a   : > { %v3548_v29 = vsel %vm12799_vm7, %v3546_v8, %v3547_v30  ;;  %v9783_v20 = vrot.slane %v14450_v57, 9  ;;  %v3551_v21 = vrot.slane %v11960_v40, 5  ;;  %v3554_v44 = vrot.slane %v11961_v47, 5  ;;  %15527 = vst [vmem:[#allocation6_spill] sm:$0xff] %v14469_v59  ;;  %v11962_v3 = vld [vmem:[%s12038_s26 + $0x88] sm:$0xf] }
 0x21b   : > { %11247 = vmatprep.mubr.msk.bf16.mxu0 %vm692_vm1, %v10338_v26  ;;  %v9800_v43 = vcombine.low %v3545_v2, %v3548_v29  ;;  %v8083_v11 = vsel %vm12799_vm7, %v8081_v49, %v8082_v54  ;;  %v10322_v41 = vrot.slane %v14458_v22, 9  ;;  %v8086_v30 = vrot.slane %v11962_v3, 5  ;;  %v14477_v37 = vld [vmem:[%s12038_s26 + $0x90] sm:$0xe]  ;;  %v11963_v2 = vld [vmem:[%s12038_s26 + $0x8c] sm:$0x1] }
 0x21c   : > { %10968 = vmatmul.mubr.msk.bf16.gmra.mrb[4].mxu1 %vm692_vm1, %v9799_v15  ;;  %v10339_v8 = vcombine.low %v8080_v5, %v8083_v11  ;;  %v3552_v40 = vsel %vm12799_vm7, %v9783_v20, %v3551_v21  ;;  %v3553_v26 = vrot.slane %v3551_v21, 4  ;;  %v8089_v29 = vrot.slane %v11963_v2, 5  ;;  %v11964_v3 = vld [vmem:[%s12038_s26 + $0x58] sm:$0xf]  ;;  %v11965_v5 = vld [vmem:[%s12038_s26 + $0x5c] sm:$0x1] }
 0x21d   : > { %10971 = vmatprep.mubr.msk.bf16.mxu1 %vm692_vm1, %v9800_v43  ;;  %v8087_v49 = vsel %vm12799_vm7, %v10322_v41, %v8086_v30  ;;  %v8088_v54 = vrot.slane %v8086_v30, 4  ;;  %v9784_v47 = vrot.slane %v14469_v59, 9  ;;  %v3558_v22 = vrot.slane %v11964_v3, 5  ;;  %v14494_v43 = vld [vmem:[%s12038_s26 + $0x60] sm:$0xe] }
 0x21e   : > { %v3555_v15 = vsel %vm12799_vm7, %v3553_v26, %v3554_v44  ;;  %v3561_v11 = vrot.slane %v11965_v5, 5  ;;  %v10323_v20 = vrot.slane %v14477_v37, 9  ;;  %v8093_v21 = vrot.slane %v13950_v9, 5  ;;  %v14501_v59 = vld [vmem:[%s12038_s26 + $0x9c] sm:$0xe] }
 0x21f   : > { %v9801_v2 = vcombine.low %v3552_v40, %v3555_v15  ;;  %v8090_v41 = vsel %vm12799_vm7, %v8088_v54, %v8089_v29  ;;  %v3559_v30 = vsel %vm12799_vm7, %v9784_v47, %v3558_v22  ;;  %v3560_v3 = vrot.slane %v3558_v22, 4  ;;  %v14513_v47 = vld [vmem:[%s12038_s26 + $0x6c] sm:$0xe] }
 0x220   : > { %11248 = vmatmul.mubr.msk.bf16.gmra.mrb[12].mxu0 %vm692_vm1, %v10339_v8  ;;  %v10340_v44 = vcombine.low %v8087_v49, %v8090_v41  ;;  %v8094_v26 = vsel %vm12799_vm7, %v10323_v20, %v8093_v21  ;;  %v8095_v5 = vrot.slane %v8093_v21, 4  ;;  %v8096_v9 = vrot.slane %v13963_v0, 5 }
 0x221   : > { %v3562_v40 = vsel %vm12799_vm7, %v3560_v3, %v3561_v11  ;;  %v9785_v29 = vrot.slane %v14494_v43, 9  ;;  %v3565_v54 = vrot.slane %v13973_v60, 5  ;;  %v3568_v22 = vrot.slane %v13988_v42, 5  ;;  %v10309_v11 = vld [vmem:[%s12038_s26 + $0xa8] sm:$0xe] }
 0x222   : > { %11251 = vmatprep.mubr.msk.bf16.mxu0 %vm692_vm1, %v10340_v44  ;;  %v9802_v8 = vcombine.low %v3559_v30, %v3562_v40  ;;  %v8097_v49 = vsel %vm12799_vm7, %v8095_v5, %v8096_v9  ;;  %v10324_v15 = vrot.slane %v14501_v59, 9  ;;  %v8100_v0 = vrot.slane %v13999_v18, 5 }
 0x223   : > { %v10341_v20 = vcombine.low %v8094_v26, %v8097_v49  ;;  %v3566_v21 = vsel %vm12799_vm7, %v9785_v29, %v3565_v54  ;;  %v3567_v41 = vrot.slane %v3565_v54, 4  ;;  %v8103_v42 = vrot.slane %v14008_v13, 5 }
 0x224   : > { %10972 = vmatmul.mubr.msk.bf16.gmra.mrb[8].mxu1 %vm692_vm1, %v9801_v2  ;;  %v8101_v30 = vsel %vm12799_vm7, %v10324_v15, %v8100_v0  ;;  %v8102_v9 = vrot.slane %v8100_v0, 4  ;;  %v9786_v3 = vrot.slane %v14513_v47, 9  ;;  %v3572_v44 = vrot.slane %v14025_v6, 5  ;;  %v9771_v2 = vld [vmem:[%s12038_s26 + $0x78] sm:$0xe] }
 0x225   : > { %10975 = vmatprep.mubr.msk.bf16.mxu1 %vm692_vm1, %v9802_v8  ;;  %v3569_v26 = vsel %vm12799_vm7, %v3567_v41, %v3568_v22  ;;  %v3575_v5 = vrot.slane %v14042_v36, 5  ;;  %v10325_v40 = vrot.slane %v10309_v11, 9  ;;  %v8107_v13 = vrot.slane %v14058_v55, 5  ;;  %v10310_v0 = vld [vmem:[%s12038_s26 + $0xb4] sm:$0xe] }
 0x226   : > { %v9803_v29 = vcombine.low %v3566_v21, %v3569_v26  ;;  %v8104_v54 = vsel %vm12799_vm7, %v8102_v9, %v8103_v42  ;;  %v3573_v49 = vsel %vm12799_vm7, %v9786_v3, %v3572_v44  ;;  %v3574_v15 = vrot.slane %v3572_v44, 4  ;;  %v9772_v3 = vld [vmem:[%s12038_s26 + $0x84] sm:$0xe] }
 0x227   : > { %v10342_v8 = vcombine.low %v8101_v30, %v8104_v54  ;;  %v8108_v22 = vsel %vm12799_vm7, %v10325_v40, %v8107_v13  ;;  %v8109_v36 = vrot.slane %v8107_v13, 4  ;;  %v8110_v11 = vrot.slane %v14068_v35, 5 }
 0x228   : > { %11252 = vmatmul.mubr.msk.bf16.gmra.mrb[16].mxu0 %vm692_vm1, %v10341_v20  ;;  %v3576_v21 = vsel %vm12799_vm7, %v3574_v15, %v3575_v5  ;;  %v9787_v41 = vrot.slane %v9771_v2, 9  ;;  %v3579_v42 = vrot.slane %v14080_v39, 5  ;;  %v3582_v9 = vrot.slane %v14094_v38, 5  ;;  %v10311_v20 = vld [vmem:[%s12038_s26 + $0xc0] sm:$0xe] }
 0x229   : > { %11255 = vmatprep.mubr.msk.bf16.mxu0 %vm692_vm1, %v10342_v8  ;;  %v9804_v30 = vcombine.low %v3573_v49, %v3576_v21  ;;  %v8111_v44 = vsel %vm12799_vm7, %v8109_v36, %v8110_v11  ;;  %v10326_v26 = vrot.slane %v10310_v0, 9  ;;  %v8114_v35 = vrot.slane %v14104_v50, 5 }
 0x22a   : > { %v10343_v40 = vcombine.low %v8108_v22, %v8111_v44  ;;  %v3580_v5 = vsel %vm12799_vm7, %v9787_v41, %v3579_v42  ;;  %v3581_v13 = vrot.slane %v3579_v42, 4  ;;  %v8117_v2 = vrot.slane %v14116_v19, 5  ;;  %v9773_v19 = vld [vmem:[%s12038_s26 + $0x90] sm:$0xe]  ;;  %v10312_v42 = vld [vmem:[%s12038_s26 + $0xcc] sm:$0xe] }
 0x22b   : > { %v8115_v38 = vsel %vm12799_vm7, %v10326_v26, %v8114_v35  ;;  %v8116_v54 = vrot.slane %v8114_v35, 4  ;;  %v9788_v49 = vrot.slane %v9772_v3, 9  ;;  %v3586_v15 = vrot.slane %v14123_v10, 5 }
 0x22c   : > { %10976 = vmatmul.mubr.msk.bf16.gmra.mrb[12].mxu1 %vm692_vm1, %v9803_v29  ;;  %v3583_v0 = vsel %vm12799_vm7, %v3581_v13, %v3582_v9  ;;  %v3589_v8 = vrot.slane %v14134_v52, 5  ;;  %v10327_v22 = vrot.slane %v10311_v20, 9  ;;  %v8121_v36 = vrot.slane %v14148_v23, 5 }
 0x22d   : > { %10979 = vmatprep.mubr.msk.bf16.mxu1 %vm692_vm1, %v9804_v30  ;;  %v9805_v11 = vcombine.low %v3580_v5, %v3583_v0  ;;  %v8118_v21 = vsel %vm12799_vm7, %v8116_v54, %v8117_v2  ;;  %v3587_v41 = vsel %vm12799_vm7, %v9788_v49, %v3586_v15  ;;  %v3588_v29 = vrot.slane %v3586_v15, 4  ;;  %v9774_v5 = vld [vmem:[%s12038_s26 + $0x9c] sm:$0xe] }
 0x22e   : > { %v10344_v9 = vcombine.low %v8115_v38, %v8118_v21  ;;  %v8122_v52 = vsel %vm12799_vm7, %v10327_v22, %v8121_v36  ;;  %v8123_v3 = vrot.slane %v8121_v36, 4  ;;  %v8124_v44 = vrot.slane %v14158_v58, 5  ;;  %v10313_v58 = vld [vmem:[%s12038_s26 + $0xd8] sm:$0xe] }
 0x22f   : > { %v3590_v30 = vsel %vm12799_vm7, %v3588_v29, %v3589_v8  ;;  %v9789_v26 = vrot.slane %v9773_v19, 9  ;;  %v3593_v35 = vrot.slane %v14169_v31, 5  ;;  %v3596_v20 = vrot.slane %v14180_v28, 5 }
 0x230   : > { %11256 = vmatmul.mubr.msk.bf16.gmra.mrb[20].mxu0 %vm692_vm1, %v10343_v40  ;;  %v9806_v13 = vcombine.low %v3587_v41, %v3590_v30  ;;  %v8125_v2 = vsel %vm12799_vm7, %v8123_v3, %v8124_v44  ;;  %v10328_v38 = vrot.slane %v10312_v42, 9  ;;  %v8128_v54 = vrot.slane %v14188_v25, 5  ;;  %v9775_v42 = vld [vmem:[%s12038_s26 + $0xa8] sm:$0xe] }
 0x231   : > { %11259 = vmatprep.mubr.msk.bf16.mxu0 %vm692_vm1, %v10344_v9  ;;  %v10345_v49 = vcombine.low %v8122_v52, %v8125_v2  ;;  %v3594_v15 = vsel %vm12799_vm7, %v9789_v26, %v3593_v35  ;;  %v3595_v0 = vrot.slane %v3593_v35, 4  ;;  %v8131_v28 = vrot.slane %v14197_v17, 5  ;;  %v10365_v2 = vld [vmem:[%s12038_s26 + $0x2c] sm:$0x3] }
 0x232   : > { %v8129_v40 = vsel %vm12799_vm7, %v10328_v38, %v8128_v54  ;;  %v8130_v8 = vrot.slane %v8128_v54, 4  ;;  %v9790_v22 = vrot.slane %v9774_v5, 9  ;;  %v3600_v36 = vrot.slane %v14209_v62, 5 }
 0x233   : > { %v3597_v19 = vsel %vm12799_vm7, %v3595_v0, %v3596_v20  ;;  %v3603_v21 = vrot.slane %v14220_v1, 5  ;;  %v10329_v41 = vrot.slane %v10313_v58, 9  ;;  %v8135_v29 = vrot.slane %v14230_v7, 5 }
 0x234   : > { %10980 = vmatmul.mubr.msk.bf16.gmra.mrb[16].mxu1 %vm692_vm1, %v9805_v11  ;;  %v9807_v17 = vcombine.low %v3594_v15, %v3597_v19  ;;  %v8132_v9 = vsel %vm12799_vm7, %v8130_v8, %v8131_v28  ;;  %v3601_v52 = vsel %vm12799_vm7, %v9790_v22, %v3600_v36  ;;  %v3602_v3 = vrot.slane %v3600_v36, 4  ;;  %v9776_v15 = vld [vmem:[%s12038_s26 + $0xb4] sm:$0xe] }
 0x235   : > { %10983 = vmatprep.mubr.msk.bf16.mxu1 %vm692_vm1, %v9806_v13  ;;  %v10346_v44 = vcombine.low %v8129_v40, %v8132_v9  ;;  %v8136_v1 = vsel %vm12799_vm7, %v10329_v41, %v8135_v29  ;;  %v8137_v30 = vrot.slane %v8135_v29, 4  ;;  %v8138_v26 = vrot.slane %v14238_v16, 5 }
 0x236   : > { %v3604_v11 = vsel %vm12799_vm7, %v3602_v3, %v3603_v21  ;;  %v9791_v35 = vrot.slane %v9775_v42, 9  ;;  %v3607_v20 = vrot.slane %v14247_v51, 5  ;;  %v3610_v5 = vrot.slane %v14258_v32, 5 }
 0x237   : > { %v9808_v38 = vcombine.low %v3601_v52, %v3604_v11  ;;  %v8139_v13 = vsel %vm12799_vm7, %v8137_v30, %v8138_v26  ;;  %v8457_v54 = vshrl.u32 %v14262_v46, 16  ;;  %v8460_v58 = vshll.u32 %v14262_v46, 16 }
 0x238   : > { %11260 = vmatmul.mubr.msk.bf16.gmra.mrb[24].mxu0 %vm692_vm1, %v10345_v49  ;;  %v10347_v16 = vcombine.low %v8136_v1, %v8139_v13  ;;  %v3608_v0 = vsel %vm12799_vm7, %v9791_v35, %v3607_v20  ;;  %v3609_v28 = vrot.slane %v3607_v20, 4  ;;  %v15528_v40 = vshrl.u32 %v13588_v24, 16  ;;  %v10366_v35 = vld [vmem:[%s12038_s26 + $0x38] sm:$0x3] }
 0x239   : > { %11263 = vmatprep.mubr.msk.bf16.mxu0 %vm692_vm1, %v10346_v44  ;;  %v8459_v8 = vrot.slane %v8457_v54, 5  ;;  %v8462_v22 = vrot.slane %v8460_v58, 6  ;;  %v15529_v36 = vshll.u32 %v13588_v24, 16  ;;  %v8471_v21 = vshrl.u32 %v10365_v2, 16 }
 0x23a   : > { %v8465_v32 = vrot.slane %v15528_v40, 5  ;;  %v3611_v46 = vsel %vm12799_vm7, %v3609_v28, %v3610_v5  ;;  %v8474_v49 = vshll.u32 %v10365_v2, 16  ;;  %v9792_v41 = vrot.slane %v9776_v15, 9 }
 0x23b   : > { %v8466_v19 = vrot.slane %v15529_v36, 6  ;;  %v3614_v29 = vrot.slane %v14282_v63, 5  ;;  %v9809_v42 = vcombine.low %v3608_v0, %v3611_v46  ;;  %v8463_v9 = vor.u32 %v8462_v22, %v8459_v8 }
 0x23c   : > { %v8473_v3 = vrot.slane %v8471_v21, 5  ;;  %10984 = vmatmul.mubr.msk.bf16.gmra.mrb[20].mxu1 %vm692_vm1, %v9807_v17  ;;  %v8476_v44 = vrot.slane %v8474_v49, 6  ;;  %v3617_v30 = vrot.slane %v14285_v27, 5  ;;  %v8480_v20 = vshrl.u32 %v14295_v56, 16  ;;  %v9777_v27 = vld [vmem:[%s12038_s26 + $0xc0] sm:$0xe] }
 0x23d   : > { %v8467_v52 = vor.u32 %v8466_v19, %v8465_v32  ;;  %v3615_v24 = vsel %vm12799_vm7, %v9792_v41, %v3614_v29  ;;  %v3616_v1 = vrot.slane %v3614_v29, 4  ;;  %10987 = vmatprep.mubr.msk.bf16.mxu1 %vm692_vm1, %v9808_v38  ;;  %v8464_v26 = vrot.slane %v8463_v9, 4  ;;  %v15532_v21 = vld [vmem:[#allocation14_spill] sm:$0xff] }
 0x23e   : > { %v8483_v5 = vshll.u32 %v14295_v56, 16  ;;  %v8477_v2 = vor.u32 %v8476_v44, %v8473_v3  ;;  %v15530_v13 = vshrl.u32 %v13614_v33, 16  ;;  %v15531_v58 = vshll.u32 %v13614_v33, 16 }
 0x23f   : > { %v8469_v11 = vrot.slane %v8467_v52, 4  ;;  %v3618_v17 = vsel %vm12799_vm7, %v3616_v1, %v3617_v30  ;;  %v8468_v38 = vsel %vm13193_vm10, %v8464_v26, %v8467_v52  ;;  %v8482_v28 = vrot.slane %v8480_v20, 5  ;;  %v10367_v52 = vld [vmem:[%s12038_s26 + $0x44] sm:$0x3] }
 0x240   : > { %v8488_v54 = vrot.slane %v15530_v13, 5  ;;  %v8489_v15 = vrot.slane %v15531_v58, 6  ;;  %v9810_v0 = vcombine.low %v3615_v24, %v3618_v17  ;;  %v8485_v40 = vrot.slane %v8483_v5, 6  ;;  %11264 = vmatmul.mubr.msk.bf16.gmra.mrb[28].mxu0 %vm692_vm1, %v10347_v16  ;;  %v15533_v26 = vld [vmem:[#allocation22_spill] sm:$0xff] }
 0x241   : > { %v8478_v56 = vsel %vm13193_vm10, %v8469_v11, %v8477_v2  ;;  %v8494_v8 = vshrl.u32 %v10366_v35, 16  ;;  %v8497_v22 = vshll.u32 %v10366_v35, 16  ;;  %v9793_v33 = vrot.slane %v9777_v27, 9 }
 0x242   : > { %v8490_v32 = vor.u32 %v8489_v15, %v8488_v54  ;;  %v10383_v36 = vcombine.low %v8468_v38, %v8478_v56  ;;  %v8486_v19 = vor.u32 %v8485_v40, %v8482_v28  ;;  %v3621_v46 = vrot.slane %v15532_v21, 5  ;;  %v9829_v15 = vld [vmem:[%s12038_s26 + $0x14] sm:$0x3]  ;;  %v15536_v40 = vld [vmem:[#allocation15_spill] sm:$0xff] }
 0x243   : > { %v8496_v41 = vrot.slane %v8494_v8, 5  ;;  %v8499_v29 = vrot.slane %v8497_v22, 6  ;;  %v3624_v9 = vrot.slane %v14315_v14, 5  ;;  %v8503_v24 = vshrl.u32 %v14321_v61, 16 }
 0x244   : > { %v8492_v49 = vrot.slane %v8490_v32, 4  ;;  %11269 = vmatprep.mubr.msk.bf16.mxu0 %vm692_vm1, %v10383_v36  ;;  %v8487_v16 = vrot.slane %v8486_v19, 4  ;;  %v3622_v3 = vsel %vm12799_vm7, %v9793_v33, %v3621_v46  ;;  %v3623_v44 = vrot.slane %v3621_v46, 4  ;;  %10988 = vmatmul.mubr.msk.bf16.gmra.mrb[24].mxu1 %vm692_vm1, %v9809_v42 }
 0x245   : > { %v8500_v1 = vor.u32 %v8499_v29, %v8496_v41  ;;  %v8506_v30 = vshll.u32 %v14321_v61, 16  ;;  %v15534_v11 = vshrl.u32 %v15533_v26, 16  ;;  %v15535_v14 = vshll.u32 %v15533_v26, 16  ;;  %10991 = vmatprep.mubr.msk.bf16.mxu1 %vm692_vm1, %v9810_v0 }
 0x246   : > { %v8491_v5 = vsel %vm13193_vm10, %v8487_v16, %v8490_v32  ;;  %v3625_v2 = vsel %vm12799_vm7, %v3623_v44, %v3624_v9  ;;  %v8505_v17 = vrot.slane %v8503_v24, 5  ;;  %v8517_v13 = vshrl.u32 %v10367_v52, 16 }
 0x247   : > { %v8511_v35 = vrot.slane %v15534_v11, 5  ;;  %v8512_v20 = vrot.slane %v15535_v14, 6  ;;  %v8501_v42 = vsel %vm13193_vm10, %v8492_v49, %v8500_v1  ;;  %v9811_v61 = vcombine.low %v3622_v3, %v3625_v2 }
 0x248   : > { %v8508_v54 = vrot.slane %v8506_v30, 6  ;;  %v10384_v27 = vcombine.low %v8491_v5, %v8501_v42  ;;  %v8519_v38 = vrot.slane %v8517_v13, 5  ;;  %v8520_v28 = vshll.u32 %v10367_v52, 16 }
 0x249   : > { %v8513_v58 = vor.u32 %v8512_v20, %v8511_v35  ;;  %v3943_v0 = vshrl.u32 %v15536_v40, 16  ;;  %v3946_v32 = vshll.u32 %v15536_v40, 16  ;;  %v15538_v22 = vshrl.u32 %v15537_v12, 16  ;;  %v10368_v35 = vld [vmem:[%s12038_s26 + $0x50] sm:$0x3] }
 0x24a   : > { %v8509_v56 = vor.u32 %v8508_v54, %v8505_v17  ;;  %11270 = vmatmul.mubr.msk.bf16.vlgmr.msra.gmra.mrb[0].mxu0 %vm692_vm1, %v10384_v27  ;;  %v8522_v19 = vrot.slane %v8520_v28, 6  ;;  %v15539_v46 = vshll.u32 %v15537_v12, 16  ;;  %v3957_v41 = vshrl.u32 %v9829_v15, 16  ;;  %v15540_v17 = vld [vmem:[#allocation3_spill] sm:$0xff] }
 0x24b   : > { %v8515_v8 = vrot.slane %v8513_v58, 4  ;;  %v3951_v36 = vrot.slane %v15538_v22, 5  ;;  %v3945_v33 = vrot.slane %v3943_v0, 5  ;;  %v3948_v9 = vrot.slane %v3946_v32, 6  ;;  %v9830_v32 = vld [vmem:[%s12038_s26 + $0x20] sm:$0x3] }
 0x24c   : > { %v3952_v49 = vrot.slane %v15539_v46, 6  ;;  %v8510_v29 = vrot.slane %v8509_v56, 4  ;;  %v3960_v52 = vshll.u32 %v9829_v15, 16  ;;  %v8526_v16 = vshrl.u32 %v14341_v48, 16  ;;  %10992 = vmatmul.mubr.msk.bf16.gmra.mrb[28].mxu1 %vm692_vm1, %v9811_v61 }
 0x24d   : > { %v8523_v3 = vor.u32 %v8522_v19, %v8519_v38  ;;  %v3959_v24 = vrot.slane %v3957_v41, 5  ;;  %v8529_v1 = vshll.u32 %v14341_v48, 16  ;;  %v3949_v26 = vor.u32 %v3948_v9, %v3945_v33 }
 0x24e   : > { %v3953_v44 = vor.u32 %v3952_v49, %v3951_v36  ;;  %v8514_v30 = vsel %vm13193_vm10, %v8510_v29, %v8513_v58  ;;  %v3962_v11 = vrot.slane %v3960_v52, 6  ;;  %v8528_v14 = vrot.slane %v8526_v16, 5  ;;  %v15543_v29 = vld [vmem:[#allocation4_spill] sm:$0xff] }
 0x24f   : > { %v8524_v20 = vsel %vm13193_vm10, %v8515_v8, %v8523_v3  ;;  %v8531_v2 = vrot.slane %v8529_v1, 6  ;;  %v15541_v13 = vshrl.u32 %v15540_v17, 16  ;;  %v3950_v48 = vrot.slane %v3949_v26, 4  ;;  %v10369_v26 = vld [vmem:[%s12038_s26 + $0x5c] sm:$0x3] }
 0x250   : > { %v3955_v5 = vrot.slane %v3953_v44, 4  ;;  %v10385_v54 = vcombine.low %v8514_v30, %v8524_v20  ;;  %v3963_v15 = vor.u32 %v3962_v11, %v3959_v24  ;;  %v15542_v61 = vshll.u32 %v15540_v17, 16 }
 0x251   : > { %v8534_v42 = vrot.slane %v15541_v13, 5  ;;  %v8532_v58 = vor.u32 %v8531_v2, %v8528_v14  ;;  %v8540_v38 = vshrl.u32 %v10368_v35, 16  ;;  %v8543_v28 = vshll.u32 %v10368_v35, 16  ;;  %v15546_v2 = vld [vmem:[#allocation8_spill] sm:$0xff] }
 0x252   : > { %v8535_v27 = vrot.slane %v15542_v61, 6  ;;  %v3966_v40 = vshrl.u32 %v14355_v34, 16  ;;  %11273 = vmatprep.mubr.msk.bf16.mxu0 %vm692_vm1, %v10385_v54  ;;  %v3954_v0 = vsel %vm13193_vm10, %v3950_v48, %v3953_v44  ;;  %v3964_v56 = vsel %vm13193_vm10, %v3955_v5, %v3963_v15 }
 0x253   : > { %v3969_v12 = vshll.u32 %v14355_v34, 16  ;;  %v9847_v22 = vcombine.low %v3954_v0, %v3964_v56  ;;  %v8533_v36 = vrot.slane %v8532_v58, 4  ;;  %v8542_v19 = vrot.slane %v8540_v38, 5  ;;  %v15549_v56 = vld [vmem:[#allocation16_spill] sm:$0xff] }
 0x254   : > { %v8536_v8 = vor.u32 %v8535_v27, %v8534_v42  ;;  %v8545_v33 = vrot.slane %v8543_v28, 6  ;;  %v3968_v49 = vrot.slane %v3966_v40, 5  ;;  %v15544_v9 = vshrl.u32 %v15543_v29, 16 }
 0x255   : > { %v3971_v41 = vrot.slane %v3969_v12, 6  ;;  %10997 = vmatprep.mubr.msk.bf16.mxu1 %vm692_vm1, %v9847_v22  ;;  %v15545_v44 = vshll.u32 %v15543_v29, 16  ;;  %v3980_v24 = vshrl.u32 %v9830_v32, 16  ;;  %v3983_v30 = vshll.u32 %v9830_v32, 16 }
 0x256   : > { %v8538_v46 = vrot.slane %v8536_v8, 4  ;;  %v3974_v52 = vrot.slane %v15544_v9, 5  ;;  %v8537_v16 = vsel %vm13193_vm10, %v8533_v36, %v8536_v8  ;;  %v8546_v3 = vor.u32 %v8545_v33, %v8542_v19  ;;  %v9831_v36 = vld [vmem:[%s12038_s26 + $0x2c] sm:$0x3] }
 0x257   : > { %v3975_v34 = vrot.slane %v15545_v44, 6  ;;  %v3972_v1 = vor.u32 %v3971_v41, %v3968_v49  ;;  %v8549_v11 = vshrl.u32 %v14368_v4, 16  ;;  %v8552_v35 = vshll.u32 %v14368_v4, 16  ;;  %v15550_v41 = vld [vmem:[#allocation7_spill] sm:$0xff] }
 0x258   : > { %v8547_v14 = vsel %vm13193_vm10, %v8538_v46, %v8546_v3  ;;  %v3982_v5 = vrot.slane %v3980_v24, 5  ;;  %v15547_v17 = vshrl.u32 %v15546_v2, 16  ;;  %v3985_v48 = vrot.slane %v3983_v30, 6 }
 0x259   : > { %v3976_v20 = vor.u32 %v3975_v34, %v3974_v52  ;;  %v10386_v42 = vcombine.low %v8537_v16, %v8547_v14  ;;  %v3973_v54 = vrot.slane %v3972_v1, 4  ;;  %v8551_v15 = vrot.slane %v8549_v11, 5  ;;  %v15553_v14 = vld [vmem:[#allocation17_spill] sm:$0xff] }
 0x25a   : > { %v8557_v13 = vrot.slane %v15547_v17, 5  ;;  %v8554_v27 = vrot.slane %v8552_v35, 6  ;;  %v15548_v58 = vshll.u32 %v15546_v2, 16  ;;  %v8563_v28 = vshrl.u32 %v10369_v26, 16 }
 0x25b   : > { %v3978_v61 = vrot.slane %v3976_v20, 4  ;;  %11274 = vmatmul.mubr.msk.bf16.gmra.mrb[4].mxu0 %vm692_vm1, %v10386_v42  ;;  %v3977_v4 = vsel %vm13193_vm10, %v3973_v54, %v3976_v20  ;;  %v3986_v40 = vor.u32 %v3985_v48, %v3982_v5  ;;  %v8566_v0 = vshll.u32 %v10369_v26, 16  ;;  %v10370_v54 = vld [vmem:[%s12038_s26 + $0x68] sm:$0x3] }
 0x25c   : > { %v8558_v38 = vrot.slane %v15548_v58, 6  ;;  %v3989_v8 = vshrl.u32 %v15549_v56, 16  ;;  %v8555_v32 = vor.u32 %v8554_v27, %v8551_v15  ;;  %v8565_v22 = vrot.slane %v8563_v28, 5  ;;  %v15554_v28 = vld [vmem:[#allocation9_spill] sm:$0xff] }
 0x25d   : > { %v3992_v19 = vshll.u32 %v15549_v56, 16  ;;  %v3987_v33 = vsel %vm13193_vm10, %v3978_v61, %v3986_v40  ;;  %v8568_v46 = vrot.slane %v8566_v0, 6  ;;  %v15551_v29 = vshrl.u32 %v15550_v41, 16 }
 0x25e   : > { %v8559_v12 = vor.u32 %v8558_v38, %v8557_v13  ;;  %v3991_v49 = vrot.slane %v3989_v8, 5  ;;  %v9848_v52 = vcombine.low %v3977_v4, %v3987_v33  ;;  %v8556_v16 = vrot.slane %v8555_v32, 4  ;;  %v9832_v33 = vld [vmem:[%s12038_s26 + $0x38] sm:$0x3] }
 0x25f   : > { %v3997_v9 = vrot.slane %v15551_v29, 5  ;;  %v3994_v44 = vrot.slane %v3992_v19, 6  ;;  %v8569_v34 = vor.u32 %v8568_v46, %v8565_v22  ;;  %v15552_v24 = vshll.u32 %v15550_v41, 16 }
 0x260   : > { %v8561_v3 = vrot.slane %v8559_v12, 4  ;;  %v4003_v30 = vshrl.u32 %v9831_v36, 16  ;;  %v4006_v26 = vshll.u32 %v9831_v36, 16  ;;  %10998 = vmatmul.mubr.msk.bf16.vlgmr.msra.gmra.mrb[0].mxu1 %vm692_vm1, %v9848_v52  ;;  %v8560_v11 = vsel %vm13193_vm10, %v8556_v16, %v8559_v12 }
 0x261   : > { %v3998_v1 = vrot.slane %v15552_v24, 6  ;;  %v3995_v35 = vor.u32 %v3994_v44, %v3991_v49  ;;  %v8572_v20 = vshrl.u32 %v15553_v14, 16  ;;  %v8575_v5 = vshll.u32 %v15553_v14, 16 }
 0x262   : > { %v8570_v2 = vsel %vm13193_vm10, %v8561_v3, %v8569_v34  ;;  %v4005_v13 = vrot.slane %v4003_v30, 5  ;;  %v4008_v42 = vrot.slane %v4006_v26, 6  ;;  %v15555_v4 = vshrl.u32 %v15554_v28, 16  ;;  %v15557_v34 = vld [vmem:[#allocation2_spill] sm:$0xff] }
 0x263   : > { %v3999_v17 = vor.u32 %v3998_v1, %v3997_v9  ;;  %v10387_v48 = vcombine.low %v8560_v11, %v8570_v2  ;;  %v3996_v15 = vrot.slane %v3995_v35, 4  ;;  %v8574_v61 = vrot.slane %v8572_v20, 5  ;;  %v15560_v2 = vld [vmem:[#allocation18_spill] sm:$0xff] }
 0x264   : > { %v8577_v27 = vrot.slane %v8575_v5, 6  ;;  %v4009_v38 = vor.u32 %v4008_v42, %v4005_v13  ;;  %v8580_v40 = vrot.slane %v15555_v4, 5  ;;  %v15556_v0 = vshll.u32 %v15554_v28, 16  ;;  %v10371_v5 = vld [vmem:[%s12038_s26 + $0x74] sm:$0x3] }
 0x265   : > { %v4001_v58 = vrot.slane %v3999_v17, 4  ;;  %11277 = vmatprep.mubr.msk.bf16.mxu0 %vm692_vm1, %v10387_v48  ;;  %v4000_v8 = vsel %vm13193_vm10, %v3996_v15, %v3999_v17  ;;  %v8586_v12 = vshrl.u32 %v10370_v54, 16  ;;  %v8589_v22 = vshll.u32 %v10370_v54, 16  ;;  %v15561_v15 = vld [vmem:[#allocation10_spill] sm:$0xff] }
 0x266   : > { %v8581_v56 = vrot.slane %v15556_v0, 6  ;;  %v8578_v32 = vor.u32 %v8577_v27, %v8574_v61  ;;  %v4012_v46 = vshrl.u32 %v14407_v45, 16  ;;  %v4015_v49 = vshll.u32 %v14407_v45, 16 }
 0x267   : > { %v4010_v36 = vsel %vm13193_vm10, %v4001_v58, %v4009_v38  ;;  %v8588_v9 = vrot.slane %v8586_v12, 5  ;;  %v8591_v52 = vrot.slane %v8589_v22, 6  ;;  %v15558_v24 = vshrl.u32 %v15557_v34, 16 }
 0x268   : > { %v8582_v19 = vor.u32 %v8581_v56, %v8580_v40  ;;  %v9849_v41 = vcombine.low %v4000_v8, %v4010_v36  ;;  %v8579_v29 = vrot.slane %v8578_v32, 4  ;;  %v4014_v3 = vrot.slane %v4012_v46, 5 }
 0x269   : > { %v4017_v44 = vrot.slane %v4015_v49, 6  ;;  %v4020_v1 = vrot.slane %v15558_v24, 5  ;;  %v8592_v26 = vor.u32 %v8591_v52, %v8588_v9  ;;  %v15559_v11 = vshll.u32 %v15557_v34, 16 }
 0x26a   : > { %v8584_v16 = vrot.slane %v8582_v19, 4  ;;  %11001 = vmatprep.mubr.msk.bf16.mxu1 %vm692_vm1, %v9849_v41  ;;  %v8583_v30 = vsel %vm13193_vm10, %v8579_v29, %v8582_v19  ;;  %v4026_v35 = vshrl.u32 %v9832_v33, 16  ;;  %v4029_v20 = vshll.u32 %v9832_v33, 16  ;;  %v15564_v19 = vld [vmem:[#allocation19_spill] sm:$0xff]  ;;  %v9833_v29 = vld [vmem:[%s12038_s26 + $0x44] sm:$0x3] }
 0x26b   : > { %v4021_v45 = vrot.slane %v15559_v11, 6  ;;  %v4018_v14 = vor.u32 %v4017_v44, %v4014_v3  ;;  %v8595_v17 = vshrl.u32 %v15560_v2, 16  ;;  %v8598_v13 = vshll.u32 %v15560_v2, 16  ;;  %v15565_v44 = vld [vmem:[#allocation5_spill] sm:$0xff] }
 0x26c   : > { %v8593_v42 = vsel %vm13193_vm10, %v8584_v16, %v8592_v26  ;;  %v4028_v48 = vrot.slane %v4026_v35, 5  ;;  %v15562_v61 = vshrl.u32 %v15561_v15, 16  ;;  %v4031_v28 = vrot.slane %v4029_v20, 6 }
 0x26d   : > { %v4022_v54 = vor.u32 %v4021_v45, %v4020_v1  ;;  %v10388_v58 = vcombine.low %v8583_v30, %v8593_v42  ;;  %v4019_v38 = vrot.slane %v4018_v14, 4  ;;  %v8597_v4 = vrot.slane %v8595_v17, 5 }
 0x26e   : > { %v8603_v27 = vrot.slane %v15562_v61, 5  ;;  %v8600_v0 = vrot.slane %v8598_v13, 6  ;;  %v15563_v56 = vshll.u32 %v15561_v15, 16  ;;  %v8609_v32 = vshrl.u32 %v10371_v5, 16  ;;  %v15568_v13 = vld [vmem:[#allocation20_spill] sm:$0xff] }
 0x26f   : > { %v4024_v40 = vrot.slane %v4022_v54, 4  ;;  %11278 = vmatmul.mubr.msk.bf16.gmra.mrb[8].mxu0 %vm692_vm1, %v10388_v58  ;;  %v4023_v12 = vsel %vm13193_vm10, %v4019_v38, %v4022_v54  ;;  %v4032_v22 = vor.u32 %v4031_v28, %v4028_v48  ;;  %v8612_v36 = vshll.u32 %v10371_v5, 16  ;;  %v10372_v58 = vld [vmem:[%s12038_s26 + $0x80] sm:$0x3] }
 0x270   : > { %v8604_v8 = vrot.slane %v15563_v56, 6  ;;  %v4035_v33 = vshrl.u32 %v15564_v19, 16  ;;  %v8601_v46 = vor.u32 %v8600_v0, %v8597_v4  ;;  %v8611_v41 = vrot.slane %v8609_v32, 5 }
 0x271   : > { %v4038_v9 = vshll.u32 %v15564_v19, 16  ;;  %v4033_v52 = vsel %vm13193_vm10, %v4024_v40, %v4032_v22  ;;  %v8614_v16 = vrot.slane %v8612_v36, 6  ;;  %v15566_v34 = vshrl.u32 %v15565_v44, 16 }
 0x272   : > { %v8605_v49 = vor.u32 %v8604_v8, %v8603_v27  ;;  %v4037_v3 = vrot.slane %v4035_v33, 5  ;;  %v9850_v1 = vcombine.low %v4023_v12, %v4033_v52  ;;  %v8602_v30 = vrot.slane %v8601_v46, 4  ;;  %v15569_v8 = vld [vmem:[#allocation11_spill] sm:$0xff] }
 0x273   : > { %v4043_v24 = vrot.slane %v15566_v34, 5  ;;  %v4040_v11 = vrot.slane %v4038_v9, 6  ;;  %v8615_v45 = vor.u32 %v8614_v16, %v8611_v41  ;;  %v15567_v35 = vshll.u32 %v15565_v44, 16  ;;  %v9834_v9 = vld [vmem:[%s12038_s26 + $0x50] sm:$0x3] }
 0x274   : > { %v8607_v26 = vrot.slane %v8605_v49, 4  ;;  %v4049_v20 = vshrl.u32 %v9833_v29, 16  ;;  %v4052_v5 = vshll.u32 %v9833_v29, 16  ;;  %11002 = vmatmul.mubr.msk.bf16.gmra.mrb[4].mxu1 %vm692_vm1, %v9850_v1  ;;  %v8606_v2 = vsel %vm13193_vm10, %v8602_v30, %v8605_v49 }
 0x275   : > { %v4044_v14 = vrot.slane %v15567_v35, 6  ;;  %v4041_v17 = vor.u32 %v4040_v11, %v4037_v3  ;;  %v8618_v42 = vshrl.u32 %v15568_v13, 16  ;;  %v8621_v54 = vshll.u32 %v15568_v13, 16  ;;  %v15572_v11 = vld [vmem:[#allocation24_spill] sm:$0xff] }
 0x276   : > { %v8616_v48 = vsel %vm13193_vm10, %v8607_v26, %v8615_v45  ;;  %v4051_v61 = vrot.slane %v4049_v20, 5  ;;  %v4054_v27 = vrot.slane %v4052_v5, 6  ;;  %v15570_v32 = vshrl.u32 %v15569_v8, 16 }
 0x277   : > { %v4045_v15 = vor.u32 %v4044_v14, %v4043_v24  ;;  %v10389_v38 = vcombine.low %v8606_v2, %v8616_v48  ;;  %v4042_v28 = vrot.slane %v4041_v17, 4  ;;  %v8620_v4 = vrot.slane %v8618_v42, 5  ;;  %v10373_v42 = vld [vmem:[%s12038_s26 + $0x8c] sm:$0x3] }
 0x278   : > { %v8623_v40 = vrot.slane %v8621_v54, 6  ;;  %v4055_v56 = vor.u32 %v4054_v27, %v4051_v61  ;;  %v8626_v12 = vrot.slane %v15570_v32, 5  ;;  %v15571_v22 = vshll.u32 %v15569_v8, 16  ;;  %v15575_v54 = vld [vmem:[#allocation21_spill] sm:$0xff] }
 0x279   : > { %v4047_v0 = vrot.slane %v4045_v15, 4  ;;  %11281 = vmatprep.mubr.msk.bf16.mxu0 %vm692_vm1, %v10389_v38  ;;  %v4046_v19 = vsel %vm13193_vm10, %v4042_v28, %v4045_v15  ;;  %v8632_v46 = vshrl.u32 %v10372_v58, 16  ;;  %v8635_v49 = vshll.u32 %v10372_v58, 16  ;;  %v15576_v38 = vld [vmem:[#allocation12_spill] sm:$0xff] }
 0x27a   : > { %v8627_v36 = vrot.slane %v15571_v22, 6  ;;  %v8624_v33 = vor.u32 %v8623_v40, %v8620_v4  ;;  %v4058_v52 = vshrl.u32 %v14450_v57, 16  ;;  %v4061_v16 = vshll.u32 %v14450_v57, 16 }
 0x27b   : > { %v4056_v41 = vsel %vm13193_vm10, %v4047_v0, %v4055_v56  ;;  %v8634_v34 = vrot.slane %v8632_v46, 5  ;;  %v8637_v24 = vrot.slane %v8635_v49, 6  ;;  %v15573_v45 = vshrl.u32 %v15572_v11, 16 }
 0x27c   : > { %v8628_v29 = vor.u32 %v8627_v36, %v8626_v12  ;;  %v9851_v3 = vcombine.low %v4046_v19, %v4056_v41  ;;  %v8625_v44 = vrot.slane %v8624_v33, 4  ;;  %v4060_v30 = vrot.slane %v4058_v52, 5  ;;  %v15579_v41 = vld [vmem:[#allocation6_spill] sm:$0xff] }
 0x27d   : > { %v4063_v26 = vrot.slane %v4061_v16, 6  ;;  %v4066_v35 = vrot.slane %v15573_v45, 5  ;;  %v8638_v20 = vor.u32 %v8637_v24, %v8634_v34  ;;  %v15574_v5 = vshll.u32 %v15572_v11, 16 }
 0x27e   : > { %v8630_v1 = vrot.slane %v8628_v29, 4  ;;  %11005 = vmatprep.mubr.msk.bf16.mxu1 %vm692_vm1, %v9851_v3  ;;  %v8629_v14 = vsel %vm13193_vm10, %v8625_v44, %v8628_v29  ;;  %v4072_v2 = vshrl.u32 %v9834_v9, 16  ;;  %v4075_v13 = vshll.u32 %v9834_v9, 16  ;;  %v9835_v3 = vld [vmem:[%s12038_s26 + $0x5c] sm:$0x3] }
 0x27f   : > { %v4067_v57 = vrot.slane %v15574_v5, 6  ;;  %v4064_v17 = vor.u32 %v4063_v26, %v4060_v30  ;;  %v8641_v48 = vshrl.u32 %v15575_v54, 16  ;;  %v8644_v15 = vshll.u32 %v15575_v54, 16  ;;  %v15580_v30 = vld [vmem:[#allocation13_spill] sm:$0xff] }
 0x280   : > { %v8639_v61 = vsel %vm13193_vm10, %v8630_v1, %v8638_v20  ;;  %v4074_v58 = vrot.slane %v4072_v2, 5  ;;  %v15577_v28 = vshrl.u32 %v15576_v38, 16  ;;  %v4077_v56 = vrot.slane %v4075_v13, 6 }
 0x281   : > { %v4068_v27 = vor.u32 %v4067_v57, %v4066_v35  ;;  %v10390_v40 = vcombine.low %v8629_v14, %v8639_v61  ;;  %v4065_v0 = vrot.slane %v4064_v17, 4  ;;  %v8643_v8 = vrot.slane %v8641_v48, 5 }
 0x282   : > { %v8649_v4 = vrot.slane %v15577_v28, 5  ;;  %v8646_v12 = vrot.slane %v8644_v15, 6  ;;  %v15578_v22 = vshll.u32 %v15576_v38, 16  ;;  %v8655_v19 = vshrl.u32 %v10373_v42, 16  ;;  %v10374_v28 = vld [vmem:[%s12038_s26 + $0x98] sm:$0x3] }
 0x283   : > { %v4070_v32 = vrot.slane %v4068_v27, 4  ;;  %11282 = vmatmul.mubr.msk.bf16.gmra.mrb[12].mxu0 %vm692_vm1, %v10390_v40  ;;  %v4069_v33 = vsel %vm13193_vm10, %v4065_v0, %v4068_v27  ;;  %v4078_v46 = vor.u32 %v4077_v56, %v4074_v58  ;;  %v8658_v49 = vshll.u32 %v10373_v42, 16 }
 0x284   : > { %v8650_v36 = vrot.slane %v15578_v22, 6  ;;  %v4081_v29 = vshrl.u32 %v15579_v41, 16  ;;  %v8647_v9 = vor.u32 %v8646_v12, %v8643_v8  ;;  %v8657_v16 = vrot.slane %v8655_v19, 5  ;;  %v15583_v12 = vld [vmem:[#allocation25_spill] sm:$0xff] }
 0x285   : > { %v4084_v44 = vshll.u32 %v15579_v41, 16  ;;  %v4079_v34 = vsel %vm13193_vm10, %v4070_v32, %v4078_v46  ;;  %v8660_v24 = vrot.slane %v8658_v49, 6  ;;  %v15581_v26 = vshrl.u32 %v15580_v30, 16 }
 0x286   : > { %v8651_v52 = vor.u32 %v8650_v36, %v8649_v4  ;;  %v4083_v1 = vrot.slane %v4081_v29, 5  ;;  %v9852_v45 = vcombine.low %v4069_v33, %v4079_v34  ;;  %v8648_v35 = vrot.slane %v8647_v9, 4 }
 0x287   : > { %v4089_v11 = vrot.slane %v15581_v26, 5  ;;  %v4086_v20 = vrot.slane %v4084_v44, 6  ;;  %v8661_v5 = vor.u32 %v8660_v24, %v8657_v16  ;;  %v15582_v57 = vshll.u32 %v15580_v30, 16 }
 0x288   : > { %v8653_v14 = vrot.slane %v8651_v52, 4  ;;  %v4095_v17 = vshrl.u32 %v9835_v3, 16  ;;  %v4098_v13 = vshll.u32 %v9835_v3, 16  ;;  %11006 = vmatmul.mubr.msk.bf16.gmra.mrb[8].mxu1 %vm692_vm1, %v9852_v45  ;;  %v8652_v42 = vsel %vm13193_vm10, %v8648_v35, %v8651_v52  ;;  %v9836_v52 = vld [vmem:[%s12038_s26 + $0x68] sm:$0x3] }
 0x289   : > { %v4090_v2 = vrot.slane %v15582_v57, 6  ;;  %v4087_v54 = vor.u32 %v4086_v20, %v4083_v1  ;;  %v8664_v48 = vshrl.u32 %v14477_v37, 16  ;;  %v8667_v15 = vshll.u32 %v14477_v37, 16 }
 0x28a   : > { %v8662_v61 = vsel %vm13193_vm10, %v8653_v14, %v8661_v5  ;;  %v4097_v58 = vrot.slane %v4095_v17, 5  ;;  %v4100_v38 = vrot.slane %v4098_v13, 6  ;;  %v15584_v22 = vshrl.u32 %v15583_v12, 16  ;;  %v10375_v13 = vld [vmem:[%s12038_s26 + $0xa4] sm:$0x3] }
 0x28b   : > { %v4091_v27 = vor.u32 %v4090_v2, %v4089_v11  ;;  %v10391_v4 = vcombine.low %v8652_v42, %v8662_v61  ;;  %v4088_v40 = vrot.slane %v4087_v54, 4  ;;  %v8666_v0 = vrot.slane %v8664_v48, 5 }
 0x28c   : > { %v8669_v56 = vrot.slane %v8667_v15, 6  ;;  %v4101_v32 = vor.u32 %v4100_v38, %v4097_v58  ;;  %v8672_v36 = vrot.slane %v15584_v22, 5  ;;  %v15585_v19 = vshll.u32 %v15583_v12, 16 }
 0x28d   : > { %v4093_v8 = vrot.slane %v4091_v27, 4  ;;  %11285 = vmatprep.mubr.msk.bf16.mxu0 %vm692_vm1, %v10391_v4  ;;  %v4092_v33 = vsel %vm13193_vm10, %v4088_v40, %v4091_v27  ;;  %v8678_v49 = vshrl.u32 %v10374_v28, 16  ;;  %v8681_v41 = vshll.u32 %v10374_v28, 16 }
 0x28e   : > { %v8673_v37 = vrot.slane %v15585_v19, 6  ;;  %v8670_v46 = vor.u32 %v8669_v56, %v8666_v0  ;;  %v4104_v16 = vshrl.u32 %v14494_v43, 16  ;;  %v4107_v3 = vshll.u32 %v14494_v43, 16 }
 0x28f   : > { %v4102_v29 = vsel %vm13193_vm10, %v4093_v8, %v4101_v32  ;;  %v8680_v24 = vrot.slane %v8678_v49, 5  ;;  %v8683_v1 = vrot.slane %v8681_v41, 6  ;;  %v15586_v45 = vshrl.u32 %v13973_v60, 16 }
 0x290   : > { %v8674_v9 = vor.u32 %v8673_v37, %v8672_v36  ;;  %v9853_v44 = vcombine.low %v4092_v33, %v4102_v29  ;;  %v8671_v34 = vrot.slane %v8670_v46, 4  ;;  %v4106_v26 = vrot.slane %v4104_v16, 5  ;;  %v9837_v46 = vld [vmem:[%s12038_s26 + $0x74] sm:$0x3] }
 0x291   : > { %v4109_v11 = vrot.slane %v4107_v3, 6  ;;  %v4112_v35 = vrot.slane %v15586_v45, 5  ;;  %v8684_v20 = vor.u32 %v8683_v1, %v8680_v24  ;;  %v15587_v5 = vshll.u32 %v13973_v60, 16 }
 0x292   : > { %v8676_v30 = vrot.slane %v8674_v9, 4  ;;  %11009 = vmatprep.mubr.msk.bf16.mxu1 %vm692_vm1, %v9853_v44  ;;  %v8675_v14 = vsel %vm13193_vm10, %v8671_v34, %v8674_v9  ;;  %v4118_v57 = vshrl.u32 %v9836_v52, 16  ;;  %v4121_v17 = vshll.u32 %v9836_v52, 16 }
 0x293   : > { %v4113_v43 = vrot.slane %v15587_v5, 6  ;;  %v4110_v2 = vor.u32 %v4109_v11, %v4106_v26  ;;  %v8687_v42 = vshrl.u32 %v14501_v59, 16  ;;  %v8690_v54 = vshll.u32 %v14501_v59, 16 }
 0x294   : > { %v8685_v48 = vsel %vm13193_vm10, %v8676_v30, %v8684_v20  ;;  %v4120_v61 = vrot.slane %v4118_v57, 5  ;;  %v15588_v27 = vshrl.u32 %v13999_v18, 16  ;;  %v4123_v28 = vrot.slane %v4121_v17, 6  ;;  %v10376_v17 = vld [vmem:[%s12038_s26 + $0xb0] sm:$0x3] }
 0x295   : > { %v4114_v15 = vor.u32 %v4113_v43, %v4112_v35  ;;  %v10392_v38 = vcombine.low %v8675_v14, %v8685_v48  ;;  %v4111_v60 = vrot.slane %v4110_v2, 4  ;;  %v8689_v4 = vrot.slane %v8687_v42, 5  ;;  %v11966_v35 = vld [vmem:[%s12038_s26 + $0xa8] sm:$0xe] }
 0x296   : > { %v8695_v58 = vrot.slane %v15588_v27, 5  ;;  %v8692_v0 = vrot.slane %v8690_v54, 6  ;;  %v15589_v56 = vshll.u32 %v13999_v18, 16  ;;  %v8701_v32 = vshrl.u32 %v10375_v13, 16 }
 0x297   : > { %v4116_v40 = vrot.slane %v4114_v15, 4  ;;  %11286 = vmatmul.mubr.msk.bf16.gmra.mrb[16].mxu0 %vm692_vm1, %v10392_v38  ;;  %v4115_v59 = vsel %vm13193_vm10, %v4111_v60, %v4114_v15  ;;  %v4124_v12 = vor.u32 %v4123_v28, %v4120_v61  ;;  %v8704_v22 = vshll.u32 %v10375_v13, 16 }
 0x298   : > { %v8696_v8 = vrot.slane %v15589_v56, 6  ;;  %v4127_v36 = vshrl.u32 %v14513_v47, 16  ;;  %v8693_v19 = vor.u32 %v8692_v0, %v8689_v4  ;;  %v8703_v33 = vrot.slane %v8701_v32, 5  ;;  %v11967_v32 = vld [vmem:[%s12038_s26 + $0x78] sm:$0xe] }
 0x299   : > { %v4130_v49 = vshll.u32 %v14513_v47, 16  ;;  %v4125_v18 = vsel %vm13193_vm10, %v4116_v40, %v4124_v12  ;;  %v8706_v41 = vrot.slane %v8704_v22, 6  ;;  %v15590_v9 = vshrl.u32 %v14025_v6, 16 }
 0x29a   : > { %v8697_v37 = vor.u32 %v8696_v8, %v8695_v58  ;;  %v4129_v29 = vrot.slane %v4127_v36, 5  ;;  %v9854_v16 = vcombine.low %v4115_v59, %v4125_v18  ;;  %v8694_v3 = vrot.slane %v8693_v19, 4  ;;  %v9838_v8 = vld [vmem:[%s12038_s26 + $0x80] sm:$0x3] }
 0x29b   : > { %v4135_v52 = vrot.slane %v15590_v9, 5  ;;  %v4132_v34 = vrot.slane %v4130_v49, 6  ;;  %v8707_v24 = vor.u32 %v8706_v41, %v8703_v33  ;;  %v15591_v1 = vshll.u32 %v14025_v6, 16 }
 0x29c   : > { %v8699_v44 = vrot.slane %v8697_v37, 4  ;;  %v4141_v26 = vshrl.u32 %v9837_v46, 16  ;;  %v4144_v47 = vshll.u32 %v9837_v46, 16  ;;  %11010 = vmatmul.mubr.msk.bf16.gmra.mrb[12].mxu1 %vm692_vm1, %v9854_v16  ;;  %v8698_v11 = vsel %vm13193_vm10, %v8694_v3, %v8697_v37 }
 0x29d   : > { %v4136_v30 = vrot.slane %v15591_v1, 6  ;;  %v4133_v45 = vor.u32 %v4132_v34, %v4129_v29  ;;  %v8710_v14 = vshrl.u32 %v11966_v35, 16  ;;  %v8713_v20 = vshll.u32 %v11966_v35, 16  ;;  %v10377_v34 = vld [vmem:[%s12038_s26 + $0xbc] sm:$0x3] }
 0x29e   : > { %v8708_v5 = vsel %vm13193_vm10, %v8699_v44, %v8707_v24  ;;  %v4143_v57 = vrot.slane %v4141_v26, 5  ;;  %v4146_v2 = vrot.slane %v4144_v47, 6  ;;  %v15592_v61 = vshrl.u32 %v14058_v55, 16  ;;  %v11968_v24 = vld [vmem:[%s12038_s26 + $0xb4] sm:$0xe] }
 0x29f   : > { %v4137_v43 = vor.u32 %v4136_v30, %v4135_v52  ;;  %v10393_v6 = vcombine.low %v8698_v11, %v8708_v5  ;;  %v4134_v13 = vrot.slane %v4133_v45, 4  ;;  %v8712_v42 = vrot.slane %v8710_v14, 5 }
 0x2a0   : > { %v8715_v54 = vrot.slane %v8713_v20, 6  ;;  %v4147_v15 = vor.u32 %v4146_v2, %v4143_v57  ;;  %v8718_v27 = vrot.slane %v15592_v61, 5  ;;  %v15593_v58 = vshll.u32 %v14058_v55, 16 }
 0x2a1   : > { %v4139_v48 = vrot.slane %v4137_v43, 4  ;;  %11289 = vmatprep.mubr.msk.bf16.mxu0 %vm692_vm1, %v10393_v6  ;;  %v4138_v60 = vsel %vm13193_vm10, %v4134_v13, %v4137_v43  ;;  %v8724_v4 = vshrl.u32 %v10376_v17, 16  ;;  %v8727_v40 = vshll.u32 %v10376_v17, 16 }
 0x2a2   : > { %v8719_v38 = vrot.slane %v15593_v58, 6  ;;  %v8716_v28 = vor.u32 %v8715_v54, %v8712_v42  ;;  %v4150_v59 = vshrl.u32 %v11967_v32, 16  ;;  %v4153_v12 = vshll.u32 %v11967_v32, 16 }
 0x2a3   : > { %v4148_v0 = vsel %vm13193_vm10, %v4139_v48, %v4147_v15  ;;  %v8726_v36 = vrot.slane %v8724_v4, 5  ;;  %v8729_v19 = vrot.slane %v8727_v40, 6  ;;  %v15594_v49 = vshrl.u32 %v14080_v39, 16  ;;  %v11969_v48 = vld [vmem:[%s12038_s26 + $0x84] sm:$0xe] }
 0x2a4   : > { %v8720_v56 = vor.u32 %v8719_v38, %v8718_v27  ;;  %v9855_v22 = vcombine.low %v4138_v60, %v4148_v0  ;;  %v8717_v55 = vrot.slane %v8716_v28, 4  ;;  %v4152_v33 = vrot.slane %v4150_v59, 5  ;;  %v9839_v38 = vld [vmem:[%s12038_s26 + $0x8c] sm:$0x3] }
 0x2a5   : > { %v4155_v46 = vrot.slane %v4153_v12, 6  ;;  %v4158_v18 = vrot.slane %v15594_v49, 5  ;;  %v8730_v29 = vor.u32 %v8729_v19, %v8726_v36  ;;  %v15595_v9 = vshll.u32 %v14080_v39, 16 }
 0x2a6   : > { %v8722_v37 = vrot.slane %v8720_v56, 4  ;;  %11013 = vmatprep.mubr.msk.bf16.mxu1 %vm692_vm1, %v9855_v22  ;;  %v8721_v41 = vsel %vm13193_vm10, %v8717_v55, %v8720_v56  ;;  %v4164_v16 = vshrl.u32 %v9838_v8, 16  ;;  %v4167_v44 = vshll.u32 %v9838_v8, 16 }
 0x2a7   : > { %v4159_v52 = vrot.slane %v15595_v9, 6  ;;  %v4156_v3 = vor.u32 %v4155_v46, %v4152_v33  ;;  %v8733_v1 = vshrl.u32 %v11968_v24, 16  ;;  %v8736_v30 = vshll.u32 %v11968_v24, 16  ;;  %v11970_v46 = vld [vmem:[%s12038_s26 + $0xc0] sm:$0xe] }
 0x2a8   : > { %v8731_v26 = vsel %vm13193_vm10, %v8722_v37, %v8730_v29  ;;  %v4166_v11 = vrot.slane %v4164_v16, 5  ;;  %v15596_v45 = vshrl.u32 %v14104_v50, 16  ;;  %v4169_v39 = vrot.slane %v4167_v44, 6  ;;  %v10378_v16 = vld [vmem:[%s12038_s26 + $0xc8] sm:$0x3] }
 0x2a9   : > { %v4160_v47 = vor.u32 %v4159_v52, %v4158_v18  ;;  %v10394_v14 = vcombine.low %v8721_v41, %v8731_v26  ;;  %v4157_v20 = vrot.slane %v4156_v3, 4  ;;  %v8735_v5 = vrot.slane %v8733_v1, 5 }
 0x2aa   : > { %v8741_v35 = vrot.slane %v15596_v45, 5  ;;  %v8738_v57 = vrot.slane %v8736_v30, 6  ;;  %v15597_v2 = vshll.u32 %v14104_v50, 16  ;;  %v8747_v6 = vshrl.u32 %v10377_v34, 16 }
 0x2ab   : > { %v4162_v43 = vrot.slane %v4160_v47, 4  ;;  %11290 = vmatmul.mubr.msk.bf16.gmra.mrb[20].mxu0 %vm692_vm1, %v10394_v14  ;;  %v4161_v13 = vsel %vm13193_vm10, %v4157_v20, %v4160_v47  ;;  %v4170_v42 = vor.u32 %v4169_v39, %v4166_v11  ;;  %v8750_v54 = vshll.u32 %v10377_v34, 16 }
 0x2ac   : > { %v8742_v17 = vrot.slane %v15597_v2, 6  ;;  %v4173_v15 = vshrl.u32 %v11969_v48, 16  ;;  %v8739_v61 = vor.u32 %v8738_v57, %v8735_v5  ;;  %v8749_v58 = vrot.slane %v8747_v6, 5  ;;  %v11971_v57 = vld [vmem:[%s12038_s26 + $0x90] sm:$0xe] }
 0x2ad   : > { %v4176_v60 = vshll.u32 %v11969_v48, 16  ;;  %v4171_v50 = vsel %vm13193_vm10, %v4162_v43, %v4170_v42  ;;  %v8752_v28 = vrot.slane %v8750_v54, 6  ;;  %v15598_v40 = vshrl.u32 %v14123_v10, 16  ;;  %v9840_v43 = vld [vmem:[%s12038_s26 + $0x98] sm:$0x3] }
 0x2ae   : > { %v8743_v27 = vor.u32 %v8742_v17, %v8741_v35  ;;  %v4175_v4 = vrot.slane %v4173_v15, 5  ;;  %v9856_v56 = vcombine.low %v4161_v13, %v4171_v50  ;;  %v8740_v8 = vrot.slane %v8739_v61, 4 }
 0x2af   : > { %v4181_v0 = vrot.slane %v15598_v40, 5  ;;  %v4178_v59 = vrot.slane %v4176_v60, 6  ;;  %v8753_v12 = vor.u32 %v8752_v28, %v8749_v58  ;;  %v15599_v22 = vshll.u32 %v14123_v10, 16 }
 0x2b0   : > { %v8745_v32 = vrot.slane %v8743_v27, 4  ;;  %v4187_v36 = vshrl.u32 %v9839_v38, 16  ;;  %v4190_v19 = vshll.u32 %v9839_v38, 16  ;;  %11014 = vmatmul.mubr.msk.bf16.gmra.mrb[16].mxu1 %vm692_vm1, %v9856_v56  ;;  %v8744_v37 = vsel %vm13193_vm10, %v8740_v8, %v8743_v27  ;;  %v11972_v56 = vld [vmem:[%s12038_s26 + $0xcc] sm:$0xe] }
 0x2b1   : > { %v4182_v55 = vrot.slane %v15599_v22, 6  ;;  %v4179_v33 = vor.u32 %v4178_v59, %v4175_v4  ;;  %v8756_v49 = vshrl.u32 %v11970_v46, 16  ;;  %v8759_v18 = vshll.u32 %v11970_v46, 16 }
 0x2b2   : > { %v8754_v41 = vsel %vm13193_vm10, %v8745_v32, %v8753_v12  ;;  %v4189_v9 = vrot.slane %v4187_v36, 5  ;;  %v4192_v52 = vrot.slane %v4190_v19, 6  ;;  %v15600_v30 = vshrl.u32 %v14148_v23, 16 }
 0x2b3   : > { %v4183_v29 = vor.u32 %v4182_v55, %v4181_v0  ;;  %v10395_v10 = vcombine.low %v8744_v37, %v8754_v41  ;;  %v4180_v3 = vrot.slane %v4179_v33, 4  ;;  %v8758_v44 = vrot.slane %v8756_v49, 5  ;;  %v10379_v0 = vld [vmem:[%s12038_s26 + $0xd4] sm:$0x3] }
 0x2b4   : > { %v8761_v34 = vrot.slane %v8759_v18, 6  ;;  %v4193_v1 = vor.u32 %v4192_v52, %v4189_v9  ;;  %v8764_v26 = vrot.slane %v15600_v30, 5  ;;  %v15601_v47 = vshll.u32 %v14148_v23, 16 }
 0x2b5   : > { %v4185_v24 = vrot.slane %v4183_v29, 4  ;;  %11293 = vmatprep.mubr.msk.bf16.mxu0 %vm692_vm1, %v10395_v10  ;;  %v4184_v45 = vsel %vm13193_vm10, %v4180_v3, %v4183_v29  ;;  %v8770_v14 = vshrl.u32 %v10378_v16, 16  ;;  %v8773_v20 = vshll.u32 %v10378_v16, 16  ;;  %v11973_v10 = vld [vmem:[%s12038_s26 + $0x9c] sm:$0xe] }
 0x2b6   : > { %v8765_v11 = vrot.slane %v15601_v47, 6  ;;  %v8762_v35 = vor.u32 %v8761_v34, %v8758_v44  ;;  %v4196_v2 = vshrl.u32 %v11971_v57, 16  ;;  %v4199_v17 = vshll.u32 %v11971_v57, 16 }
 0x2b7   : > { %v4194_v39 = vsel %vm13193_vm10, %v4185_v24, %v4193_v1  ;;  %v8772_v13 = vrot.slane %v8770_v14, 5  ;;  %v8775_v42 = vrot.slane %v8773_v20, 6  ;;  %v15602_v61 = vshrl.u32 %v14169_v31, 16  ;;  %v9841_v1 = vld [vmem:[%s12038_s26 + $0xa4] sm:$0x3] }
 0x2b8   : > { %v8766_v5 = vor.u32 %v8765_v11, %v8764_v26  ;;  %v9857_v6 = vcombine.low %v4184_v45, %v4194_v39  ;;  %v8763_v23 = vrot.slane %v8762_v35, 4  ;;  %v4198_v48 = vrot.slane %v4196_v2, 5 }
 0x2b9   : > { %v4201_v15 = vrot.slane %v4199_v17, 6  ;;  %v4204_v27 = vrot.slane %v15602_v61, 5  ;;  %v8776_v38 = vor.u32 %v8775_v42, %v8772_v13  ;;  %v15603_v60 = vshll.u32 %v14169_v31, 16  ;;  %v11974_v13 = vld [vmem:[%s12038_s26 + $0xd8] sm:$0xe] }
 0x2ba   : > { %v8768_v54 = vrot.slane %v8766_v5, 4  ;;  %11017 = vmatprep.mubr.msk.bf16.mxu1 %vm692_vm1, %v9857_v6  ;;  %v8767_v58 = vsel %vm13193_vm10, %v8763_v23, %v8766_v5  ;;  %v4210_v28 = vshrl.u32 %v9840_v43, 16  ;;  %v4213_v40 = vshll.u32 %v9840_v43, 16 }
 0x2bb   : > { %v4205_v50 = vrot.slane %v15603_v60, 6  ;;  %v4202_v4 = vor.u32 %v4201_v15, %v4198_v48  ;;  %v8779_v8 = vshrl.u32 %v11972_v56, 16  ;;  %v8782_v32 = vshll.u32 %v11972_v56, 16 }
 0x2bc   : > { %v8777_v59 = vsel %vm13193_vm10, %v8768_v54, %v8776_v38  ;;  %v4212_v22 = vrot.slane %v4210_v28, 5  ;;  %v15604_v55 = vshrl.u32 %v14188_v25, 16  ;;  %v4215_v31 = vrot.slane %v4213_v40, 6 }
 0x2bd   : > { %v4206_v12 = vor.u32 %v4205_v50, %v4204_v27  ;;  %v10396_v19 = vcombine.low %v8767_v58, %v8777_v59  ;;  %v4203_v37 = vrot.slane %v4202_v4, 4  ;;  %v8781_v33 = vrot.slane %v8779_v8, 5  ;;  %v10380_v58 = vld [vmem:[%s12038_s26 + $0xe0] sm:$0x3] }
 0x2be   : > { %v8787_v36 = vrot.slane %v15604_v55, 5  ;;  %v8784_v49 = vrot.slane %v8782_v32, 6  ;;  %v15605_v18 = vshll.u32 %v14188_v25, 16  ;;  %v8793_v29 = vshrl.u32 %v10379_v0, 16 }
 0x2bf   : > { %v4208_v46 = vrot.slane %v4206_v12, 4  ;;  %11294 = vmatmul.mubr.msk.bf16.gmra.mrb[24].mxu0 %vm692_vm1, %v10396_v19  ;;  %v4207_v9 = vsel %vm13193_vm10, %v4203_v37, %v4206_v12  ;;  %v4216_v52 = vor.u32 %v4215_v31, %v4212_v22  ;;  %v8796_v16 = vshll.u32 %v10379_v0, 16  ;;  %v9842_v19 = vld [vmem:[%s12038_s26 + $0xb0] sm:$0x3]  ;;  %v11975_v37 = vld [vmem:[%s12038_s26 + $0xa8] sm:$0xe] }
 0x2c0   : > { %v8788_v41 = vrot.slane %v15605_v18, 6  ;;  %v4219_v3 = vshrl.u32 %v11973_v10, 16  ;;  %v8785_v44 = vor.u32 %v8784_v49, %v8781_v33  ;;  %v8795_v24 = vrot.slane %v8793_v29, 5 }
 0x2c1   : > { %v4222_v30 = vshll.u32 %v11973_v10, 16  ;;  %v4217_v25 = vsel %vm13193_vm10, %v4208_v46, %v4216_v52  ;;  %v8798_v26 = vrot.slane %v8796_v16, 6  ;;  %v15606_v11 = vshrl.u32 %v14209_v62, 16 }
 0x2c2   : > { %v8789_v34 = vor.u32 %v8788_v41, %v8787_v36  ;;  %v4221_v47 = vrot.slane %v4219_v3, 5  ;;  %v9858_v35 = vcombine.low %v4207_v9, %v4217_v25  ;;  %v8786_v14 = vrot.slane %v8785_v44, 4  ;;  %v9843_v25 = vld [vmem:[%s12038_s26 + $0xbc] sm:$0x3] }
 0x2c3   : > { %v4227_v45 = vrot.slane %v15606_v11, 5  ;;  %v4224_v39 = vrot.slane %v4222_v30, 6  ;;  %v8799_v5 = vor.u32 %v8798_v26, %v8795_v24  ;;  %v15607_v43 = vshll.u32 %v14209_v62, 16  ;;  %v11976_v26 = vld [vmem:[%s12038_s26 + $0xb4] sm:$0xe] }
 0x2c4   : > { %v8791_v20 = vrot.slane %v8789_v34, 4  ;;  %v4233_v2 = vshrl.u32 %v9841_v1, 16  ;;  %v4236_v17 = vshll.u32 %v9841_v1, 16  ;;  %11018 = vmatmul.mubr.msk.bf16.gmra.mrb[20].mxu1 %vm692_vm1, %v9858_v35  ;;  %v8790_v6 = vsel %vm13193_vm10, %v8786_v14, %v8789_v34 }
 0x2c5   : > { %v4228_v57 = vrot.slane %v15607_v43, 6  ;;  %v4225_v23 = vor.u32 %v4224_v39, %v4221_v47  ;;  %v8802_v42 = vshrl.u32 %v11974_v13, 16  ;;  %v8805_v54 = vshll.u32 %v11974_v13, 16 }
 0x2c6   : > { %v8800_v48 = vsel %vm13193_vm10, %v8791_v20, %v8799_v5  ;;  %v4235_v61 = vrot.slane %v4233_v2, 5  ;;  %v4238_v27 = vrot.slane %v4236_v17, 6  ;;  %v15608_v40 = vshrl.u32 %v14230_v7, 16 }
 0x2c7   : > { %v4229_v15 = vor.u32 %v4228_v57, %v4227_v45  ;;  %v10397_v62 = vcombine.low %v8790_v6, %v8800_v48  ;;  %v4226_v38 = vrot.slane %v4225_v23, 4  ;;  %v8804_v60 = vrot.slane %v8802_v42, 5 }
 0x2c8   : > { %v8807_v50 = vrot.slane %v8805_v54, 6  ;;  %v4239_v4 = vor.u32 %v4238_v27, %v4235_v61  ;;  %v8810_v0 = vrot.slane %v15608_v40, 5  ;;  %v15609_v56 = vshll.u32 %v14230_v7, 16 }
 0x2c9   : > { %v4231_v28 = vrot.slane %v4229_v15, 4  ;;  %11297 = vmatprep.mubr.msk.bf16.mxu0 %vm692_vm1, %v10397_v62  ;;  %v4230_v32 = vsel %vm13193_vm10, %v4226_v38, %v4229_v15  ;;  %v8816_v12 = vshrl.u32 %v10380_v58, 16  ;;  %v8819_v22 = vshll.u32 %v10380_v58, 16  ;;  %v11977_v15 = vld [vmem:[%s12038_s26 + $0xc0] sm:$0xe] }
 0x2ca   : > { %v8811_v8 = vrot.slane %v15609_v56, 6  ;;  %v8808_v59 = vor.u32 %v8807_v50, %v8804_v60  ;;  %v4242_v31 = vshrl.u32 %v11975_v37, 16  ;;  %v4245_v33 = vshll.u32 %v11975_v37, 16  ;;  %v9844_v38 = vld [vmem:[%s12038_s26 + $0xc8] sm:$0x3] }
 0x2cb   : > { %v4240_v55 = vsel %vm13193_vm10, %v4231_v28, %v4239_v4  ;;  %v8818_v49 = vrot.slane %v8816_v12, 5  ;;  %v8821_v18 = vrot.slane %v8819_v22, 6  ;;  %v15610_v52 = vshrl.u32 %v14247_v51, 16 }
 0x2cc   : > { %v8812_v36 = vor.u32 %v8811_v8, %v8810_v0  ;;  %v9859_v46 = vcombine.low %v4230_v32, %v4240_v55  ;;  %v8809_v7 = vrot.slane %v8808_v59, 4  ;;  %v4244_v29 = vrot.slane %v4242_v31, 5 }
 0x2cd   : > { %v4247_v9 = vrot.slane %v4245_v33, 6  ;;  %v4250_v16 = vrot.slane %v15610_v52, 5  ;;  %v8822_v3 = vor.u32 %v8821_v18, %v8818_v49  ;;  %v15611_v44 = vshll.u32 %v14247_v51, 16 }
 0x2ce   : > { %v8814_v41 = vrot.slane %v8812_v36, 4  ;;  %11021 = vmatprep.mubr.msk.bf16.mxu1 %vm692_vm1, %v9859_v46  ;;  %v8813_v10 = vsel %vm13193_vm10, %v8809_v7, %v8812_v36  ;;  %v4256_v24 = vshrl.u32 %v9842_v19, 16  ;;  %v4259_v30 = vshll.u32 %v9842_v19, 16 }
 0x2cf   : > { %v4251_v34 = vrot.slane %v15611_v44, 6  ;;  %v4248_v1 = vor.u32 %v4247_v9, %v4244_v29  ;;  %v4265_v47 = vshrl.u32 %v11976_v26, 16  ;;  %v4268_v11 = vshll.u32 %v11976_v26, 16  ;;  %v15013_v26 = vld [vmem:[%s15159_s2] ss:$0 sm:$0xff] }
 0x2d0   : > { %v8823_v45 = vsel %vm13193_vm10, %v8814_v41, %v8822_v3  ;;  %v4258_v14 = vrot.slane %v4256_v24, 5  ;;  %v15612_v20 = vshrl.u32 %v14282_v63, 16  ;;  %v4261_v51 = vrot.slane %v4259_v30, 6 }
 0x2d1   : > { %v4252_v35 = vor.u32 %v4251_v34, %v4250_v16  ;;  %v10398_v5 = vcombine.low %v8813_v10, %v8823_v45  ;;  %v4249_v43 = vrot.slane %v4248_v1, 4  ;;  %v4267_v57 = vrot.slane %v4265_v47, 5 }
 0x2d2   : > { %v4273_v39 = vrot.slane %v15612_v20, 5  ;;  %v4270_v17 = vrot.slane %v4268_v11, 6  ;;  %v15613_v6 = vshll.u32 %v14282_v63, 16  ;;  %v4279_v13 = vshrl.u32 %v9843_v25, 16  ;;  %v15018_v11 = vld [vmem:[%s15160_s3] ss:$0 sm:$0xff] }
 0x2d3   : > { %v4254_v2 = vrot.slane %v4252_v35, 4  ;;  %11298 = vmatmul.mubr.msk.bf16.gmra.mrb[28].mxu0 %vm692_vm1, %v10398_v5  ;;  %v4253_v42 = vsel %vm13193_vm10, %v4249_v43, %v4252_v35  ;;  %v4262_v54 = vor.u32 %v4261_v51, %v4258_v14  ;;  %v4282_v48 = vshll.u32 %v9843_v25, 16 }
 0x2d4   : > { %v4274_v23 = vrot.slane %v15613_v6, 6  ;;  %v4288_v61 = vshrl.u32 %v11977_v15, 16  ;;  %v4271_v27 = vor.u32 %v4270_v17, %v4267_v57  ;;  %v4281_v62 = vrot.slane %v4279_v13, 5 }
 0x2d5   : > { %v4291_v60 = vshll.u32 %v11977_v15, 16  ;;  %v4263_v50 = vsel %vm13193_vm10, %v4254_v2, %v4262_v54  ;;  %v4284_v63 = vrot.slane %v4282_v48, 6  ;;  %v15614_v4 = vshrl.u32 %v15532_v21, 16 }
 0x2d6   : > { %v4275_v58 = vor.u32 %v4274_v23, %v4273_v39  ;;  %v4290_v28 = vrot.slane %v4288_v61, 5  ;;  %v9860_v0 = vcombine.low %v4253_v42, %v4263_v50  ;;  %v4272_v56 = vrot.slane %v4271_v27, 4 }
 0x2d7   : > { %v4296_v40 = vrot.slane %v15614_v4, 5  ;;  %v4293_v32 = vrot.slane %v4291_v60, 6  ;;  %v4285_v59 = vor.u32 %v4284_v63, %v4281_v62  ;;  %v15615_v12 = vshll.u32 %v15532_v21, 16 }
 0x2d8   : > { %v4277_v8 = vrot.slane %v4275_v58, 4  ;;  %v4302_v55 = vshrl.u32 %v9844_v38, 16  ;;  %v4305_v36 = vshll.u32 %v9844_v38, 16  ;;  %11022 = vmatmul.mubr.msk.bf16.gmra.mrb[24].mxu1 %vm692_vm1, %v9860_v0  ;;  %v4276_v19 = vsel %vm13193_vm10, %v4272_v56, %v4275_v58 }
 0x2d9   : > { %v4297_v22 = vrot.slane %v15615_v12, 6  ;;  %v4294_v37 = vor.u32 %v4293_v32, %v4290_v28 }
 0x2da   : > { %v4286_v31 = vsel %vm13193_vm10, %v4277_v8, %v4285_v59  ;;  %v4304_v46 = vrot.slane %v4302_v55, 5  ;;  %v4307_v7 = vrot.slane %v4305_v36, 6 }
 0x2db   : > { %v4298_v33 = vor.u32 %v4297_v22, %v4296_v40  ;;  %v9861_v49 = vcombine.low %v4276_v19, %v4286_v31  ;;  %v4295_v18 = vrot.slane %v4294_v37, 4 }
 0x2dc   : > { %v4308_v29 = vor.u32 %v4307_v7, %v4304_v46 }
 0x2dd   : > { %v4300_v41 = vrot.slane %v4298_v33, 4  ;;  %11025 = vmatprep.mubr.msk.bf16.mxu1 %vm692_vm1, %v9861_v49  ;;  %v4299_v21 = vsel %vm13193_vm10, %v4295_v18, %v4298_v33 }
 0x2df   : > { %v4309_v9 = vsel %vm13193_vm10, %v4300_v41, %v4308_v29 }
 0x2e0   : > { %v9862_v52 = vcombine.low %v4299_v21, %v4309_v9 }
 0x2e2   : > { %11026 = vmatmul.mubr.msk.bf16.gmra.mrb[28].mxu1 %vm692_vm1, %v9862_v52 }
 0x31d   : > { %v11271_v16 = vpop.f32.mrb[0].mxu0 }
 0x31e   : > { %v8965_v10 = vpop.f32.mrb[1].mxu0 }
 0x31f   : > { %v11272_v3 = vpop.f32.mrb[2].mxu0 }
 0x320   : > { %v8968_v44 = vpop.f32.mrb[3].mxu0 }
 0x32e   : > { %v11275_v34 = vpop.f32.mrb[4].mxu0 }
 0x32f   : > { %v8981_v24 = vpop.f32.mrb[5].mxu0 }
 0x330   : > { %v11276_v1 = vpop.f32.mrb[6].mxu0 }
 0x331   : > { %v8984_v30 = vpop.f32.mrb[7].mxu0 }
 0x333   : > { %v10999_v25 = vpop.f32.mrb[0].mxu1 }
 0x334   : > { %v11301_v53 = vadd.f32 %v11271_v16, %v10999_v25  ;;  %v4451_v47 = vpop.f32.mrb[1].mxu1 }
 0x335   : > { %v11302_v45 = vadd.f32 %v8965_v10, %v4451_v47  ;;  %v11000_v35 = vpop.f32.mrb[2].mxu1 }
 0x336   : > { %v9133_v14 = vmul.f32 %v11301_v53, %v15013_v26  ;;  %v11303_v20 = vadd.f32 %v11272_v3, %v11000_v35  ;;  %v4454_v39 = vpop.f32.mrb[3].mxu1 }
 0x337   : > { %v9131_v5 = vmul.f32 %v11302_v45, %v15013_v26  ;;  %v11304_v43 = vadd.f32 %v8968_v44, %v4454_v39 }
 0x338   : > { %v9172_v51 = vadd.f32 %v15018_v11, %v9133_v14  ;;  %v9134_v57 = vmul.f32 %v11303_v20, %v15013_v26 }
 0x339   : > { %v9170_v2 = vadd.f32 %v15018_v11, %v9131_v5  ;;  %v9132_v17 = vmul.f32 %v11304_v43, %v15013_v26 }
 0x33a   : > { %v9204_v6 = vmax.f32 %v9172_v51, 0.0  ;;  %v9173_v23 = vadd.f32 %v15018_v11, %v9134_v57 }
 0x33b   : > { %v9202_v13 = vmax.f32 %v9170_v2, 0.0  ;;  %v9171_v42 = vadd.f32 %v15018_v11, %v9132_v17 }
 0x33c   : > { %v10455_v54 = vpack.c.bf16 %v9204_v6, %v9204_v6  ;;  %v9205_v48 = vmax.f32 %v9173_v23, 0.0 }
 0x33d   : > { %v10453_v15 = vpack.c.bf16 %v9202_v13, %v9202_v13  ;;  %v9203_v61 = vmax.f32 %v9171_v42, 0.0 }
 0x33e   : > { %9365 = vst.msk [vmem:[%s15031_s12 + $0x8] sm:$0xf] %vm9362_vm11, %v10455_v54  ;;  %v10456_v27 = vpack.c.bf16 %v9205_v48, %v9205_v48 }
 0x33f   : > { %9363 = vst.msk [vmem:[%s15031_s12] sm:$0xf] %vm9362_vm11, %v10453_v15  ;;  %v10454_v58 = vpack.c.bf16 %v9203_v61, %v9203_v61 }
 0x340   : > { %9366 = vst.msk [vmem:[%s15031_s12 + $0xc] sm:$0xf] %vm9362_vm11, %v10456_v27 }
 0x341   : > { %9364 = vst.msk [vmem:[%s15031_s12 + $0x4] sm:$0xf] %vm9362_vm11, %v10454_v58 }
 0x342   : > { %v11279_v62 = vpop.f32.mrb[8].mxu0 }
 0x343   : > { %v8997_v38 = vpop.f32.mrb[9].mxu0 }
 0x344   : > { %v11280_v60 = vpop.f32.mrb[10].mxu0 }
 0x345   : > { %v9000_v50 = vpop.f32.mrb[11].mxu0 }
 0x347   : > { %v11003_v63 = vpop.f32.mrb[4].mxu1 }
 0x348   : > { %v11305_v28 = vadd.f32 %v11275_v34, %v11003_v63  ;;  %v4467_v4 = vpop.f32.mrb[5].mxu1 }
 0x349   : > { %v11306_v40 = vadd.f32 %v8981_v24, %v4467_v4  ;;  %v11004_v0 = vpop.f32.mrb[6].mxu1 }
 0x34a   : > { %v9137_v56 = vmul.f32 %v11305_v28, %v15013_v26  ;;  %v11307_v8 = vadd.f32 %v11276_v1, %v11004_v0  ;;  %v4470_v32 = vpop.f32.mrb[7].mxu1 }
 0x34b   : > { %v9135_v59 = vmul.f32 %v11306_v40, %v15013_v26  ;;  %v11308_v12 = vadd.f32 %v8984_v30, %v4470_v32 }
 0x34c   : > { %v9176_v22 = vadd.f32 %v15018_v11, %v9137_v56  ;;  %v9138_v55 = vmul.f32 %v11307_v8, %v15013_v26 }
 0x34d   : > { %v9174_v36 = vadd.f32 %v15018_v11, %v9135_v59  ;;  %v9136_v19 = vmul.f32 %v11308_v12, %v15013_v26 }
 0x34e   : > { %v9208_v37 = vmax.f32 %v9176_v22, 0.0  ;;  %v9177_v31 = vadd.f32 %v15018_v11, %v9138_v55 }
 0x34f   : > { %v9206_v33 = vmax.f32 %v9174_v36, 0.0  ;;  %v9175_v46 = vadd.f32 %v15018_v11, %v9136_v19 }
 0x350   : > { %v10459_v7 = vpack.c.bf16 %v9208_v37, %v9208_v37  ;;  %v9209_v49 = vmax.f32 %v9177_v31, 0.0 }
 0x351   : > { %v10457_v18 = vpack.c.bf16 %v9206_v33, %v9206_v33  ;;  %v9207_v41 = vmax.f32 %v9175_v46, 0.0 }
 0x352   : > { %9369 = vst.msk [vmem:[%s15031_s12 + $0x18] sm:$0xf] %vm9362_vm11, %v10459_v7  ;;  %v10460_v29 = vpack.c.bf16 %v9209_v49, %v9209_v49 }
 0x353   : > { %9367 = vst.msk [vmem:[%s15031_s12 + $0x10] sm:$0xf] %vm9362_vm11, %v10457_v18  ;;  %v10458_v21 = vpack.c.bf16 %v9207_v41, %v9207_v41 }
 0x354   : > { %9370 = vst.msk [vmem:[%s15031_s12 + $0x1c] sm:$0xf] %vm9362_vm11, %v10460_v29 }
 0x355   : > { %9368 = vst.msk [vmem:[%s15031_s12 + $0x14] sm:$0xf] %vm9362_vm11, %v10458_v21 }
 0x356   : > { %v11283_v9 = vpop.f32.mrb[12].mxu0 }
 0x357   : > { %v9013_v52 = vpop.f32.mrb[13].mxu0 }
 0x358   : > { %v11284_v16 = vpop.f32.mrb[14].mxu0 }
 0x359   : > { %v9016_v10 = vpop.f32.mrb[15].mxu0 }
 0x35b   : > { %v11007_v3 = vpop.f32.mrb[8].mxu1 }
 0x35c   : > { %v11309_v44 = vadd.f32 %v11279_v62, %v11007_v3  ;;  %v4483_v34 = vpop.f32.mrb[9].mxu1 }
 0x35d   : > { %v11310_v24 = vadd.f32 %v8997_v38, %v4483_v34  ;;  %v11008_v1 = vpop.f32.mrb[10].mxu1 }
 0x35e   : > { %v9141_v30 = vmul.f32 %v11309_v44, %v15013_v26  ;;  %v11311_v25 = vadd.f32 %v11280_v60, %v11008_v1  ;;  %v4486_v53 = vpop.f32.mrb[11].mxu1 }
 0x35f   : > { %v9139_v47 = vmul.f32 %v11310_v24, %v15013_v26  ;;  %v11312_v45 = vadd.f32 %v9000_v50, %v4486_v53 }
 0x360   : > { %v9180_v35 = vadd.f32 %v15018_v11, %v9141_v30  ;;  %v9142_v14 = vmul.f32 %v11311_v25, %v15013_v26 }
 0x361   : > { %v9178_v20 = vadd.f32 %v15018_v11, %v9139_v47  ;;  %v9140_v39 = vmul.f32 %v11312_v45, %v15013_v26 }
 0x362   : > { %v9212_v5 = vmax.f32 %v9180_v35, 0.0  ;;  %v9181_v43 = vadd.f32 %v15018_v11, %v9142_v14 }
 0x363   : > { %v9210_v51 = vmax.f32 %v9178_v20, 0.0  ;;  %v9179_v57 = vadd.f32 %v15018_v11, %v9140_v39 }
 0x364   : > { %v10463_v2 = vpack.c.bf16 %v9212_v5, %v9212_v5  ;;  %v9213_v17 = vmax.f32 %v9181_v43, 0.0 }
 0x365   : > { %v10461_v6 = vpack.c.bf16 %v9210_v51, %v9210_v51  ;;  %v9211_v23 = vmax.f32 %v9179_v57, 0.0 }
 0x366   : > { %9373 = vst.msk [vmem:[%s15031_s12 + $0x28] sm:$0xf] %vm9362_vm11, %v10463_v2  ;;  %v10464_v13 = vpack.c.bf16 %v9213_v17, %v9213_v17 }
 0x367   : > { %9371 = vst.msk [vmem:[%s15031_s12 + $0x20] sm:$0xf] %vm9362_vm11, %v10461_v6  ;;  %v10462_v42 = vpack.c.bf16 %v9211_v23, %v9211_v23 }
 0x368   : > { %9374 = vst.msk [vmem:[%s15031_s12 + $0x2c] sm:$0xf] %vm9362_vm11, %v10464_v13 }
 0x369   : > { %9372 = vst.msk [vmem:[%s15031_s12 + $0x24] sm:$0xf] %vm9362_vm11, %v10462_v42 }
 0x36a   : > { %v11287_v54 = vpop.f32.mrb[16].mxu0 }
 0x36b   : > { %v9029_v48 = vpop.f32.mrb[17].mxu0 }
 0x36c   : > { %v11288_v15 = vpop.f32.mrb[18].mxu0 }
 0x36d   : > { %v9032_v61 = vpop.f32.mrb[19].mxu0 }
 0x36f   : > { %v11011_v27 = vpop.f32.mrb[12].mxu1 }
 0x370   : > { %v11313_v58 = vadd.f32 %v11283_v9, %v11011_v27  ;;  %v4499_v62 = vpop.f32.mrb[13].mxu1 }
 0x371   : > { %v11314_v38 = vadd.f32 %v9013_v52, %v4499_v62  ;;  %v11012_v60 = vpop.f32.mrb[14].mxu1 }
 0x372   : > { %v9145_v50 = vmul.f32 %v11313_v58, %v15013_v26  ;;  %v11315_v63 = vadd.f32 %v11284_v16, %v11012_v60  ;;  %v4502_v28 = vpop.f32.mrb[15].mxu1 }
 0x373   : > { %v9143_v4 = vmul.f32 %v11314_v38, %v15013_v26  ;;  %v11316_v40 = vadd.f32 %v9016_v10, %v4502_v28 }
 0x374   : > { %v9184_v0 = vadd.f32 %v15018_v11, %v9145_v50  ;;  %v9146_v56 = vmul.f32 %v11315_v63, %v15013_v26 }
 0x375   : > { %v9182_v8 = vadd.f32 %v15018_v11, %v9143_v4  ;;  %v9144_v32 = vmul.f32 %v11316_v40, %v15013_v26 }
 0x376   : > { %v9216_v59 = vmax.f32 %v9184_v0, 0.0  ;;  %v9185_v12 = vadd.f32 %v15018_v11, %v9146_v56 }
 0x377   : > { %v9214_v22 = vmax.f32 %v9182_v8, 0.0  ;;  %v9183_v55 = vadd.f32 %v15018_v11, %v9144_v32 }
 0x378   : > { %v10467_v36 = vpack.c.bf16 %v9216_v59, %v9216_v59  ;;  %v9217_v19 = vmax.f32 %v9185_v12, 0.0 }
 0x379   : > { %v10465_v37 = vpack.c.bf16 %v9214_v22, %v9214_v22  ;;  %v9215_v31 = vmax.f32 %v9183_v55, 0.0 }
 0x37a   : > { %9377 = vst.msk [vmem:[%s15031_s12 + $0x38] sm:$0xf] %vm9362_vm11, %v10467_v36  ;;  %v10468_v33 = vpack.c.bf16 %v9217_v19, %v9217_v19 }
 0x37b   : > { %9375 = vst.msk [vmem:[%s15031_s12 + $0x30] sm:$0xf] %vm9362_vm11, %v10465_v37  ;;  %v10466_v46 = vpack.c.bf16 %v9215_v31, %v9215_v31 }
 0x37c   : > { %9378 = vst.msk [vmem:[%s15031_s12 + $0x3c] sm:$0xf] %vm9362_vm11, %v10468_v33 }
 0x37d   : > { %9376 = vst.msk [vmem:[%s15031_s12 + $0x34] sm:$0xf] %vm9362_vm11, %v10466_v46 }
 0x37e   : > { %v11291_v7 = vpop.f32.mrb[20].mxu0 }
 0x37f   : > { %v9045_v49 = vpop.f32.mrb[21].mxu0 }
 0x380   : > { %v11292_v18 = vpop.f32.mrb[22].mxu0 }
 0x381   : > { %v9048_v41 = vpop.f32.mrb[23].mxu0 }
 0x383   : > { %v11015_v29 = vpop.f32.mrb[16].mxu1 }
 0x384   : > { %v11317_v21 = vadd.f32 %v11287_v54, %v11015_v29  ;;  %v4515_v9 = vpop.f32.mrb[17].mxu1 }
 0x385   : > { %v11318_v52 = vadd.f32 %v9029_v48, %v4515_v9  ;;  %v11016_v16 = vpop.f32.mrb[18].mxu1 }
 0x386   : > { %v9149_v10 = vmul.f32 %v11317_v21, %v15013_v26  ;;  %v11319_v3 = vadd.f32 %v11288_v15, %v11016_v16  ;;  %v4518_v44 = vpop.f32.mrb[19].mxu1 }
 0x387   : > { %v9147_v34 = vmul.f32 %v11318_v52, %v15013_v26  ;;  %v11320_v24 = vadd.f32 %v9032_v61, %v4518_v44 }
 0x388   : > { %v9188_v1 = vadd.f32 %v15018_v11, %v9149_v10  ;;  %v9150_v30 = vmul.f32 %v11319_v3, %v15013_v26 }
 0x389   : > { %v9186_v25 = vadd.f32 %v15018_v11, %v9147_v34  ;;  %v9148_v53 = vmul.f32 %v11320_v24, %v15013_v26 }
 0x38a   : > { %v9220_v47 = vmax.f32 %v9188_v1, 0.0  ;;  %v9189_v45 = vadd.f32 %v15018_v11, %v9150_v30 }
 0x38b   : > { %v9218_v35 = vmax.f32 %v9186_v25, 0.0  ;;  %v9187_v14 = vadd.f32 %v15018_v11, %v9148_v53 }
 0x38c   : > { %v10471_v20 = vpack.c.bf16 %v9220_v47, %v9220_v47  ;;  %v9221_v39 = vmax.f32 %v9189_v45, 0.0 }
 0x38d   : > { %v10469_v5 = vpack.c.bf16 %v9218_v35, %v9218_v35  ;;  %v9219_v43 = vmax.f32 %v9187_v14, 0.0 }
 0x38e   : > { %9381 = vst.msk [vmem:[%s15031_s12 + $0x48] sm:$0xf] %vm9362_vm11, %v10471_v20  ;;  %v10472_v51 = vpack.c.bf16 %v9221_v39, %v9221_v39 }
 0x38f   : > { %9379 = vst.msk [vmem:[%s15031_s12 + $0x40] sm:$0xf] %vm9362_vm11, %v10469_v5  ;;  %v10470_v57 = vpack.c.bf16 %v9219_v43, %v9219_v43 }
 0x390   : > { %9382 = vst.msk [vmem:[%s15031_s12 + $0x4c] sm:$0xf] %vm9362_vm11, %v10472_v51 }
 0x391   : > { %9380 = vst.msk [vmem:[%s15031_s12 + $0x44] sm:$0xf] %vm9362_vm11, %v10470_v57 }
 0x392   : > { %v11295_v2 = vpop.f32.mrb[24].mxu0 }
 0x393   : > { %v9061_v17 = vpop.f32.mrb[25].mxu0 }
 0x394   : > { %v11296_v6 = vpop.f32.mrb[26].mxu0 }
 0x395   : > { %v9064_v23 = vpop.f32.mrb[27].mxu0 }
 0x397   : > { %v11019_v13 = vpop.f32.mrb[20].mxu1 }
 0x398   : > { %v11321_v42 = vadd.f32 %v11291_v7, %v11019_v13  ;;  %v4531_v54 = vpop.f32.mrb[21].mxu1 }
 0x399   : > { %v11322_v48 = vadd.f32 %v9045_v49, %v4531_v54  ;;  %v11020_v15 = vpop.f32.mrb[22].mxu1 }
 0x39a   : > { %v9153_v61 = vmul.f32 %v11321_v42, %v15013_v26  ;;  %v11323_v27 = vadd.f32 %v11292_v18, %v11020_v15  ;;  %v4534_v58 = vpop.f32.mrb[23].mxu1 }
 0x39b   : > { %v9151_v62 = vmul.f32 %v11322_v48, %v15013_v26  ;;  %v11324_v38 = vadd.f32 %v9048_v41, %v4534_v58 }
 0x39c   : > { %v9192_v60 = vadd.f32 %v15018_v11, %v9153_v61  ;;  %v9154_v50 = vmul.f32 %v11323_v27, %v15013_v26 }
 0x39d   : > { %v9190_v63 = vadd.f32 %v15018_v11, %v9151_v62  ;;  %v9152_v28 = vmul.f32 %v11324_v38, %v15013_v26 }
 0x39e   : > { %v9224_v4 = vmax.f32 %v9192_v60, 0.0  ;;  %v9193_v40 = vadd.f32 %v15018_v11, %v9154_v50 }
 0x39f   : > { %v9222_v0 = vmax.f32 %v9190_v63, 0.0  ;;  %v9191_v56 = vadd.f32 %v15018_v11, %v9152_v28 }
 0x3a0   : > { %v10475_v8 = vpack.c.bf16 %v9224_v4, %v9224_v4  ;;  %v9225_v32 = vmax.f32 %v9193_v40, 0.0 }
 0x3a1   : > { %v10473_v59 = vpack.c.bf16 %v9222_v0, %v9222_v0  ;;  %v9223_v12 = vmax.f32 %v9191_v56, 0.0 }
 0x3a2   : > { %9385 = vst.msk [vmem:[%s15031_s12 + $0x58] sm:$0xf] %vm9362_vm11, %v10475_v8  ;;  %v10476_v22 = vpack.c.bf16 %v9225_v32, %v9225_v32 }
 0x3a3   : > { %9383 = vst.msk [vmem:[%s15031_s12 + $0x50] sm:$0xf] %vm9362_vm11, %v10473_v59  ;;  %v10474_v55 = vpack.c.bf16 %v9223_v12, %v9223_v12 }
 0x3a4   : > { %9386 = vst.msk [vmem:[%s15031_s12 + $0x5c] sm:$0xf] %vm9362_vm11, %v10476_v22 }
 0x3a5   : > { %9384 = vst.msk [vmem:[%s15031_s12 + $0x54] sm:$0xf] %vm9362_vm11, %v10474_v55 }
 0x3a6   : > { %v11299_v36 = vpop.f32.mrb[28].mxu0 }
 0x3a7   : > { %v9077_v19 = vpop.f32.mrb[29].mxu0 }
 0x3a8   : > { %v11300_v37 = vpop.f32.mrb[30].mxu0 }
 0x3a9   : > { %v9080_v31 = vpop.f32.mrb[31].mxu0 }
 0x3ab   : > { %v11023_v33 = vpop.f32.mrb[24].mxu1 }
 0x3ac   : > { %v11325_v46 = vadd.f32 %v11295_v2, %v11023_v33  ;;  %v4547_v7 = vpop.f32.mrb[25].mxu1 }
 0x3ad   : > { %v11326_v49 = vadd.f32 %v9061_v17, %v4547_v7  ;;  %v11024_v18 = vpop.f32.mrb[26].mxu1 }
 0x3ae   : > { %v9157_v41 = vmul.f32 %v11325_v46, %v15013_v26  ;;  %v11327_v29 = vadd.f32 %v11296_v6, %v11024_v18  ;;  %v4550_v21 = vpop.f32.mrb[27].mxu1 }
 0x3af   : > { %v9155_v9 = vmul.f32 %v11326_v49, %v15013_v26  ;;  %v11328_v52 = vadd.f32 %v9064_v23, %v4550_v21 }
 0x3b0   : > { %v9196_v16 = vadd.f32 %v15018_v11, %v9157_v41  ;;  %v9158_v10 = vmul.f32 %v11327_v29, %v15013_v26 }
 0x3b1   : > { %v9194_v3 = vadd.f32 %v15018_v11, %v9155_v9  ;;  %v9156_v44 = vmul.f32 %v11328_v52, %v15013_v26 }
 0x3b2   : > { %v9228_v34 = vmax.f32 %v9196_v16, 0.0  ;;  %v9197_v24 = vadd.f32 %v15018_v11, %v9158_v10 }
 0x3b3   : > { %v9226_v1 = vmax.f32 %v9194_v3, 0.0  ;;  %v9195_v30 = vadd.f32 %v15018_v11, %v9156_v44 }
 0x3b4   : > { %v10479_v53 = vpack.c.bf16 %v9228_v34, %v9228_v34  ;;  %v9229_v47 = vmax.f32 %v9197_v24, 0.0 }
 0x3b5   : > { %v11027_v25 = vpop.f32.mrb[28].mxu1  ;;  %v10477_v14 = vpack.c.bf16 %v9226_v1, %v9226_v1  ;;  %v9227_v20 = vmax.f32 %v9195_v30, 0.0 }
 0x3b6   : > { %v11329_v45 = vadd.f32 %v11299_v36, %v11027_v25  ;;  %v4563_v35 = vpop.f32.mrb[29].mxu1  ;;  %9389 = vst.msk [vmem:[%s15031_s12 + $0x68] sm:$0xf] %vm9362_vm11, %v10479_v53  ;;  %v10480_v43 = vpack.c.bf16 %v9229_v47, %v9229_v47 }
 0x3b7   : > { %v11330_v39 = vadd.f32 %v9077_v19, %v4563_v35  ;;  %v11028_v5 = vpop.f32.mrb[30].mxu1  ;;  %9387 = vst.msk [vmem:[%s15031_s12 + $0x60] sm:$0xf] %vm9362_vm11, %v10477_v14  ;;  %v10478_v17 = vpack.c.bf16 %v9227_v20, %v9227_v20 }
 0x3b8   : > { %v9161_v51 = vmul.f32 %v11329_v45, %v15013_v26  ;;  %v11331_v57 = vadd.f32 %v11300_v37, %v11028_v5  ;;  %v4566_v2 = vpop.f32.mrb[31].mxu1  ;;  %9390 = vst.msk [vmem:[%s15031_s12 + $0x6c] sm:$0xf] %vm9362_vm11, %v10480_v43 }
 0x3b9   : > { %v9159_v6 = vmul.f32 %v11330_v39, %v15013_v26  ;;  %v11332_v23 = vadd.f32 %v9080_v31, %v4566_v2  ;;  %9388 = vst.msk [vmem:[%s15031_s12 + $0x64] sm:$0xf] %vm9362_vm11, %v10478_v17 }
 0x3ba   : > { %v9200_v13 = vadd.f32 %v15018_v11, %v9161_v51  ;;  %v9162_v42 = vmul.f32 %v11331_v57, %v15013_v26 }
 0x3bb   : > { %v9198_v54 = vadd.f32 %v15018_v11, %v9159_v6  ;;  %v9160_v48 = vmul.f32 %v11332_v23, %v15013_v26 }
 0x3bc   : > { %v9232_v15 = vmax.f32 %v9200_v13, 0.0  ;;  %v9201_v61 = vadd.f32 %v15018_v11, %v9162_v42 }
 0x3bd   : > { %v9230_v27 = vmax.f32 %v9198_v54, 0.0  ;;  %v9199_v58 = vadd.f32 %v15018_v11, %v9160_v48 }
 0x3be   : > { %v10483_v62 = vpack.c.bf16 %v9232_v15, %v9232_v15  ;;  %v9233_v38 = vmax.f32 %v9201_v61, 0.0 }
 0x3bf   : > { %v10481_v60 = vpack.c.bf16 %v9230_v27, %v9230_v27  ;;  %v9231_v50 = vmax.f32 %v9199_v58, 0.0 }
 0x3c0   : > { %9393 = vst.msk [vmem:[%s15031_s12 + $0x78] sm:$0xf] %vm9362_vm11, %v10483_v62  ;;  %v10484_v63 = vpack.c.bf16 %v9233_v38, %v9233_v38 }
 0x3c1   : > { %9391 = vst.msk [vmem:[%s15031_s12 + $0x70] sm:$0xf] %vm9362_vm11, %v10481_v60  ;;  %v10482_v28 = vpack.c.bf16 %v9231_v50, %v9231_v50 }
 0x3c2   : > { %9394 = vst.msk [vmem:[%s15031_s12 + $0x7c] sm:$0xf] %vm9362_vm11, %v10484_v63 }
 0x3c3   : > { %9392 = vst.msk [vmem:[%s15031_s12 + $0x74] sm:$0xf] %vm9362_vm11, %v10482_v28 }
 0x3c4 PF: > { %s14_s15 = sadd.s32 1, %s11984_s15  }
 0x3c5   : > { %p11_p4 = scmp.ge.s32.totalorder %s14_s15, 4  }
 0x3c7   :  { %13 = sbr.rel (!%p11_p4) target bundleno = 1 (0x1), region = 84 }

// kernel: input_conv_forward.18
= control target key start
LH: loop header
LB: loop body
LE: loop exit
PB: predicated region body
PF: predicated region fallthrough
CT: control target
= control target key end

     0   :  { %s3177_s15 = smov 0   ;;  %s3770_s0 = inlined_call_operand.vmem [shape: bf16[2,10,10,128], index: 0, kind: input, shape index: {}]   ;;  %s3771_s1 = inlined_call_operand.vmem [shape: bf16[9,128,32], index: 1, kind: input, shape index: {}]   ;;  %s3772_s2 = inlined_call_operand.vmem [shape: f32[1,32], index: 2, kind: input, shape index: {}]   ;;  %s3773_s3 = inlined_call_operand.vmem [shape: f32[1,32], index: 3, kind: input, shape index: {}]   ;;  %s3774_s4 = inlined_call_operand.vmem [shape: bf16[2,64,32], index: 4, kind: output, shape index: {}]  }
   0x1 LB: > { %s2294_s16 = sadd.s32 4294967295, %s3150_s15   ;;  %p2298_p0 = scmp.ge.s32.totalorder %s3150_s15, 1  ;;  %s3150_s15 = sphi %s3177_s15, %s14_s15  }
   0x2   : > { %p162_p1 = scmp.lt.s32.totalorder %s3150_s15, 3 }
   0x4   : > { %p163_p2 = pnand %p2298_p0, %p162_p1 }
   0x5   : > { %v3060_v0 = vld [vmem:[%s3771_s1 + $0x40] sm:$0xff] (!%p163_p2)   ;;  %p188_p3 = scmp.lt.s32.totalorder (!%p163_p2), %s2294_s16, 1  ;;  %v3062_v2 = vld [vmem:[%s3771_s1 + $0x48] sm:$0xff] (!%p163_p2)   ;;  %v3064_v4 = vld [vmem:[%s3771_s1 + $0x50] sm:$0xff] (!%p163_p2)   ;;  %vm231_vm0 = vsmask.f32 (!%p163_p2), 3328 }
   0x6   : > { %166 = sbr.rel (%p163_p2) target bundleno = 396 (0x18c), region = 36  ;;  %v3061_v1 = vld [vmem:[%s3771_s1 + $0x100] sm:$0xff] (!%p163_p2)   ;;  %2755 = vmatprep.subr.bf16.mxu1 (!%p163_p2), %v3060_v0  ;;  %v3063_v3 = vld [vmem:[%s3771_s1 + $0x108] sm:$0xff] (!%p163_p2)   ;;  %v3065_v5 = vld [vmem:[%s3771_s1 + $0x110] sm:$0xff] (!%p163_p2)   ;;  %vm232_vm1 = vsmask.f32 (!%p163_p2), 7440 }
   0x7   : > { %2851 = vmatprep.subr.bf16.mxu0 (!%p163_p2), %v3061_v1  ;;  %2756 = vmatpush3.bf16.msra.mxu1 (!%p163_p2), %v3060_v0  ;;  %v3066_v6 = vld [vmem:[%s3771_s1 + $0x58] sm:$0xff] (!%p163_p2)   ;;  %v3068_v8 = vld [vmem:[%s3771_s1 + $0x60] sm:$0xff] (!%p163_p2)   ;;  %v3070_v10 = vld [vmem:[%s3771_s1 + $0x68] sm:$0xff] (!%p163_p2)   ;;  %vm653_vm3 = vcmask (!%p163_p2), 1042432   ;;  %vm654_vm4 = vcmask (!%p163_p2), 1046532   ;;  %vm2230_vm6 = vcmask (!%p163_p2), 257024  }
   0x8   : > { %2852 = vmatpush3.bf16.msra.mxu0 (!%p163_p2), %v3061_v1  ;;  %2757 = vmatprep.subr.bf16.mxu1 (!%p163_p2), %v3062_v2  ;;  %v3067_v7 = vld [vmem:[%s3771_s1 + $0x118] sm:$0xff] (!%p163_p2)   ;;  %v3069_v9 = vld [vmem:[%s3771_s1 + $0x120] sm:$0xff] (!%p163_p2)   ;;  %v3071_v14 = vld [vmem:[%s3771_s1 + $0x128] sm:$0xff] (!%p163_p2)  }
   0x9   : > { %2853 = vmatprep.subr.bf16.mxu0 (!%p163_p2), %v3063_v3  ;;  %v3072_v22 = vld [vmem:[%s3771_s1 + $0x70] sm:$0xff] (!%p163_p2)   ;;  %v3074_v37 = vld [vmem:[%s3771_s1 + $0x78] sm:$0xff] (!%p163_p2)   ;;  %vm3266_vm2 = vmor (!%p163_p2), %vm231_vm0, %vm232_vm1 }
   0xa   : > { %v3073_v23 = vld [vmem:[%s3771_s1 + $0x130] sm:$0xff] (!%p163_p2)   ;;  %v3075_v47 = vld [vmem:[%s3771_s1 + $0x138] sm:$0xff] (!%p163_p2)   ;;  %v3076_v63 = vld [vmem:[%s3771_s1] sm:$0xff] (!%p163_p2)  }
   0xb   : > { %2758 = vmatpush3.bf16.msra.mxu1 (!%p163_p2), %v3062_v2  ;;  %v3298_v1 = vld [vmem:[%s3771_s1 + $0x140] sm:$0xff] (!%p163_p2)   ;;  %vm3440_vm5 = vmor (!%p163_p2), %vm653_vm3, %vm654_vm4 }
   0xc   : > { %2854 = vmatpush3.bf16.msra.mxu0 (!%p163_p2), %v3063_v3  ;;  %2759 = vmatprep.subr.bf16.mxu1 (!%p163_p2), %v3064_v4  ;;  %v3140_v38 = vld [vmem:[%s3771_s1 + $0x220] sm:$0xff] (!%p163_p2)  }
   0xd   : > { %s3780_s16 = smov (!%p188_p3, %s2294_s16), 1  ;;  %2855 = vmatprep.subr.bf16.mxu0 %v3065_v5 }
   0xe   : > { %s3051_s7 = smul.u32 80, %s3780_s16  ;;  %s2638_s29 = sshll.u32 %s3780_s16, 5 }
   0xf   : > { %2760 = vmatpush3.bf16.msra.mxu1 %v3064_v4  ;;  %s3749_s6 = scalar_lea.vmem %s3774_s4, %s2638_s29 }
  0x10   : > { %2856 = vmatpush3.bf16.msra.mxu0 %v3065_v5  ;;  %2761 = vmatprep.subr.bf16.mxu1 %v3066_v6  ;;  %s3221_s14 = scalar_lea.vmem %s3770_s0, %s3051_s7 }
  0x11   : > { %2857 = vmatprep.subr.bf16.mxu0 %v3067_v7  ;;  %v3227_v11 = vld [vmem:[%s3221_s14] sm:$0xf]  ;;  %v3230_v12 = vld [vmem:[%s3221_s14 + $0x8] sm:$0xf]  ;;  %v3233_v13 = vld [vmem:[%s3221_s14 + $0x4] sm:$0x1] }
  0x12   : > { %v3239_v15 = vld [vmem:[%s3221_s14 + $0xc] sm:$0x1]  ;;  %v235_v16 = vshrl.u32 %v3227_v11, 16  ;;  %v238_v17 = vshll.u32 %v3227_v11, 16  ;;  %v244_v18 = vshll.u32 %v3233_v13, 16  ;;  %v249_v19 = vshrl.u32 %v3230_v12, 16 }
  0x13   : > { %2762 = vmatpush3.bf16.msra.mxu1 %v3066_v6  ;;  %v252_v20 = vshll.u32 %v3230_v12, 16  ;;  %v258_v21 = vshll.u32 %v3239_v15, 16  ;;  %v2414_v30 = vld [vmem:[%s3221_s14 + $0x8] sm:$0xf]  ;;  %v3255_v31 = vld [vmem:[%s3221_s14 + $0xc] sm:$0x1] }
  0x14   : > { %2858 = vmatpush3.bf16.msra.mxu0 %v3067_v7  ;;  %2763 = vmatprep.subr.bf16.mxu1 %v3068_v8  ;;  %v237_v24 = vrot.slane %v235_v16, 4  ;;  %v240_v25 = vrot.slane %v238_v17, 5  ;;  %v246_v26 = vrot.slane %v244_v18, 5  ;;  %v251_v27 = vrot.slane %v249_v19, 4  ;;  %v2416_v33 = vld [vmem:[%s3221_s14 + $0x10] sm:$0xf] }
  0x15   : > { %2859 = vmatprep.subr.bf16.mxu0 %v3069_v9  ;;  %v254_v28 = vrot.slane %v252_v20, 5  ;;  %v260_v29 = vrot.slane %v258_v21, 5  ;;  %v3259_v34 = vld [vmem:[%s3221_s14 + $0x14] sm:$0x1]  ;;  %v1030_v35 = vshrl.u32 %v2414_v30, 16  ;;  %v1033_v36 = vshll.u32 %v2414_v30, 16 }
  0x16   : > { %v241_v32 = vor.u32 %v240_v25, %v237_v24  ;;  %v1039_v40 = vshll.u32 %v3255_v31, 16  ;;  %v1044_v41 = vshrl.u32 %v2416_v33, 16  ;;  %v1047_v42 = vshll.u32 %v2416_v33, 16  ;;  %v3276_v51 = vld [vmem:[%s3221_s14 + $0x10] sm:$0xf] }
  0x17   : > { %2764 = vmatpush3.bf16.msra.mxu1 %v3068_v8  ;;  %v255_v39 = vor.u32 %v254_v28, %v251_v27  ;;  %v1032_v44 = vrot.slane %v1030_v35, 4  ;;  %v1035_v45 = vrot.slane %v1033_v36, 5  ;;  %v1053_v46 = vshll.u32 %v3259_v34, 16  ;;  %v3281_v55 = vld [vmem:[%s3221_s14 + $0x18] sm:$0xf] }
  0x18   : > { %2860 = vmatpush3.bf16.msra.mxu0 %v3069_v9  ;;  %2765 = vmatprep.subr.bf16.mxu1 %v3070_v10  ;;  %v242_v43 = vrot.slane %v241_v32, 4  ;;  %v1046_v49 = vrot.slane %v1044_v41, 4  ;;  %v1049_v50 = vrot.slane %v1047_v42, 5  ;;  %v1041_v54 = vrot.slane %v1039_v40, 5  ;;  %v3284_v56 = vld [vmem:[%s3221_s14 + $0x14] sm:$0x1] }
  0x19   : > { %2861 = vmatprep.subr.bf16.mxu0 %v3071_v14  ;;  %v256_v48 = vrot.slane %v255_v39, 4  ;;  %v1036_v53 = vor.u32 %v1035_v45, %v1032_v44  ;;  %v1055_v59 = vrot.slane %v1053_v46, 5  ;;  %v3289_v60 = vld [vmem:[%s3221_s14 + $0x1c] sm:$0x1]  ;;  %v263_v61 = vshrl.u32 %v3276_v51, 16 }
  0x1a   : > { %v247_v52 = vsel %vm3266_vm2, %v242_v43, %v246_v26  ;;  %v1050_v58 = vor.u32 %v1049_v50, %v1046_v49  ;;  %v266_v2 = vshll.u32 %v3276_v51, 16  ;;  %v272_v3 = vshll.u32 %v3284_v56, 16  ;;  %v2418_v8 = vld [vmem:[%s3221_s14 + $0x18] sm:$0xf]  ;;  %v3309_v16 = vld [vmem:[%s3221_s14 + $0x1c] sm:$0x1] }
  0x1b   : > { %2766 = vmatpush3.bf16.msra.mxu1 %v3070_v10  ;;  %v261_v57 = vsel %vm3266_vm2, %v256_v48, %v260_v29  ;;  %v1037_v0 = vrot.slane %v1036_v53, 4  ;;  %v265_v5 = vrot.slane %v263_v61, 4  ;;  %v277_v6 = vshrl.u32 %v3281_v55, 16  ;;  %v2420_v17 = vld [vmem:[%s3221_s14 + $0x20] sm:$0xf]  ;;  %v3078_v43 = vld [vmem:[%s3771_s1 + $0x8] sm:$0xff]  }
  0x1c   : > { %2862 = vmatpush3.bf16.msra.mxu0 %v3071_v14  ;;  %2767 = vmatprep.subr.bf16.mxu1 %v3072_v22  ;;  %v2318_v62 = vcombine.low %v247_v52, %v261_v57  ;;  %v1051_v4 = vrot.slane %v1050_v58, 4  ;;  %v280_v7 = vshll.u32 %v3281_v55, 16  ;;  %v268_v10 = vrot.slane %v266_v2, 5  ;;  %v3315_v21 = vld [vmem:[%s3221_s14 + $0x24] sm:$0x1] }
  0x1d   : > { %2863 = vmatprep.subr.bf16.mxu0 %v3073_v23  ;;  %v1042_v9 = vsel %vm3266_vm2, %v1037_v0, %v1041_v54  ;;  %v286_v14 = vshll.u32 %v3289_v60, 16  ;;  %v279_v19 = vrot.slane %v277_v6, 4  ;;  %v274_v24 = vrot.slane %v272_v3, 5  ;;  %v3079_v54 = vld [vmem:[%s3771_s1 + $0x148] sm:$0xff]   ;;  %v3345_v0 = vld [vmem:[%s3221_s14 + $0x24] sm:$0x1] }
  0x1e   : > { %2771 = vmatprep.mubr.bf16.mxu1 %v2318_v62  ;;  %v1056_v18 = vsel %vm3266_vm2, %v1051_v4, %v1055_v59  ;;  %v282_v20 = vrot.slane %v280_v7, 5  ;;  %v1058_v27 = vshrl.u32 %v2418_v8, 16  ;;  %v1061_v28 = vshll.u32 %v2418_v8, 16  ;;  %v3080_v59 = vld [vmem:[%s3771_s1 + $0x10] sm:$0xff]   ;;  %v3339_v62 = vld [vmem:[%s3221_s14 + $0x20] sm:$0xf] }
  0x1f   : > { %2768 = vmatpush3.bf16.msra.mxu1 %v3072_v22  ;;  %v2446_v22 = vcombine.low %v1042_v9, %v1056_v18  ;;  %v288_v25 = vrot.slane %v286_v14, 5  ;;  %v1067_v29 = vshll.u32 %v3309_v16, 16  ;;  %v1072_v32 = vshrl.u32 %v2420_v17, 16  ;;  %v3348_v2 = vld [vmem:[%s3221_s14 + $0x2c] sm:$0x1]  ;;  %v3081_v9 = vld [vmem:[%s3771_s1 + $0x150] sm:$0xff]  }
  0x20   : > { %2864 = vmatpush3.bf16.msra.mxu0 %v3073_v23  ;;  %2769 = vmatprep.subr.bf16.mxu1 %v3074_v37  ;;  %v269_v23 = vor.u32 %v268_v10, %v265_v5  ;;  %v283_v26 = vor.u32 %v282_v20, %v279_v19  ;;  %v1075_v33 = vshll.u32 %v2420_v17, 16  ;;  %v1081_v35 = vshll.u32 %v3315_v21, 16  ;;  %v3082_v10 = vld [vmem:[%s3771_s1 + $0x18] sm:$0xff]  }
  0x21   : > { %2865 = vmatprep.subr.bf16.mxu0 %v3075_v47  ;;  %2867 = vmatprep.mubr.bf16.mxu0 %v2446_v22  ;;  %v1063_v39 = vrot.slane %v1061_v28, 5  ;;  %v1074_v41 = vrot.slane %v1072_v32, 4  ;;  %v1069_v46 = vrot.slane %v1067_v29, 5  ;;  %v1321_v57 = vrot.slane %v3255_v31, 5  ;;  %v3083_v29 = vld [vmem:[%s3771_s1 + $0x158] sm:$0xff]  }
  0x22   : > { %v270_v30 = vrot.slane %v269_v23, 4  ;;  %v284_v36 = vrot.slane %v283_v26, 4  ;;  %v1077_v42 = vrot.slane %v1075_v33, 5  ;;  %v291_v3 = vshrl.u32 %v3339_v62, 16  ;;  %v2422_v23 = vld [vmem:[%s3221_s14 + $0x28] sm:$0xf] }
  0x23   : > { %2770 = vmatpush3.bf16.msra.mxu1 %v3074_v37  ;;  %v1060_v37 = vrot.slane %v1058_v27, 4  ;;  %v294_v4 = vshll.u32 %v3339_v62, 16  ;;  %v300_v5 = vshll.u32 %v3345_v0, 16  ;;  %v314_v8 = vshll.u32 %v3348_v2, 16  ;;  %v3369_v26 = vld [vmem:[%s3221_s14 + $0x34] sm:$0x1] }
  0x24   : > { %2866 = vmatpush3.bf16.msra.mxu0 %v3075_v47  ;;  %2779 = vmatprep.subr.bf16.mxu1 %v3076_v63  ;;  %v275_v40 = vsel %vm3266_vm2, %v270_v30, %v274_v24  ;;  %v289_v44 = vsel %vm3266_vm2, %v284_v36, %v288_v25  ;;  %v1083_v47 = vrot.slane %v1081_v35, 5  ;;  %v1078_v49 = vor.u32 %v1077_v42, %v1074_v41  ;;  %v3365_v24 = vld [vmem:[%s3221_s14 + $0x2c] sm:$0x1]  ;;  %v2424_v25 = vld [vmem:[%s3221_s14 + $0x30] sm:$0xf]  ;;  %v3084_v30 = vld [vmem:[%s3771_s1 + $0x20] sm:$0xff]  }
  0x25   : > { %2875 = vmatprep.subr.bf16.mxu0 %v3298_v1  ;;  %v1064_v45 = vor.u32 %v1063_v39, %v1060_v37  ;;  %v2319_v48 = vcombine.low %v275_v40, %v289_v44  ;;  %v293_v14 = vrot.slane %v291_v3, 4  ;;  %v296_v17 = vrot.slane %v294_v4, 5 }
  0x26   : > { %v1079_v52 = vrot.slane %v1078_v49, 4  ;;  %v302_v18 = vrot.slane %v300_v5, 5  ;;  %v316_v22 = vrot.slane %v314_v8, 5  ;;  %v1086_v27 = vshrl.u32 %v2422_v23, 16  ;;  %v2426_v5 = vld [vmem:[%s3221_s14 + $0x38] sm:$0xf] }
  0x27   : > { %v1065_v50 = vrot.slane %v1064_v45, 4  ;;  %2772 = vmatmul.mubr.bf16.vlgmr.msra.gmra.mrb[0].mxu1 %v2319_v48  ;;  %v1089_v28 = vshll.u32 %v2422_v23, 16  ;;  %v1095_v33 = vshll.u32 %v3365_v24, 16  ;;  %v1100_v35 = vshrl.u32 %v2424_v25, 16 }
  0x28   : > { %2780 = vmatpush3.bf16.msra.mxu1 %v3076_v63  ;;  %v1084_v58 = vsel %vm3266_vm2, %v1079_v52, %v1083_v47  ;;  %v3342_v63 = vld [vmem:[%s3221_s14 + $0x28] sm:$0xf]  ;;  %v1103_v36 = vshll.u32 %v2424_v25, 16  ;;  %v1088_v39 = vrot.slane %v1086_v27, 4  ;;  %v1109_v41 = vshll.u32 %v3369_v26, 16 }
  0x29   : > { %v1070_v53 = vsel %vm3266_vm2, %v1065_v50, %v1069_v46  ;;  %2781 = vmatprep.subr.bf16.mxu1 %v3078_v43  ;;  %v305_v6 = vshrl.u32 %v3342_v63, 16  ;;  %v308_v7 = vshll.u32 %v3342_v63, 16  ;;  %v1091_v40 = vrot.slane %v1089_v28, 5  ;;  %v3380_v46 = vld [vmem:[%s3221_s14 + $0x30] sm:$0xf] }
  0x2a   : > { %v2447_v61 = vcombine.low %v1070_v53, %v1084_v58  ;;  %v1102_v44 = vrot.slane %v1100_v35, 4  ;;  %v1105_v45 = vrot.slane %v1103_v36, 5  ;;  %v1111_v49 = vrot.slane %v1109_v41, 5  ;;  %v3385_v50 = vld [vmem:[%s3221_s14 + $0x38] sm:$0xf] }
  0x2b   : > { %v307_v19 = vrot.slane %v305_v6, 4  ;;  %v310_v20 = vrot.slane %v308_v7, 5  ;;  %v1092_v48 = vor.u32 %v1091_v40, %v1088_v39  ;;  %v3388_v52 = vld [vmem:[%s3221_s14 + $0x34] sm:$0x1]  ;;  %v319_v53 = vshrl.u32 %v3380_v46, 16  ;;  %v3086_v6 = vld [vmem:[%s3771_s1 + $0x28] sm:$0xff]  }
  0x2c   : > { %2868 = vmatmul.mubr.bf16.vlgmr.msra.gmra.mrb[0].mxu0 %v2447_v61  ;;  %2782 = vmatpush3.bf16.msra.mxu1 %v3078_v43  ;;  %v1097_v43 = vrot.slane %v1095_v33, 5  ;;  %v3397_v61 = vld [vmem:[%s3221_s14 + $0x3c] sm:$0x1]  ;;  %v322_v3 = vshll.u32 %v3380_v46, 16  ;;  %v328_v4 = vshll.u32 %v3388_v52, 16  ;;  %v1114_v28 = vshrl.u32 %v2426_v5, 16 }
  0x2d   : > { %2876 = vmatpush3.bf16.msra.mxu0 %v3298_v1  ;;  %2783 = vmatprep.subr.bf16.mxu1 %v3080_v59  ;;  %v297_v1 = vor.u32 %v296_v17, %v293_v14  ;;  %v311_v32 = vor.u32 %v310_v20, %v307_v19  ;;  %v1093_v8 = vrot.slane %v1092_v48, 4  ;;  %v333_v14 = vshrl.u32 %v3385_v50, 16  ;;  %v3407_v17 = vld [vmem:[%s3221_s14 + $0x3c] sm:$0x1]  ;;  %v3415_v27 = vld [vmem:[%s3221_s14 + $0x44] sm:$0x1] }
  0x2e   : > { %2877 = vmatprep.subr.bf16.mxu0 %v3079_v54  ;;  %v324_v19 = vrot.slane %v322_v3, 5  ;;  %v330_v20 = vrot.slane %v328_v4, 5  ;;  %v342_v25 = vshll.u32 %v3397_v61, 16  ;;  %v1117_v36 = vshll.u32 %v2426_v5, 16 }
  0x2f   : > { %v298_v37 = vrot.slane %v297_v1, 4  ;;  %v312_v42 = vrot.slane %v311_v32, 4  ;;  %v1098_v23 = vsel %vm3266_vm2, %v1093_v8, %v1097_v43  ;;  %v335_v1 = vrot.slane %v333_v14, 4 }
  0x30   : > { %2784 = vmatpush3.bf16.msra.mxu1 %v3080_v59  ;;  %v1106_v59 = vor.u32 %v1105_v45, %v1102_v44  ;;  %v344_v40 = vrot.slane %v342_v25, 5  ;;  %v1116_v41 = vrot.slane %v1114_v28, 4  ;;  %v1119_v45 = vrot.slane %v1117_v36, 5  ;;  %v2460_v25 = vld [vmem:[%s3221_s14 + $0x18] sm:$0xe] }
  0x31   : > { %2878 = vmatpush3.bf16.msra.mxu0 %v3079_v54  ;;  %2785 = vmatprep.subr.bf16.mxu1 %v3082_v10  ;;  %v303_v47 = vsel %vm3266_vm2, %v298_v37, %v302_v18  ;;  %v3085_v54 = vld [vmem:[%s3771_s1 + $0x160] sm:$0xff]   ;;  %v317_v58 = vsel %vm3266_vm2, %v312_v42, %v316_v22  ;;  %v336_v22 = vshll.u32 %v3385_v50, 16  ;;  %v3088_v37 = vld [vmem:[%s3771_s1 + $0x30] sm:$0xff]   ;;  %v1123_v42 = vshll.u32 %v3407_v17, 16  ;;  %v3091_v28 = vld [vmem:[%s3771_s1 + $0x178] sm:$0xff]  }
  0x32   : > { %2879 = vmatprep.subr.bf16.mxu0 %v3081_v9  ;;  %v2320_v7 = vcombine.low %v303_v47, %v317_v58  ;;  %v1107_v18 = vrot.slane %v1106_v59, 4  ;;  %v1325_v47 = vrot.slane %v3259_v34, 5  ;;  %v1329_v48 = vrot.slane %v3309_v16, 5  ;;  %v3089_v58 = vld [vmem:[%s3771_s1 + $0x170] sm:$0xff]  }
  0x33   : > { %v338_v35 = vrot.slane %v336_v22, 5  ;;  %v1120_v4 = vor.u32 %v1119_v45, %v1116_v41  ;;  %v1125_v34 = vrot.slane %v1123_v42, 5  ;;  %v1333_v22 = vrot.slane %v3315_v21, 5  ;;  %v3094_v41 = vld [vmem:[%s3771_s1 + $0x180] sm:$0xff]  }
  0x34   : > { %2786 = vmatpush3.bf16.msra.mxu1 %v3082_v10  ;;  %v321_v10 = vrot.slane %v319_v53, 4  ;;  %2775 = vmatprep.mubr.bf16.mxu1 %v2320_v7  ;;  %v1112_v32 = vsel %vm3266_vm2, %v1107_v18, %v1111_v49  ;;  %v1137_v53 = vshll.u32 %v3415_v27, 16  ;;  %v2458_v7 = vld [vmem:[%s3221_s14 + $0x8] sm:$0xe]  ;;  %v2468_v36 = vrot.slane %v2460_v25, 9 }
  0x35   : > { %2880 = vmatpush3.bf16.msra.mxu0 %v3081_v9  ;;  %2787 = vmatprep.subr.bf16.mxu1 %v3084_v30  ;;  %v2428_v9 = vld [vmem:[%s3221_s14 + $0x40] sm:$0xf]  ;;  %v2448_v39 = vcombine.low %v1098_v23, %v1112_v32  ;;  %v339_v44 = vor.u32 %v338_v35, %v335_v1  ;;  %v2466_v14 = vrot.slane %v2458_v7, 9  ;;  %v1121_v18 = vrot.slane %v1120_v4, 4 }
  0x36   : > { %2881 = vmatprep.subr.bf16.mxu0 %v3083_v29  ;;  %v325_v33 = vor.u32 %v324_v19, %v321_v10  ;;  %v1131_v49 = vshll.u32 %v2428_v9, 16  ;;  %v2459_v10 = vld [vmem:[%s3221_s14 + $0x10] sm:$0xe]  ;;  %v2330_v19 = vcombine.low %v3227_v11, %v3230_v12  ;;  %v1139_v1 = vrot.slane %v1137_v53, 5  ;;  %v2461_v12 = vld [vmem:[%s3221_s14 + $0x20] sm:$0xe] }
  0x37   : > { %2871 = vmatprep.mubr.bf16.mxu0 %v2448_v39  ;;  %v340_v3 = vrot.slane %v339_v44, 4  ;;  %v1322_v32 = vsel %vm3440_vm5, %v2466_v14, %v1321_v57  ;;  %v1126_v21 = vsel %vm3266_vm2, %v1121_v18, %v1125_v34  ;;  %v3093_v35 = vld [vmem:[%s3771_s1 + $0x80] sm:$0xff]   ;;  %v1330_v42 = vsel %vm3440_vm5, %v2468_v36, %v1329_v48  ;;  %v3098_v44 = vld [vmem:[%s3771_s1 + $0x90] sm:$0xff]  }
  0x38   : > { %2788 = vmatpush3.bf16.msra.mxu1 %v3084_v30  ;;  %v3087_v30 = vld [vmem:[%s3771_s1 + $0x168] sm:$0xff]   ;;  %v326_v43 = vrot.slane %v325_v33, 4  ;;  %v1133_v16 = vrot.slane %v1131_v49, 5  ;;  %v1337_v45 = vrot.slane %v3365_v24, 5  ;;  %v1345_v53 = vrot.slane %v3407_v17, 5  ;;  %v3102_v18 = vld [vmem:[%s3771_s1 + $0xa0] sm:$0xff]  }
  0x39   : > { %2882 = vmatpush3.bf16.msra.mxu0 %v3083_v29  ;;  %2789 = vmatprep.subr.bf16.mxu1 %v3086_v6  ;;  %v1128_v29 = vshrl.u32 %v2428_v9, 16  ;;  %v1349_v24 = vrot.slane %v3415_v27, 5  ;;  %v662_v34 = vrot.slane %v3239_v15, 5  ;;  %v666_v17 = vrot.slane %v3284_v56, 5  ;;  %v630_v15 = vld [vmem:[%s3221_s14 + $0x8] sm:$0xe] }
  0x3a   : > { %2883 = vmatprep.subr.bf16.mxu0 %v3085_v54  ;;  %v331_v59 = vsel %vm3266_vm2, %v326_v43, %v330_v20  ;;  %v2467_v20 = vrot.slane %v2459_v10, 9  ;;  %v3096_v43 = vld [vmem:[%s3771_s1 + $0x88] sm:$0xff]   ;;  %v3099_v10 = vld [vmem:[%s3771_s1 + $0x190] sm:$0xff]   ;;  %v2343_v14 = vrot.slane %v630_v15, 9  ;;  %v674_v36 = vrot.slane %v3345_v0, 5  ;;  %v3112_v0 = vld [vmem:[%s3771_s1 + $0xc0] sm:$0xff]  }
  0x3b   : > { %v1130_v5 = vrot.slane %v1128_v29, 4  ;;  %v1341_v29 = vrot.slane %v3369_v26, 5  ;;  %v2333_v26 = vcombine.low %v3380_v46, %v3385_v50  ;;  %v3100_v46 = vld [vmem:[%s3771_s1 + $0x98] sm:$0xff]   ;;  %v3117_v15 = vld [vmem:[%s3771_s1 + $0x1c8] sm:$0xff]  }
  0x3c   : > { %2790 = vmatpush3.bf16.msra.mxu1 %v3086_v6  ;;  %v3090_v6 = vld [vmem:[%s3771_s1 + $0x38] sm:$0xff]   ;;  %v1326_v11 = vsel %vm3440_vm5, %v2467_v20, %v1325_v47 }
  0x3d   : > { %2884 = vmatpush3.bf16.msra.mxu0 %v3085_v54  ;;  %2791 = vmatprep.subr.bf16.mxu1 %v3088_v37  ;;  %v345_v54 = vsel %vm3266_vm2, %v340_v3, %v344_v40  ;;  %v1134_v23 = vor.u32 %v1133_v16, %v1130_v5  ;;  %v2490_v57 = vcombine.low %v1322_v32, %v1326_v11  ;;  %v629_v16 = vld [vmem:[%s3221_s14] sm:$0xe]  ;;  %v3101_v20 = vld [vmem:[%s3771_s1 + $0x198] sm:$0xff]  }
  0x3e   : > { %2885 = vmatprep.subr.bf16.mxu0 %v3087_v30  ;;  %v2321_v9 = vcombine.low %v331_v59, %v345_v54  ;;  %v2331_v40 = vcombine.low %v3276_v51, %v3281_v55  ;;  %v2332_v51 = vcombine.low %v3339_v62, %v3342_v63  ;;  %v658_v55 = vrot.slane %v3233_v13, 5  ;;  %v3097_v62 = vld [vmem:[%s3771_s1 + $0x188] sm:$0xff]   ;;  %v2463_v63 = vld [vmem:[%s3221_s14 + $0x30] sm:$0xe]  ;;  %v2465_v59 = vld [vmem:[%s3221_s14 + $0x40] sm:$0xe] }
  0x3f   : > { %v1135_v33 = vrot.slane %v1134_v23, 4  ;;  %v2462_v13 = vld [vmem:[%s3221_s14 + $0x28] sm:$0xe]  ;;  %v2471_v49 = vrot.slane %v2463_v63, 9  ;;  %v2473_v7 = vrot.slane %v2465_v59, 9  ;;  %v2342_v56 = vrot.slane %v629_v16, 9 }
  0x40   : > { %2792 = vmatpush3.bf16.msra.mxu1 %v3088_v37  ;;  %v2469_v37 = vrot.slane %v2461_v12, 9  ;;  %v2470_v48 = vrot.slane %v2462_v13, 9  ;;  %v670_v54 = vrot.slane %v3289_v60, 5  ;;  %v631_v23 = vld [vmem:[%s3221_s14 + $0x10] sm:$0xe] }
  0x41   : > { %2886 = vmatpush3.bf16.msra.mxu0 %v3087_v30  ;;  %2776 = vmatmul.mubr.bf16.gmra.mrb[4].mxu1 %v2321_v9  ;;  %v1140_v31 = vsel %vm3266_vm2, %v1135_v33, %v1139_v1  ;;  %v1342_v4 = vsel %vm3440_vm5, %v2471_v49, %v1341_v29  ;;  %v663_v9 = vsel %vm3440_vm5, %v2343_v14, %v662_v34  ;;  %v632_v60 = vld [vmem:[%s3221_s14 + $0x18] sm:$0xe]  ;;  %v2344_v25 = vrot.slane %v631_v23, 9  ;;  %v3104_v33 = vld [vmem:[%s3771_s1 + $0xa8] sm:$0xff]  }
  0x42   : > { %2887 = vmatprep.subr.bf16.mxu0 %v3089_v58  ;;  %2793 = vmatprep.subr.bf16.mxu1 %v3090_v6  ;;  %v2449_v39 = vcombine.low %v1126_v21, %v1140_v31  ;;  %v1334_v30 = vsel %vm3440_vm5, %v2469_v37, %v1333_v22  ;;  %v1338_v3 = vsel %vm3440_vm5, %v2470_v48, %v1337_v45  ;;  %v3113_v32 = vld [vmem:[%s3221_s14 + $0x10] ss:$8 sps:$4 sm:$0xff]   ;;  %v682_v29 = vrot.slane %v3388_v52, 5  ;;  %v3116_v49 = vld [vmem:[%s3771_s1 + $0xc8] sm:$0xff]  }
  0x43   : > { %2795 = vmatprep.mubr.bf16.mxu1 %v2330_v19  ;;  %v2491_v47 = vcombine.low %v1330_v42, %v1334_v30  ;;  %v2492_v27 = vcombine.low %v1338_v3, %v1342_v4  ;;  %v659_v19 = vsel %vm3440_vm5, %v2342_v56, %v658_v55  ;;  %v667_v11 = vsel %vm3440_vm5, %v2344_v25, %v666_v17  ;;  %v3107_v31 = vld [vmem:[%s3771_s1 + $0xb0] sm:$0xff]   ;;  %v3110_v37 = vld [vmem:[%s3771_s1 + $0xb8] sm:$0xff]   ;;  %v2544_v25 = vld [vmem:[%s3221_s14 + $0x28] sm:$0xf] }
  0x44   : > { %2794 = vmatpush3.bf16.msra.mxu1 %v3090_v6  ;;  %2872 = vmatmul.mubr.bf16.gmra.mrb[4].mxu0 %v2449_v39  ;;  %v1350_v6 = vsel %vm3440_vm5, %v2473_v7, %v1349_v24  ;;  %v2366_v1 = vcombine.low %v659_v19, %v663_v9  ;;  %v633_v39 = vld [vmem:[%s3221_s14 + $0x20] sm:$0xe]  ;;  %v3111_v45 = vld [vmem:[%s3771_s1 + $0x1b8] sm:$0xff]   ;;  %v3579_v24 = vld [vmem:[%s3221_s14 + $0x14] sm:$0x1] }
  0x45   : > { %2888 = vmatpush3.bf16.msra.mxu0 %v3089_v58  ;;  %2803 = vmatprep.subr.bf16.mxu1 %v3093_v35  ;;  %v2464_v58 = vld [vmem:[%s3221_s14 + $0x38] sm:$0xe]  ;;  %v2346_v42 = vrot.slane %v633_v39, 9  ;;  %v1702_v59 = vshll.u32 %v3579_v24, 16  ;;  %v3115_v7 = vld [vmem:[%s3221_s14 + $0x20] ss:$8 sps:$4 sm:$0xff]  }
  0x46   : > { %2889 = vmatprep.subr.bf16.mxu0 %v3091_v28  ;;  %2891 = vmatprep.mubr.bf16.mxu0 %v2490_v57  ;;  %v2472_v5 = vrot.slane %v2464_v58, 9  ;;  %v3105_v57 = vld [vmem:[%s3771_s1 + $0x1a8] sm:$0xff]   ;;  %v2540_v52 = vld [vmem:[%s3221_s14 + $0x18] sm:$0xf]  ;;  %v3119_v9 = vld [vmem:[%s3771_s1 + $0x1d0] sm:$0xff]  }
  0x47   : > { %v1707_v3 = vshrl.u32 %v2540_v52, 16  ;;  %v1710_v4 = vshll.u32 %v2540_v52, 16  ;;  %v3126_v56 = vld [vmem:[%s3221_s14 + $0x30] ss:$8 sps:$4 sm:$0xff]   ;;  %v3125_v52 = vld [vmem:[%s3771_s1 + $0x1e8] sm:$0xff]  }
  0x48   : > { %v1346_v50 = vsel %vm3440_vm5, %v2472_v5, %v1345_v53  ;;  %v2538_v53 = vld [vmem:[%s3221_s14 + $0x10] sm:$0xf]  ;;  %v3120_v23 = vld [vmem:[%s3771_s1 + $0xd8] sm:$0xff]  }
  0x49   : > { %2890 = vmatpush3.bf16.msra.mxu0 %v3091_v28  ;;  %2796 = vmatmul.mubr.bf16.vlgmr.msra.gmra.mrb[0].mxu1 %v2331_v40  ;;  %v2493_v22 = vcombine.low %v1346_v50, %v1350_v6  ;;  %v2345_v28 = vrot.slane %v632_v60, 9  ;;  %v634_v40 = vld [vmem:[%s3221_s14 + $0x28] sm:$0xe]  ;;  %v1696_v58 = vshll.u32 %v2538_v53, 16  ;;  %v1709_v50 = vrot.slane %v1707_v3, 4 }
  0x4a   : > { %2899 = vmatprep.subr.bf16.mxu0 %v3094_v41  ;;  %2804 = vmatpush3.bf16.msra.mxu1 %v3093_v35  ;;  %v3103_v35 = vld [vmem:[%s3771_s1 + $0x1a0] sm:$0xff]   ;;  %v2347_v30 = vrot.slane %v634_v40, 9  ;;  %v1712_v6 = vrot.slane %v1710_v4, 5 }
  0x4b   : > { %2805 = vmatprep.subr.bf16.mxu1 %v3096_v43  ;;  %2799 = vmatprep.mubr.bf16.mxu1 %v2332_v51  ;;  %v671_v12 = vsel %vm3440_vm5, %v2345_v28, %v670_v54  ;;  %v635_v51 = vld [vmem:[%s3221_s14 + $0x30] sm:$0xe]  ;;  %v1698_v16 = vrot.slane %v1696_v58, 5  ;;  %v1704_v54 = vrot.slane %v1702_v59, 5 }
  0x4c   : > { %2892 = vmatmul.mubr.bf16.vlgmr.msra.gmra.mrb[0].mxu0 %v2491_v47  ;;  %v2367_v21 = vcombine.low %v667_v11, %v671_v12  ;;  %v686_v47 = vrot.slane %v3397_v61, 5  ;;  %v2348_v63 = vrot.slane %v635_v51, 9  ;;  %v3583_v61 = vld [vmem:[%s3221_s14 + $0x1c] sm:$0x1]  ;;  %v3128_v11 = vld [vmem:[%s3221_s14 + $0x40] ss:$8 sps:$4 sm:$0xff]  }
  0x4d   : > { %2900 = vmatpush3.bf16.msra.mxu0 %v3094_v41  ;;  %2895 = vmatprep.mubr.bf16.mxu0 %v2492_v27  ;;  %v678_v41 = vrot.slane %v3348_v2, 5  ;;  %v675_v2 = vsel %vm3440_vm5, %v2346_v42, %v674_v36  ;;  %v1716_v5 = vshll.u32 %v3583_v61, 16  ;;  %v2546_v12 = vld [vmem:[%s3221_s14 + $0x30] sm:$0xf]  ;;  %v1738_v36 = vshll.u32 %v2544_v25, 16 }
  0x4e   : > { %2806 = vmatpush3.bf16.msra.mxu1 %v3096_v43  ;;  %2901 = vmatprep.subr.bf16.mxu0 %v3097_v62  ;;  %v3108_v43 = vld [vmem:[%s3771_s1 + $0x1b0] sm:$0xff]   ;;  %v683_v34 = vsel %vm3440_vm5, %v2348_v63, %v682_v29  ;;  %v1749_v40 = vshrl.u32 %v2546_v12, 16  ;;  %v3628_v51 = vld [vmem:[%s3221_s14 + $0x24] sm:$0x1] }
  0x4f   : > { %2807 = vmatprep.subr.bf16.mxu1 %v3098_v44  ;;  %v679_v55 = vsel %vm3440_vm5, %v2347_v30, %v678_v41  ;;  %v1718_v19 = vrot.slane %v1716_v5, 5  ;;  %v1752_v41 = vshll.u32 %v2546_v12, 16  ;;  %v1740_v29 = vrot.slane %v1738_v36, 5  ;;  %v2552_v5 = vld [vmem:[%s3221_s14 + $0x48] sm:$0xf]  ;;  %v3131_v12 = vld [vmem:[%s3771_s1 + $0x1f8] sm:$0xff]  }
  0x50   : > { %v2368_v13 = vcombine.low %v675_v2, %v679_v55  ;;  %v3631_v2 = vld [vmem:[%s3221_s14 + $0x2c] sm:$0x1]  ;;  %v1730_v58 = vshll.u32 %v3628_v51, 16 }
  0x51   : > { %2800 = vmatmul.mubr.bf16.gmra.mrb[4].mxu1 %v2333_v26  ;;  %2902 = vmatpush3.bf16.msra.mxu0 %v3097_v62  ;;  %v3114_v62 = vld [vmem:[%s3771_s1 + $0x1c0] sm:$0xff]   ;;  %v1693_v26 = vshrl.u32 %v2538_v53, 16  ;;  %v1754_v63 = vrot.slane %v1752_v41, 5  ;;  %v1744_v59 = vshll.u32 %v3631_v2, 16 }
  0x52   : > { %2808 = vmatpush3.bf16.msra.mxu1 %v3098_v44  ;;  %2903 = vmatprep.subr.bf16.mxu0 %v3099_v10  ;;  %v636_v44 = vld [vmem:[%s3221_s14 + $0x38] sm:$0xe]  ;;  %v2550_v53 = vld [vmem:[%s3221_s14 + $0x40] sm:$0xf] }
  0x53   : > { %2809 = vmatprep.subr.bf16.mxu1 %v3100_v46  ;;  %2819 = vmatprep.mubr.bf16.mxu1 %v2366_v1  ;;  %v2349_v48 = vrot.slane %v636_v44, 9  ;;  %v1695_v27 = vrot.slane %v1693_v26, 4  ;;  %v2542_v1 = vld [vmem:[%s3221_s14 + $0x20] sm:$0xf]  ;;  %v3127_v26 = vld [vmem:[%s3771_s1 + $0xf0] sm:$0xff]  }
  0x54   : > { %2896 = vmatmul.mubr.bf16.gmra.mrb[4].mxu0 %v2493_v22 }
  0x55   : > { %2904 = vmatpush3.bf16.msra.mxu0 %v3099_v10  ;;  %2915 = vmatprep.mubr.bf16.mxu0 %v3113_v32  ;;  %v687_v17 = vsel %vm3440_vm5, %v2349_v48, %v686_v47  ;;  %v1699_v10 = vor.u32 %v1698_v16, %v1695_v27  ;;  %v3634_v47 = vld [vmem:[%s3221_s14 + $0x34] sm:$0x1]  ;;  %v1780_v27 = vshll.u32 %v2550_v53, 16 }
  0x56   : > { %2810 = vmatpush3.bf16.msra.mxu1 %v3100_v46  ;;  %2905 = vmatprep.subr.bf16.mxu0 %v3101_v20  ;;  %v3118_v46 = vld [vmem:[%s3771_s1 + $0xd0] sm:$0xff]   ;;  %v2369_v14 = vcombine.low %v683_v34, %v687_v17  ;;  %v1758_v3 = vshll.u32 %v3634_v47, 16  ;;  %v1777_v17 = vshrl.u32 %v2550_v53, 16  ;;  %v2583_v53 = vld [vmem:[%s3221_s14 + $0x18] sm:$0xe] }
  0x57   : > { %2811 = vmatprep.subr.bf16.mxu1 %v3102_v18  ;;  %v1700_v22 = vrot.slane %v1699_v10, 4 }
  0x59   : > { %2906 = vmatpush3.bf16.msra.mxu0 %v3101_v20  ;;  %v3132_v20 = vld [vmem:[%s3221_s14 + $0x8] ss:$8 sps:$4 sm:$0xff]   ;;  %v1705_v28 = vsel %vm3266_vm2, %v1700_v22, %v1704_v54 }
  0x5a   : > { %2812 = vmatpush3.bf16.msra.mxu1 %v3102_v18  ;;  %2907 = vmatprep.subr.bf16.mxu0 %v3103_v35  ;;  %v1713_v18 = vor.u32 %v1712_v6, %v1709_v50  ;;  %v1791_v50 = vshrl.u32 %v2552_v5, 16  ;;  %v1794_v6 = vshll.u32 %v2552_v5, 16  ;;  %v2591_v5 = vrot.slane %v2583_v53, 9 }
  0x5b   : > { %2813 = vmatprep.subr.bf16.mxu1 %v3104_v33 }
  0x5c   : > { %v1714_v60 = vrot.slane %v1713_v18, 4  ;;  %v1746_v18 = vrot.slane %v1744_v59, 5  ;;  %v3137_v59 = vld [vmem:[%s3221_s14 + $0x38] ss:$8 sps:$4 sm:$0xff]  }
  0x5d   : > { %2908 = vmatpush3.bf16.msra.mxu0 %v3103_v35  ;;  %v1721_v35 = vshrl.u32 %v2542_v1, 16 }
  0x5e   : > { %2814 = vmatpush3.bf16.msra.mxu1 %v3104_v33  ;;  %2909 = vmatprep.subr.bf16.mxu0 %v3105_v57  ;;  %v1719_v32 = vsel %vm3266_vm2, %v1714_v60, %v1718_v19  ;;  %v3122_v33 = vld [vmem:[%s3771_s1 + $0xe0] sm:$0xff]   ;;  %v3661_v60 = vld [vmem:[%s3221_s14 + $0x4c] sm:$0x1] }
  0x5f   : > { %2815 = vmatprep.subr.bf16.mxu1 %v3107_v31  ;;  %v2570_v39 = vcombine.low %v1705_v28, %v1719_v32  ;;  %v1723_v55 = vrot.slane %v1721_v35, 4  ;;  %v1793_v28 = vrot.slane %v1791_v50, 4  ;;  %v1796_v32 = vrot.slane %v1794_v6, 5  ;;  %v3133_v35 = vld [vmem:[%s3221_s14 + $0x18] ss:$8 sps:$4 sm:$0xff]   ;;  %v3141_v6 = vld [vmem:[%s3771_s1 + $0x228] sm:$0xff]  }
  0x61   : > { %2910 = vmatpush3.bf16.msra.mxu0 %v3105_v57  ;;  %v1735_v57 = vshrl.u32 %v2544_v25, 16  ;;  %v1782_v25 = vrot.slane %v1780_v27, 5 }
  0x62   : > { %2816 = vmatpush3.bf16.msra.mxu1 %v3107_v31  ;;  %2911 = vmatprep.subr.bf16.mxu0 %v3108_v43  ;;  %v1724_v31 = vshll.u32 %v2542_v1, 16  ;;  %v1779_v1 = vrot.slane %v1777_v17, 4 }
  0x63   : > { %2817 = vmatprep.subr.bf16.mxu1 %v3110_v37 }
  0x64   : > { %v1726_v44 = vrot.slane %v1724_v31, 5 }
  0x65   : > { %2912 = vmatpush3.bf16.msra.mxu0 %v3108_v43  ;;  %v3123_v43 = vld [vmem:[%s3771_s1 + $0x1e0] sm:$0xff]  }
  0x66   : > { %2818 = vmatpush3.bf16.msra.mxu1 %v3110_v37  ;;  %2913 = vmatprep.subr.bf16.mxu0 %v3111_v45  ;;  %v3121_v37 = vld [vmem:[%s3771_s1 + $0x1d8] sm:$0xff]  }
  0x67   : > { %2827 = vmatprep.subr.bf16.mxu1 %v3112_v0 }
  0x69   : > { %2820 = vmatmul.mubr.bf16.vlgmr.msra.gmra.mrb[0].mxu1 %v2367_v21  ;;  %2914 = vmatpush3.bf16.msra.mxu0 %v3111_v45  ;;  %v2548_v21 = vld [vmem:[%s3221_s14 + $0x38] sm:$0xf]  ;;  %v1737_v45 = vrot.slane %v1735_v57, 4 }
  0x6a   : > { %2828 = vmatpush3.bf16.msra.mxu1 %v3112_v0  ;;  %2823 = vmatprep.mubr.bf16.mxu1 %v2368_v13  ;;  %v1763_v42 = vshrl.u32 %v2548_v21, 16  ;;  %v1766_v30 = vshll.u32 %v2548_v21, 16  ;;  %v3124_v0 = vld [vmem:[%s3771_s1 + $0xe8] sm:$0xff]   ;;  %v1751_v13 = vrot.slane %v1749_v40, 4  ;;  %v2586_v21 = vld [vmem:[%s3221_s14 + $0x30] sm:$0xe] }
  0x6b   : > { %2829 = vmatprep.subr.bf16.mxu1 %v3116_v49  ;;  %2923 = vmatprep.subr.bf16.mxu0 %v3114_v62  ;;  %v1741_v34 = vor.u32 %v1740_v29, %v1737_v45 }
  0x6c   : > { %2916 = vmatmul.mubr.bf16.vlgmr.msra.gmra.mrb[0].mxu0 %v3115_v7  ;;  %v1765_v48 = vrot.slane %v1763_v42, 4  ;;  %v1727_v7 = vor.u32 %v1726_v44, %v1723_v55  ;;  %v1755_v16 = vor.u32 %v1754_v63, %v1751_v13  ;;  %v1783_v42 = vor.u32 %v1782_v25, %v1779_v1 }
  0x6d   : > { %2924 = vmatpush3.bf16.msra.mxu0 %v3114_v62  ;;  %2919 = vmatprep.mubr.bf16.mxu0 %v3126_v56  ;;  %v3637_v62 = vld [vmem:[%s3221_s14 + $0x3c] sm:$0x1]  ;;  %v3129_v56 = vld [vmem:[%s3771_s1 + $0x1f0] sm:$0xff]   ;;  %v1742_v54 = vrot.slane %v1741_v34, 4  ;;  %v2000_v55 = vrot.slane %v3634_v47, 5  ;;  %v1992_v25 = vrot.slane %v3628_v51, 5 }
  0x6e   : > { %2830 = vmatpush3.bf16.msra.mxu1 %v3116_v49  ;;  %2925 = vmatprep.subr.bf16.mxu0 %v3117_v15  ;;  %v1768_v49 = vrot.slane %v1766_v30, 5  ;;  %v1772_v4 = vshll.u32 %v3637_v62, 16  ;;  %v1728_v10 = vrot.slane %v1727_v7, 4  ;;  %v1756_v19 = vrot.slane %v1755_v16, 4  ;;  %v3139_v16 = vld [vmem:[%s3771_s1 + $0x218] sm:$0xff]  }
  0x6f   : > { %2831 = vmatprep.subr.bf16.mxu1 %v3118_v46  ;;  %v1747_v57 = vsel %vm3266_vm2, %v1742_v54, %v1746_v18  ;;  %v1797_v30 = vor.u32 %v1796_v32, %v1793_v28  ;;  %v2004_v45 = vrot.slane %v3637_v62, 5  ;;  %v1988_v7 = vrot.slane %v3583_v61, 5 }
  0x70   : > { %v2012_v54 = vrot.slane %v3661_v60, 5  ;;  %v1996_v32 = vrot.slane %v3631_v2, 5 }
  0x71   : > { %2824 = vmatmul.mubr.bf16.gmra.mrb[4].mxu1 %v2369_v14  ;;  %2926 = vmatpush3.bf16.msra.mxu0 %v3117_v15  ;;  %v3130_v15 = vld [vmem:[%s3771_s1 + $0xf8] sm:$0xff]   ;;  %v1732_v14 = vrot.slane %v1730_v58, 5  ;;  %v3138_v58 = vld [vmem:[%s3771_s1 + $0x210] sm:$0xff]   ;;  %v1989_v61 = vsel %vm3440_vm5, %v2591_v5, %v1988_v7 }
  0x72   : > { %2832 = vmatpush3.bf16.msra.mxu1 %v3118_v46  ;;  %2843 = vmatprep.mubr.bf16.mxu1 %v3132_v20  ;;  %v1769_v46 = vor.u32 %v1768_v49, %v1765_v48  ;;  %v1760_v20 = vrot.slane %v1758_v3, 5  ;;  %v2582_v49 = vld [vmem:[%s3221_s14 + $0x10] sm:$0xe] }
  0x73   : > { %2833 = vmatprep.subr.bf16.mxu1 %v3120_v23  ;;  %2927 = vmatprep.subr.bf16.mxu0 %v3119_v9  ;;  %v1733_v31 = vsel %vm3266_vm2, %v1728_v10, %v1732_v14  ;;  %v2590_v3 = vrot.slane %v2582_v49, 9  ;;  %v2589_v10 = vld [vmem:[%s3221_s14 + $0x48] sm:$0xe] }
  0x74   : > { %2920 = vmatmul.mubr.bf16.gmra.mrb[4].mxu0 %v3128_v11  ;;  %v1770_v22 = vrot.slane %v1769_v46, 4  ;;  %v3134_v11 = vld [vmem:[%s3771_s1 + $0x200] sm:$0xff]   ;;  %v1761_v40 = vsel %vm3266_vm2, %v1756_v19, %v1760_v20  ;;  %v2571_v29 = vcombine.low %v1733_v31, %v1747_v57  ;;  %v2597_v19 = vrot.slane %v2589_v10, 9  ;;  %v3143_v20 = vld [vmem:[%s3771_s1 + $0x238] sm:$0xff]  }
  0x75   : > { %2928 = vmatpush3.bf16.msra.mxu0 %v3119_v9  ;;  %2939 = vmatprep.mubr.bf16.mxu0 %v2570_v39  ;;  %v1774_v9 = vrot.slane %v1772_v4, 5  ;;  %v3136_v39 = vld [vmem:[%s3221_s14 + $0x28] ss:$8 sps:$4 sm:$0xff]   ;;  %v1984_v4 = vrot.slane %v3579_v24, 5 }
  0x76   : > { %2834 = vmatpush3.bf16.msra.mxu1 %v3120_v23  ;;  %2929 = vmatprep.subr.bf16.mxu0 %v3121_v37  ;;  %v3658_v23 = vld [vmem:[%s3221_s14 + $0x44] sm:$0x1] }
  0x77   : > { %2835 = vmatprep.subr.bf16.mxu1 %v3122_v33  ;;  %v1786_v36 = vshll.u32 %v3658_v23, 16  ;;  %v1775_v41 = vsel %vm3266_vm2, %v1770_v22, %v1774_v9  ;;  %v1985_v24 = vsel %vm3440_vm5, %v2590_v3, %v1984_v4  ;;  %v2008_v14 = vrot.slane %v3658_v23, 5  ;;  %v2584_v22 = vld [vmem:[%s3221_s14 + $0x20] sm:$0xe]  ;;  %v2585_v9 = vld [vmem:[%s3221_s14 + $0x28] sm:$0xe] }
  0x78   : > { %v2572_v13 = vcombine.low %v1761_v40, %v1775_v41  ;;  %v2614_v50 = vcombine.low %v1985_v24, %v1989_v61  ;;  %v2013_v23 = vsel %vm3440_vm5, %v2597_v19, %v2012_v54  ;;  %v2593_v28 = vrot.slane %v2585_v9, 9 }
  0x79   : > { %2930 = vmatpush3.bf16.msra.mxu0 %v3121_v37  ;;  %v1800_v37 = vshll.u32 %v3661_v60, 16  ;;  %v1788_v63 = vrot.slane %v1786_v36, 5  ;;  %v2592_v60 = vrot.slane %v2584_v22, 9 }
  0x7a   : > { %2836 = vmatpush3.bf16.msra.mxu1 %v3122_v33  ;;  %2931 = vmatprep.subr.bf16.mxu0 %v3123_v43  ;;  %v2587_v33 = vld [vmem:[%s3221_s14 + $0x38] sm:$0xe] }
  0x7b   : > { %2837 = vmatprep.subr.bf16.mxu1 %v3124_v0  ;;  %v2595_v44 = vrot.slane %v2587_v33, 9  ;;  %v1802_v48 = vrot.slane %v1800_v37, 5 }
  0x7d   : > { %2932 = vmatpush3.bf16.msra.mxu0 %v3123_v43  ;;  %v3135_v43 = vld [vmem:[%s3771_s1 + $0x208] sm:$0xff]   ;;  %v2005_v62 = vsel %vm3440_vm5, %v2595_v44, %v2004_v45  ;;  %v2626_v44 = vld [vmem:[%s3772_s2] ss:$0 sm:$0xff] }
  0x7e   : > { %2838 = vmatpush3.bf16.msra.mxu1 %v3124_v0  ;;  %2933 = vmatprep.subr.bf16.mxu0 %v3125_v52  ;;  %v2594_v0 = vrot.slane %v2586_v21, 9  ;;  %v1997_v21 = vsel %vm3440_vm5, %v2593_v28, %v1996_v32 }
  0x7f   : > { %2839 = vmatprep.subr.bf16.mxu1 %v3127_v26 }
  0x80   : > { %v2001_v47 = vsel %vm3440_vm5, %v2594_v0, %v2000_v55 }
  0x81   : > { %2934 = vmatpush3.bf16.msra.mxu0 %v3125_v52  ;;  %v1784_v52 = vrot.slane %v1783_v42, 4  ;;  %v2616_v34 = vcombine.low %v2001_v47, %v2005_v62 }
  0x82   : > { %2840 = vmatpush3.bf16.msra.mxu1 %v3127_v26  ;;  %2935 = vmatprep.subr.bf16.mxu0 %v3129_v56  ;;  %v1798_v26 = vrot.slane %v1797_v30, 4 }
  0x83   : > { %2841 = vmatprep.subr.bf16.mxu1 %v3130_v15  ;;  %v1789_v17 = vsel %vm3266_vm2, %v1784_v52, %v1788_v63  ;;  %v2627_v63 = vld [vmem:[%s3773_s3] ss:$0 sm:$0xff] }
  0x84   : > { %v1803_v27 = vsel %vm3266_vm2, %v1798_v26, %v1802_v48 }
  0x85   : > { %2936 = vmatpush3.bf16.msra.mxu0 %v3129_v56  ;;  %v2573_v46 = vcombine.low %v1789_v17, %v1803_v27  ;;  %v2588_v56 = vld [vmem:[%s3221_s14 + $0x40] sm:$0xe] }
  0x86   : > { %2842 = vmatpush3.bf16.msra.mxu1 %v3130_v15  ;;  %2937 = vmatprep.subr.bf16.mxu0 %v3131_v12  ;;  %v3142_v15 = vld [vmem:[%s3771_s1 + $0x230] sm:$0xff]   ;;  %v2596_v18 = vrot.slane %v2588_v56, 9 }
  0x87   : > { %2971 = vmatprep.subr.bf16.mxu1 %v3134_v11 }
  0x88   : > { %v2009_v1 = vsel %vm3440_vm5, %v2596_v18, %v2008_v14 }
  0x89   : > { %2844 = vmatmul.mubr.bf16.vlgmr.msra.gmra.mrb[0].mxu1 %v3133_v35  ;;  %2938 = vmatpush3.bf16.msra.mxu0 %v3131_v12  ;;  %v1993_v12 = vsel %vm3440_vm5, %v2592_v60, %v1992_v25 }
  0x8a   : > { %2979 = vmatpush3.bf16.msra.mxu1 %v3134_v11  ;;  %2847 = vmatprep.mubr.bf16.mxu1 %v3136_v39  ;;  %v2615_v33 = vcombine.low %v1993_v12, %v1997_v21 }
  0x8b   : > { %2972 = vmatprep.subr.bf16.mxu1 %v3135_v43  ;;  %2947 = vmatprep.subr.bf16.mxu0 %v3134_v11 }
  0x8c   : > { %2940 = vmatmul.mubr.bf16.vlgmr.msra.gmra.mrb[0].mxu0 %v2571_v29 }
  0x8d   : > { %2948 = vmatpush3.bf16.msra.mxu0 %v3134_v11  ;;  %2943 = vmatprep.mubr.bf16.mxu0 %v2572_v13  ;;  %v2617_v11 = vcombine.low %v2009_v1, %v2013_v23 }
  0x8e   : > { %2980 = vmatpush3.bf16.msra.mxu1 %v3135_v43  ;;  %2949 = vmatprep.subr.bf16.mxu0 %v3135_v43 }
  0x8f   : > { %2973 = vmatprep.subr.bf16.mxu1 %v3138_v58 }
  0x91   : > { %2848 = vmatmul.mubr.bf16.gmra.mrb[4].mxu1 %v3137_v59  ;;  %2950 = vmatpush3.bf16.msra.mxu0 %v3135_v43 }
  0x92   : > { %2981 = vmatpush3.bf16.msra.mxu1 %v3138_v58  ;;  %2967 = vmatprep.mubr.bf16.mxu1 %v2616_v34 }
  0x93   : > { %2974 = vmatprep.subr.bf16.mxu1 %v3139_v16  ;;  %2951 = vmatprep.subr.bf16.mxu0 %v3138_v58 }
  0x94   : > { %2944 = vmatmul.mubr.bf16.gmra.mrb[4].mxu0 %v2573_v46 }
  0x95   : > { %2952 = vmatpush3.bf16.msra.mxu0 %v3138_v58  ;;  %2963 = vmatprep.mubr.bf16.mxu0 %v2614_v50 }
  0x96   : > { %2982 = vmatpush3.bf16.msra.mxu1 %v3139_v16  ;;  %2953 = vmatprep.subr.bf16.mxu0 %v3139_v16 }
  0x97   : > { %2975 = vmatprep.subr.bf16.mxu1 %v3140_v38 }
  0x99   : > { %2954 = vmatpush3.bf16.msra.mxu0 %v3139_v16 }
  0x9a   : > { %2983 = vmatpush3.bf16.msra.mxu1 %v3140_v38  ;;  %2955 = vmatprep.subr.bf16.mxu0 %v3140_v38 }
  0x9b   : > { %2976 = vmatprep.subr.bf16.mxu1 %v3141_v6 }
  0x9d   : > { %2956 = vmatpush3.bf16.msra.mxu0 %v3140_v38 }
  0x9e   : > { %2984 = vmatpush3.bf16.msra.mxu1 %v3141_v6  ;;  %2957 = vmatprep.subr.bf16.mxu0 %v3141_v6 }
  0x9f   : > { %2977 = vmatprep.subr.bf16.mxu1 %v3142_v15 }
  0xa1   : > { %2958 = vmatpush3.bf16.msra.mxu0 %v3141_v6 }
  0xa2   : > { %2985 = vmatpush3.bf16.msra.mxu1 %v3142_v15  ;;  %2959 = vmatprep.subr.bf16.mxu0 %v3142_v15 }
  0xa3   : > { %2978 = vmatprep.subr.bf16.mxu1 %v3143_v20 }
  0xa5   : > { %2960 = vmatpush3.bf16.msra.mxu0 %v3142_v15 }
  0xa6   : > { %2986 = vmatpush3.bf16.msra.mxu1 %v3143_v20  ;;  %2961 = vmatprep.subr.bf16.mxu0 %v3143_v20 }
  0xa9   : > { %2968 = vmatmul.mubr.bf16.vlgmr.msra.gmra.mrb[8].mxu1 %v2617_v11  ;;  %2962 = vmatpush3.bf16.msra.mxu0 %v3143_v20 }
  0xac   : > { %2964 = vmatmul.mubr.bf16.vlgmr.msra.gmra.mrb[0].mxu0 %v2615_v33 }
 0x15c   : > { %v2845_v35 = vpop.f32.mrb[0].mxu1 }
 0x15d   : > { %v974_v51 = vpop.f32.mrb[1].mxu1 }
 0x15e   : > { %v2846_v31 = vpop.f32.mrb[2].mxu1 }
 0x15f   : > { %v977_v57 = vpop.f32.mrb[3].mxu1 }
 0x164   : > { %v2849_v2 = vpop.f32.mrb[4].mxu1 }
 0x165   : > { %v990_v36 = vpop.f32.mrb[5].mxu1 }
 0x166   : > { %v2850_v37 = vpop.f32.mrb[6].mxu1 }
 0x167   : > { %v993_v39 = vpop.f32.mrb[7].mxu1  ;;  %v2945_v40 = vpop.f32.mrb[4].mxu0 }
 0x168   : > { %v2991_v41 = vadd.f32 %v2945_v40, %v2849_v2  ;;  %v1935_v42 = vpop.f32.mrb[5].mxu0 }
 0x169   : > { %v2993_v30 = vadd.f32 %v1935_v42, %v990_v36  ;;  %v2946_v8 = vpop.f32.mrb[6].mxu0 }
 0x16a   : > { %v2995_v43 = vadd.f32 %v2946_v8, %v2850_v37  ;;  %v1938_v0 = vpop.f32.mrb[7].mxu0 }
 0x16b   : > { %v2997_v55 = vadd.f32 %v1938_v0, %v993_v39 }
 0x17c   : > { %v2969_v45 = vpop.f32.mrb[8].mxu1 }
 0x17d   : > { %v2992_v29 = vadd.f32 %v2991_v41, %v2969_v45  ;;  %v2145_v13 = vpop.f32.mrb[9].mxu1 }
 0x17e   : > { %v2994_v48 = vadd.f32 %v2993_v30, %v2145_v13  ;;  %v2970_v49 = vpop.f32.mrb[10].mxu1 }
 0x17f   : > { %v2181_v53 = vmul.f32 %v2992_v29, %v2626_v44  ;;  %v2996_v52 = vadd.f32 %v2995_v43, %v2970_v49  ;;  %v2148_v26 = vpop.f32.mrb[11].mxu1  ;;  %v2965_v58 = vpop.f32.mrb[0].mxu0 }
 0x180   : > { %v2179_v47 = vmul.f32 %v2994_v48, %v2626_v44  ;;  %v2998_v62 = vadd.f32 %v2997_v55, %v2148_v26  ;;  %v2987_v4 = vadd.f32 %v2965_v58, %v2845_v35  ;;  %v2129_v5 = vpop.f32.mrb[1].mxu0 }
 0x181   : > { %v2196_v59 = vadd.f32 %v2627_v63, %v2181_v53  ;;  %v2182_v3 = vmul.f32 %v2996_v52, %v2626_v44  ;;  %v2988_v27 = vadd.f32 %v2129_v5, %v974_v51  ;;  %v2966_v16 = vpop.f32.mrb[2].mxu0 }
 0x182   : > { %v2194_v7 = vadd.f32 %v2627_v63, %v2179_v47  ;;  %v2180_v34 = vmul.f32 %v2998_v62, %v2626_v44  ;;  %v2177_v61 = vmul.f32 %v2987_v4, %v2626_v44  ;;  %v2989_v38 = vadd.f32 %v2966_v16, %v2846_v31  ;;  %v2132_v50 = vpop.f32.mrb[3].mxu0 }
 0x183   : > { %v2645_v17 = vpack.c.bf16 %v2196_v59, %v2196_v59  ;;  %v2197_v24 = vadd.f32 %v2627_v63, %v2182_v3  ;;  %v2175_v15 = vmul.f32 %v2988_v27, %v2626_v44  ;;  %v2990_v10 = vadd.f32 %v2132_v50, %v977_v57 }
 0x184   : > { %v2643_v46 = vpack.c.bf16 %v2194_v7, %v2194_v7  ;;  %v2195_v6 = vadd.f32 %v2627_v63, %v2180_v34  ;;  %v2192_v14 = vadd.f32 %v2627_v63, %v2177_v61  ;;  %v2178_v54 = vmul.f32 %v2989_v38, %v2626_v44 }
 0x185   : > { %2237 = vst.msk [vmem:[%s3749_s6 + $0x18] sm:$0xf] %vm2230_vm6, %v2645_v17  ;;  %v2646_v56 = vpack.c.bf16 %v2197_v24, %v2197_v24  ;;  %v2190_v19 = vadd.f32 %v2627_v63, %v2175_v15  ;;  %v2176_v20 = vmul.f32 %v2990_v10, %v2626_v44 }
 0x186   : > { %2235 = vst.msk [vmem:[%s3749_s6 + $0x10] sm:$0xf] %vm2230_vm6, %v2643_v46  ;;  %v2644_v18 = vpack.c.bf16 %v2195_v6, %v2195_v6  ;;  %v2641_v22 = vpack.c.bf16 %v2192_v14, %v2192_v14  ;;  %v2193_v9 = vadd.f32 %v2627_v63, %v2178_v54 }
 0x187   : > { %2238 = vst.msk [vmem:[%s3749_s6 + $0x1c] sm:$0xf] %vm2230_vm6, %v2646_v56  ;;  %v2639_v1 = vpack.c.bf16 %v2190_v19, %v2190_v19  ;;  %v2191_v23 = vadd.f32 %v2627_v63, %v2176_v20 }
 0x188   : > { %2236 = vst.msk [vmem:[%s3749_s6 + $0x14] sm:$0xf] %vm2230_vm6, %v2644_v18  ;;  %2233 = vst.msk [vmem:[%s3749_s6 + $0x8] sm:$0xf] %vm2230_vm6, %v2641_v22  ;;  %v2642_v60 = vpack.c.bf16 %v2193_v9, %v2193_v9 }
 0x189   : > { %2231 = vst.msk [vmem:[%s3749_s6] sm:$0xf] %vm2230_vm6, %v2639_v1  ;;  %v2640_v25 = vpack.c.bf16 %v2191_v23, %v2191_v23 }
 0x18a   : > { %2234 = vst.msk [vmem:[%s3749_s6 + $0xc] sm:$0xf] %vm2230_vm6, %v2642_v60 }
 0x18b   : > { %2232 = vst.msk [vmem:[%s3749_s6 + $0x4] sm:$0xf] %vm2230_vm6, %v2640_v25 }
 0x18c PF: > { %s14_s15 = sadd.s32 1, %s3150_s15  }
 0x18d   : > { %p11_p4 = scmp.ge.s32.totalorder %s14_s15, 4  }
 0x18f   :  { %13 = sbr.rel (!%p11_p4) target bundleno = 1 (0x1), region = 76 }

// kernel: input_conv_forward.29
= control target key start
LH: loop header
LB: loop body
LE: loop exit
PB: predicated region body
PF: predicated region fallthrough
CT: control target
= control target key end

     0   :  { %10 = vsyncpa [#allocation3], 0  ;;  %s1163_s0 = inlined_call_operand.vmem [shape: bf16[2,8,8,256], index: 0, kind: input, shape index: {}]   ;;  %s1164_s1 = inlined_call_operand.vmem [shape: bf16[256,64], index: 1, kind: input, shape index: {}]   ;;  %s1165_s2 = inlined_call_operand.vmem [shape: f32[1,256], index: 2, kind: input, shape index: {}]   ;;  %s1166_s3 = inlined_call_operand.vmem [shape: f32[1,256], index: 3, kind: input, shape index: {}]   ;;  %s1167_s4 = inlined_call_operand.vmem [shape: f32[4,64], index: 4, kind: input, shape index: {}]   ;;  %s1168_s5 = inlined_call_operand.hbm [shape: f32[2,4,64], index: 5, kind: output, shape index: {}]  }
   0x1   :  { %12 = vsyncpa [#allocation3 + $0x1], 0  ;;  %s952_s18 = smov 0   ;;  %s954_s19 = smov 0  }
   0x2   :  { %s956_s20 = smov 0   ;;  %s958_s21 = smov 0  }
   0x3 LB: > { %s973_s22 = sadd.s32 4294967295, %s916_s21   ;;  %s671_s23 = sadd.s32 4294967294, %s916_s21   ;;  %s916_s21 = sphi %s958_s21, %s1174_s21   ;;  %s912_s20 = sphi %s956_s20, %s1173_s20   ;;  %s908_s19 = sphi %s954_s19, %s1172_s19   ;;  %s904_s18 = sphi %s952_s18, %s1171_s18  }
   0x4   : > { %s977_s24 = sadd.s32 1, %s916_s21   ;;  %s135_s25 = sadd.s32 1, %s912_s20 }
   0x5   : > { %s132_s26 = ssub.s32 %s916_s21, %s977_s24  ;;  %p145_p0 = scmp.ne.s32.totalorder %s912_s20, %s908_s19 }
   0x6   : > { %p133_p1 = scmp.eq.s32.totalorder %s132_s26, 0  ;;  %p146_p2 = scmp.eq.s32.totalorder %s973_s22, 1 }
   0x7   : > { %p151_p3 = scmp.ne.s32.totalorder %s908_s19, %s904_s18  ;;  %p152_p4 = scmp.eq.s32.totalorder %s671_s23, 1 }
   0x8   : > { %s988_s27 = scalar_select %p133_p1, %s912_s20, %s135_s25  }
   0x9   : > { %p990_p5 = por %p146_p2, %p145_p0  ;;  %p994_p6 = por %p152_p4, %p151_p3 }
   0xa   : > { %p674_p7 = scmp.ge.s32.totalorder %s916_s21, 1  ;;  %p190_p8 = scmp.lt.s32.totalorder %s916_s21, 3 }
   0xc   : > { %p191_p9 = pnand %p674_p7, %p190_p8 }
   0xd   : > { %v838_v0 = vld [vmem:[%s1164_s1 + $0x40] sm:$0xff] (!%p191_p9)   ;;  %v840_v2 = vld [vmem:[%s1164_s1 + $0x48] sm:$0xff] (!%p191_p9)   ;;  %p218_p10 = scmp.lt.s32.totalorder (!%p191_p9), %s973_s22, 1  ;;  %v842_v4 = vld [vmem:[%s1164_s1 + $0x50] sm:$0xff] (!%p191_p9)   ;;  %v250_v5 = vlaneseq (!%p191_p9)  ;;  %vm919_vm0 = vmmov (!%p191_p9), 0   ;;  %vm522_vm1 = vcmask (!%p191_p9), 523264  }
   0xe   : > { %194 = sbr.rel (%p191_p9) target bundleno = 510 (0x1fe), region = 40  ;;  %v839_v1 = vld [vmem:[%s1164_s1] sm:$0xff] (!%p191_p9)   ;;  %700 = vmatprep.subr.bf16.mxu0 (!%p191_p9), %v838_v0  ;;  %780 = vmatprep.subr.bf16.mxu1 (!%p191_p9), %v838_v0  ;;  %v841_v3 = vld [vmem:[%s1164_s1 + $0x8] sm:$0xff] (!%p191_p9)   ;;  %v843_v6 = vld [vmem:[%s1164_s1 + $0x10] sm:$0xff] (!%p191_p9)   ;;  %s215_s16 = sand.u32 (!%p191_p9), 1, %s908_s19   ;;  %vm596_vm2 = vcmask (!%p191_p9), 519168  }
   0xf   : > { %701 = vmatpush3.bf16.msra.mxu0 (!%p191_p9), %v839_v1  ;;  %788 = vmatpush3.bf16.msra.mxu1 (!%p191_p9), %v839_v1  ;;  %v844_v7 = vld [vmem:[%s1164_s1 + $0x58] sm:$0xff] (!%p191_p9)   ;;  %v251_v8 = vshrl.u32 (!%p191_p9), %v250_v5, 7  ;;  %v846_v10 = vld [vmem:[%s1164_s1 + $0x60] sm:$0xff] (!%p191_p9)   ;;  %v848_v14 = vld [vmem:[%s1164_s1 + $0x68] sm:$0xff] (!%p191_p9)   ;;  %s675_s17 = sshll.u32 (!%p191_p9), %s215_s16, 2  ;;  %s696_s23 = sshll.u32 (!%p191_p9), %s973_s22, 6 }
  0x10   : > { %702 = vmatprep.subr.bf16.mxu0 (!%p191_p9), %v840_v2  ;;  %781 = vmatprep.subr.bf16.mxu1 (!%p191_p9), %v840_v2  ;;  %v845_v9 = vld [vmem:[%s1164_s1 + $0x18] sm:$0xff] (!%p191_p9)   ;;  %v847_v12 = vld [vmem:[%s1164_s1 + $0x20] sm:$0xff] (!%p191_p9)   ;;  %v849_v30 = vld [vmem:[%s1164_s1 + $0x28] sm:$0xff] (!%p191_p9)   ;;  %s217_s25 = scalar_lea.vmem (!%p191_p9), [#allocation2], %s675_s17  ;;  %s1121_s7 = scalar_lea.hbm (!%p191_p9), %s1168_s5, %s696_s23 }
  0x11   : > { %v252_v11 = vsub.s32 (!%p191_p9), 0, %v251_v8  ;;  %v256_v13 = vsub.s32 (!%p191_p9), 1, %v251_v8  ;;  %v248_v17 = vld [vmem:[%s1165_s2] sm:$0x3] (!%p191_p9)  ;;  %v850_v35 = vld [vmem:[%s1164_s1 + $0x70] sm:$0xff] (!%p191_p9)   ;;  %v852_v54 = vld [vmem:[%s1164_s1 + $0x78] sm:$0xff] (!%p191_p9)  }
  0x12   : > { %v276_v22 = vld [vmem:[%s1166_s3] sm:$0x3] (!%p191_p9)  ;;  %v851_v49 = vld [vmem:[%s1164_s1 + $0x30] sm:$0xff] (!%p191_p9)   ;;  %v853_v5 = vld [vmem:[%s1164_s1 + $0x38] sm:$0xff] (!%p191_p9)   ;;  %s599_s8 = scalar_lea.sflag (!%p191_p9), [#allocation3], %s215_s16 }
  0x13   : > { %703 = vmatpush3.bf16.msra.mxu0 (!%p191_p9), %v841_v3  ;;  %789 = vmatpush3.bf16.msra.mxu1 (!%p191_p9), %v841_v3  ;;  %v1050_v25 = vrot.slane (!%p191_p9), %v248_v17, %v252_v11  ;;  %v1052_v26 = vrot.slane (!%p191_p9), %v248_v17, %v256_v13  ;;  %v1054_v27 = vrot.slane (!%p191_p9), %v276_v22, %v252_v11 }
  0x14   : > { %704 = vmatprep.subr.bf16.mxu0 (!%p191_p9), %v842_v4  ;;  %782 = vmatprep.subr.bf16.mxu1 (!%p191_p9), %v842_v4  ;;  %v1056_v28 = vrot.slane (!%p191_p9), %v276_v22, %v256_v13 }
  0x15   : > { %s219_s15 = scalar_select %p218_p10, %s973_s22, 1 }
  0x16   : > { %s921_s22 = smov [#allocation2]  }
  0x17   : > { %s699_s26 = sshll.u32 %s219_s15, 6  ;;  %705 = vmatpush3.bf16.msra.mxu0 %v843_v6  ;;  %790 = vmatpush3.bf16.msra.mxu1 %v843_v6  ;;  %s858_s10 = sshll.u32 %s921_s22, 4  ;;  %s859_s10 = int_to_ptr.vmem [resolvable:$false] %s858_s10 }
  0x18   : > { %706 = vmatprep.subr.bf16.mxu0 %v844_v7  ;;  %783 = vmatprep.subr.bf16.mxu1 %v844_v7  ;;  %s1032_s11 = scalar_lea.vmem %s1163_s0, %s699_s26  ;;  %s612_s26 = sshll.u32 %s217_s25, 4  ;;  %s1123_s26 = int_to_ptr.vmem [resolvable:$true] %s612_s26 }
  0x19   : > { %v224_v15 = vld [vmem:[%s1032_s11] sm:$0xff]  ;;  %v225_v16 = vld [vmem:[%s1032_s11 + $0x8] sm:$0xff]  ;;  %v1059_v29 = vld [vmem:[%s1032_s11 + $0x10] sm:$0xff]  ;;  %s854_s9 = scalar_lea.vmem %s1123_s26, 64  ;;  %s860_s12 = scalar_lea.vmem %s859_s10, 128 }
  0x1a   : > { %v232_v18 = vunpack.c.l.bf16 %v224_v15  ;;  %v233_v19 = vunpack.c.h.bf16 %v224_v15  ;;  %v234_v20 = vunpack.c.l.bf16 %v225_v16  ;;  %v235_v21 = vunpack.c.h.bf16 %v225_v16  ;;  %v228_v23 = vld [vmem:[%s1032_s11 + $0x20] sm:$0xff]  ;;  %v229_v24 = vld [vmem:[%s1032_s11 + $0x28] sm:$0xff]  ;;  %v227_v39 = vld [vmem:[%s1032_s11 + $0x18] sm:$0xff]  ;;  %p855_p11 = scmp.ne.s32.totalorder %s1123_s26, %s854_s9  ;;  %p861_p0 = scmp.lt.s32.totalorder %s1123_s26, %s859_s10 }
  0x1b   : > { %707 = vmatpush3.bf16.msra.mxu0 %v845_v9  ;;  %791 = vmatpush3.bf16.msra.mxu1 %v845_v9  ;;  %v240_v31 = vunpack.c.l.bf16 %v228_v23  ;;  %v241_v32 = vunpack.c.h.bf16 %v228_v23  ;;  %v242_v33 = vunpack.c.l.bf16 %v229_v24  ;;  %v243_v34 = vunpack.c.h.bf16 %v229_v24  ;;  %v230_v63 = vld [vmem:[%s1032_s11 + $0x30] sm:$0xff]  ;;  %v231_v4 = vld [vmem:[%s1032_s11 + $0x38] sm:$0xff]  ;;  %p862_p1 = scmp.lt.s32.totalorder %s860_s12, %s854_s9 }
  0x1c   : > { %708 = vmatprep.subr.bf16.mxu0 %v846_v10  ;;  %784 = vmatprep.subr.bf16.mxu1 %v846_v10  ;;  %v261_v36 = vmul.f32 %v1052_v26, %v233_v19  ;;  %v263_v37 = vmul.f32 %v1052_v26, %v235_v21  ;;  %v260_v38 = vmul.f32 %v1050_v25, %v232_v18  ;;  %v237_v40 = vunpack.c.h.bf16 %v1059_v29  ;;  %p856_p12 = pnand %p855_p11, %p990_p5 }
  0x1d   : > { %v262_v41 = vmul.f32 %v1050_v25, %v234_v20  ;;  %v269_v42 = vmul.f32 %v1052_v26, %v241_v32  ;;  %v271_v43 = vmul.f32 %v1052_v26, %v243_v34  ;;  %v268_v44 = vmul.f32 %v1050_v25, %v240_v31  ;;  %p863_p2 = por %p862_p1, %p861_p0 }
  0x1e   : > { %v289_v45 = vadd.f32 %v1056_v28, %v261_v36  ;;  %v291_v46 = vadd.f32 %v1056_v28, %v263_v37  ;;  %v288_v47 = vadd.f32 %v1054_v27, %v260_v38  ;;  %v270_v48 = vmul.f32 %v1050_v25, %v242_v33  ;;  %p857_p13 = pneg %p856_p12 }
  0x1f   : > { %709 = vmatpush3.bf16.msra.mxu0 %v847_v12  ;;  %792 = vmatpush3.bf16.msra.mxu1 %v847_v12  ;;  %v290_v50 = vadd.f32 %v1054_v27, %v262_v41  ;;  %v297_v51 = vadd.f32 %v1056_v28, %v269_v42  ;;  %v299_v52 = vadd.f32 %v1056_v28, %v271_v43  ;;  %v239_v53 = vunpack.c.h.bf16 %v227_v39 }
  0x20   : > { %710 = vmatprep.subr.bf16.mxu0 %v848_v14  ;;  %785 = vmatprep.subr.bf16.mxu1 %v848_v14  ;;  %v305_v55 = vmax.f32 %v289_v45, 0.0  ;;  %v307_v56 = vmax.f32 %v291_v46, 0.0  ;;  %v304_v57 = vmax.f32 %v288_v47, 0.0  ;;  %v296_v58 = vadd.f32 %v1054_v27, %v268_v44  ;;  %p864_p3 = pnand %p863_p2, %p857_p13 }
  0x21   : > { %v306_v59 = vmax.f32 %v290_v50, 0.0  ;;  %v313_v60 = vmax.f32 %v297_v51, 0.0  ;;  %v315_v61 = vmax.f32 %v299_v52, 0.0  ;;  %v298_v62 = vadd.f32 %v1054_v27, %v270_v48 }
  0x22   : > { %v321_v0 = vpack.c.bf16 %v307_v56, %v305_v55  ;;  %v312_v1 = vmax.f32 %v296_v58, 0.0  ;;  %v265_v2 = vmul.f32 %v1052_v26, %v237_v40  ;;  %v267_v3 = vmul.f32 %v1052_v26, %v239_v53 }
  0x23   : > { %711 = vmatpush3.bf16.msra.mxu0 %v849_v30  ;;  %793 = vmatpush3.bf16.msra.mxu1 %v849_v30  ;;  %v320_v6 = vpack.c.bf16 %v306_v59, %v304_v57  ;;  %v325_v7 = vpack.c.bf16 %v315_v61, %v313_v60  ;;  %v314_v8 = vmax.f32 %v298_v62, 0.0  ;;  %v236_v9 = vunpack.c.l.bf16 %v1059_v29 }
  0x24   : > { %712 = vmatprep.subr.bf16.mxu0 %v850_v35  ;;  %786 = vmatprep.subr.bf16.mxu1 %v850_v35  ;;  %v293_v10 = vadd.f32 %v1056_v28, %v265_v2  ;;  %v295_v11 = vadd.f32 %v1056_v28, %v267_v3  ;;  %v238_v12 = vunpack.c.l.bf16 %v227_v39  ;;  %v245_v13 = vunpack.c.h.bf16 %v230_v63 }
  0x25   : > { %488 = vmatprep.mubr.bf16.mxu0 %v321_v0  ;;  %504 = vmatprep.mubr.bf16.mxu1 %v325_v7  ;;  %v324_v14 = vpack.c.bf16 %v314_v8, %v312_v1  ;;  %v264_v15 = vmul.f32 %v1050_v25, %v236_v9  ;;  %v247_v16 = vunpack.c.h.bf16 %v231_v4  ;;  %v244_v17 = vunpack.c.l.bf16 %v230_v63  ;;  %v521_v8 = vld [vmem:[%s1167_s4] sm:$0xf] }
  0x26   : > { %v309_v18 = vmax.f32 %v293_v10, 0.0  ;;  %v311_v19 = vmax.f32 %v295_v11, 0.0  ;;  %v266_v20 = vmul.f32 %v1050_v25, %v238_v12  ;;  %v273_v21 = vmul.f32 %v1052_v26, %v245_v13 }
  0x27   : > { %713 = vmatpush3.bf16.msra.mxu0 %v851_v49  ;;  %794 = vmatpush3.bf16.msra.mxu1 %v851_v49  ;;  %v292_v22 = vadd.f32 %v1054_v27, %v264_v15  ;;  %v275_v23 = vmul.f32 %v1052_v26, %v247_v16  ;;  %v246_v24 = vunpack.c.l.bf16 %v231_v4  ;;  %v272_v29 = vmul.f32 %v1050_v25, %v244_v17 }
  0x28   : > { %714 = vmatprep.subr.bf16.mxu0 %v852_v54  ;;  %787 = vmatprep.subr.bf16.mxu1 %v852_v54  ;;  %v323_v30 = vpack.c.bf16 %v311_v19, %v309_v18  ;;  %v294_v31 = vadd.f32 %v1054_v27, %v266_v20  ;;  %v301_v32 = vadd.f32 %v1056_v28, %v273_v21 }
  0x29   : > { %v303_v33 = vadd.f32 %v1056_v28, %v275_v23  ;;  %v274_v34 = vmul.f32 %v1050_v25, %v246_v24  ;;  %v300_v35 = vadd.f32 %v1054_v27, %v272_v29  ;;  %v308_v36 = vmax.f32 %v292_v22, 0.0 }
  0x2a   : > { %v310_v37 = vmax.f32 %v294_v31, 0.0  ;;  %v317_v38 = vmax.f32 %v301_v32, 0.0  ;;  %v918_v25 = vmov 0.0|0.0   ;;  %v920_v28 = vmov 0.0  }
  0x2b   : > { %715 = vmatpush3.bf16.msra.mxu0 %v853_v5  ;;  %795 = vmatpush3.bf16.msra.mxu1 %v853_v5  ;;  %v319_v26 = vmax.f32 %v303_v33, 0.0  ;;  %v302_v39 = vadd.f32 %v1054_v27, %v274_v34  ;;  %v316_v40 = vmax.f32 %v300_v35, 0.0 }
  0x2c   : > { %v322_v43 = vpack.c.bf16 %v310_v37, %v308_v36  ;;  %768 = vmatprep.subr.bf16.mxu1 %v918_v25 }
  0x2d   : > { %v327_v41 = vpack.c.bf16 %v319_v26, %v317_v38  ;;  %v318_v42 = vmax.f32 %v302_v39, 0.0 }
  0x2e   : > { %489 = vmatmul.mubr.bf16.vlgmr.msra.gmra.mrb[0].mxu0 %v320_v6  ;;  %505 = vmatmul.mubr.bf16.vlgmr.msra.gmra.mrb[0].mxu1 %v324_v14 }
  0x2f   : > { %496 = vmatprep.mubr.bf16.mxu0 %v323_v30  ;;  %512 = vmatprep.mubr.bf16.mxu1 %v327_v41  ;;  %v326_v44 = vpack.c.bf16 %v318_v42, %v316_v40 }
  0x36   : > { %497 = vmatmul.mubr.bf16.gmra.mrb[4].mxu0 %v322_v43  ;;  %513 = vmatmul.mubr.bf16.gmra.mrb[4].mxu1 %v326_v44 }
  0x37   : > { %765 = vmatprep.mubr.msk.f32.mxu1 %vm919_vm0, %v920_v28 }
 0x101   : > { %v716_v45 = vpop.f32.mrb[0].mxu0  ;;  %v728_v46 = vpop.f32.mrb[0].mxu1 }
 0x102   : > { %v717_v47 = vpop.f32.mrb[1].mxu0  ;;  %v729_v48 = vpop.f32.mrb[1].mxu1 }
 0x103   : > { %v718_v49 = vadd.f32 %v717_v47, %v716_v45  ;;  %v719_v50 = vpop.f32.mrb[2].mxu0  ;;  %v730_v27 = vadd.f32 %v729_v48, %v728_v46  ;;  %v731_v51 = vpop.f32.mrb[2].mxu1 }
 0x104   : > { %v720_v52 = vpop.f32.mrb[3].mxu0  ;;  %v732_v53 = vpop.f32.mrb[3].mxu1 }
 0x105   : > { %v721_v54 = vadd.f32 %v720_v52, %v719_v50  ;;  %v733_v55 = vadd.f32 %v732_v53, %v731_v51 }
 0x107   : > { %v769_v56 = vpack.c.bf16 %v721_v54, %v718_v49  ;;  %v775_v57 = vpack.c.bf16 %v733_v55, %v730_v27 }
 0x109   : > { %v722_v58 = vpop.f32.mrb[4].mxu0  ;;  %770 = vmatpush3.bf16.msra.mxu1 %v769_v56  ;;  %v734_v59 = vpop.f32.mrb[4].mxu1 }
 0x10a   : > { %v723_v60 = vpop.f32.mrb[5].mxu0  ;;  %v735_v61 = vpop.f32.mrb[5].mxu1  ;;  %771 = vmatprep.subr.bf16.mxu1 %v918_v25 }
 0x10b   : > { %v724_v62 = vadd.f32 %v723_v60, %v722_v58  ;;  %v725_v63 = vpop.f32.mrb[6].mxu0  ;;  %v736_v0 = vadd.f32 %v735_v61, %v734_v59  ;;  %v737_v1 = vpop.f32.mrb[6].mxu1 }
 0x10c   : > { %v726_v2 = vpop.f32.mrb[7].mxu0  ;;  %v738_v3 = vpop.f32.mrb[7].mxu1 }
 0x10d   : > { %v727_v4 = vadd.f32 %v726_v2, %v725_v63  ;;  %v739_v5 = vadd.f32 %v738_v3, %v737_v1 }
 0x10f   : > { %v772_v6 = vpack.c.bf16 %v727_v4, %v724_v62  ;;  %v778_v7 = vpack.c.bf16 %v739_v5, %v736_v0 }
 0x111   : > { %773 = vmatpush3.bf16.msra.mxu1 %v772_v6 }
 0x112   : > { %774 = vmatprep.subr.bf16.mxu1 %v918_v25 }
 0x115   : > { %776 = vmatpush3.bf16.msra.mxu1 %v775_v57 }
 0x116   : > { %777 = vmatprep.subr.bf16.mxu1 %v918_v25 }
 0x119   : > { %779 = vmatpush3.bf16.msra.mxu1 %v778_v7 }
 0x11c   : > { %766 = vmatmul.mubr.msk.f32.vlgmr.msra.gmra.mrb[8].mxu1 %vm522_vm1, %v521_v8 }
 0x1ef   : > { %v592_v9 = vpop.f32.mrb[8].mxu1 }
 0x1f0   : > { %597 = vst.msk [vmem:[%s217_s25] sm:$0xf] %vm596_vm2, %v592_v9  ;;  %v767_v10 = vpop.f32.mrb[9].mxu1 }
 0x1f1   : > { %867 = shalt.err (!%p864_p3)
}
 0x1f2   : > { %s868_s13 = scalar_lea.hbm %s1121_s7, 64  ;;  %s872_s15 = scalar_lea.hbm %s1168_s5, 128 }
 0x1f3   : > { %p869_p4 = scmp.ne.s32.totalorder %s1121_s7, %s868_s13  ;;  %p873_p9 = scmp.lt.u32.totalorder %s1121_s7, %s1168_s5 }
 0x1f4   : > { %p874_p10 = scmp.lt.u32.totalorder %s872_s15, %s868_s13  ;;  %p876_p12 = scmp.lt.u32.totalorder %s868_s13, %s1121_s7 }
 0x1f5   : > { %p870_p7 = pnand %p869_p4, %p990_p5 }
 0x1f6   : > { %p875_p11 = por %p874_p10, %p873_p9 }
 0x1f7   : > { %p871_p8 = pneg %p870_p7 }
 0x1f8   : > { %p877_p13 = por %p876_p12, %p875_p11 }
 0x1fa   : > { %p878_p0 = pnand %p877_p13, %p871_p8 }
 0x1fc   : > { %881 = shalt.err (!%p878_p0)
}
 0x1fd   : > { %796 = dma.vmem_to_hbm [thread:$0]  (%p990_p5), %s1123_s26, 64, %s1121_s7, %s599_s8  }
 0x1fe PF: > { %p802_p1 = scmp.ge.s32.totalorder %s916_s21, 2  ;;  %s624_s23 = sand.u32 1, %s904_s18  }
 0x1ff   : > { %s625_s25 = scalar_lea.sflag [#allocation3], %s624_s23 }
 0x200   : > { %p799_p2 = pnand %p802_p1, %p994_p6 }
 0x202   : > { %899 = dma.done.wait (!%p799_p2), %s625_s25, 64  }
 0x203   : > { %901 = vsyncadd (!%p799_p2), %s625_s25, 4294967232  ;;  %p15_p3 = scmp.ge.s32.totalorder %s977_s24, 4   ;;  %s1171_s18 = smov %s908_s19 }
 0x204   : > { %s1172_s19 = smov %s912_s20  ;;  %s1173_s20 = smov %s988_s27 }
 0x205   : > { %s1174_s21 = smov %s977_s24  ;;  %17 = sbr.rel (!%p15_p3) target bundleno = 3 (0x3), region = 75 }
 0x20c   :  { %630 = vsyncpa [#allocation3], 1 }
 0x20d   :  { %632 = vsyncpa [#allocation3 + $0x1], 1 }

</bundles_post_ra>
